<compile_context>
chip_gen: v7x
topology: tpu7x:2x2x1
jax: 0.10.0
libtpu: 0.0.40
codegen_flags: <defaults>
</compile_context>

<pallas_src>
import functools
import math

import jax
import jax.numpy as jnp
from jax.experimental import pallas as pl
from jax.experimental.pallas import tpu as pltpu

# ---------------- synthetic hparams (small but structurally faithful) ----------------
HPARAMS = dict(
    num_spk=4,
    post_glow_hidden=64,
    post_glow_kernel_size=3,
    post_glow_n_blocks=2,
    post_glow_n_block_layers=2,
    post_share_cond_layers=False,
    share_wn_layers=0,
    sigmoid_scale=False,
)
MEL = 80
N_SQZ = 2
N_SPLIT = 4
LANE = 128   # TPU lane width; squeezed time axis is padded to a multiple of this.


# ============================ single fused Pallas kernel (all Glow blocks) ============================

def _glow_fused_kernel(x_ref, g_ref, m_ref, gb_ref,
                       an_s_ref, an_b_ref, invl_ref, invr_ref,
                       st_w_ref, st_b_ref, cd_w_ref,
                       in_w_ref, rs_w_ref, rs_b_ref,
                       en_w_ref, en_b_ref,
                       z_ref, ld_ref,
                       *, hidden, n_layers, n_blocks, half):
    """Every Glow block (ActNorm -> InvConvNear -> CouplingBlock), fused, per batch element."""
    f32, bf16 = jnp.float32, jnp.bfloat16
    x = x_ref[0]                        # (C, Tt)  f32  flow state
    top, bot = x[:half], x[half:]       # kept split -> no sublane concat between blocks
    gm = g_ref[0]                       # (Gm, Tt) bf16 mel-derived conditioning (spk folded into gb)
    mask = m_ref[0]                     # (1, Tt)  f32
    Tt = mask.shape[-1]
    zcol = jnp.zeros((hidden, 1), bf16)  # zero column = the K=3 conv's zero padding

    ld_total = jnp.zeros((1, 1), f32)

    for blk in range(n_blocks):         # static unroll: state stays VMEM-resident across blocks
        # ---------------- ActNorm:  (bias + exp(logs) * x) * mask ----------------
        an_s = an_s_ref[blk]
        an_b = an_b_ref[blk]
        top = (an_b[:half] + an_s[:half] * top) * mask
        bot = (an_b[half:] + an_s[half:] * bot) * mask

        # ---- InvConvNear: channel perm + 4x4 mix folded into a dense CxC matrix, applied
        #      as two K=half MXU matmuls (no concat).  Operand is already masked and the op
        #      is linear & bias-free, so no extra *mask is needed. ----
        x = (jnp.dot(invl_ref[blk], top.astype(bf16), preferred_element_type=f32)
             + jnp.dot(invr_ref[blk], bot.astype(bf16), preferred_element_type=f32))
        x0 = x[:half]
        x1 = x[half:]

        # ---------------- CouplingBlock ----------------
        h = (jnp.dot(st_w_ref[blk], x0.astype(bf16), preferred_element_type=f32)
             + st_b_ref[blk]) * mask
        # WN conditioning: mel-only bf16 matmul; speaker, cond_b and in_b are folded into gb
        gc = (jnp.dot(cd_w_ref[blk], gm, preferred_element_type=f32)
              + gb_ref[0, blk])

        skip = None
        for l in range(n_layers):        # static unroll (n_layers is tiny)
            # K=3 dilation-1 conv: zero-padded shifted taps stacked into ONE K=3*hidden matmul
            hb = h.astype(bf16)
            h_prev = jnp.concatenate([zcol, hb[:, :Tt - 1]], axis=1)   # h[t-1], 0 at t=0
            h_next = jnp.concatenate([hb[:, 1:], zcol], axis=1)        # h[t+1], 0 at t=Tt-1
            h3 = jnp.concatenate([h_prev, hb, h_next], axis=0)         # (3H, Tt) bf16
            s = (jnp.dot(in_w_ref[blk, l], h3, preferred_element_type=f32)
                 + gc[l * 2 * hidden:(l + 1) * 2 * hidden])
            acts = jnp.tanh(s[:hidden]) * jax.nn.sigmoid(s[hidden:])   # fused gate (f32)
            rs = (jnp.dot(rs_w_ref[blk, l], acts.astype(bf16), preferred_element_type=f32)
                  + rs_b_ref[blk, l])
            if l < n_layers - 1:
                h = (h + rs[:hidden]) * mask
            skip = rs[hidden:] if skip is None else skip + rs[hidden:]
        skip = skip * mask

        # end 1x1 conv + affine coupling (sigmoid_scale=False)
        out = (jnp.dot(en_w_ref[blk], skip.astype(bf16), preferred_element_type=f32)
               + en_b_ref[blk])
        m_c = out[:half]
        logs = out[half:]
        z1 = (m_c + jnp.exp(logs) * x1) * mask
        ld_total = ld_total + jnp.sum(jnp.sum(logs * mask, axis=1, keepdims=True),
                                      axis=0, keepdims=True)
        top, bot = x0, z1                # z = [x0, z1] is the next block's input

    # two direct sublane-aligned stores (half=80 is a multiple of 8) -- no final concat
    z_ref[0, :half] = top
    z_ref[0, half:] = bot
    ld_ref[0] = jnp.broadcast_to(ld_total, (1, LANE))


def _full_spec(arr):
    nd = arr.ndim
    return pl.BlockSpec(arr.shape, lambda b, _nd=nd: (0,) * _nd)


def glow_blocks_fused(x, g_mel, x_mask, gb, packed):
    """Single pallas_call running every Glow block.  grid=(B,) marked parallel."""
    B, C, Tt = x.shape
    Gm = g_mel.shape[1]
    nb = HPARAMS['post_glow_n_blocks']
    hidden = HPARAMS['post_glow_hidden']
    n_layers = HPARAMS['post_glow_n_block_layers']
    kernel = functools.partial(_glow_fused_kernel, hidden=hidden, n_layers=n_layers,
                               n_blocks=nb, half=C // 2)
    weights = (packed['an_scale'], packed['an_bias'], packed['inv_l'], packed['inv_r'],
               packed['start_w'], packed['start_b'], packed['cond_w_mel'],
               packed['in_w'], packed['rs_w'], packed['rs_b'],
               packed['end_w'], packed['end_b'])
    # ~24 KB/lane of live activations + double-buffered I/O, plus weights & slack.
    vmem_bytes = int(min(100 * 1024 * 1024,
                         max(16 * 1024 * 1024, 4 * 1024 * 1024 + Tt * 24 * 1024)))
    z, ld = pl.pallas_call(
        kernel,
        out_shape=(jax.ShapeDtypeStruct((B, C, Tt), jnp.float32),
                   jax.ShapeDtypeStruct((B, 1, LANE), jnp.float32)),
        grid=(B,),
        in_specs=[pl.BlockSpec((1, C, Tt), lambda b: (b, 0, 0)),
                  pl.BlockSpec((1, Gm, Tt), lambda b: (b, 0, 0)),
                  pl.BlockSpec((1, 1, Tt), lambda b: (b, 0, 0)),
                  pl.BlockSpec((1,) + gb.shape[1:], lambda b: (b, 0, 0, 0))]
                 + [_full_spec(w) for w in weights],
        out_specs=(pl.BlockSpec((1, C, Tt), lambda b: (b, 0, 0)),
                   pl.BlockSpec((1, 1, LANE), lambda b: (b, 0, 0))),
        compiler_params=pltpu.CompilerParams(
            dimension_semantics=("parallel",),
            vmem_limit_bytes=vmem_bytes),
    )(x, g_mel, x_mask, gb, *weights)
    return z, ld[:, 0, 0]


# ============================== Glow glue (plain JAX) ==============================

def squeeze(x, x_mask, n_sqz):
    b, c, t = x.shape
    t = (t // n_sqz) * n_sqz
    x = x[:, :, :t]
    x_sqz = x.reshape(b, c, t // n_sqz, n_sqz)
    x_sqz = jnp.transpose(x_sqz, (0, 3, 1, 2)).reshape(b, c * n_sqz, t // n_sqz)
    x_mask = x_mask[:, :, n_sqz - 1::n_sqz]
    return x_sqz * x_mask, x_mask


def unsqueeze(x, x_mask, n_sqz):
    b, c, t = x.shape
    x_unsqz = x.reshape(b, n_sqz, c // n_sqz, t)
    x_unsqz = jnp.transpose(x_unsqz, (0, 2, 3, 1)).reshape(b, c // n_sqz, t * n_sqz)
    x_mask = jnp.repeat(x_mask[:, :, :, None], n_sqz, axis=3).reshape(b, 1, t * n_sqz)
    return x_unsqz * x_mask, x_mask


def build_invconv_matrix(w4, C, n_split=N_SPLIT, n_sqz=N_SQZ):
    """Fold InvConvNear's channel permutation + n_split x n_split mix into one dense (C,C)."""
    c = jnp.arange(C)
    a = c // (C // n_sqz)
    r = c % (C // n_sqz)
    ch = r // (n_split // n_sqz)
    d = r % (n_split // n_sqz)
    s = a * (n_split // n_sqz) + d
    same_ch = (ch[:, None] == ch[None, :]).astype(w4.dtype)
    return w4[s[:, None], s[None, :]] * same_ch


def pack_glow_params(flows):
    """Stack per-block params into kernel-ready arrays: bf16 matmul weights, fused K=3 taps,
    mel-only cond columns, folded+split InvConv matrices, in_b folded into the cond bias."""
    bf16 = jnp.bfloat16
    hid = HPARAMS['post_glow_hidden']
    L = HPARAMS['post_glow_n_block_layers']
    nb = len(flows)
    C = MEL * N_SQZ
    half = C // 2

    an_logs = jnp.stack([f['an_logs'] for f in flows])                        # (nb,C,1)
    inv_mats = jnp.stack([build_invconv_matrix(f['inv_weight'], C) for f in flows])
    cond_w = jnp.stack([f['cond_w'] for f in flows])                          # (nb,2HL,320)
    in_w = jnp.stack([f['in_w'] for f in flows])                              # (nb,L,K,2H,H)
    in_b = jnp.stack([f['in_b'] for f in flows])                              # (nb,L,2H,1)

    return dict(
        an_scale=jnp.exp(an_logs),
        an_bias=jnp.stack([f['an_bias'] for f in flows]),
        an_logs_sum=jnp.sum(an_logs),
        inv_logdet_sum=jnp.sum(jnp.stack([f['inv_logdet_w'] for f in flows])),
        inv_l=inv_mats[:, :, :half].astype(bf16),
        inv_r=inv_mats[:, :, half:].astype(bf16),
        start_w=jnp.stack([f['start_w'] for f in flows]).astype(bf16),
        start_b=jnp.stack([f['start_b'] for f in flows]),
        # squeezed-g channel layout: [0:80] mel(even t) | [80:160] spk | [160:240] mel(odd t) | [240:320] spk
        cond_w_mel=jnp.concatenate([cond_w[:, :, :MEL], cond_w[:, :, 2 * MEL:3 * MEL]],
                                   axis=2).astype(bf16),                      # (nb,2HL,160)
        cond_w_spk=cond_w[:, :, MEL:2 * MEL] + cond_w[:, :, 3 * MEL:],        # both spk halves see the same vec
        cond_bias_base=(jnp.stack([f['cond_b'] for f in flows])
                        + in_b.reshape(nb, L * 2 * hid, 1)),                  # cond_b + folded in_b
        in_w=jnp.concatenate([in_w[:, :, 0], in_w[:, :, 1], in_w[:, :, 2]],
                             axis=-1).astype(bf16),                           # (nb,L,2H,3H) taps [t-1,t,t+1]
        rs_w=jnp.stack([f['rs_w'] for f in flows]).astype(bf16),
        rs_b=jnp.stack([f['rs_b'] for f in flows]),
        end_w=jnp.stack([f['end_w'] for f in flows]).astype(bf16),
        end_b=jnp.stack([f['end_b'] for f in flows]),
    )


def glow_forward(packed, x, x_mask, g_mel, spk_vec):
    x, x_mask_s = squeeze(x, x_mask, N_SQZ)
    g_mel_s, _ = squeeze(g_mel, x_mask, N_SQZ)            # [B,160,Tt] (masked)
    x_mask = x_mask_s
    B, C, _ = x.shape
    x_len = jnp.sum(x_mask, axis=(1, 2))                  # [B]
    # ActNorm / InvConvNear logdets only need x_len -> tiny JAX-side scalar math.
    logdet_tot = (packed['an_logs_sum'] + packed['inv_logdet_sum'] * (C // N_SPLIT)) * x_len
    # Per-batch conditioning bias: cond_b + folded in_b + time-constant speaker contribution.
    spk_bias = jnp.einsum('nkg,bg->bnk', packed['cond_w_spk'], spk_vec)[..., None]
    gb = packed['cond_bias_base'][None] + spk_bias         # (B, nb, 2HL, 1)
    # One fused kernel for all blocks; g shipped as bf16 (only consumed by a bf16 matmul).
    z, ld_c = glow_blocks_fused(x, g_mel_s.astype(jnp.bfloat16), x_mask, gb, packed)
    logdet_tot = logdet_tot + ld_c
    z, x_mask = unsqueeze(z, x_mask, N_SQZ)
    return z, logdet_tot


# ============================== FlowPostnet forward (infer=False) ==============================

def flow_postnet_forward(params, tgt_mels, mel_out, x_mask_bt1, spk_ids):
    B, T, _ = tgt_mels.shape

    x_recon = jnp.transpose(mel_out, (0, 2, 1))            # [B,80,T]
    g_mel = jax.lax.stop_gradient(x_recon)                 # .detach()
    spk_vec = params['spk_emb'][spk_ids]                   # [B,80]; time-constant -> folded into bias

    x_mask = jnp.transpose(x_mask_bt1, (0, 2, 1))          # [B,1,T]
    y_lengths = jnp.sum(x_mask, axis=-1)                   # [B,1]
    tgt = jnp.transpose(tgt_mels, (0, 2, 1))               # [B,80,T]

    # Pad T so the squeezed time axis is a whole number of 128-lane tiles (lane-dense stores,
    # full MXU N).  Padded frames carry mask=0, so valid outputs are unchanged.  (Even T assumed,
    # matching the n_sqz=2 squeeze of the reference.)
    T_trunc = (T // N_SQZ) * N_SQZ
    T_pad = max(-(-T // (N_SQZ * LANE)), 1) * (N_SQZ * LANE)
    pad = ((0, 0), (0, 0), (0, T_pad - T))

    packed = pack_glow_params(params['flows'])
    z_pf, ldj = glow_forward(packed, jnp.pad(tgt, pad), jnp.pad(x_mask, pad),
                             jnp.pad(g_mel, pad), spk_vec)
    z_pf = z_pf[:, :, :T_trunc]

    # torch broadcasting: [B] / [B,1] -> [B,B] (reproduced on purpose; per-example ldj is the diagonal)
    ldj = ldj / y_lengths / 80.0
    log_prob = -0.5 * z_pf ** 2 - 0.5 * math.log(2.0 * math.pi)   # Normal(0,1).log_prob
    postflow = -jnp.mean(log_prob) - jnp.mean(ldj)
    return dict(z_pf=z_pf, ldj_pf=ldj, postflow=postflow)


# ============================== deterministic parameter init ==============================

def init_params(key):
    hid = HPARAMS['post_glow_hidden']
    K = HPARAMS['post_glow_kernel_size']
    n_blocks = HPARAMS['post_glow_n_blocks']
    L = HPARAMS['post_glow_n_block_layers']
    C = MEL * N_SQZ              # 160 flow channels after squeeze
    G = 2 * MEL * N_SQZ          # 320 conditioning channels after squeeze
    half = C // 2

    keys = iter(jax.random.split(key, 512))

    def nrm(shape, scale=0.1):
        return scale * jax.random.normal(next(keys), shape, jnp.float32)

    spk_emb = jax.random.normal(next(keys), (HPARAMS['num_spk'], MEL), jnp.float32) * (MEL ** -0.5)

    flows = []
    for _ in range(n_blocks):
        # ActNorm (torch init is zeros; small random so the affine math is exercised)
        an_logs = nrm((C, 1), 0.05)
        an_bias = nrm((C, 1), 0.05)
        # InvConvNear: orthonormal 4x4 with det > 0 (matches the QR init)
        w = jax.random.normal(next(keys), (N_SPLIT, N_SPLIT), jnp.float32)
        q, _ = jnp.linalg.qr(w)
        q = jnp.where(jnp.linalg.det(q) < 0, q.at[:, 0].multiply(-1.0), q)
        inv_logdet_w = jnp.linalg.slogdet(q)[1]
        # CouplingBlock (weight_norm folded into plain weights; torch zero-inits `end`,
        # small random used so the exp(logs) path is exercised).  All stored f32; the
        # packing step casts matmul weights to bf16.
        in_w = jnp.stack([jnp.transpose(nrm((2 * hid, hid, K)), (2, 0, 1))
                          for _ in range(L)])                        # (L, K, 2H, H)
        in_b = jnp.stack([nrm((2 * hid, 1)) for _ in range(L)])      # (L, 2H, 1)
        rs_w, rs_b = [], []
        for i in range(L):
            if i < L - 1:                      # rows :H residual, rows H: skip
                rs_w.append(nrm((2 * hid, hid)))
                rs_b.append(nrm((2 * hid, 1)))
            else:                              # last layer is skip-only
                rs_w.append(jnp.concatenate([jnp.zeros((hid, hid), jnp.float32),
                                             nrm((hid, hid))], axis=0))
                rs_b.append(jnp.concatenate([jnp.zeros((hid, 1), jnp.float32),
                                             nrm((hid, 1))], axis=0))
        flows.append(dict(
            an_logs=an_logs, an_bias=an_bias,
            inv_weight=q, inv_logdet_w=inv_logdet_w,
            start_w=nrm((hid, half)), start_b=nrm((hid, 1)),
            cond_w=nrm((2 * hid * L, G)), cond_b=nrm((2 * hid * L, 1)),
            in_w=in_w, in_b=in_b,
            rs_w=jnp.stack(rs_w), rs_b=jnp.stack(rs_b),
            end_w=nrm((C, hid), 0.02), end_b=nrm((C, 1), 0.02),
        ))
    return dict(spk_emb=spk_emb, flows=flows)


# ============================== demo ==============================

if __name__ == "__main__":
    key = jax.random.PRNGKey(0)
    kp, k1, k2 = jax.random.split(key, 3)
    params = init_params(kp)

    B, T = 2, 16
    tgt_mels = jax.random.normal(k1, (B, T, MEL), jnp.float32)      # ground-truth mels [B,T,80]
    mel_out = jax.random.normal(k2, (B, T, MEL), jnp.float32)       # ret['mel_out']    [B,T,80]
    lengths = jnp.array([16, 12], jnp.int32)
    x_mask = (jnp.arange(T)[None, :] < lengths[:, None]).astype(jnp.float32)[:, :, None]  # [B,T,1]
    spk_ids = jnp.array([1, 3], jnp.int32)

    fwd = jax.jit(lambda a, b, c, d: flow_postnet_forward(params, a, b, c, d))
    out = jax.block_until_ready(fwd(tgt_mels, mel_out, x_mask, spk_ids))

    assert out['z_pf'].shape == (B, MEL, T)
    assert out['ldj_pf'].shape == (B, B)        # reproduces torch [B]/[B,1] broadcast
    assert bool(jnp.isfinite(out['postflow']))
    print("KERNEL_OK")
</pallas_src>

<mosaic_0001>
module attributes {stable_mosaic.version = 11 : i64} {
  func.func @_glow_fused_kernel(%arg0: i32, %arg1: memref<1x160x128xf32, #tpu.memory_space<vmem>>, %arg2: memref<1x160x128xbf16, #tpu.memory_space<vmem>>, %arg3: memref<1x1x128xf32, #tpu.memory_space<vmem>>, %arg4: memref<1x2x256x1xf32, #tpu.memory_space<vmem>>, %arg5: memref<2x160x1xf32, #tpu.memory_space<vmem>>, %arg6: memref<2x160x1xf32, #tpu.memory_space<vmem>>, %arg7: memref<2x160x80xbf16, #tpu.memory_space<vmem>>, %arg8: memref<2x160x80xbf16, #tpu.memory_space<vmem>>, %arg9: memref<2x64x80xbf16, #tpu.memory_space<vmem>>, %arg10: memref<2x64x1xf32, #tpu.memory_space<vmem>>, %arg11: memref<2x256x160xbf16, #tpu.memory_space<vmem>>, %arg12: memref<2x2x128x192xbf16, #tpu.memory_space<vmem>>, %arg13: memref<2x2x128x64xbf16, #tpu.memory_space<vmem>>, %arg14: memref<2x2x128x1xf32, #tpu.memory_space<vmem>>, %arg15: memref<2x160x64xbf16, #tpu.memory_space<vmem>>, %arg16: memref<2x160x1xf32, #tpu.memory_space<vmem>>, %arg17: memref<1x160x128xf32, #tpu.memory_space<vmem>>, %arg18: memref<1x1x128xf32, #tpu.memory_space<vmem>>) attributes {dimension_semantics = [#tpu.dimension_semantics<parallel>], iteration_bounds = array<i64: 2>, scalar_prefetch = 0 : i64, scratch_operands = 0 : i64, tpu.core_type = #tpu.core_type<tc>, window_params = [{transform_indices = @transform_0, window_bounds = array<i64: 1, 160, 128>}, {transform_indices = @transform_1, window_bounds = array<i64: 1, 160, 128>}, {transform_indices = @transform_2, window_bounds = array<i64: 1, 1, 128>}, {transform_indices = @transform_3, window_bounds = array<i64: 1, 2, 256, 1>}, {pipeline_mode = #tpu.pipeline_mode<synchronous>, transform_indices = @transform_4, window_bounds = array<i64: 2, 160, 1>}, {pipeline_mode = #tpu.pipeline_mode<synchronous>, transform_indices = @transform_5, window_bounds = array<i64: 2, 160, 1>}, {pipeline_mode = #tpu.pipeline_mode<synchronous>, transform_indices = @transform_6, window_bounds = array<i64: 2, 160, 80>}, {pipeline_mode = #tpu.pipeline_mode<synchronous>, transform_indices = @transform_7, window_bounds = array<i64: 2, 160, 80>}, {pipeline_mode = #tpu.pipeline_mode<synchronous>, transform_indices = @transform_8, window_bounds = array<i64: 2, 64, 80>}, {pipeline_mode = #tpu.pipeline_mode<synchronous>, transform_indices = @transform_9, window_bounds = array<i64: 2, 64, 1>}, {pipeline_mode = #tpu.pipeline_mode<synchronous>, transform_indices = @transform_10, window_bounds = array<i64: 2, 256, 160>}, {pipeline_mode = #tpu.pipeline_mode<synchronous>, transform_indices = @transform_11, window_bounds = array<i64: 2, 2, 128, 192>}, {pipeline_mode = #tpu.pipeline_mode<synchronous>, transform_indices = @transform_12, window_bounds = array<i64: 2, 2, 128, 64>}, {pipeline_mode = #tpu.pipeline_mode<synchronous>, transform_indices = @transform_13, window_bounds = array<i64: 2, 2, 128, 1>}, {pipeline_mode = #tpu.pipeline_mode<synchronous>, transform_indices = @transform_14, window_bounds = array<i64: 2, 160, 64>}, {pipeline_mode = #tpu.pipeline_mode<synchronous>, transform_indices = @transform_15, window_bounds = array<i64: 2, 160, 1>}, {transform_indices = @transform_16, window_bounds = array<i64: 1, 160, 128>}, {transform_indices = @transform_17, window_bounds = array<i64: 1, 1, 128>}]} {
    %c0 = arith.constant 0 : index
    %c0_0 = arith.constant 0 : index
    %c0_1 = arith.constant 0 : index
    %0 = vector.load %arg1[%c0, %c0_0, %c0_1] : memref<1x160x128xf32, #tpu.memory_space<vmem>>, vector<1x160x128xf32>
    %1 = vector.shape_cast %0 : vector<1x160x128xf32> to vector<160x128xf32>
    %2 = vector.extract_strided_slice %1 {offsets = [0, 0], sizes = [80, 128], strides = [1, 1]} : vector<160x128xf32> to vector<80x128xf32>
    %3 = vector.extract_strided_slice %1 {offsets = [80, 0], sizes = [80, 128], strides = [1, 1]} : vector<160x128xf32> to vector<80x128xf32>
    %c0_2 = arith.constant 0 : index
    %c0_3 = arith.constant 0 : index
    %c0_4 = arith.constant 0 : index
    %4 = vector.load %arg2[%c0_2, %c0_3, %c0_4] : memref<1x160x128xbf16, #tpu.memory_space<vmem>>, vector<1x160x128xbf16>
    %5 = vector.shape_cast %4 : vector<1x160x128xbf16> to vector<160x128xbf16>
    %c0_5 = arith.constant 0 : index
    %c0_6 = arith.constant 0 : index
    %c0_7 = arith.constant 0 : index
    %6 = vector.load %arg3[%c0_5, %c0_6, %c0_7] : memref<1x1x128xf32, #tpu.memory_space<vmem>>, vector<1x1x128xf32>
    %7 = vector.shape_cast %6 : vector<1x1x128xf32> to vector<1x128xf32>
    %cst = arith.constant 0.000000e+00 : bf16
    %8 = vector.broadcast %cst : bf16 to vector<64x1xbf16>
    %cst_8 = arith.constant 0.000000e+00 : f32
    %9 = vector.broadcast %cst_8 : f32 to vector<1x1xf32>
    %c0_9 = arith.constant 0 : index
    %c0_10 = arith.constant 0 : index
    %c0_11 = arith.constant 0 : index
    %10 = vector.load %arg5[%c0_9, %c0_10, %c0_11] : memref<2x160x1xf32, #tpu.memory_space<vmem>>, vector<1x160x1xf32>
    %11 = vector.shape_cast %10 : vector<1x160x1xf32> to vector<160x1xf32>
    %c0_12 = arith.constant 0 : index
    %c0_13 = arith.constant 0 : index
    %c0_14 = arith.constant 0 : index
    %12 = vector.load %arg6[%c0_12, %c0_13, %c0_14] : memref<2x160x1xf32, #tpu.memory_space<vmem>>, vector<1x160x1xf32>
    %13 = vector.shape_cast %12 : vector<1x160x1xf32> to vector<160x1xf32>
    %14 = vector.extract_strided_slice %13 {offsets = [0, 0], sizes = [80, 1], strides = [1, 1]} : vector<160x1xf32> to vector<80x1xf32>
    %15 = vector.extract_strided_slice %11 {offsets = [0, 0], sizes = [80, 1], strides = [1, 1]} : vector<160x1xf32> to vector<80x1xf32>
    %16 = vector.broadcast %15 : vector<80x1xf32> to vector<80x128xf32>
    %17 = arith.mulf %16, %2 : vector<80x128xf32>
    %18 = vector.broadcast %14 : vector<80x1xf32> to vector<80x128xf32>
    %19 = arith.addf %18, %17 : vector<80x128xf32>
    %20 = vector.broadcast %7 : vector<1x128xf32> to vector<80x128xf32>
    %21 = arith.mulf %19, %20 : vector<80x128xf32>
    %22 = vector.extract_strided_slice %13 {offsets = [80, 0], sizes = [80, 1], strides = [1, 1]} : vector<160x1xf32> to vector<80x1xf32>
    %23 = vector.extract_strided_slice %11 {offsets = [80, 0], sizes = [80, 1], strides = [1, 1]} : vector<160x1xf32> to vector<80x1xf32>
    %24 = vector.broadcast %23 : vector<80x1xf32> to vector<80x128xf32>
    %25 = arith.mulf %24, %3 : vector<80x128xf32>
    %26 = vector.broadcast %22 : vector<80x1xf32> to vector<80x128xf32>
    %27 = arith.addf %26, %25 : vector<80x128xf32>
    %28 = vector.broadcast %7 : vector<1x128xf32> to vector<80x128xf32>
    %29 = arith.mulf %27, %28 : vector<80x128xf32>
    %c0_15 = arith.constant 0 : index
    %c0_16 = arith.constant 0 : index
    %c0_17 = arith.constant 0 : index
    %30 = vector.load %arg7[%c0_15, %c0_16, %c0_17] : memref<2x160x80xbf16, #tpu.memory_space<vmem>>, vector<1x160x80xbf16>
    %31 = vector.shape_cast %30 : vector<1x160x80xbf16> to vector<160x80xbf16>
    %32 = arith.truncf %21 : vector<80x128xf32> to vector<80x128xbf16>
    %cst_18 = arith.constant dense<0.000000e+00> : vector<160x128xf32>
    %33 = tpu.matmul %31, %32, %cst_18 {dimension_numbers = #tpu.dot_dimension_numbers<[1], [0], [0], [1], [0, 0, 1, 1], [], []>} : vector<160x80xbf16>, vector<80x128xbf16>, vector<160x128xf32> -> vector<160x128xf32>
    %c0_19 = arith.constant 0 : index
    %c0_20 = arith.constant 0 : index
    %c0_21 = arith.constant 0 : index
    %34 = vector.load %arg8[%c0_19, %c0_20, %c0_21] : memref<2x160x80xbf16, #tpu.memory_space<vmem>>, vector<1x160x80xbf16>
    %35 = vector.shape_cast %34 : vector<1x160x80xbf16> to vector<160x80xbf16>
    %36 = arith.truncf %29 : vector<80x128xf32> to vector<80x128xbf16>
    %cst_22 = arith.constant dense<0.000000e+00> : vector<160x128xf32>
    %37 = tpu.matmul %35, %36, %cst_22 {dimension_numbers = #tpu.dot_dimension_numbers<[1], [0], [0], [1], [0, 0, 1, 1], [], []>} : vector<160x80xbf16>, vector<80x128xbf16>, vector<160x128xf32> -> vector<160x128xf32>
    %38 = arith.addf %33, %37 : vector<160x128xf32>
    %39 = vector.extract_strided_slice %38 {offsets = [0, 0], sizes = [80, 128], strides = [1, 1]} : vector<160x128xf32> to vector<80x128xf32>
    %40 = vector.extract_strided_slice %38 {offsets = [80, 0], sizes = [80, 128], strides = [1, 1]} : vector<160x128xf32> to vector<80x128xf32>
    %c0_23 = arith.constant 0 : index
    %c0_24 = arith.constant 0 : index
    %c0_25 = arith.constant 0 : index
    %41 = vector.load %arg9[%c0_23, %c0_24, %c0_25] : memref<2x64x80xbf16, #tpu.memory_space<vmem>>, vector<1x64x80xbf16>
    %42 = vector.shape_cast %41 : vector<1x64x80xbf16> to vector<64x80xbf16>
    %43 = arith.truncf %39 : vector<80x128xf32> to vector<80x128xbf16>
    %cst_26 = arith.constant dense<0.000000e+00> : vector<64x128xf32>
    %44 = tpu.matmul %42, %43, %cst_26 {dimension_numbers = #tpu.dot_dimension_numbers<[1], [0], [0], [1], [0, 0, 1, 1], [], []>} : vector<64x80xbf16>, vector<80x128xbf16>, vector<64x128xf32> -> vector<64x128xf32>
    %c0_27 = arith.constant 0 : index
    %c0_28 = arith.constant 0 : index
    %c0_29 = arith.constant 0 : index
    %45 = vector.load %arg10[%c0_27, %c0_28, %c0_29] : memref<2x64x1xf32, #tpu.memory_space<vmem>>, vector<1x64x1xf32>
    %46 = vector.shape_cast %45 : vector<1x64x1xf32> to vector<64x1xf32>
    %47 = vector.broadcast %46 : vector<64x1xf32> to vector<64x128xf32>
    %48 = arith.addf %44, %47 : vector<64x128xf32>
    %49 = vector.broadcast %7 : vector<1x128xf32> to vector<64x128xf32>
    %50 = arith.mulf %48, %49 : vector<64x128xf32>
    %c0_30 = arith.constant 0 : index
    %c0_31 = arith.constant 0 : index
    %c0_32 = arith.constant 0 : index
    %51 = vector.load %arg11[%c0_30, %c0_31, %c0_32] : memref<2x256x160xbf16, #tpu.memory_space<vmem>>, vector<1x256x160xbf16>
    %52 = vector.shape_cast %51 : vector<1x256x160xbf16> to vector<256x160xbf16>
    %cst_33 = arith.constant dense<0.000000e+00> : vector<256x128xf32>
    %53 = tpu.matmul %52, %5, %cst_33 {dimension_numbers = #tpu.dot_dimension_numbers<[1], [0], [0], [1], [0, 0, 1, 1], [], []>} : vector<256x160xbf16>, vector<160x128xbf16>, vector<256x128xf32> -> vector<256x128xf32>
    %c0_34 = arith.constant 0 : index
    %c0_35 = arith.constant 0 : index
    %c0_36 = arith.constant 0 : index
    %c0_37 = arith.constant 0 : index
    %54 = vector.load %arg4[%c0_34, %c0_35, %c0_36, %c0_37] : memref<1x2x256x1xf32, #tpu.memory_space<vmem>>, vector<1x1x256x1xf32>
    %55 = vector.shape_cast %54 : vector<1x1x256x1xf32> to vector<256x1xf32>
    %56 = vector.broadcast %55 : vector<256x1xf32> to vector<256x128xf32>
    %57 = arith.addf %53, %56 : vector<256x128xf32>
    %58 = arith.truncf %50 : vector<64x128xf32> to vector<64x128xbf16>
    %59 = vector.extract_strided_slice %58 {offsets = [0, 0], sizes = [64, 127], strides = [1, 1]} : vector<64x128xbf16> to vector<64x127xbf16>
    %60 = tpu.concatenate %8, %59 in 1 : vector<64x1xbf16>, vector<64x127xbf16> -> vector<64x128xbf16>
    %61 = vector.extract_strided_slice %58 {offsets = [0, 1], sizes = [64, 127], strides = [1, 1]} : vector<64x128xbf16> to vector<64x127xbf16>
    %62 = tpu.concatenate %61, %8 in 1 : vector<64x127xbf16>, vector<64x1xbf16> -> vector<64x128xbf16>
    %63 = tpu.concatenate %60, %58, %62 in 0 : vector<64x128xbf16>, vector<64x128xbf16>, vector<64x128xbf16> -> vector<192x128xbf16>
    %c0_38 = arith.constant 0 : index
    %c0_39 = arith.constant 0 : index
    %c0_40 = arith.constant 0 : index
    %c0_41 = arith.constant 0 : index
    %64 = vector.load %arg12[%c0_38, %c0_39, %c0_40, %c0_41] : memref<2x2x128x192xbf16, #tpu.memory_space<vmem>>, vector<1x1x128x192xbf16>
    %65 = vector.shape_cast %64 : vector<1x1x128x192xbf16> to vector<128x192xbf16>
    %cst_42 = arith.constant dense<0.000000e+00> : vector<128x128xf32>
    %66 = tpu.matmul %65, %63, %cst_42 {dimension_numbers = #tpu.dot_dimension_numbers<[1], [0], [0], [1], [0, 0, 1, 1], [], []>} : vector<128x192xbf16>, vector<192x128xbf16>, vector<128x128xf32> -> vector<128x128xf32>
    %67 = vector.extract_strided_slice %57 {offsets = [0, 0], sizes = [128, 128], strides = [1, 1]} : vector<256x128xf32> to vector<128x128xf32>
    %68 = arith.addf %66, %67 : vector<128x128xf32>
    %69 = vector.extract_strided_slice %68 {offsets = [0, 0], sizes = [64, 128], strides = [1, 1]} : vector<128x128xf32> to vector<64x128xf32>
    %70 = math.tanh %69 : vector<64x128xf32>
    %71 = vector.extract_strided_slice %68 {offsets = [64, 0], sizes = [64, 128], strides = [1, 1]} : vector<128x128xf32> to vector<64x128xf32>
    %72 = arith.negf %71 : vector<64x128xf32>
    %73 = math.exp %72 : vector<64x128xf32>
    %cst_43 = arith.constant 1.000000e+00 : f32
    %74 = vector.broadcast %cst_43 : f32 to vector<64x128xf32>
    %75 = arith.addf %74, %73 : vector<64x128xf32>
    %76 = arith.divf %74, %75 : vector<64x128xf32>
    %77 = arith.mulf %70, %76 : vector<64x128xf32>
    %c0_44 = arith.constant 0 : index
    %c0_45 = arith.constant 0 : index
    %c0_46 = arith.constant 0 : index
    %c0_47 = arith.constant 0 : index
    %78 = vector.load %arg13[%c0_44, %c0_45, %c0_46, %c0_47] : memref<2x2x128x64xbf16, #tpu.memory_space<vmem>>, vector<1x1x128x64xbf16>
    %79 = vector.shape_cast %78 : vector<1x1x128x64xbf16> to vector<128x64xbf16>
    %80 = arith.truncf %77 : vector<64x128xf32> to vector<64x128xbf16>
    %cst_48 = arith.constant dense<0.000000e+00> : vector<128x128xf32>
    %81 = tpu.matmul %79, %80, %cst_48 {dimension_numbers = #tpu.dot_dimension_numbers<[1], [0], [0], [1], [0, 0, 1, 1], [], []>} : vector<128x64xbf16>, vector<64x128xbf16>, vector<128x128xf32> -> vector<128x128xf32>
    %c0_49 = arith.constant 0 : index
    %c0_50 = arith.constant 0 : index
    %c0_51 = arith.constant 0 : index
    %c0_52 = arith.constant 0 : index
    %82 = vector.load %arg14[%c0_49, %c0_50, %c0_51, %c0_52] : memref<2x2x128x1xf32, #tpu.memory_space<vmem>>, vector<1x1x128x1xf32>
    %83 = vector.shape_cast %82 : vector<1x1x128x1xf32> to vector<128x1xf32>
    %84 = vector.broadcast %83 : vector<128x1xf32> to vector<128x128xf32>
    %85 = arith.addf %81, %84 : vector<128x128xf32>
    %86 = vector.extract_strided_slice %85 {offsets = [0, 0], sizes = [64, 128], strides = [1, 1]} : vector<128x128xf32> to vector<64x128xf32>
    %87 = arith.addf %50, %86 : vector<64x128xf32>
    %88 = vector.broadcast %7 : vector<1x128xf32> to vector<64x128xf32>
    %89 = arith.mulf %87, %88 : vector<64x128xf32>
    %90 = vector.extract_strided_slice %85 {offsets = [64, 0], sizes = [64, 128], strides = [1, 1]} : vector<128x128xf32> to vector<64x128xf32>
    %91 = arith.truncf %89 : vector<64x128xf32> to vector<64x128xbf16>
    %92 = vector.extract_strided_slice %91 {offsets = [0, 0], sizes = [64, 127], strides = [1, 1]} : vector<64x128xbf16> to vector<64x127xbf16>
    %93 = tpu.concatenate %8, %92 in 1 : vector<64x1xbf16>, vector<64x127xbf16> -> vector<64x128xbf16>
    %94 = vector.extract_strided_slice %91 {offsets = [0, 1], sizes = [64, 127], strides = [1, 1]} : vector<64x128xbf16> to vector<64x127xbf16>
    %95 = tpu.concatenate %94, %8 in 1 : vector<64x127xbf16>, vector<64x1xbf16> -> vector<64x128xbf16>
    %96 = tpu.concatenate %93, %91, %95 in 0 : vector<64x128xbf16>, vector<64x128xbf16>, vector<64x128xbf16> -> vector<192x128xbf16>
    %c0_53 = arith.constant 0 : index
    %c1 = arith.constant 1 : index
    %c0_54 = arith.constant 0 : index
    %c0_55 = arith.constant 0 : index
    %97 = vector.load %arg12[%c0_53, %c1, %c0_54, %c0_55] : memref<2x2x128x192xbf16, #tpu.memory_space<vmem>>, vector<1x1x128x192xbf16>
    %98 = vector.shape_cast %97 : vector<1x1x128x192xbf16> to vector<128x192xbf16>
    %cst_56 = arith.constant dense<0.000000e+00> : vector<128x128xf32>
    %99 = tpu.matmul %98, %96, %cst_56 {dimension_numbers = #tpu.dot_dimension_numbers<[1], [0], [0], [1], [0, 0, 1, 1], [], []>} : vector<128x192xbf16>, vector<192x128xbf16>, vector<128x128xf32> -> vector<128x128xf32>
    %100 = vector.extract_strided_slice %57 {offsets = [128, 0], sizes = [128, 128], strides = [1, 1]} : vector<256x128xf32> to vector<128x128xf32>
    %101 = arith.addf %99, %100 : vector<128x128xf32>
    %102 = vector.extract_strided_slice %101 {offsets = [0, 0], sizes = [64, 128], strides = [1, 1]} : vector<128x128xf32> to vector<64x128xf32>
    %103 = math.tanh %102 : vector<64x128xf32>
    %104 = vector.extract_strided_slice %101 {offsets = [64, 0], sizes = [64, 128], strides = [1, 1]} : vector<128x128xf32> to vector<64x128xf32>
    %105 = arith.negf %104 : vector<64x128xf32>
    %106 = math.exp %105 : vector<64x128xf32>
    %cst_57 = arith.constant 1.000000e+00 : f32
    %107 = vector.broadcast %cst_57 : f32 to vector<64x128xf32>
    %108 = arith.addf %107, %106 : vector<64x128xf32>
    %109 = arith.divf %107, %108 : vector<64x128xf32>
    %110 = arith.mulf %103, %109 : vector<64x128xf32>
    %c0_58 = arith.constant 0 : index
    %c1_59 = arith.constant 1 : index
    %c0_60 = arith.constant 0 : index
    %c0_61 = arith.constant 0 : index
    %111 = vector.load %arg13[%c0_58, %c1_59, %c0_60, %c0_61] : memref<2x2x128x64xbf16, #tpu.memory_space<vmem>>, vector<1x1x128x64xbf16>
    %112 = vector.shape_cast %111 : vector<1x1x128x64xbf16> to vector<128x64xbf16>
    %113 = arith.truncf %110 : vector<64x128xf32> to vector<64x128xbf16>
    %cst_62 = arith.constant dense<0.000000e+00> : vector<128x128xf32>
    %114 = tpu.matmul %112, %113, %cst_62 {dimension_numbers = #tpu.dot_dimension_numbers<[1], [0], [0], [1], [0, 0, 1, 1], [], []>} : vector<128x64xbf16>, vector<64x128xbf16>, vector<128x128xf32> -> vector<128x128xf32>
    %c0_63 = arith.constant 0 : index
    %c1_64 = arith.constant 1 : index
    %c0_65 = arith.constant 0 : index
    %c0_66 = arith.constant 0 : index
    %115 = vector.load %arg14[%c0_63, %c1_64, %c0_65, %c0_66] : memref<2x2x128x1xf32, #tpu.memory_space<vmem>>, vector<1x1x128x1xf32>
    %116 = vector.shape_cast %115 : vector<1x1x128x1xf32> to vector<128x1xf32>
    %117 = vector.broadcast %116 : vector<128x1xf32> to vector<128x128xf32>
    %118 = arith.addf %114, %117 : vector<128x128xf32>
    %119 = vector.extract_strided_slice %118 {offsets = [64, 0], sizes = [64, 128], strides = [1, 1]} : vector<128x128xf32> to vector<64x128xf32>
    %120 = arith.addf %90, %119 : vector<64x128xf32>
    %121 = vector.broadcast %7 : vector<1x128xf32> to vector<64x128xf32>
    %122 = arith.mulf %120, %121 : vector<64x128xf32>
    %c0_67 = arith.constant 0 : index
    %c0_68 = arith.constant 0 : index
    %c0_69 = arith.constant 0 : index
    %123 = vector.load %arg15[%c0_67, %c0_68, %c0_69] : memref<2x160x64xbf16, #tpu.memory_space<vmem>>, vector<1x160x64xbf16>
    %124 = vector.shape_cast %123 : vector<1x160x64xbf16> to vector<160x64xbf16>
    %125 = arith.truncf %122 : vector<64x128xf32> to vector<64x128xbf16>
    %cst_70 = arith.constant dense<0.000000e+00> : vector<160x128xf32>
    %126 = tpu.matmul %124, %125, %cst_70 {dimension_numbers = #tpu.dot_dimension_numbers<[1], [0], [0], [1], [0, 0, 1, 1], [], []>} : vector<160x64xbf16>, vector<64x128xbf16>, vector<160x128xf32> -> vector<160x128xf32>
    %c0_71 = arith.constant 0 : index
    %c0_72 = arith.constant 0 : index
    %c0_73 = arith.constant 0 : index
    %127 = vector.load %arg16[%c0_71, %c0_72, %c0_73] : memref<2x160x1xf32, #tpu.memory_space<vmem>>, vector<1x160x1xf32>
    %128 = vector.shape_cast %127 : vector<1x160x1xf32> to vector<160x1xf32>
    %129 = vector.broadcast %128 : vector<160x1xf32> to vector<160x128xf32>
    %130 = arith.addf %126, %129 : vector<160x128xf32>
    %131 = vector.extract_strided_slice %130 {offsets = [0, 0], sizes = [80, 128], strides = [1, 1]} : vector<160x128xf32> to vector<80x128xf32>
    %132 = vector.extract_strided_slice %130 {offsets = [80, 0], sizes = [80, 128], strides = [1, 1]} : vector<160x128xf32> to vector<80x128xf32>
    %133 = math.exp %132 : vector<80x128xf32>
    %134 = arith.mulf %133, %40 : vector<80x128xf32>
    %135 = arith.addf %131, %134 : vector<80x128xf32>
    %136 = vector.broadcast %7 : vector<1x128xf32> to vector<80x128xf32>
    %137 = arith.mulf %135, %136 : vector<80x128xf32>
    %138 = vector.broadcast %7 : vector<1x128xf32> to vector<80x128xf32>
    %139 = arith.mulf %132, %138 : vector<80x128xf32>
    %cst_74 = arith.constant dense<0.000000e+00> : vector<80xf32>
    %140 = vector.multi_reduction <add>, %139, %cst_74 [1] : vector<80x128xf32> to vector<80xf32>
    %141 = vector.shape_cast %140 : vector<80xf32> to vector<80x1xf32>
    %cst_75 = arith.constant dense<0.000000e+00> : vector<1xf32>
    %142 = vector.multi_reduction <add>, %141, %cst_75 [0] : vector<80x1xf32> to vector<1xf32>
    %143 = vector.shape_cast %142 : vector<1xf32> to vector<1x1xf32>
    %144 = arith.addf %9, %143 : vector<1x1xf32>
    %c1_76 = arith.constant 1 : index
    %c0_77 = arith.constant 0 : index
    %c0_78 = arith.constant 0 : index
    %145 = vector.load %arg5[%c1_76, %c0_77, %c0_78] : memref<2x160x1xf32, #tpu.memory_space<vmem>>, vector<1x160x1xf32>
    %146 = vector.shape_cast %145 : vector<1x160x1xf32> to vector<160x1xf32>
    %c1_79 = arith.constant 1 : index
    %c0_80 = arith.constant 0 : index
    %c0_81 = arith.constant 0 : index
    %147 = vector.load %arg6[%c1_79, %c0_80, %c0_81] : memref<2x160x1xf32, #tpu.memory_space<vmem>>, vector<1x160x1xf32>
    %148 = vector.shape_cast %147 : vector<1x160x1xf32> to vector<160x1xf32>
    %149 = vector.extract_strided_slice %148 {offsets = [0, 0], sizes = [80, 1], strides = [1, 1]} : vector<160x1xf32> to vector<80x1xf32>
    %150 = vector.extract_strided_slice %146 {offsets = [0, 0], sizes = [80, 1], strides = [1, 1]} : vector<160x1xf32> to vector<80x1xf32>
    %151 = vector.broadcast %150 : vector<80x1xf32> to vector<80x128xf32>
    %152 = arith.mulf %151, %39 : vector<80x128xf32>
    %153 = vector.broadcast %149 : vector<80x1xf32> to vector<80x128xf32>
    %154 = arith.addf %153, %152 : vector<80x128xf32>
    %155 = vector.broadcast %7 : vector<1x128xf32> to vector<80x128xf32>
    %156 = arith.mulf %154, %155 : vector<80x128xf32>
    %157 = vector.extract_strided_slice %148 {offsets = [80, 0], sizes = [80, 1], strides = [1, 1]} : vector<160x1xf32> to vector<80x1xf32>
    %158 = vector.extract_strided_slice %146 {offsets = [80, 0], sizes = [80, 1], strides = [1, 1]} : vector<160x1xf32> to vector<80x1xf32>
    %159 = vector.broadcast %158 : vector<80x1xf32> to vector<80x128xf32>
    %160 = arith.mulf %159, %137 : vector<80x128xf32>
    %161 = vector.broadcast %157 : vector<80x1xf32> to vector<80x128xf32>
    %162 = arith.addf %161, %160 : vector<80x128xf32>
    %163 = vector.broadcast %7 : vector<1x128xf32> to vector<80x128xf32>
    %164 = arith.mulf %162, %163 : vector<80x128xf32>
    %c1_82 = arith.constant 1 : index
    %c0_83 = arith.constant 0 : index
    %c0_84 = arith.constant 0 : index
    %165 = vector.load %arg7[%c1_82, %c0_83, %c0_84] : memref<2x160x80xbf16, #tpu.memory_space<vmem>>, vector<1x160x80xbf16>
    %166 = vector.shape_cast %165 : vector<1x160x80xbf16> to vector<160x80xbf16>
    %167 = arith.truncf %156 : vector<80x128xf32> to vector<80x128xbf16>
    %cst_85 = arith.constant dense<0.000000e+00> : vector<160x128xf32>
    %168 = tpu.matmul %166, %167, %cst_85 {dimension_numbers = #tpu.dot_dimension_numbers<[1], [0], [0], [1], [0, 0, 1, 1], [], []>} : vector<160x80xbf16>, vector<80x128xbf16>, vector<160x128xf32> -> vector<160x128xf32>
    %c1_86 = arith.constant 1 : index
    %c0_87 = arith.constant 0 : index
    %c0_88 = arith.constant 0 : index
    %169 = vector.load %arg8[%c1_86, %c0_87, %c0_88] : memref<2x160x80xbf16, #tpu.memory_space<vmem>>, vector<1x160x80xbf16>
    %170 = vector.shape_cast %169 : vector<1x160x80xbf16> to vector<160x80xbf16>
    %171 = arith.truncf %164 : vector<80x128xf32> to vector<80x128xbf16>
    %cst_89 = arith.constant dense<0.000000e+00> : vector<160x128xf32>
    %172 = tpu.matmul %170, %171, %cst_89 {dimension_numbers = #tpu.dot_dimension_numbers<[1], [0], [0], [1], [0, 0, 1, 1], [], []>} : vector<160x80xbf16>, vector<80x128xbf16>, vector<160x128xf32> -> vector<160x128xf32>
    %173 = arith.addf %168, %172 : vector<160x128xf32>
    %174 = vector.extract_strided_slice %173 {offsets = [0, 0], sizes = [80, 128], strides = [1, 1]} : vector<160x128xf32> to vector<80x128xf32>
    %175 = vector.extract_strided_slice %173 {offsets = [80, 0], sizes = [80, 128], strides = [1, 1]} : vector<160x128xf32> to vector<80x128xf32>
    %c1_90 = arith.constant 1 : index
    %c0_91 = arith.constant 0 : index
    %c0_92 = arith.constant 0 : index
    %176 = vector.load %arg9[%c1_90, %c0_91, %c0_92] : memref<2x64x80xbf16, #tpu.memory_space<vmem>>, vector<1x64x80xbf16>
    %177 = vector.shape_cast %176 : vector<1x64x80xbf16> to vector<64x80xbf16>
    %178 = arith.truncf %174 : vector<80x128xf32> to vector<80x128xbf16>
    %cst_93 = arith.constant dense<0.000000e+00> : vector<64x128xf32>
    %179 = tpu.matmul %177, %178, %cst_93 {dimension_numbers = #tpu.dot_dimension_numbers<[1], [0], [0], [1], [0, 0, 1, 1], [], []>} : vector<64x80xbf16>, vector<80x128xbf16>, vector<64x128xf32> -> vector<64x128xf32>
    %c1_94 = arith.constant 1 : index
    %c0_95 = arith.constant 0 : index
    %c0_96 = arith.constant 0 : index
    %180 = vector.load %arg10[%c1_94, %c0_95, %c0_96] : memref<2x64x1xf32, #tpu.memory_space<vmem>>, vector<1x64x1xf32>
    %181 = vector.shape_cast %180 : vector<1x64x1xf32> to vector<64x1xf32>
    %182 = vector.broadcast %181 : vector<64x1xf32> to vector<64x128xf32>
    %183 = arith.addf %179, %182 : vector<64x128xf32>
    %184 = vector.broadcast %7 : vector<1x128xf32> to vector<64x128xf32>
    %185 = arith.mulf %183, %184 : vector<64x128xf32>
    %c1_97 = arith.constant 1 : index
    %c0_98 = arith.constant 0 : index
    %c0_99 = arith.constant 0 : index
    %186 = vector.load %arg11[%c1_97, %c0_98, %c0_99] : memref<2x256x160xbf16, #tpu.memory_space<vmem>>, vector<1x256x160xbf16>
    %187 = vector.shape_cast %186 : vector<1x256x160xbf16> to vector<256x160xbf16>
    %cst_100 = arith.constant dense<0.000000e+00> : vector<256x128xf32>
    %188 = tpu.matmul %187, %5, %cst_100 {dimension_numbers = #tpu.dot_dimension_numbers<[1], [0], [0], [1], [0, 0, 1, 1], [], []>} : vector<256x160xbf16>, vector<160x128xbf16>, vector<256x128xf32> -> vector<256x128xf32>
    %c0_101 = arith.constant 0 : index
    %c1_102 = arith.constant 1 : index
    %c0_103 = arith.constant 0 : index
    %c0_104 = arith.constant 0 : index
    %189 = vector.load %arg4[%c0_101, %c1_102, %c0_103, %c0_104] : memref<1x2x256x1xf32, #tpu.memory_space<vmem>>, vector<1x1x256x1xf32>
    %190 = vector.shape_cast %189 : vector<1x1x256x1xf32> to vector<256x1xf32>
    %191 = vector.broadcast %190 : vector<256x1xf32> to vector<256x128xf32>
    %192 = arith.addf %188, %191 : vector<256x128xf32>
    %193 = arith.truncf %185 : vector<64x128xf32> to vector<64x128xbf16>
    %194 = vector.extract_strided_slice %193 {offsets = [0, 0], sizes = [64, 127], strides = [1, 1]} : vector<64x128xbf16> to vector<64x127xbf16>
    %195 = tpu.concatenate %8, %194 in 1 : vector<64x1xbf16>, vector<64x127xbf16> -> vector<64x128xbf16>
    %196 = vector.extract_strided_slice %193 {offsets = [0, 1], sizes = [64, 127], strides = [1, 1]} : vector<64x128xbf16> to vector<64x127xbf16>
    %197 = tpu.concatenate %196, %8 in 1 : vector<64x127xbf16>, vector<64x1xbf16> -> vector<64x128xbf16>
    %198 = tpu.concatenate %195, %193, %197 in 0 : vector<64x128xbf16>, vector<64x128xbf16>, vector<64x128xbf16> -> vector<192x128xbf16>
    %c1_105 = arith.constant 1 : index
    %c0_106 = arith.constant 0 : index
    %c0_107 = arith.constant 0 : index
    %c0_108 = arith.constant 0 : index
    %199 = vector.load %arg12[%c1_105, %c0_106, %c0_107, %c0_108] : memref<2x2x128x192xbf16, #tpu.memory_space<vmem>>, vector<1x1x128x192xbf16>
    %200 = vector.shape_cast %199 : vector<1x1x128x192xbf16> to vector<128x192xbf16>
    %cst_109 = arith.constant dense<0.000000e+00> : vector<128x128xf32>
    %201 = tpu.matmul %200, %198, %cst_109 {dimension_numbers = #tpu.dot_dimension_numbers<[1], [0], [0], [1], [0, 0, 1, 1], [], []>} : vector<128x192xbf16>, vector<192x128xbf16>, vector<128x128xf32> -> vector<128x128xf32>
    %202 = vector.extract_strided_slice %192 {offsets = [0, 0], sizes = [128, 128], strides = [1, 1]} : vector<256x128xf32> to vector<128x128xf32>
    %203 = arith.addf %201, %202 : vector<128x128xf32>
    %204 = vector.extract_strided_slice %203 {offsets = [0, 0], sizes = [64, 128], strides = [1, 1]} : vector<128x128xf32> to vector<64x128xf32>
    %205 = math.tanh %204 : vector<64x128xf32>
    %206 = vector.extract_strided_slice %203 {offsets = [64, 0], sizes = [64, 128], strides = [1, 1]} : vector<128x128xf32> to vector<64x128xf32>
    %207 = arith.negf %206 : vector<64x128xf32>
    %208 = math.exp %207 : vector<64x128xf32>
    %cst_110 = arith.constant 1.000000e+00 : f32
    %209 = vector.broadcast %cst_110 : f32 to vector<64x128xf32>
    %210 = arith.addf %209, %208 : vector<64x128xf32>
    %211 = arith.divf %209, %210 : vector<64x128xf32>
    %212 = arith.mulf %205, %211 : vector<64x128xf32>
    %c1_111 = arith.constant 1 : index
    %c0_112 = arith.constant 0 : index
    %c0_113 = arith.constant 0 : index
    %c0_114 = arith.constant 0 : index
    %213 = vector.load %arg13[%c1_111, %c0_112, %c0_113, %c0_114] : memref<2x2x128x64xbf16, #tpu.memory_space<vmem>>, vector<1x1x128x64xbf16>
    %214 = vector.shape_cast %213 : vector<1x1x128x64xbf16> to vector<128x64xbf16>
    %215 = arith.truncf %212 : vector<64x128xf32> to vector<64x128xbf16>
    %cst_115 = arith.constant dense<0.000000e+00> : vector<128x128xf32>
    %216 = tpu.matmul %214, %215, %cst_115 {dimension_numbers = #tpu.dot_dimension_numbers<[1], [0], [0], [1], [0, 0, 1, 1], [], []>} : vector<128x64xbf16>, vector<64x128xbf16>, vector<128x128xf32> -> vector<128x128xf32>
    %c1_116 = arith.constant 1 : index
    %c0_117 = arith.constant 0 : index
    %c0_118 = arith.constant 0 : index
    %c0_119 = arith.constant 0 : index
    %217 = vector.load %arg14[%c1_116, %c0_117, %c0_118, %c0_119] : memref<2x2x128x1xf32, #tpu.memory_space<vmem>>, vector<1x1x128x1xf32>
    %218 = vector.shape_cast %217 : vector<1x1x128x1xf32> to vector<128x1xf32>
    %219 = vector.broadcast %218 : vector<128x1xf32> to vector<128x128xf32>
    %220 = arith.addf %216, %219 : vector<128x128xf32>
    %221 = vector.extract_strided_slice %220 {offsets = [0, 0], sizes = [64, 128], strides = [1, 1]} : vector<128x128xf32> to vector<64x128xf32>
    %222 = arith.addf %185, %221 : vector<64x128xf32>
    %223 = vector.broadcast %7 : vector<1x128xf32> to vector<64x128xf32>
    %224 = arith.mulf %222, %223 : vector<64x128xf32>
    %225 = vector.extract_strided_slice %220 {offsets = [64, 0], sizes = [64, 128], strides = [1, 1]} : vector<128x128xf32> to vector<64x128xf32>
    %226 = arith.truncf %224 : vector<64x128xf32> to vector<64x128xbf16>
    %227 = vector.extract_strided_slice %226 {offsets = [0, 0], sizes = [64, 127], strides = [1, 1]} : vector<64x128xbf16> to vector<64x127xbf16>
    %228 = tpu.concatenate %8, %227 in 1 : vector<64x1xbf16>, vector<64x127xbf16> -> vector<64x128xbf16>
    %229 = vector.extract_strided_slice %226 {offsets = [0, 1], sizes = [64, 127], strides = [1, 1]} : vector<64x128xbf16> to vector<64x127xbf16>
    %230 = tpu.concatenate %229, %8 in 1 : vector<64x127xbf16>, vector<64x1xbf16> -> vector<64x128xbf16>
    %231 = tpu.concatenate %228, %226, %230 in 0 : vector<64x128xbf16>, vector<64x128xbf16>, vector<64x128xbf16> -> vector<192x128xbf16>
    %c1_120 = arith.constant 1 : index
    %c1_121 = arith.constant 1 : index
    %c0_122 = arith.constant 0 : index
    %c0_123 = arith.constant 0 : index
    %232 = vector.load %arg12[%c1_120, %c1_121, %c0_122, %c0_123] : memref<2x2x128x192xbf16, #tpu.memory_space<vmem>>, vector<1x1x128x192xbf16>
    %233 = vector.shape_cast %232 : vector<1x1x128x192xbf16> to vector<128x192xbf16>
    %cst_124 = arith.constant dense<0.000000e+00> : vector<128x128xf32>
    %234 = tpu.matmul %233, %231, %cst_124 {dimension_numbers = #tpu.dot_dimension_numbers<[1], [0], [0], [1], [0, 0, 1, 1], [], []>} : vector<128x192xbf16>, vector<192x128xbf16>, vector<128x128xf32> -> vector<128x128xf32>
    %235 = vector.extract_strided_slice %192 {offsets = [128, 0], sizes = [128, 128], strides = [1, 1]} : vector<256x128xf32> to vector<128x128xf32>
    %236 = arith.addf %234, %235 : vector<128x128xf32>
    %237 = vector.extract_strided_slice %236 {offsets = [0, 0], sizes = [64, 128], strides = [1, 1]} : vector<128x128xf32> to vector<64x128xf32>
    %238 = math.tanh %237 : vector<64x128xf32>
    %239 = vector.extract_strided_slice %236 {offsets = [64, 0], sizes = [64, 128], strides = [1, 1]} : vector<128x128xf32> to vector<64x128xf32>
    %240 = arith.negf %239 : vector<64x128xf32>
    %241 = math.exp %240 : vector<64x128xf32>
    %cst_125 = arith.constant 1.000000e+00 : f32
    %242 = vector.broadcast %cst_125 : f32 to vector<64x128xf32>
    %243 = arith.addf %242, %241 : vector<64x128xf32>
    %244 = arith.divf %242, %243 : vector<64x128xf32>
    %245 = arith.mulf %238, %244 : vector<64x128xf32>
    %c1_126 = arith.constant 1 : index
    %c1_127 = arith.constant 1 : index
    %c0_128 = arith.constant 0 : index
    %c0_129 = arith.constant 0 : index
    %246 = vector.load %arg13[%c1_126, %c1_127, %c0_128, %c0_129] : memref<2x2x128x64xbf16, #tpu.memory_space<vmem>>, vector<1x1x128x64xbf16>
    %247 = vector.shape_cast %246 : vector<1x1x128x64xbf16> to vector<128x64xbf16>
    %248 = arith.truncf %245 : vector<64x128xf32> to vector<64x128xbf16>
    %cst_130 = arith.constant dense<0.000000e+00> : vector<128x128xf32>
    %249 = tpu.matmul %247, %248, %cst_130 {dimension_numbers = #tpu.dot_dimension_numbers<[1], [0], [0], [1], [0, 0, 1, 1], [], []>} : vector<128x64xbf16>, vector<64x128xbf16>, vector<128x128xf32> -> vector<128x128xf32>
    %c1_131 = arith.constant 1 : index
    %c1_132 = arith.constant 1 : index
    %c0_133 = arith.constant 0 : index
    %c0_134 = arith.constant 0 : index
    %250 = vector.load %arg14[%c1_131, %c1_132, %c0_133, %c0_134] : memref<2x2x128x1xf32, #tpu.memory_space<vmem>>, vector<1x1x128x1xf32>
    %251 = vector.shape_cast %250 : vector<1x1x128x1xf32> to vector<128x1xf32>
    %252 = vector.broadcast %251 : vector<128x1xf32> to vector<128x128xf32>
    %253 = arith.addf %249, %252 : vector<128x128xf32>
    %254 = vector.extract_strided_slice %253 {offsets = [64, 0], sizes = [64, 128], strides = [1, 1]} : vector<128x128xf32> to vector<64x128xf32>
    %255 = arith.addf %225, %254 : vector<64x128xf32>
    %256 = vector.broadcast %7 : vector<1x128xf32> to vector<64x128xf32>
    %257 = arith.mulf %255, %256 : vector<64x128xf32>
    %c1_135 = arith.constant 1 : index
    %c0_136 = arith.constant 0 : index
    %c0_137 = arith.constant 0 : index
    %258 = vector.load %arg15[%c1_135, %c0_136, %c0_137] : memref<2x160x64xbf16, #tpu.memory_space<vmem>>, vector<1x160x64xbf16>
    %259 = vector.shape_cast %258 : vector<1x160x64xbf16> to vector<160x64xbf16>
    %260 = arith.truncf %257 : vector<64x128xf32> to vector<64x128xbf16>
    %cst_138 = arith.constant dense<0.000000e+00> : vector<160x128xf32>
    %261 = tpu.matmul %259, %260, %cst_138 {dimension_numbers = #tpu.dot_dimension_numbers<[1], [0], [0], [1], [0, 0, 1, 1], [], []>} : vector<160x64xbf16>, vector<64x128xbf16>, vector<160x128xf32> -> vector<160x128xf32>
    %c1_139 = arith.constant 1 : index
    %c0_140 = arith.constant 0 : index
    %c0_141 = arith.constant 0 : index
    %262 = vector.load %arg16[%c1_139, %c0_140, %c0_141] : memref<2x160x1xf32, #tpu.memory_space<vmem>>, vector<1x160x1xf32>
    %263 = vector.shape_cast %262 : vector<1x160x1xf32> to vector<160x1xf32>
    %264 = vector.broadcast %263 : vector<160x1xf32> to vector<160x128xf32>
    %265 = arith.addf %261, %264 : vector<160x128xf32>
    %266 = vector.extract_strided_slice %265 {offsets = [0, 0], sizes = [80, 128], strides = [1, 1]} : vector<160x128xf32> to vector<80x128xf32>
    %267 = vector.extract_strided_slice %265 {offsets = [80, 0], sizes = [80, 128], strides = [1, 1]} : vector<160x128xf32> to vector<80x128xf32>
    %268 = math.exp %267 : vector<80x128xf32>
    %269 = arith.mulf %268, %175 : vector<80x128xf32>
    %270 = arith.addf %266, %269 : vector<80x128xf32>
    %271 = vector.broadcast %7 : vector<1x128xf32> to vector<80x128xf32>
    %272 = arith.mulf %270, %271 : vector<80x128xf32>
    %273 = vector.broadcast %7 : vector<1x128xf32> to vector<80x128xf32>
    %274 = arith.mulf %267, %273 : vector<80x128xf32>
    %cst_142 = arith.constant dense<0.000000e+00> : vector<80xf32>
    %275 = vector.multi_reduction <add>, %274, %cst_142 [1] : vector<80x128xf32> to vector<80xf32>
    %276 = vector.shape_cast %275 : vector<80xf32> to vector<80x1xf32>
    %cst_143 = arith.constant dense<0.000000e+00> : vector<1xf32>
    %277 = vector.multi_reduction <add>, %276, %cst_143 [0] : vector<80x1xf32> to vector<1xf32>
    %278 = vector.shape_cast %277 : vector<1xf32> to vector<1x1xf32>
    %279 = arith.addf %144, %278 : vector<1x1xf32>
    %c0_144 = arith.constant 0 : index
    %c0_145 = arith.constant 0 : index
    %c0_146 = arith.constant 0 : index
    %280 = vector.load %arg17[%c0_144, %c0_145, %c0_146] : memref<1x160x128xf32, #tpu.memory_space<vmem>>, vector<1x80x128xf32>
    %281 = vector.shape_cast %280 : vector<1x80x128xf32> to vector<80x128xf32>
    %282 = vector.shape_cast %174 : vector<80x128xf32> to vector<1x80x128xf32>
    tpu.vector_store %arg17[%c0_144, %c0_145, %c0_146], %282 {strides = array<i32>} : memref<1x160x128xf32, #tpu.memory_space<vmem>>, vector<1x80x128xf32>,
    %c0_147 = arith.constant 0 : index
    %c80 = arith.constant 80 : index
    %c0_148 = arith.constant 0 : index
    %283 = vector.load %arg17[%c0_147, %c80, %c0_148] : memref<1x160x128xf32, #tpu.memory_space<vmem>>, vector<1x80x128xf32>
    %284 = vector.shape_cast %283 : vector<1x80x128xf32> to vector<80x128xf32>
    %285 = vector.shape_cast %272 : vector<80x128xf32> to vector<1x80x128xf32>
    tpu.vector_store %arg17[%c0_147, %c80, %c0_148], %285 {strides = array<i32>} : memref<1x160x128xf32, #tpu.memory_space<vmem>>, vector<1x80x128xf32>,
    %286 = vector.shape_cast %279 : vector<1x1xf32> to vector<1x1xf32>
    %287 = vector.broadcast %286 : vector<1x1xf32> to vector<1x128xf32>
    %c0_149 = arith.constant 0 : index
    %c0_150 = arith.constant 0 : index
    %c0_151 = arith.constant 0 : index
    %288 = vector.load %arg18[%c0_149, %c0_150, %c0_151] : memref<1x1x128xf32, #tpu.memory_space<vmem>>, vector<1x1x128xf32>
    %289 = vector.shape_cast %288 : vector<1x1x128xf32> to vector<1x128xf32>
    %290 = vector.shape_cast %287 : vector<1x128xf32> to vector<1x1x128xf32>
    tpu.vector_store %arg18[%c0_149, %c0_150, %c0_151], %290 {strides = array<i32>} : memref<1x1x128xf32, #tpu.memory_space<vmem>>, vector<1x1x128xf32>,
    return
  }
  func.func @transform_0(%arg0: i32) -> (i32, i32, i32) {
    %c0_i32 = arith.constant 0 : i32
    %c0_i32_0 = arith.constant 0 : i32
    %c0_i32_1 = arith.constant 0 : i32
    return %arg0, %c0_i32, %c0_i32_0 : i32, i32, i32
  }
  func.func @transform_1(%arg0: i32) -> (i32, i32, i32) {
    %c0_i32 = arith.constant 0 : i32
    %c0_i32_0 = arith.constant 0 : i32
    %c0_i32_1 = arith.constant 0 : i32
    return %arg0, %c0_i32, %c0_i32_0 : i32, i32, i32
  }
  func.func @transform_2(%arg0: i32) -> (i32, i32, i32) {
    %c0_i32 = arith.constant 0 : i32
    %c0_i32_0 = arith.constant 0 : i32
    %c0_i32_1 = arith.constant 0 : i32
    return %arg0, %c0_i32, %c0_i32_0 : i32, i32, i32
  }
  func.func @transform_3(%arg0: i32) -> (i32, i32, i32, i32) {
    %c0_i32 = arith.constant 0 : i32
    %c0_i32_0 = arith.constant 0 : i32
    %c0_i32_1 = arith.constant 0 : i32
    %c0_i32_2 = arith.constant 0 : i32
    return %arg0, %c0_i32, %c0_i32_0, %c0_i32_1 : i32, i32, i32, i32
  }
  func.func @transform_4(%arg0: i32) -> (i32, i32, i32) {
    %c0_i32 = arith.constant 0 : i32
    %c0_i32_0 = arith.constant 0 : i32
    %c0_i32_1 = arith.constant 0 : i32
    %c0_i32_2 = arith.constant 0 : i32
    return %c0_i32, %c0_i32_0, %c0_i32_1 : i32, i32, i32
  }
  func.func @transform_5(%arg0: i32) -> (i32, i32, i32) {
    %c0_i32 = arith.constant 0 : i32
    %c0_i32_0 = arith.constant 0 : i32
    %c0_i32_1 = arith.constant 0 : i32
    %c0_i32_2 = arith.constant 0 : i32
    return %c0_i32, %c0_i32_0, %c0_i32_1 : i32, i32, i32
  }
  func.func @transform_6(%arg0: i32) -> (i32, i32, i32) {
    %c0_i32 = arith.constant 0 : i32
    %c0_i32_0 = arith.constant 0 : i32
    %c0_i32_1 = arith.constant 0 : i32
    %c0_i32_2 = arith.constant 0 : i32
    return %c0_i32, %c0_i32_0, %c0_i32_1 : i32, i32, i32
  }
  func.func @transform_7(%arg0: i32) -> (i32, i32, i32) {
    %c0_i32 = arith.constant 0 : i32
    %c0_i32_0 = arith.constant 0 : i32
    %c0_i32_1 = arith.constant 0 : i32
    %c0_i32_2 = arith.constant 0 : i32
    return %c0_i32, %c0_i32_0, %c0_i32_1 : i32, i32, i32
  }
  func.func @transform_8(%arg0: i32) -> (i32, i32, i32) {
    %c0_i32 = arith.constant 0 : i32
    %c0_i32_0 = arith.constant 0 : i32
    %c0_i32_1 = arith.constant 0 : i32
    %c0_i32_2 = arith.constant 0 : i32
    return %c0_i32, %c0_i32_0, %c0_i32_1 : i32, i32, i32
  }
  func.func @transform_9(%arg0: i32) -> (i32, i32, i32) {
    %c0_i32 = arith.constant 0 : i32
    %c0_i32_0 = arith.constant 0 : i32
    %c0_i32_1 = arith.constant 0 : i32
    %c0_i32_2 = arith.constant 0 : i32
    return %c0_i32, %c0_i32_0, %c0_i32_1 : i32, i32, i32
  }
  func.func @transform_10(%arg0: i32) -> (i32, i32, i32) {
    %c0_i32 = arith.constant 0 : i32
    %c0_i32_0 = arith.constant 0 : i32
    %c0_i32_1 = arith.constant 0 : i32
    %c0_i32_2 = arith.constant 0 : i32
    return %c0_i32, %c0_i32_0, %c0_i32_1 : i32, i32, i32
  }
  func.func @transform_11(%arg0: i32) -> (i32, i32, i32, i32) {
    %c0_i32 = arith.constant 0 : i32
    %c0_i32_0 = arith.constant 0 : i32
    %c0_i32_1 = arith.constant 0 : i32
    %c0_i32_2 = arith.constant 0 : i32
    %c0_i32_3 = arith.constant 0 : i32
    return %c0_i32, %c0_i32_0, %c0_i32_1, %c0_i32_2 : i32, i32, i32, i32
  }
  func.func @transform_12(%arg0: i32) -> (i32, i32, i32, i32) {
    %c0_i32 = arith.constant 0 : i32
    %c0_i32_0 = arith.constant 0 : i32
    %c0_i32_1 = arith.constant 0 : i32
    %c0_i32_2 = arith.constant 0 : i32
    %c0_i32_3 = arith.constant 0 : i32
    return %c0_i32, %c0_i32_0, %c0_i32_1, %c0_i32_2 : i32, i32, i32, i32
  }
  func.func @transform_13(%arg0: i32) -> (i32, i32, i32, i32) {
    %c0_i32 = arith.constant 0 : i32
    %c0_i32_0 = arith.constant 0 : i32
    %c0_i32_1 = arith.constant 0 : i32
    %c0_i32_2 = arith.constant 0 : i32
    %c0_i32_3 = arith.constant 0 : i32
    return %c0_i32, %c0_i32_0, %c0_i32_1, %c0_i32_2 : i32, i32, i32, i32
  }
  func.func @transform_14(%arg0: i32) -> (i32, i32, i32) {
    %c0_i32 = arith.constant 0 : i32
    %c0_i32_0 = arith.constant 0 : i32
    %c0_i32_1 = arith.constant 0 : i32
    %c0_i32_2 = arith.constant 0 : i32
    return %c0_i32, %c0_i32_0, %c0_i32_1 : i32, i32, i32
  }
  func.func @transform_15(%arg0: i32) -> (i32, i32, i32) {
    %c0_i32 = arith.constant 0 : i32
    %c0_i32_0 = arith.constant 0 : i32
    %c0_i32_1 = arith.constant 0 : i32
    %c0_i32_2 = arith.constant 0 : i32
    return %c0_i32, %c0_i32_0, %c0_i32_1 : i32, i32, i32
  }
  func.func @transform_16(%arg0: i32) -> (i32, i32, i32) {
    %c0_i32 = arith.constant 0 : i32
    %c0_i32_0 = arith.constant 0 : i32
    %c0_i32_1 = arith.constant 0 : i32
    return %arg0, %c0_i32, %c0_i32_0 : i32, i32, i32
  }
  func.func @transform_17(%arg0: i32) -> (i32, i32, i32) {
    %c0_i32 = arith.constant 0 : i32
    %c0_i32_0 = arith.constant 0 : i32
    %c0_i32_1 = arith.constant 0 : i32
    return %arg0, %c0_i32, %c0_i32_0 : i32, i32, i32
  }
}

</mosaic_0001>

<bundles_post_ra>
// kernel: mul.38
= control target key start
LH: loop header
LB: loop body
LE: loop exit
PB: predicated region body
PF: predicated region fallthrough
CT: control target
= control target key end

     0   :  { %vm5_vm0 = vcmask 1041409   ;;  %vm9_vm1 = vcmask 1042434   ;;  %vm13_vm2 = vcmask 1043459   ;;  %s1609_s30 = smov 126   ;;  %s1610_s8 = smov 122   ;;  %vm15_vm3 = vcmask 15360   ;;  %s2652_s0 = inlined_call_operand.vmem [shape: f32[2,128,1,2], index: 0, kind: input, shape index: {}]   ;;  %s2653_s1 = inlined_call_operand.vmem [shape: f32[2,256], index: 1, kind: output, shape index: {}]  }
   0x1   :  { %v1293_v0 = vld [vmem:[%s2652_s0 + $0x3f] sm:$0x1]   ;;  %v1301_v5 = vld [vmem:[%s2652_s0 + $0x3d] sm:$0x1]   ;;  %v1297_v11 = vld [vmem:[%s2652_s0 + $0x3e] sm:$0x1]  }
   0x2   :  { %v1294_v1 = vld [vmem:[%s2652_s0 + $0xbe] sm:$0x2]   ;;  %v1302_v6 = vld [vmem:[%s2652_s0 + $0xbc] sm:$0x2]   ;;  %v1298_v14 = vld [vmem:[%s2652_s0 + $0xbd] sm:$0x2]  }
   0x3   :  { %v1295_v2 = vld [vmem:[%s2652_s0 + $0x7d] sm:$0x4]   ;;  %v24_v4 = vsel %vm5_vm0, %v1294_v1, %v1293_v0  ;;  %v1303_v7 = vld [vmem:[%s2652_s0 + $0x7b] sm:$0x4]   ;;  %v64_v9 = vsel %vm5_vm0, %v1302_v6, %v1301_v5  ;;  %v1299_v15 = vld [vmem:[%s2652_s0 + $0x7c] sm:$0x4]   ;;  %v44_v18 = vsel %vm5_vm0, %v1298_v14, %v1297_v11 }
   0x4   :  { %v1296_v3 = vld [vmem:[%s2652_s0 + $0xfc] sm:$0x8]   ;;  %v28_v8 = vsel %vm9_vm1, %v1295_v2, %v24_v4  ;;  %v1304_v10 = vld [vmem:[%s2652_s0 + $0xfa] sm:$0x8]   ;;  %v68_v13 = vsel %vm9_vm1, %v1303_v7, %v64_v9  ;;  %v1300_v16 = vld [vmem:[%s2652_s0 + $0xfb] sm:$0x8]   ;;  %v48_v22 = vsel %vm9_vm1, %v1299_v15, %v44_v18 }
   0x5   :  { %v32_v12 = vsel %vm13_vm2, %v1296_v3, %v28_v8  ;;  %v72_v17 = vsel %vm13_vm2, %v1304_v10, %v68_v13  ;;  %v1305_v19 = vld [vmem:[%s2652_s0 + $0x3c] sm:$0x1]   ;;  %v1309_v25 = vld [vmem:[%s2652_s0 + $0x3b] sm:$0x1]   ;;  %v52_v26 = vsel %vm13_vm2, %v1300_v16, %v48_v22  ;;  %v1313_v33 = vld [vmem:[%s2652_s0 + $0x3a] sm:$0x1]  }
   0x6   :  { %33 = vrot.lane.b32.xlu0 %v32_v12, %s1609_s30  ;;  %v1306_v20 = vld [vmem:[%s2652_s0 + $0xbb] sm:$0x2]   ;;  %73 = vrot.lane.b32.xlu1 %v72_v17, %s1610_s8  ;;  %v1310_v28 = vld [vmem:[%s2652_s0 + $0xba] sm:$0x2]   ;;  %s1611_s25 = smov 124   ;;  %s1612_s30 = smov 120  }
   0x7   :  { %v1307_v21 = vld [vmem:[%s2652_s0 + $0x7a] sm:$0x4]   ;;  %v84_v23 = vsel %vm5_vm0, %v1306_v20, %v1305_v19  ;;  %v1311_v29 = vld [vmem:[%s2652_s0 + $0x79] sm:$0x4]   ;;  %v104_v32 = vsel %vm5_vm0, %v1310_v28, %v1309_v25  ;;  %v1314_v34 = vld [vmem:[%s2652_s0 + $0xb9] sm:$0x2]  }
   0x8   :  { %v1308_v24 = vld [vmem:[%s2652_s0 + $0xf9] sm:$0x8]   ;;  %v88_v27 = vsel %vm9_vm1, %v1307_v21, %v84_v23  ;;  %v1312_v30 = vld [vmem:[%s2652_s0 + $0xf8] sm:$0x8]   ;;  %v1315_v35 = vld [vmem:[%s2652_s0 + $0x78] sm:$0x4]   ;;  %v108_v36 = vsel %vm9_vm1, %v1311_v29, %v104_v32  ;;  %v124_v37 = vsel %vm5_vm0, %v1314_v34, %v1313_v33 }
   0x9   :  { %v92_v31 = vsel %vm13_vm2, %v1308_v24, %v88_v27  ;;  %v1316_v38 = vld [vmem:[%s2652_s0 + $0xf7] sm:$0x8]   ;;  %v1317_v39 = vld [vmem:[%s2652_s0 + $0x39] sm:$0x1]   ;;  %v112_v40 = vsel %vm13_vm2, %v1312_v30, %v108_v36  ;;  %v128_v41 = vsel %vm9_vm1, %v1315_v35, %v124_v37  ;;  %v1321_v47 = vld [vmem:[%s2652_s0 + $0x38] sm:$0x1]  }
   0xa   :  { %53 = vrot.lane.b32.xlu0 %v52_v26, %s1611_s25  ;;  %93 = vrot.lane.b32.xlu1 %v92_v31, %s1612_s30  ;;  %v1318_v42 = vld [vmem:[%s2652_s0 + $0xb8] sm:$0x2]   ;;  %v132_v45 = vsel %vm13_vm2, %v1316_v38, %v128_v41  ;;  %v1322_v48 = vld [vmem:[%s2652_s0 + $0xb7] sm:$0x2]   ;;  %s1613_s18 = smov 118   ;;  %s1614_s23 = smov 116  }
   0xb   :  { %v1319_v43 = vld [vmem:[%s2652_s0 + $0x77] sm:$0x4]   ;;  %v144_v46 = vsel %vm5_vm0, %v1318_v42, %v1317_v39  ;;  %v1323_v49 = vld [vmem:[%s2652_s0 + $0x76] sm:$0x4]   ;;  %v164_v51 = vsel %vm5_vm0, %v1322_v48, %v1321_v47  ;;  %v1325_v53 = vld [vmem:[%s2652_s0 + $0x37] sm:$0x1]  }
   0xc   :  { %v1320_v44 = vld [vmem:[%s2652_s0 + $0xf6] sm:$0x8]   ;;  %v148_v50 = vsel %vm9_vm1, %v1319_v43, %v144_v46  ;;  %v1324_v52 = vld [vmem:[%s2652_s0 + $0xf5] sm:$0x8]   ;;  %v168_v54 = vsel %vm9_vm1, %v1323_v49, %v164_v51  ;;  %v1326_v55 = vld [vmem:[%s2652_s0 + $0xb6] sm:$0x2]  }
   0xd   :  { %v1327_v56 = vld [vmem:[%s2652_s0 + $0x75] sm:$0x4]   ;;  %v152_v57 = vsel %vm13_vm2, %v1320_v44, %v148_v50  ;;  %v184_v58 = vsel %vm5_vm0, %v1326_v55, %v1325_v53  ;;  %v1329_v59 = vld [vmem:[%s2652_s0 + $0x36] sm:$0x1]   ;;  %v172_v62 = vsel %vm13_vm2, %v1324_v52, %v168_v54  ;;  %v1333_v2 = vld [vmem:[%s2652_s0 + $0x35] sm:$0x1]  }
   0xe   :  { %113 = vrot.lane.b32.xlu0 %v112_v40, %s1613_s18  ;;  %133 = vrot.lane.b32.xlu1 %v132_v45, %s1614_s23  ;;  %v1330_v60 = vld [vmem:[%s2652_s0 + $0xb5] sm:$0x2]   ;;  %v188_v63 = vsel %vm9_vm1, %v1327_v56, %v184_v58  ;;  %v1328_v0 = vld [vmem:[%s2652_s0 + $0xf4] sm:$0x8]   ;;  %s1615_s11 = smov 114   ;;  %s1616_s18 = smov 112  }
   0xf   :  { %v1331_v61 = vld [vmem:[%s2652_s0 + $0x74] sm:$0x4]   ;;  %v204_v1 = vsel %vm5_vm0, %v1330_v60, %v1329_v59  ;;  %v1334_v5 = vld [vmem:[%s2652_s0 + $0xb4] sm:$0x2]   ;;  %v1337_v8 = vld [vmem:[%s2652_s0 + $0x34] sm:$0x1]   ;;  %v192_v11 = vsel %vm13_vm2, %v1328_v0, %v188_v63 }
  0x10   :  { %v208_v3 = vsel %vm9_vm1, %v1331_v61, %v204_v1  ;;  %v1332_v4 = vld [vmem:[%s2652_s0 + $0xf3] sm:$0x8]   ;;  %v1335_v6 = vld [vmem:[%s2652_s0 + $0x73] sm:$0x4]   ;;  %v224_v7 = vsel %vm5_vm0, %v1334_v5, %v1333_v2  ;;  %v1338_v9 = vld [vmem:[%s2652_s0 + $0xb3] sm:$0x2]  }
  0x11   :  { %v1339_v10 = vld [vmem:[%s2652_s0 + $0x72] sm:$0x4]   ;;  %v244_v12 = vsel %vm5_vm0, %v1338_v9, %v1337_v8  ;;  %v1341_v13 = vld [vmem:[%s2652_s0 + $0x33] sm:$0x1]   ;;  %v212_v14 = vsel %vm13_vm2, %v1332_v4, %v208_v3  ;;  %v228_v15 = vsel %vm9_vm1, %v1335_v6, %v224_v7  ;;  %v1336_v16 = vld [vmem:[%s2652_s0 + $0xf2] sm:$0x8]  }
  0x12   :  { %153 = vrot.lane.b32.xlu0 %v152_v57, %s1615_s11  ;;  %173 = vrot.lane.b32.xlu1 %v172_v62, %s1616_s18  ;;  %v1340_v17 = vld [vmem:[%s2652_s0 + $0xf1] sm:$0x8]   ;;  %v1342_v18 = vld [vmem:[%s2652_s0 + $0xb2] sm:$0x2]   ;;  %v248_v19 = vsel %vm9_vm1, %v1339_v10, %v244_v12  ;;  %s1617_s4 = smov 110   ;;  %s1618_s9 = smov 108   ;;  %v232_v27 = vsel %vm13_vm2, %v1336_v16, %v228_v15 }
  0x13   :  { %v264_v20 = vsel %vm5_vm0, %v1342_v18, %v1341_v13  ;;  %v1343_v21 = vld [vmem:[%s2652_s0 + $0x71] sm:$0x4]   ;;  %v1345_v22 = vld [vmem:[%s2652_s0 + $0x32] sm:$0x1]   ;;  %v1349_v26 = vld [vmem:[%s2652_s0 + $0x31] sm:$0x1]   ;;  %v252_v29 = vsel %vm13_vm2, %v1340_v17, %v248_v19 }
  0x14   :  { %v1346_v23 = vld [vmem:[%s2652_s0 + $0xb1] sm:$0x2]   ;;  %v1350_v28 = vld [vmem:[%s2652_s0 + $0xb0] sm:$0x2]   ;;  %v268_v30 = vsel %vm9_vm1, %v1343_v21, %v264_v20  ;;  %v1344_v31 = vld [vmem:[%s2652_s0 + $0xf0] sm:$0x8]  }
  0x15   :  { %v284_v24 = vsel %vm5_vm0, %v1346_v23, %v1345_v22  ;;  %v1347_v25 = vld [vmem:[%s2652_s0 + $0x70] sm:$0x4]   ;;  %v1353_v32 = vld [vmem:[%s2652_s0 + $0x30] sm:$0x1]   ;;  %v304_v36 = vsel %vm5_vm0, %v1350_v28, %v1349_v26  ;;  %v1351_v37 = vld [vmem:[%s2652_s0 + $0x6f] sm:$0x4]   ;;  %v272_v42 = vsel %vm13_vm2, %v1344_v31, %v268_v30 }
  0x16   :  { %193 = vrot.lane.b32.xlu0 %v192_v11, %s1617_s4  ;;  %213 = vrot.lane.b32.xlu1 %v212_v14, %s1618_s9  ;;  %v1354_v33 = vld [vmem:[%s2652_s0 + $0xaf] sm:$0x2]   ;;  %v288_v34 = vsel %vm9_vm1, %v1347_v25, %v284_v24  ;;  %v1348_v35 = vld [vmem:[%s2652_s0 + $0xef] sm:$0x8]   ;;  %s1619_s22 = smov 106   ;;  %s1620_s29 = smov 104   ;;  %v308_v46 = vsel %vm9_vm1, %v1351_v37, %v304_v36 }
  0x17   :  { %v324_v38 = vsel %vm5_vm0, %v1354_v33, %v1353_v32  ;;  %v1355_v39 = vld [vmem:[%s2652_s0 + $0x6e] sm:$0x4]   ;;  %v1357_v40 = vld [vmem:[%s2652_s0 + $0x2f] sm:$0x1]   ;;  %v1361_v43 = vld [vmem:[%s2652_s0 + $0x2e] sm:$0x1]   ;;  %v292_v45 = vsel %vm13_vm2, %v1348_v35, %v288_v34 }
  0x18   :  { %v1358_v41 = vld [vmem:[%s2652_s0 + $0xae] sm:$0x2]   ;;  %v1362_v44 = vld [vmem:[%s2652_s0 + $0xad] sm:$0x2]   ;;  %v1352_v47 = vld [vmem:[%s2652_s0 + $0xee] sm:$0x8]   ;;  %v328_v48 = vsel %vm9_vm1, %v1355_v39, %v324_v38 }
  0x19   :  { %v1356_v49 = vld [vmem:[%s2652_s0 + $0xed] sm:$0x8]   ;;  %v344_v50 = vsel %vm5_vm0, %v1358_v41, %v1357_v40  ;;  %v1359_v51 = vld [vmem:[%s2652_s0 + $0x6d] sm:$0x4]   ;;  %s1621_s11 = smov 102   ;;  %v364_v52 = vsel %vm5_vm0, %v1362_v44, %v1361_v43  ;;  %s1622_s18 = smov 100   ;;  %v312_v56 = vsel %vm13_vm2, %v1352_v47, %v308_v46 }
  0x1a   :  { %233 = vrot.lane.b32.xlu0 %v232_v27, %s1619_s22  ;;  %253 = vrot.lane.b32.xlu1 %v252_v29, %s1620_s29  ;;  %v1363_v53 = vld [vmem:[%s2652_s0 + $0x6c] sm:$0x4]   ;;  %v1365_v54 = vld [vmem:[%s2652_s0 + $0x2d] sm:$0x1]   ;;  %v332_v59 = vsel %vm13_vm2, %v1356_v49, %v328_v48  ;;  %v348_v60 = vsel %vm9_vm1, %v1359_v51, %v344_v50  ;;  %s1623_s29 = smov 98   ;;  %s1624_s7 = smov 96  }
  0x1b   :  { %v1366_v55 = vld [vmem:[%s2652_s0 + $0xac] sm:$0x2]   ;;  %v1369_v57 = vld [vmem:[%s2652_s0 + $0x2c] sm:$0x1]   ;;  %v1360_v61 = vld [vmem:[%s2652_s0 + $0xec] sm:$0x8]   ;;  %v368_v62 = vsel %vm9_vm1, %v1363_v53, %v364_v52 }
  0x1c   :  { %v1370_v58 = vld [vmem:[%s2652_s0 + $0xab] sm:$0x2]   ;;  %v1364_v63 = vld [vmem:[%s2652_s0 + $0xeb] sm:$0x8]   ;;  %v384_v0 = vsel %vm5_vm0, %v1366_v55, %v1365_v54  ;;  %v1367_v1 = vld [vmem:[%s2652_s0 + $0x6b] sm:$0x4]   ;;  %v352_v6 = vsel %vm13_vm2, %v1360_v61, %v348_v60 }
  0x1d   :  { %v404_v2 = vsel %vm5_vm0, %v1370_v58, %v1369_v57  ;;  %v1371_v3 = vld [vmem:[%s2652_s0 + $0x6a] sm:$0x4]   ;;  %v1373_v4 = vld [vmem:[%s2652_s0 + $0x2b] sm:$0x1]   ;;  %v1377_v7 = vld [vmem:[%s2652_s0 + $0x2a] sm:$0x1]   ;;  %v372_v9 = vsel %vm13_vm2, %v1364_v63, %v368_v62  ;;  %v388_v10 = vsel %vm9_vm1, %v1367_v1, %v384_v0 }
  0x1e   :  { %273 = vrot.lane.b32.xlu0 %v272_v42, %s1621_s11  ;;  %293 = vrot.lane.b32.xlu1 %v292_v45, %s1622_s18  ;;  %v1374_v5 = vld [vmem:[%s2652_s0 + $0xaa] sm:$0x2]   ;;  %v1378_v8 = vld [vmem:[%s2652_s0 + $0xa9] sm:$0x2]   ;;  %v408_v12 = vsel %vm9_vm1, %v1371_v3, %v404_v2  ;;  %s1625_s18 = smov 94   ;;  %s1626_s25 = smov 92  }
  0x1f   :  { %v1368_v11 = vld [vmem:[%s2652_s0 + $0xea] sm:$0x8]   ;;  %v1372_v13 = vld [vmem:[%s2652_s0 + $0xe9] sm:$0x8]   ;;  %v424_v14 = vsel %vm5_vm0, %v1374_v5, %v1373_v4  ;;  %v1375_v15 = vld [vmem:[%s2652_s0 + $0x69] sm:$0x4]   ;;  %v444_v16 = vsel %vm5_vm0, %v1378_v8, %v1377_v7 }
  0x20   :  { %v1379_v17 = vld [vmem:[%s2652_s0 + $0x68] sm:$0x4]   ;;  %v1381_v18 = vld [vmem:[%s2652_s0 + $0x29] sm:$0x1]   ;;  %v392_v20 = vsel %vm13_vm2, %v1368_v11, %v388_v10  ;;  %v1385_v21 = vld [vmem:[%s2652_s0 + $0x28] sm:$0x1]   ;;  %v412_v23 = vsel %vm13_vm2, %v1372_v13, %v408_v12  ;;  %v428_v24 = vsel %vm9_vm1, %v1375_v15, %v424_v14 }
  0x21   :  { %v1382_v19 = vld [vmem:[%s2652_s0 + $0xa8] sm:$0x2]   ;;  %v1386_v22 = vld [vmem:[%s2652_s0 + $0xa7] sm:$0x2]   ;;  %v1376_v25 = vld [vmem:[%s2652_s0 + $0xe8] sm:$0x8]   ;;  %v448_v26 = vsel %vm9_vm1, %v1379_v17, %v444_v16 }
  0x22   :  { %313 = vrot.lane.b32.xlu0 %v312_v56, %s1623_s29  ;;  %333 = vrot.lane.b32.xlu1 %v332_v59, %s1624_s7  ;;  %v1380_v27 = vld [vmem:[%s2652_s0 + $0xe7] sm:$0x8]   ;;  %v464_v28 = vsel %vm5_vm0, %v1382_v19, %v1381_v18  ;;  %v1383_v29 = vld [vmem:[%s2652_s0 + $0x67] sm:$0x4]   ;;  %s1627_s7 = smov 90   ;;  %v484_v30 = vsel %vm5_vm0, %v1386_v22, %v1385_v21  ;;  %s1628_s14 = smov 88   ;;  %v432_v34 = vsel %vm13_vm2, %v1376_v25, %v428_v24 }
  0x23   :  { %v1387_v31 = vld [vmem:[%s2652_s0 + $0x66] sm:$0x4]   ;;  %v1389_v32 = vld [vmem:[%s2652_s0 + $0x27] sm:$0x1]   ;;  %v1393_v35 = vld [vmem:[%s2652_s0 + $0x26] sm:$0x1]   ;;  %v452_v37 = vsel %vm13_vm2, %v1380_v27, %v448_v26  ;;  %v468_v38 = vsel %vm9_vm1, %v1383_v29, %v464_v28 }
  0x24   :  { %v1390_v33 = vld [vmem:[%s2652_s0 + $0xa6] sm:$0x2]   ;;  %v1394_v36 = vld [vmem:[%s2652_s0 + $0xa5] sm:$0x2]   ;;  %v1384_v39 = vld [vmem:[%s2652_s0 + $0xe6] sm:$0x8]   ;;  %v488_v40 = vsel %vm9_vm1, %v1387_v31, %v484_v30 }
  0x25   :  { %v1388_v41 = vld [vmem:[%s2652_s0 + $0xe5] sm:$0x8]   ;;  %v504_v42 = vsel %vm5_vm0, %v1390_v33, %v1389_v32  ;;  %v1391_v43 = vld [vmem:[%s2652_s0 + $0x65] sm:$0x4]   ;;  %v524_v44 = vsel %vm5_vm0, %v1394_v36, %v1393_v35  ;;  %v1395_v45 = vld [vmem:[%s2652_s0 + $0x64] sm:$0x4]   ;;  %v472_v48 = vsel %vm13_vm2, %v1384_v39, %v468_v38 }
  0x26   :  { %353 = vrot.lane.b32.xlu0 %v352_v6, %s1625_s18  ;;  %373 = vrot.lane.b32.xlu1 %v372_v9, %s1626_s25  ;;  %s1629_s25 = smov 86   ;;  %v1397_v46 = vld [vmem:[%s2652_s0 + $0x25] sm:$0x1]   ;;  %s1630_s3 = smov 84   ;;  %v1401_v49 = vld [vmem:[%s2652_s0 + $0x24] sm:$0x1]   ;;  %v492_v51 = vsel %vm13_vm2, %v1388_v41, %v488_v40  ;;  %v508_v52 = vsel %vm9_vm1, %v1391_v43, %v504_v42  ;;  %v528_v54 = vsel %vm9_vm1, %v1395_v45, %v524_v44 }
  0x27   :  { %v1398_v47 = vld [vmem:[%s2652_s0 + $0xa4] sm:$0x2]   ;;  %v1402_v50 = vld [vmem:[%s2652_s0 + $0xa3] sm:$0x2]   ;;  %v1392_v53 = vld [vmem:[%s2652_s0 + $0xe4] sm:$0x8]  }
  0x28   :  { %v1396_v55 = vld [vmem:[%s2652_s0 + $0xe3] sm:$0x8]   ;;  %v544_v56 = vsel %vm5_vm0, %v1398_v47, %v1397_v46  ;;  %v1399_v57 = vld [vmem:[%s2652_s0 + $0x63] sm:$0x4]   ;;  %v564_v58 = vsel %vm5_vm0, %v1402_v50, %v1401_v49  ;;  %v1403_v59 = vld [vmem:[%s2652_s0 + $0x62] sm:$0x4]   ;;  %v512_v62 = vsel %vm13_vm2, %v1392_v53, %v508_v52 }
  0x29   :  { %v1405_v60 = vld [vmem:[%s2652_s0 + $0x23] sm:$0x1]   ;;  %s1632_s21 = smov 80   ;;  %v1409_v63 = vld [vmem:[%s2652_s0 + $0x22] sm:$0x1]   ;;  %v532_v1 = vsel %vm13_vm2, %v1396_v55, %v528_v54  ;;  %v548_v2 = vsel %vm9_vm1, %v1399_v57, %v544_v56  ;;  %v568_v4 = vsel %vm9_vm1, %v1403_v59, %v564_v58  ;;  %s1634_s10 = smov 76  }
  0x2a   :  { %393 = vrot.lane.b32.xlu0 %v392_v20, %s1627_s7  ;;  %413 = vrot.lane.b32.xlu1 %v412_v23, %s1628_s14  ;;  %s1631_s14 = smov 82   ;;  %v1406_v61 = vld [vmem:[%s2652_s0 + $0xa2] sm:$0x2]   ;;  %v1410_v0 = vld [vmem:[%s2652_s0 + $0xa1] sm:$0x2]   ;;  %s1636_s28 = smov 72  }
  0x2b   :  { %v1400_v3 = vld [vmem:[%s2652_s0 + $0xe2] sm:$0x8]   ;;  %v1404_v5 = vld [vmem:[%s2652_s0 + $0xe1] sm:$0x8]   ;;  %v584_v6 = vsel %vm5_vm0, %v1406_v61, %v1405_v60  ;;  %v1407_v7 = vld [vmem:[%s2652_s0 + $0x61] sm:$0x4]   ;;  %v604_v8 = vsel %vm5_vm0, %v1410_v0, %v1409_v63 }
  0x2c   :  { %v1411_v9 = vld [vmem:[%s2652_s0 + $0x60] sm:$0x4]   ;;  %v1413_v10 = vld [vmem:[%s2652_s0 + $0x21] sm:$0x1]   ;;  %v552_v12 = vsel %vm13_vm2, %v1400_v3, %v548_v2  ;;  %v1417_v13 = vld [vmem:[%s2652_s0 + $0x20] sm:$0x1]   ;;  %v572_v15 = vsel %vm13_vm2, %v1404_v5, %v568_v4  ;;  %v588_v16 = vsel %vm9_vm1, %v1407_v7, %v584_v6 }
  0x2d   :  { %v1414_v11 = vld [vmem:[%s2652_s0 + $0xa0] sm:$0x2]   ;;  %v1418_v14 = vld [vmem:[%s2652_s0 + $0x9f] sm:$0x2]   ;;  %v1408_v17 = vld [vmem:[%s2652_s0 + $0xe0] sm:$0x8]   ;;  %v608_v18 = vsel %vm9_vm1, %v1411_v9, %v604_v8 }
  0x2e   :  { %433 = vrot.lane.b32.xlu0 %v432_v34, %s1629_s25  ;;  %453 = vrot.lane.b32.xlu1 %v452_v37, %s1630_s3  ;;  %s1633_s3 = smov 78   ;;  %v1412_v19 = vld [vmem:[%s2652_s0 + $0xdf] sm:$0x8]   ;;  %v624_v20 = vsel %vm5_vm0, %v1414_v11, %v1413_v10  ;;  %v1415_v21 = vld [vmem:[%s2652_s0 + $0x5f] sm:$0x4]   ;;  %v644_v22 = vsel %vm5_vm0, %v1418_v14, %v1417_v13  ;;  %v592_v26 = vsel %vm13_vm2, %v1408_v17, %v588_v16  ;;  %s1638_s17 = smov 68  }
  0x2f   :  { %v1419_v23 = vld [vmem:[%s2652_s0 + $0x5e] sm:$0x4]   ;;  %v1421_v24 = vld [vmem:[%s2652_s0 + $0x1f] sm:$0x1]   ;;  %v1425_v27 = vld [vmem:[%s2652_s0 + $0x1e] sm:$0x1]   ;;  %v612_v29 = vsel %vm13_vm2, %v1412_v19, %v608_v18  ;;  %v628_v30 = vsel %vm9_vm1, %v1415_v21, %v624_v20 }
  0x30   :  { %v1422_v25 = vld [vmem:[%s2652_s0 + $0x9e] sm:$0x2]   ;;  %v1426_v28 = vld [vmem:[%s2652_s0 + $0x9d] sm:$0x2]   ;;  %v1416_v31 = vld [vmem:[%s2652_s0 + $0xde] sm:$0x8]   ;;  %v648_v32 = vsel %vm9_vm1, %v1419_v23, %v644_v22 }
  0x31   :  { %v1420_v33 = vld [vmem:[%s2652_s0 + $0xdd] sm:$0x8]   ;;  %v664_v34 = vsel %vm5_vm0, %v1422_v25, %v1421_v24  ;;  %v1423_v35 = vld [vmem:[%s2652_s0 + $0x5d] sm:$0x4]   ;;  %v684_v36 = vsel %vm5_vm0, %v1426_v28, %v1425_v27  ;;  %v1427_v37 = vld [vmem:[%s2652_s0 + $0x5c] sm:$0x4]   ;;  %v632_v40 = vsel %vm13_vm2, %v1416_v31, %v628_v30 }
  0x32   :  { %473 = vrot.lane.b32.xlu0 %v472_v48, %s1631_s14  ;;  %493 = vrot.lane.b32.xlu1 %v492_v51, %s1632_s21  ;;  %s1635_s21 = smov 74   ;;  %v1429_v38 = vld [vmem:[%s2652_s0 + $0x1d] sm:$0x1]   ;;  %v1433_v41 = vld [vmem:[%s2652_s0 + $0x1c] sm:$0x1]   ;;  %v652_v43 = vsel %vm13_vm2, %v1420_v33, %v648_v32  ;;  %v668_v44 = vsel %vm9_vm1, %v1423_v35, %v664_v34  ;;  %v688_v46 = vsel %vm9_vm1, %v1427_v37, %v684_v36  ;;  %s1640_s6 = smov 64  }
  0x33   :  { %v1430_v39 = vld [vmem:[%s2652_s0 + $0x9c] sm:$0x2]   ;;  %v1434_v42 = vld [vmem:[%s2652_s0 + $0x9b] sm:$0x2]   ;;  %v1424_v45 = vld [vmem:[%s2652_s0 + $0xdc] sm:$0x8]  }
  0x34   :  { %v1428_v47 = vld [vmem:[%s2652_s0 + $0xdb] sm:$0x8]   ;;  %v704_v48 = vsel %vm5_vm0, %v1430_v39, %v1429_v38  ;;  %v1431_v49 = vld [vmem:[%s2652_s0 + $0x5b] sm:$0x4]   ;;  %v724_v50 = vsel %vm5_vm0, %v1434_v42, %v1433_v41  ;;  %v1435_v51 = vld [vmem:[%s2652_s0 + $0x5a] sm:$0x4]   ;;  %v672_v54 = vsel %vm13_vm2, %v1424_v45, %v668_v44 }
  0x35   :  { %v1437_v52 = vld [vmem:[%s2652_s0 + $0x1b] sm:$0x1]   ;;  %v1441_v55 = vld [vmem:[%s2652_s0 + $0x1a] sm:$0x1]   ;;  %v692_v57 = vsel %vm13_vm2, %v1428_v47, %v688_v46  ;;  %v708_v58 = vsel %vm9_vm1, %v1431_v49, %v704_v48  ;;  %v1432_v59 = vld [vmem:[%s2652_s0 + $0xda] sm:$0x8]   ;;  %v728_v60 = vsel %vm9_vm1, %v1435_v51, %v724_v50 }
  0x36   :  { %513 = vrot.lane.b32.xlu0 %v512_v62, %s1633_s3  ;;  %533 = vrot.lane.b32.xlu1 %v532_v1, %s1634_s10  ;;  %s1637_s10 = smov 70   ;;  %v1438_v53 = vld [vmem:[%s2652_s0 + $0x9a] sm:$0x2]   ;;  %v1442_v56 = vld [vmem:[%s2652_s0 + $0x99] sm:$0x2]   ;;  %s1642_s24 = smov 60   ;;  %v712_v4 = vsel %vm13_vm2, %v1432_v59, %v708_v58 }
  0x37   :  { %v1436_v61 = vld [vmem:[%s2652_s0 + $0xd9] sm:$0x8]   ;;  %v744_v62 = vsel %vm5_vm0, %v1438_v53, %v1437_v52  ;;  %v1439_v63 = vld [vmem:[%s2652_s0 + $0x59] sm:$0x4]   ;;  %v764_v0 = vsel %vm5_vm0, %v1442_v56, %v1441_v55  ;;  %v1443_v1 = vld [vmem:[%s2652_s0 + $0x58] sm:$0x4]  }
  0x38   :  { %v1445_v2 = vld [vmem:[%s2652_s0 + $0x19] sm:$0x1]   ;;  %v1449_v5 = vld [vmem:[%s2652_s0 + $0x18] sm:$0x1]   ;;  %v732_v7 = vsel %vm13_vm2, %v1436_v61, %v728_v60  ;;  %v748_v8 = vsel %vm9_vm1, %v1439_v63, %v744_v62  ;;  %v1440_v9 = vld [vmem:[%s2652_s0 + $0xd8] sm:$0x8]   ;;  %v768_v10 = vsel %vm9_vm1, %v1443_v1, %v764_v0 }
  0x39   :  { %v1446_v3 = vld [vmem:[%s2652_s0 + $0x98] sm:$0x2]   ;;  %v1450_v6 = vld [vmem:[%s2652_s0 + $0x97] sm:$0x2]   ;;  %v1444_v11 = vld [vmem:[%s2652_s0 + $0xd7] sm:$0x8]   ;;  %v752_v18 = vsel %vm13_vm2, %v1440_v9, %v748_v8 }
  0x3a   :  { %553 = vrot.lane.b32.xlu0 %v552_v12, %s1635_s21  ;;  %573 = vrot.lane.b32.xlu1 %v572_v15, %s1636_s28  ;;  %s1639_s28 = smov 66   ;;  %v784_v12 = vsel %vm5_vm0, %v1446_v3, %v1445_v2  ;;  %v1447_v13 = vld [vmem:[%s2652_s0 + $0x57] sm:$0x4]   ;;  %v804_v14 = vsel %vm5_vm0, %v1450_v6, %v1449_v5  ;;  %v1451_v15 = vld [vmem:[%s2652_s0 + $0x56] sm:$0x4]   ;;  %s1644_s13 = smov 56   ;;  %v772_v21 = vsel %vm13_vm2, %v1444_v11, %v768_v10 }
  0x3b   :  { %v1453_v16 = vld [vmem:[%s2652_s0 + $0x17] sm:$0x1]   ;;  %v1457_v19 = vld [vmem:[%s2652_s0 + $0x16] sm:$0x1]   ;;  %v788_v22 = vsel %vm9_vm1, %v1447_v13, %v784_v12  ;;  %v1448_v23 = vld [vmem:[%s2652_s0 + $0xd6] sm:$0x8]   ;;  %v808_v24 = vsel %vm9_vm1, %v1451_v15, %v804_v14 }
  0x3c   :  { %v1454_v17 = vld [vmem:[%s2652_s0 + $0x96] sm:$0x2]   ;;  %v1458_v20 = vld [vmem:[%s2652_s0 + $0x95] sm:$0x2]   ;;  %v1452_v25 = vld [vmem:[%s2652_s0 + $0xd5] sm:$0x8]   ;;  %v792_v32 = vsel %vm13_vm2, %v1448_v23, %v788_v22 }
  0x3d   :  { %v1455_v27 = vld [vmem:[%s2652_s0 + $0x55] sm:$0x4]   ;;  %v844_v28 = vsel %vm5_vm0, %v1458_v20, %v1457_v19  ;;  %v1461_v30 = vld [vmem:[%s2652_s0 + $0x15] sm:$0x1]   ;;  %s1646_s2 = smov 52   ;;  %v812_v35 = vsel %vm13_vm2, %v1452_v25, %v808_v24  ;;  %s1648_s20 = smov 48  }
  0x3e   :  { %593 = vrot.lane.b32.xlu0 %v592_v26, %s1637_s10  ;;  %613 = vrot.lane.b32.xlu1 %v612_v29, %s1638_s17  ;;  %s1641_s17 = smov 62   ;;  %v824_v26 = vsel %vm5_vm0, %v1454_v17, %v1453_v16  ;;  %v1459_v29 = vld [vmem:[%s2652_s0 + $0x54] sm:$0x4]   ;;  %v1462_v31 = vld [vmem:[%s2652_s0 + $0x94] sm:$0x2]   ;;  %s1650_s11 = smov 44  }
  0x3f   :  { %v1465_v33 = vld [vmem:[%s2652_s0 + $0x14] sm:$0x1]   ;;  %v828_v36 = vsel %vm9_vm1, %v1455_v27, %v824_v26  ;;  %v1456_v37 = vld [vmem:[%s2652_s0 + $0xd4] sm:$0x8]   ;;  %v848_v38 = vsel %vm9_vm1, %v1459_v29, %v844_v28  ;;  %v1460_v39 = vld [vmem:[%s2652_s0 + $0xd3] sm:$0x8]  }
  0x40   :  { %v1466_v34 = vld [vmem:[%s2652_s0 + $0x93] sm:$0x2]   ;;  %v1463_v41 = vld [vmem:[%s2652_s0 + $0x53] sm:$0x4]   ;;  %v1469_v44 = vld [vmem:[%s2652_s0 + $0x13] sm:$0x1]   ;;  %v832_v46 = vsel %vm13_vm2, %v1456_v37, %v828_v36  ;;  %v852_v49 = vsel %vm13_vm2, %v1460_v39, %v848_v38 }
  0x41   :  { %v884_v42 = vsel %vm5_vm0, %v1466_v34, %v1465_v33  ;;  %v1470_v45 = vld [vmem:[%s2652_s0 + $0x92] sm:$0x2]   ;;  %v1473_v47 = vld [vmem:[%s2652_s0 + $0x12] sm:$0x1]   ;;  %v1464_v51 = vld [vmem:[%s2652_s0 + $0xd2] sm:$0x8]  }
  0x42   :  { %633 = vrot.lane.b32.xlu0 %v632_v40, %s1639_s28  ;;  %653 = vrot.lane.b32.xlu1 %v652_v43, %s1640_s6  ;;  %s1643_s6 = smov 58   ;;  %v864_v40 = vsel %vm5_vm0, %v1462_v31, %v1461_v30  ;;  %v1467_v43 = vld [vmem:[%s2652_s0 + $0x52] sm:$0x4]   ;;  %v1474_v48 = vld [vmem:[%s2652_s0 + $0x91] sm:$0x2]   ;;  %s1651_s28 = smov 42  }
  0x43   :  { %v868_v50 = vsel %vm9_vm1, %v1463_v41, %v864_v40  ;;  %v888_v52 = vsel %vm9_vm1, %v1467_v43, %v884_v42  ;;  %v1468_v53 = vld [vmem:[%s2652_s0 + $0xd1] sm:$0x8]   ;;  %v1471_v55 = vld [vmem:[%s2652_s0 + $0x51] sm:$0x4]   ;;  %v1475_v58 = vld [vmem:[%s2652_s0 + $0x50] sm:$0x4]  }
  0x44   :  { %v1472_v56 = vld [vmem:[%s2652_s0 + $0xd0] sm:$0x8]   ;;  %v1477_v59 = vld [vmem:[%s2652_s0 + $0x11] sm:$0x1]   ;;  %v872_v61 = vsel %vm13_vm2, %v1464_v51, %v868_v50  ;;  %v1481_v62 = vld [vmem:[%s2652_s0 + $0x10] sm:$0x1]   ;;  %v892_v1 = vsel %vm13_vm2, %v1468_v53, %v888_v52 }
  0x45   :  { %v1478_v60 = vld [vmem:[%s2652_s0 + $0x90] sm:$0x2]   ;;  %v1482_v63 = vld [vmem:[%s2652_s0 + $0x8f] sm:$0x2]   ;;  %v1291_v0 = vld [vmem:[%s2652_s0 + $0x7e] sm:$0x4]  }
  0x46   :  { %673 = vrot.lane.b32.xlu0 %v672_v54, %s1641_s17  ;;  %693 = vrot.lane.b32.xlu1 %v692_v57, %s1642_s24  ;;  %s1645_s24 = smov 54   ;;  %v904_v54 = vsel %vm5_vm0, %v1470_v45, %v1469_v44  ;;  %v924_v57 = vsel %vm5_vm0, %v1474_v48, %v1473_v47  ;;  %v1292_v3 = vld [vmem:[%s2652_s0 + $0xbd] sm:$0x8]   ;;  %v944_v8 = vsel %vm5_vm0, %v1478_v60, %v1477_v59  ;;  %v1479_v9 = vld [vmem:[%s2652_s0 + $0x4f] sm:$0x4]   ;;  %s1653_s17 = smov 38  }
  0x47   :  { %v908_v2 = vsel %vm9_vm1, %v1471_v55, %v904_v54  ;;  %v1290_v5 = vld [vmem:[%s2652_s0 + $0x3f] sm:$0x2]   ;;  %v928_v6 = vsel %vm9_vm1, %v1475_v58, %v924_v57  ;;  %v964_v11 = vsel %vm5_vm0, %v1482_v63, %v1481_v62  ;;  %v1483_v12 = vld [vmem:[%s2652_s0 + $0x4e] sm:$0x4]   ;;  %v1485_v13 = vld [vmem:[%s2652_s0 + $0xf] sm:$0x1]  }
  0x48   :  { %v1486_v14 = vld [vmem:[%s2652_s0 + $0x8e] sm:$0x2]   ;;  %v912_v16 = vsel %vm13_vm2, %v1472_v56, %v908_v2  ;;  %v1489_v17 = vld [vmem:[%s2652_s0 + $0xe] sm:$0x1]   ;;  %v1480_v22 = vld [vmem:[%s2652_s0 + $0xce] sm:$0x8]   ;;  %v968_v23 = vsel %vm9_vm1, %v1483_v12, %v964_v11 }
  0x49   :  { %v1484_v24 = vld [vmem:[%s2652_s0 + $0xcd] sm:$0x8]   ;;  %v984_v25 = vsel %vm5_vm0, %v1486_v14, %v1485_v13  ;;  %v1487_v26 = vld [vmem:[%s2652_s0 + $0x4d] sm:$0x4]   ;;  %v1491_v28 = vld [vmem:[%s2652_s0 + $0x4c] sm:$0x4]  }
  0x4a   :  { %713 = vrot.lane.b32.xlu0 %v712_v4, %s1643_s6  ;;  %733 = vrot.lane.b32.xlu1 %v732_v7, %s1644_s13  ;;  %s1647_s13 = smov 50   ;;  %v2_v4 = vld [vmem:[%s2652_s0] sm:$0x1]   ;;  %v1476_v7 = vld [vmem:[%s2652_s0 + $0xcf] sm:$0x8]   ;;  %s1652_s6 = smov 40   ;;  %v972_v34 = vsel %vm13_vm2, %v1484_v24, %v968_v23 }
  0x4b   :  { %v6_v10 = vsel %vm5_vm0, %v1290_v5, %v2_v4  ;;  %v932_v20 = vsel %vm13_vm2, %v1476_v7, %v928_v6  ;;  %v1493_v29 = vld [vmem:[%s2652_s0 + $0xd] sm:$0x1]   ;;  %v1498_v33 = vld [vmem:[%s2652_s0 + $0x8b] sm:$0x2]   ;;  %v1488_v36 = vld [vmem:[%s2652_s0 + $0xcc] sm:$0x8]  }
  0x4c   :  { %v10_v15 = vsel %vm9_vm1, %v1291_v0, %v6_v10  ;;  %v1494_v30 = vld [vmem:[%s2652_s0 + $0x8c] sm:$0x2]   ;;  %v1492_v38 = vld [vmem:[%s2652_s0 + $0xcb] sm:$0x8]   ;;  %v1499_v42 = vld [vmem:[%s2652_s0 + $0x4a] sm:$0x4]  }
  0x4d   :  { %v14_v19 = vsel %vm13_vm2, %v1292_v3, %v10_v15  ;;  %v1024_v39 = vsel %vm5_vm0, %v1494_v30, %v1493_v29  ;;  %v1495_v40 = vld [vmem:[%s2652_s0 + $0x4b] sm:$0x4]   ;;  %v1501_v43 = vld [vmem:[%s2652_s0 + $0xb] sm:$0x1]   ;;  %v1506_v47 = vld [vmem:[%s2652_s0 + $0x89] sm:$0x2]  }
  0x4e   :  { %753 = vrot.lane.b32.xlu0 %v752_v18, %s1645_s24  ;;  %773 = vrot.lane.b32.xlu1 %v772_v21, %s1646_s2  ;;  %s1649_s2 = smov 46   ;;  %v1490_v18 = vld [vmem:[%s2652_s0 + $0x8d] sm:$0x2]   ;;  %v948_v21 = vsel %vm9_vm1, %v1479_v9, %v944_v8  ;;  %16 = vst.msk [vmem:[#allocation0] ss:$8 sm:$0x3] %vm15_vm3, %v14_v19  }
  0x4f   :  { %18 = vst.msk [vmem:[#allocation0 - $0xf] ss:$8 sm:$0xc] %vm15_vm3, %v14_v19   ;;  %v1004_v27 = vsel %vm5_vm0, %v1490_v18, %v1489_v17  ;;  %s1654_s24 = smov 36   ;;  %v952_v31 = vsel %vm13_vm2, %v1480_v22, %v948_v21  ;;  %v1502_v44 = vld [vmem:[%s2652_s0 + $0x8a] sm:$0x2]  }
  0x50   :  { %v1008_v37 = vsel %vm9_vm1, %v1491_v28, %v1004_v27  ;;  %v1496_v50 = vld [vmem:[%s2652_s0 + $0xca] sm:$0x8]   ;;  %v1500_v52 = vld [vmem:[%s2652_s0 + $0xc9] sm:$0x8]   ;;  %v1064_v53 = vsel %vm5_vm0, %v1502_v44, %v1501_v43  ;;  %v1503_v54 = vld [vmem:[%s2652_s0 + $0x49] sm:$0x4]  }
  0x51   :  { %v1012_v48 = vsel %vm13_vm2, %v1492_v38, %v1008_v37  ;;  %v1507_v56 = vld [vmem:[%s2652_s0 + $0x48] sm:$0x4]   ;;  %v1509_v57 = vld [vmem:[%s2652_s0 + $0x9] sm:$0x1]   ;;  %v1513_v60 = vld [vmem:[%s2652_s0 + $0x8] sm:$0x1]   ;;  %v1068_v63 = vsel %vm9_vm1, %v1503_v54, %v1064_v53 }
  0x52   :  { %793 = vrot.lane.b32.xlu0 %v792_v32, %s1647_s13  ;;  %813 = vrot.lane.b32.xlu1 %v812_v35, %s1648_s20  ;;  %v1497_v32 = vld [vmem:[%s2652_s0 + $0xc] sm:$0x1]   ;;  %v988_v35 = vsel %vm9_vm1, %v1487_v26, %v984_v25  ;;  %s1656_s13 = smov 32   ;;  %v1510_v58 = vld [vmem:[%s2652_s0 + $0x88] sm:$0x2]   ;;  %s1660_s20 = smov 24  }
  0x53   :  { %v1044_v41 = vsel %vm5_vm0, %v1498_v33, %v1497_v32  ;;  %v992_v45 = vsel %vm13_vm2, %v1488_v36, %v988_v35  ;;  %v1504_v0 = vld [vmem:[%s2652_s0 + $0xc8] sm:$0x8]   ;;  %v1508_v2 = vld [vmem:[%s2652_s0 + $0xc7] sm:$0x8]   ;;  %v1104_v3 = vsel %vm5_vm0, %v1510_v58, %v1509_v57  ;;  %v1511_v4 = vld [vmem:[%s2652_s0 + $0x47] sm:$0x4]  }
  0x54   :  { %v1048_v51 = vsel %vm9_vm1, %v1499_v42, %v1044_v41  ;;  %v1515_v6 = vld [vmem:[%s2652_s0 + $0x46] sm:$0x4]   ;;  %v1517_v7 = vld [vmem:[%s2652_s0 + $0x7] sm:$0x1]   ;;  %v1072_v9 = vsel %vm13_vm2, %v1504_v0, %v1068_v63  ;;  %v1521_v10 = vld [vmem:[%s2652_s0 + $0x6] sm:$0x1]   ;;  %v1108_v13 = vsel %vm9_vm1, %v1511_v4, %v1104_v3 }
  0x55   :  { %v1052_v62 = vsel %vm13_vm2, %v1500_v52, %v1048_v51  ;;  %v1518_v8 = vld [vmem:[%s2652_s0 + $0x86] sm:$0x2]   ;;  %v1522_v11 = vld [vmem:[%s2652_s0 + $0x85] sm:$0x2]   ;;  %v1512_v14 = vld [vmem:[%s2652_s0 + $0xc6] sm:$0x8]  }
  0x56   :  { %833 = vrot.lane.b32.xlu0 %v832_v46, %s1649_s2  ;;  %853 = vrot.lane.b32.xlu1 %v852_v49, %s1650_s11  ;;  %v1505_v46 = vld [vmem:[%s2652_s0 + $0xa] sm:$0x1]   ;;  %v1028_v49 = vsel %vm9_vm1, %v1495_v40, %v1024_v39  ;;  %s1658_s2 = smov 28   ;;  %v1144_v17 = vsel %vm5_vm0, %v1518_v8, %v1517_v7  ;;  %v1519_v18 = vld [vmem:[%s2652_s0 + $0x45] sm:$0x4]   ;;  %v1164_v19 = vsel %vm5_vm0, %v1522_v11, %v1521_v10  ;;  %s1662_s9 = smov 20  }
  0x57   :  { %v1084_v55 = vsel %vm5_vm0, %v1506_v47, %v1505_v46  ;;  %v1032_v59 = vsel %vm13_vm2, %v1496_v50, %v1028_v49  ;;  %v1525_v21 = vld [vmem:[%s2652_s0 + $0x5] sm:$0x1]   ;;  %v1112_v23 = vsel %vm13_vm2, %v1512_v14, %v1108_v13  ;;  %v1529_v24 = vld [vmem:[%s2652_s0 + $0x4] sm:$0x1]   ;;  %v1148_v27 = vsel %vm9_vm1, %v1519_v18, %v1144_v17  ;;  %v1520_v28 = vld [vmem:[%s2652_s0 + $0xc4] sm:$0x8]  }
  0x58   :  { %v1526_v22 = vld [vmem:[%s2652_s0 + $0x84] sm:$0x2]   ;;  %v1530_v25 = vld [vmem:[%s2652_s0 + $0x83] sm:$0x2]   ;;  %v1524_v30 = vld [vmem:[%s2652_s0 + $0xc3] sm:$0x8]   ;;  %v1152_v37 = vsel %vm13_vm2, %v1520_v28, %v1148_v27 }
  0x59   :  { %v1527_v32 = vld [vmem:[%s2652_s0 + $0x43] sm:$0x4]   ;;  %v1204_v33 = vsel %vm5_vm0, %v1530_v25, %v1529_v24  ;;  %v1533_v35 = vld [vmem:[%s2652_s0 + $0x3] sm:$0x1]   ;;  %s1664_s27 = smov 16   ;;  %vm35_vm4 = vcmask 1048560  }
  0x5a   :  { %873 = vrot.lane.b32.xlu0 %v872_v61, %s1651_s28  ;;  %893 = vrot.lane.b32.xlu1 %v892_v1, %s1652_s6  ;;  %s1655_s6 = smov 34   ;;  %v1514_v61 = vld [vmem:[%s2652_s0 + $0x87] sm:$0x2]   ;;  %v1088_v1 = vsel %vm9_vm1, %v1507_v56, %v1084_v55  ;;  %v1534_v36 = vld [vmem:[%s2652_s0 + $0x82] sm:$0x2]   ;;  %s1666_s16 = smov 12  }
  0x5b   :  { %v1124_v5 = vsel %vm5_vm0, %v1514_v61, %v1513_v60  ;;  %v1092_v12 = vsel %vm13_vm2, %v1508_v2, %v1088_v1  ;;  %v1537_v38 = vld [vmem:[%s2652_s0 + $0x2] sm:$0x1]   ;;  %v1528_v42 = vld [vmem:[%s2652_s0 + $0xc2] sm:$0x8]   ;;  %v1532_v44 = vld [vmem:[%s2652_s0 + $0xc1] sm:$0x8]  }
  0x5c   :  { %v1128_v15 = vsel %vm9_vm1, %v1515_v6, %v1124_v5  ;;  %v1538_v39 = vld [vmem:[%s2652_s0 + $0x81] sm:$0x2]   ;;  %v1535_v46 = vld [vmem:[%s2652_s0 + $0x41] sm:$0x4]   ;;  %v1541_v49 = vld [vmem:[%s2652_s0 + $0x1] sm:$0x1]  }
  0x5d   :  { %v1244_v47 = vsel %vm5_vm0, %v1538_v39, %v1537_v38  ;;  %v1542_v50 = vld [vmem:[%s2652_s0 + $0x80] sm:$0x2]   ;;  %v1536_v55 = vld [vmem:[%s2652_s0 + $0xc0] sm:$0x8]   ;;  %v1540_v58 = vld [vmem:[%s2652_s0 + $0xbf] sm:$0x8]  }
  0x5e   :  { %913 = vrot.lane.b32.xlu0 %v912_v16, %s1653_s17  ;;  %933 = vrot.lane.b32.xlu1 %v932_v20, %s1654_s24  ;;  %s1657_s24 = smov 30   ;;  %v1516_v16 = vld [vmem:[%s2652_s0 + $0xc5] sm:$0x8]   ;;  %v1523_v20 = vld [vmem:[%s2652_s0 + $0x44] sm:$0x4]   ;;  %s1667_s23 = smov 10  }
  0x5f   :  { %v1132_v26 = vsel %vm13_vm2, %v1516_v16, %v1128_v15  ;;  %v1168_v29 = vsel %vm9_vm1, %v1523_v20, %v1164_v19  ;;  %v1543_v60 = vld [vmem:[%s2652_s0 + $0x3f] sm:$0x4]   ;;  %vm55_vm5 = vcmask 1032160   ;;  %vm75_vm6 = vcmask 1015760   ;;  %s1671_s28 = smov 2  }
  0x60   :  { %v1172_v40 = vsel %vm13_vm2, %v1524_v30, %v1168_v29  ;;  %vm95_vm7 = vcmask 999360   ;;  %v1544_v1 = vld [vmem:[%s2652_s0 + $0xbe] sm:$0x8]   ;;  %vm115_vm8 = vcmask 982960   ;;  %vm135_vm9 = vcmask 966560  }
  0x61   :  { %vm155_vm10 = vcmask 950160   ;;  %vm175_vm11 = vcmask 933760   ;;  %vm195_vm12 = vcmask 917360   ;;  %vm215_vm13 = vcmask 900960  }
  0x62   :  { %953 = vrot.lane.b32.xlu0 %v952_v31, %s1655_s6  ;;  %973 = vrot.lane.b32.xlu1 %v972_v34, %s1656_s13  ;;  %s1659_s13 = smov 26   ;;  %v1184_v31 = vsel %vm5_vm0, %v1526_v22, %v1525_v21  ;;  %v1531_v34 = vld [vmem:[%s2652_s0 + $0x42] sm:$0x4]   ;;  %vm235_vm14 = vcmask 884560   ;;  %vm255_vm15 = vcmask 868160   ;;  %vm335_vm3 = vcmask 802560  }
  0x63   :  { %v1188_v41 = vsel %vm9_vm1, %v1527_v32, %v1184_v31  ;;  %v1208_v43 = vsel %vm9_vm1, %v1531_v34, %v1204_v33 }
  0x64   :  { %v1192_v51 = vsel %vm13_vm2, %v1528_v42, %v1188_v41  ;;  %v1212_v53 = vsel %vm13_vm2, %v1532_v44, %v1208_v43 }
  0x66   :  { %993 = vrot.lane.b32.xlu0 %v992_v45, %s1657_s24  ;;  %1013 = vrot.lane.b32.xlu1 %v1012_v48, %s1658_s2  ;;  %s1661_s2 = smov 22   ;;  %v1224_v45 = vsel %vm5_vm0, %v1534_v36, %v1533_v35  ;;  %v1539_v48 = vld [vmem:[%s2652_s0 + $0x40] sm:$0x4]   ;;  %s1668_s24 = smov 8  }
  0x67   :  { %v1228_v54 = vsel %vm9_vm1, %v1535_v46, %v1224_v45  ;;  %v1248_v57 = vsel %vm9_vm1, %v1539_v48, %v1244_v47  ;;  %s1669_s0 = smov 6  }
  0x68   :  { %v1232_v61 = vsel %vm13_vm2, %v1536_v55, %v1228_v54  ;;  %v1252_v63 = vsel %vm13_vm2, %v1540_v58, %v1248_v57 }
  0x6a   :  { %1033 = vrot.lane.b32.xlu0 %v1032_v59, %s1659_s13  ;;  %1053 = vrot.lane.b32.xlu1 %v1052_v62, %s1660_s20  ;;  %s1663_s20 = smov 18   ;;  %v1264_v59 = vsel %vm5_vm0, %v1542_v50, %v1541_v49  ;;  %vm275_vm0 = vcmask 851760  }
  0x6b   :  { %v1268_v0 = vsel %vm9_vm1, %v1543_v60, %v1264_v59  ;;  %vm295_vm1 = vcmask 835360  }
  0x6c   :  { %v1272_v3 = vsel %vm13_vm2, %v1544_v1, %v1268_v0  ;;  %vm315_vm2 = vcmask 818960  }
  0x6e   :  { %1073 = vrot.lane.b32.xlu0 %v1072_v9, %s1661_s2  ;;  %1093 = vrot.lane.b32.xlu1 %v1092_v12, %s1662_s9  ;;  %s1665_s9 = smov 14  }
  0x72   :  { %1113 = vrot.lane.b32.xlu0 %v1112_v23, %s1663_s20  ;;  %1133 = vrot.lane.b32.xlu1 %v1132_v26, %s1664_s27  ;;  %s1670_s27 = smov 4  }
  0x76   :  { %1153 = vrot.lane.b32.xlu0 %v1152_v37, %s1665_s9  ;;  %1173 = vrot.lane.b32.xlu1 %v1172_v40, %s1666_s16 }
  0x78   :  { %v34_v52 = vpop.permute.xlu0 %33   ;;  %v74_v56 = vpop.permute.xlu1 %73  }
  0x79   :  { %36 = vst.msk [vmem:[#allocation0] sm:$0x3] %vm35_vm4, %v34_v52   ;;  %38 = vst.msk [vmem:[#allocation0 + $0x6] sm:$0xc] %vm35_vm4, %v34_v52   ;;  %vm355_vm4 = vcmask 786160  }
  0x7a   :  { %1193 = vrot.lane.b32.xlu0 %v1192_v51, %s1667_s23  ;;  %1213 = vrot.lane.b32.xlu1 %v1212_v53, %s1668_s24 }
  0x7c   :  { %v54_v62 = vpop.permute.xlu0 %53   ;;  %v94_v2 = vpop.permute.xlu1 %93  }
  0x7d   :  { %56 = vst.msk [vmem:[#allocation0] sm:$0x3] %vm55_vm5, %v54_v62   ;;  %58 = vst.msk [vmem:[#allocation0 + $0x6] sm:$0xc] %vm55_vm5, %v54_v62   ;;  %vm375_vm5 = vcmask 769760  }
  0x7e   :  { %76 = vst.msk [vmem:[#allocation0] sm:$0x3] %vm75_vm6, %v74_v56   ;;  %78 = vst.msk [vmem:[#allocation0 + $0x6] sm:$0xc] %vm75_vm6, %v74_v56   ;;  %1233 = vrot.lane.b32.xlu0 %v1232_v61, %s1669_s0  ;;  %1253 = vrot.lane.b32.xlu1 %v1252_v63, %s1670_s27  ;;  %vm395_vm6 = vcmask 753360  }
  0x7f   :  { %96 = vst.msk [vmem:[#allocation0] sm:$0x3] %vm95_vm7, %v94_v2   ;;  %98 = vst.msk [vmem:[#allocation0 + $0x6] sm:$0xc] %vm95_vm7, %v94_v2   ;;  %vm415_vm7 = vcmask 736960  }
  0x80   :  { %v114_v4 = vpop.permute.xlu0 %113   ;;  %v134_v5 = vpop.permute.xlu1 %133  }
  0x81   :  { %116 = vst.msk [vmem:[#allocation0] sm:$0x3] %vm115_vm8, %v114_v4   ;;  %118 = vst.msk [vmem:[#allocation0 + $0x6] sm:$0xc] %vm115_vm8, %v114_v4   ;;  %vm435_vm8 = vcmask 720560  }
  0x82   :  { %1273 = vrot.lane.b32.xlu0 %v1272_v3, %s1671_s28  ;;  %136 = vst.msk [vmem:[#allocation0] sm:$0x3] %vm135_vm9, %v134_v5   ;;  %138 = vst.msk [vmem:[#allocation0 + $0x6] sm:$0xc] %vm135_vm9, %v134_v5   ;;  %vm455_vm9 = vcmask 704160  }
  0x84   :  { %v154_v6 = vpop.permute.xlu0 %153   ;;  %v174_v7 = vpop.permute.xlu1 %173  }
  0x85   :  { %156 = vst.msk [vmem:[#allocation0] sm:$0x3] %vm155_vm10, %v154_v6   ;;  %158 = vst.msk [vmem:[#allocation0 + $0x6] sm:$0xc] %vm155_vm10, %v154_v6   ;;  %vm475_vm10 = vcmask 687760  }
  0x86   :  { %176 = vst.msk [vmem:[#allocation0] sm:$0x3] %vm175_vm11, %v174_v7   ;;  %178 = vst.msk [vmem:[#allocation0 + $0x6] sm:$0xc] %vm175_vm11, %v174_v7   ;;  %vm495_vm11 = vcmask 671360  }
  0x88   :  { %v194_v8 = vpop.permute.xlu0 %193   ;;  %v214_v9 = vpop.permute.xlu1 %213  }
  0x89   :  { %196 = vst.msk [vmem:[#allocation0] sm:$0x3] %vm195_vm12, %v194_v8   ;;  %198 = vst.msk [vmem:[#allocation0 + $0x6] sm:$0xc] %vm195_vm12, %v194_v8   ;;  %vm515_vm12 = vcmask 654960  }
  0x8a   :  { %216 = vst.msk [vmem:[#allocation0] sm:$0x3] %vm215_vm13, %v214_v9   ;;  %218 = vst.msk [vmem:[#allocation0 + $0x6] sm:$0xc] %vm215_vm13, %v214_v9   ;;  %vm535_vm13 = vcmask 638560  }
  0x8c   :  { %v234_v10 = vpop.permute.xlu0 %233   ;;  %v254_v11 = vpop.permute.xlu1 %253  }
  0x8d   :  { %236 = vst.msk [vmem:[#allocation0] sm:$0x3] %vm235_vm14, %v234_v10   ;;  %238 = vst.msk [vmem:[#allocation0 + $0x6] sm:$0xc] %vm235_vm14, %v234_v10   ;;  %vm555_vm14 = vcmask 622160  }
  0x8e   :  { %256 = vst.msk [vmem:[#allocation0] sm:$0x3] %vm255_vm15, %v254_v11   ;;  %258 = vst.msk [vmem:[#allocation0 + $0x6] sm:$0xc] %vm255_vm15, %v254_v11   ;;  %vm575_vm15 = vcmask 605760  }
  0x90   :  { %v274_v12 = vpop.permute.xlu0 %273   ;;  %v294_v13 = vpop.permute.xlu1 %293  }
  0x91   :  { %276 = vst.msk [vmem:[#allocation0] sm:$0x3] %vm275_vm0, %v274_v12   ;;  %278 = vst.msk [vmem:[#allocation0 + $0x6] sm:$0xc] %vm275_vm0, %v274_v12   ;;  %vm595_vm0 = vcmask 589360  }
  0x92   :  { %296 = vst.msk [vmem:[#allocation0] sm:$0x3] %vm295_vm1, %v294_v13   ;;  %298 = vst.msk [vmem:[#allocation0 + $0x6] sm:$0xc] %vm295_vm1, %v294_v13   ;;  %vm615_vm1 = vcmask 572960  }
  0x94   :  { %v314_v14 = vpop.permute.xlu0 %313   ;;  %v334_v15 = vpop.permute.xlu1 %333  }
  0x95   :  { %316 = vst.msk [vmem:[#allocation0] sm:$0x3] %vm315_vm2, %v314_v14   ;;  %318 = vst.msk [vmem:[#allocation0 + $0x6] sm:$0xc] %vm315_vm2, %v314_v14   ;;  %vm635_vm2 = vcmask 556560  }
  0x96   :  { %336 = vst.msk [vmem:[#allocation0] sm:$0x3] %vm335_vm3, %v334_v15   ;;  %338 = vst.msk [vmem:[#allocation0 + $0x6] sm:$0xc] %vm335_vm3, %v334_v15   ;;  %vm655_vm3 = vcmask 540160  }
  0x98   :  { %v354_v16 = vpop.permute.xlu0 %353   ;;  %v374_v17 = vpop.permute.xlu1 %373  }
  0x99   :  { %356 = vst.msk [vmem:[#allocation0] sm:$0x3] %vm355_vm4, %v354_v16   ;;  %358 = vst.msk [vmem:[#allocation0 + $0x6] sm:$0xc] %vm355_vm4, %v354_v16   ;;  %vm675_vm4 = vcmask 523760  }
  0x9a   :  { %376 = vst.msk [vmem:[#allocation0] sm:$0x3] %vm375_vm5, %v374_v17   ;;  %378 = vst.msk [vmem:[#allocation0 + $0x6] sm:$0xc] %vm375_vm5, %v374_v17   ;;  %vm695_vm5 = vcmask 507360  }
  0x9c   :  { %v394_v18 = vpop.permute.xlu0 %393   ;;  %v414_v19 = vpop.permute.xlu1 %413  }
  0x9d   :  { %396 = vst.msk [vmem:[#allocation0] sm:$0x3] %vm395_vm6, %v394_v18   ;;  %398 = vst.msk [vmem:[#allocation0 + $0x6] sm:$0xc] %vm395_vm6, %v394_v18   ;;  %vm715_vm6 = vcmask 490960  }
  0x9e   :  { %416 = vst.msk [vmem:[#allocation0] sm:$0x3] %vm415_vm7, %v414_v19   ;;  %418 = vst.msk [vmem:[#allocation0 + $0x6] sm:$0xc] %vm415_vm7, %v414_v19   ;;  %vm735_vm7 = vcmask 474560  }
  0xa0   :  { %v434_v20 = vpop.permute.xlu0 %433   ;;  %v454_v21 = vpop.permute.xlu1 %453  }
  0xa1   :  { %436 = vst.msk [vmem:[#allocation0] sm:$0x3] %vm435_vm8, %v434_v20   ;;  %438 = vst.msk [vmem:[#allocation0 + $0x6] sm:$0xc] %vm435_vm8, %v434_v20   ;;  %vm755_vm8 = vcmask 458160  }
  0xa2   :  { %456 = vst.msk [vmem:[#allocation0] sm:$0x3] %vm455_vm9, %v454_v21   ;;  %458 = vst.msk [vmem:[#allocation0 + $0x6] sm:$0xc] %vm455_vm9, %v454_v21   ;;  %vm775_vm9 = vcmask 441760  }
  0xa4   :  { %v474_v22 = vpop.permute.xlu0 %473   ;;  %v494_v23 = vpop.permute.xlu1 %493  }
  0xa5   :  { %476 = vst.msk [vmem:[#allocation0] sm:$0x3] %vm475_vm10, %v474_v22   ;;  %478 = vst.msk [vmem:[#allocation0 + $0x6] sm:$0xc] %vm475_vm10, %v474_v22   ;;  %vm795_vm10 = vcmask 425360  }
  0xa6   :  { %496 = vst.msk [vmem:[#allocation0] sm:$0x3] %vm495_vm11, %v494_v23   ;;  %498 = vst.msk [vmem:[#allocation0 + $0x6] sm:$0xc] %vm495_vm11, %v494_v23   ;;  %vm815_vm11 = vcmask 408960  }
  0xa8   :  { %v514_v24 = vpop.permute.xlu0 %513   ;;  %v534_v25 = vpop.permute.xlu1 %533  }
  0xa9   :  { %516 = vst.msk [vmem:[#allocation0] sm:$0x3] %vm515_vm12, %v514_v24   ;;  %518 = vst.msk [vmem:[#allocation0 + $0x6] sm:$0xc] %vm515_vm12, %v514_v24   ;;  %vm835_vm12 = vcmask 392560  }
  0xaa   :  { %536 = vst.msk [vmem:[#allocation0] sm:$0x3] %vm535_vm13, %v534_v25   ;;  %538 = vst.msk [vmem:[#allocation0 + $0x6] sm:$0xc] %vm535_vm13, %v534_v25   ;;  %vm855_vm13 = vcmask 376160  }
  0xac   :  { %v554_v26 = vpop.permute.xlu0 %553   ;;  %v574_v27 = vpop.permute.xlu1 %573  }
  0xad   :  { %556 = vst.msk [vmem:[#allocation0] sm:$0x3] %vm555_vm14, %v554_v26   ;;  %558 = vst.msk [vmem:[#allocation0 + $0x6] sm:$0xc] %vm555_vm14, %v554_v26   ;;  %vm875_vm14 = vcmask 359760  }
  0xae   :  { %576 = vst.msk [vmem:[#allocation0] sm:$0x3] %vm575_vm15, %v574_v27   ;;  %578 = vst.msk [vmem:[#allocation0 + $0x6] sm:$0xc] %vm575_vm15, %v574_v27   ;;  %vm895_vm15 = vcmask 343360  }
  0xb0   :  { %v594_v28 = vpop.permute.xlu0 %593   ;;  %v614_v29 = vpop.permute.xlu1 %613  }
  0xb1   :  { %596 = vst.msk [vmem:[#allocation0] sm:$0x3] %vm595_vm0, %v594_v28   ;;  %598 = vst.msk [vmem:[#allocation0 + $0x6] sm:$0xc] %vm595_vm0, %v594_v28   ;;  %vm915_vm0 = vcmask 326960  }
  0xb2   :  { %616 = vst.msk [vmem:[#allocation0] sm:$0x3] %vm615_vm1, %v614_v29   ;;  %618 = vst.msk [vmem:[#allocation0 + $0x6] sm:$0xc] %vm615_vm1, %v614_v29   ;;  %vm935_vm1 = vcmask 310560  }
  0xb4   :  { %v634_v30 = vpop.permute.xlu0 %633   ;;  %v654_v31 = vpop.permute.xlu1 %653  }
  0xb5   :  { %636 = vst.msk [vmem:[#allocation0] sm:$0x3] %vm635_vm2, %v634_v30   ;;  %638 = vst.msk [vmem:[#allocation0 + $0x6] sm:$0xc] %vm635_vm2, %v634_v30   ;;  %vm955_vm2 = vcmask 294160  }
  0xb6   :  { %656 = vst.msk [vmem:[#allocation0] sm:$0x3] %vm655_vm3, %v654_v31   ;;  %658 = vst.msk [vmem:[#allocation0 + $0x6] sm:$0xc] %vm655_vm3, %v654_v31   ;;  %vm975_vm3 = vcmask 277760  }
  0xb8   :  { %v674_v32 = vpop.permute.xlu0 %673   ;;  %v694_v33 = vpop.permute.xlu1 %693  }
  0xb9   :  { %676 = vst.msk [vmem:[#allocation0] sm:$0x3] %vm675_vm4, %v674_v32   ;;  %678 = vst.msk [vmem:[#allocation0 + $0x6] sm:$0xc] %vm675_vm4, %v674_v32   ;;  %vm995_vm4 = vcmask 261360  }
  0xba   :  { %696 = vst.msk [vmem:[#allocation0] sm:$0x3] %vm695_vm5, %v694_v33   ;;  %698 = vst.msk [vmem:[#allocation0 + $0x6] sm:$0xc] %vm695_vm5, %v694_v33   ;;  %vm1015_vm5 = vcmask 244960  }
  0xbc   :  { %v714_v34 = vpop.permute.xlu0 %713   ;;  %v734_v35 = vpop.permute.xlu1 %733  }
  0xbd   :  { %716 = vst.msk [vmem:[#allocation0] sm:$0x3] %vm715_vm6, %v714_v34   ;;  %718 = vst.msk [vmem:[#allocation0 + $0x6] sm:$0xc] %vm715_vm6, %v714_v34   ;;  %vm1035_vm6 = vcmask 228560  }
  0xbe   :  { %736 = vst.msk [vmem:[#allocation0] sm:$0x3] %vm735_vm7, %v734_v35   ;;  %738 = vst.msk [vmem:[#allocation0 + $0x6] sm:$0xc] %vm735_vm7, %v734_v35   ;;  %vm1055_vm7 = vcmask 212160  }
  0xc0   :  { %v754_v36 = vpop.permute.xlu0 %753   ;;  %v774_v37 = vpop.permute.xlu1 %773  }
  0xc1   :  { %756 = vst.msk [vmem:[#allocation0] sm:$0x3] %vm755_vm8, %v754_v36   ;;  %758 = vst.msk [vmem:[#allocation0 + $0x6] sm:$0xc] %vm755_vm8, %v754_v36   ;;  %vm1075_vm8 = vcmask 195760  }
  0xc2   :  { %776 = vst.msk [vmem:[#allocation0] sm:$0x3] %vm775_vm9, %v774_v37   ;;  %778 = vst.msk [vmem:[#allocation0 + $0x6] sm:$0xc] %vm775_vm9, %v774_v37   ;;  %vm1095_vm9 = vcmask 179360  }
  0xc4   :  { %v794_v38 = vpop.permute.xlu0 %793   ;;  %v814_v39 = vpop.permute.xlu1 %813  }
  0xc5   :  { %796 = vst.msk [vmem:[#allocation0] sm:$0x3] %vm795_vm10, %v794_v38   ;;  %798 = vst.msk [vmem:[#allocation0 + $0x6] sm:$0xc] %vm795_vm10, %v794_v38   ;;  %vm1115_vm10 = vcmask 162960  }
  0xc6   :  { %816 = vst.msk [vmem:[#allocation0] sm:$0x3] %vm815_vm11, %v814_v39   ;;  %818 = vst.msk [vmem:[#allocation0 + $0x6] sm:$0xc] %vm815_vm11, %v814_v39   ;;  %vm1135_vm11 = vcmask 146560  }
  0xc8   :  { %v834_v40 = vpop.permute.xlu0 %833   ;;  %v854_v41 = vpop.permute.xlu1 %853  }
  0xc9   :  { %836 = vst.msk [vmem:[#allocation0] sm:$0x3] %vm835_vm12, %v834_v40   ;;  %838 = vst.msk [vmem:[#allocation0 + $0x6] sm:$0xc] %vm835_vm12, %v834_v40   ;;  %vm1155_vm12 = vcmask 130160  }
  0xca   :  { %856 = vst.msk [vmem:[#allocation0] sm:$0x3] %vm855_vm13, %v854_v41   ;;  %858 = vst.msk [vmem:[#allocation0 + $0x6] sm:$0xc] %vm855_vm13, %v854_v41   ;;  %vm1175_vm13 = vcmask 113760  }
  0xcc   :  { %v874_v42 = vpop.permute.xlu0 %873   ;;  %v894_v43 = vpop.permute.xlu1 %893  }
  0xcd   :  { %876 = vst.msk [vmem:[#allocation0] sm:$0x3] %vm875_vm14, %v874_v42   ;;  %878 = vst.msk [vmem:[#allocation0 + $0x6] sm:$0xc] %vm875_vm14, %v874_v42   ;;  %vm1195_vm14 = vcmask 97360  }
  0xce   :  { %896 = vst.msk [vmem:[#allocation0] sm:$0x3] %vm895_vm15, %v894_v43   ;;  %898 = vst.msk [vmem:[#allocation0 + $0x6] sm:$0xc] %vm895_vm15, %v894_v43   ;;  %vm1215_vm15 = vcmask 80960  }
  0xd0   :  { %v914_v44 = vpop.permute.xlu0 %913   ;;  %v934_v45 = vpop.permute.xlu1 %933  }
  0xd1   :  { %916 = vst.msk [vmem:[#allocation0] sm:$0x3] %vm915_vm0, %v914_v44   ;;  %918 = vst.msk [vmem:[#allocation0 + $0x6] sm:$0xc] %vm915_vm0, %v914_v44   ;;  %vm1235_vm0 = vcmask 64560  }
  0xd2   :  { %936 = vst.msk [vmem:[#allocation0] sm:$0x3] %vm935_vm1, %v934_v45   ;;  %938 = vst.msk [vmem:[#allocation0 + $0x6] sm:$0xc] %vm935_vm1, %v934_v45   ;;  %vm1255_vm1 = vcmask 48160  }
  0xd4   :  { %v954_v46 = vpop.permute.xlu0 %953   ;;  %v974_v47 = vpop.permute.xlu1 %973  }
  0xd5   :  { %956 = vst.msk [vmem:[#allocation0] sm:$0x3] %vm955_vm2, %v954_v46   ;;  %958 = vst.msk [vmem:[#allocation0 + $0x6] sm:$0xc] %vm955_vm2, %v954_v46   ;;  %vm1275_vm2 = vcmask 31760  }
  0xd6   :  { %976 = vst.msk [vmem:[#allocation0] sm:$0x3] %vm975_vm3, %v974_v47   ;;  %978 = vst.msk [vmem:[#allocation0 + $0x6] sm:$0xc] %vm975_vm3, %v974_v47  }
  0xd8   :  { %v994_v48 = vpop.permute.xlu0 %993   ;;  %v1014_v49 = vpop.permute.xlu1 %1013  }
  0xd9   :  { %996 = vst.msk [vmem:[#allocation0] sm:$0x3] %vm995_vm4, %v994_v48   ;;  %998 = vst.msk [vmem:[#allocation0 + $0x6] sm:$0xc] %vm995_vm4, %v994_v48  }
  0xda   :  { %1016 = vst.msk [vmem:[#allocation0] sm:$0x3] %vm1015_vm5, %v1014_v49   ;;  %1018 = vst.msk [vmem:[#allocation0 + $0x6] sm:$0xc] %vm1015_vm5, %v1014_v49  }
  0xdc   :  { %v1034_v50 = vpop.permute.xlu0 %1033   ;;  %v1054_v51 = vpop.permute.xlu1 %1053  }
  0xdd   :  { %1036 = vst.msk [vmem:[#allocation0] sm:$0x3] %vm1035_vm6, %v1034_v50   ;;  %1038 = vst.msk [vmem:[#allocation0 + $0x6] sm:$0xc] %vm1035_vm6, %v1034_v50  }
  0xde   :  { %1056 = vst.msk [vmem:[#allocation0] sm:$0x3] %vm1055_vm7, %v1054_v51   ;;  %1058 = vst.msk [vmem:[#allocation0 + $0x6] sm:$0xc] %vm1055_vm7, %v1054_v51  }
  0xe0   :  { %v1074_v52 = vpop.permute.xlu0 %1073   ;;  %v1094_v53 = vpop.permute.xlu1 %1093  }
  0xe1   :  { %1076 = vst.msk [vmem:[#allocation0] sm:$0x3] %vm1075_vm8, %v1074_v52   ;;  %1078 = vst.msk [vmem:[#allocation0 + $0x6] sm:$0xc] %vm1075_vm8, %v1074_v52  }
  0xe2   :  { %1096 = vst.msk [vmem:[#allocation0] sm:$0x3] %vm1095_vm9, %v1094_v53   ;;  %1098 = vst.msk [vmem:[#allocation0 + $0x6] sm:$0xc] %vm1095_vm9, %v1094_v53  }
  0xe4   :  { %v1114_v54 = vpop.permute.xlu0 %1113   ;;  %v1134_v55 = vpop.permute.xlu1 %1133  }
  0xe5   :  { %1116 = vst.msk [vmem:[#allocation0] sm:$0x3] %vm1115_vm10, %v1114_v54   ;;  %1118 = vst.msk [vmem:[#allocation0 + $0x6] sm:$0xc] %vm1115_vm10, %v1114_v54  }
  0xe6   :  { %1136 = vst.msk [vmem:[#allocation0] sm:$0x3] %vm1135_vm11, %v1134_v55   ;;  %1138 = vst.msk [vmem:[#allocation0 + $0x6] sm:$0xc] %vm1135_vm11, %v1134_v55  }
  0xe8   :  { %v1154_v56 = vpop.permute.xlu0 %1153   ;;  %v1174_v57 = vpop.permute.xlu1 %1173  }
  0xe9   :  { %1156 = vst.msk [vmem:[#allocation0] sm:$0x3] %vm1155_vm12, %v1154_v56   ;;  %1158 = vst.msk [vmem:[#allocation0 + $0x6] sm:$0xc] %vm1155_vm12, %v1154_v56  }
  0xea   :  { %1176 = vst.msk [vmem:[#allocation0] sm:$0x3] %vm1175_vm13, %v1174_v57   ;;  %1178 = vst.msk [vmem:[#allocation0 + $0x6] sm:$0xc] %vm1175_vm13, %v1174_v57  }
  0xec   :  { %v1194_v58 = vpop.permute.xlu0 %1193   ;;  %v1214_v59 = vpop.permute.xlu1 %1213  }
  0xed   :  { %1196 = vst.msk [vmem:[#allocation0] sm:$0x3] %vm1195_vm14, %v1194_v58   ;;  %1198 = vst.msk [vmem:[#allocation0 + $0x6] sm:$0xc] %vm1195_vm14, %v1194_v58  }
  0xee   :  { %1216 = vst.msk [vmem:[#allocation0] sm:$0x3] %vm1215_vm15, %v1214_v59   ;;  %1218 = vst.msk [vmem:[#allocation0 + $0x6] sm:$0xc] %vm1215_vm15, %v1214_v59  }
  0xf0   :  { %v1234_v60 = vpop.permute.xlu0 %1233   ;;  %v1254_v61 = vpop.permute.xlu1 %1253  }
  0xf1   :  { %1236 = vst.msk [vmem:[#allocation0] sm:$0x3] %vm1235_vm0, %v1234_v60   ;;  %1238 = vst.msk [vmem:[#allocation0 + $0x6] sm:$0xc] %vm1235_vm0, %v1234_v60  }
  0xf2   :  { %1256 = vst.msk [vmem:[#allocation0] sm:$0x3] %vm1255_vm1, %v1254_v61   ;;  %1258 = vst.msk [vmem:[#allocation0 + $0x6] sm:$0xc] %vm1255_vm1, %v1254_v61  }
  0xf4   :  { %v1274_v62 = vpop.permute.xlu0 %1273  }
  0xf5   :  { %1276 = vst.msk [vmem:[#allocation0] sm:$0x3] %vm1275_vm2, %v1274_v62   ;;  %1278 = vst.msk [vmem:[#allocation0 + $0x6] sm:$0xc] %vm1275_vm2, %v1274_v62  }
  0xfc   :  { %v1282_v63 = vld [vmem:[#allocation0] sm:$0x3]  ;;  %v1286_v0 = vld [vmem:[#allocation0 + $0x8] sm:$0x3] }
  0xfd   :  { %1284 = vst [vmem:[%s2653_s1] sm:$0x3] %v1282_v63  ;;  %1545 = vst [vmem:[%s2653_s1 + $0x2] sm:$0x3] %v1286_v0 }

// kernel: _lambda_.1
= control target key start
LH: loop header
LB: loop body
LE: loop exit
PB: predicated region body
PF: predicated region fallthrough
CT: control target
= control target key end

     0   :  { %s9357_s24 = smov 0   ;;  %s12097_s0 = inlined_call_operand.vmem [shape: f32[2,160,128], index: 0, kind: input, shape index: {}]   ;;  %s12098_s1 = inlined_call_operand.vmem [shape: bf16[2,160,128], index: 1, kind: input, shape index: {}]   ;;  %s12099_s2 = inlined_call_operand.vmem [shape: f32[2,1,128], index: 2, kind: input, shape index: {}]   ;;  %s12100_s3 = inlined_call_operand.vmem [shape: f32[2,2,256,1], index: 3, kind: input, shape index: {}]   ;;  %s12101_s4 = inlined_call_operand.vmem [shape: f32[2,160,1], index: 4, kind: input, shape index: {}]   ;;  %s12102_s5 = inlined_call_operand.vmem [shape: f32[2,160,1], index: 5, kind: input, shape index: {}]   ;;  %s12103_s6 = inlined_call_operand.vmem [shape: bf16[2,160,80], index: 6, kind: input, shape index: {}]   ;;  %s12104_s7 = inlined_call_operand.vmem [shape: bf16[2,160,80], index: 7, kind: input, shape index: {}]   ;;  %s12105_s8 = inlined_call_operand.vmem [shape: bf16[2,64,80], index: 8, kind: input, shape index: {}]   ;;  %s12106_s9 = inlined_call_operand.vmem [shape: f32[2,64,1], index: 9, kind: input, shape index: {}]   ;;  %s12107_s10 = inlined_call_operand.vmem [shape: bf16[2,256,160], index: 10, kind: input, shape index: {}]   ;;  %s12108_s11 = inlined_call_operand.vmem [shape: bf16[2,2,128,192], index: 11, kind: input, shape index: {}]   ;;  %s12109_s12 = inlined_call_operand.vmem [shape: bf16[2,2,128,64], index: 12, kind: input, shape index: {}]   ;;  %s12110_s13 = inlined_call_operand.vmem [shape: f32[2,2,128,1], index: 13, kind: input, shape index: {}]   ;;  %s12111_s14 = inlined_call_operand.vmem [shape: bf16[2,160,64], index: 14, kind: input, shape index: {}]   ;;  %s12112_s15 = inlined_call_operand.vmem [shape: f32[2,160,1], index: 15, kind: input, shape index: {}]   ;;  %s12113_s16 = inlined_call_operand.vmem [shape: f32[2,160,128], index: 16, kind: output, shape index: {0}]   ;;  %s12114_s17 = inlined_call_operand.vmem [shape: f32[2,1,128], index: 17, kind: output, shape index: {1}]  }
   0x1   :  { %12126 = sst [smem:[#allocation52_spill]] %s12097_s0 }
   0x2   :  { %12127 = sst [smem:[#allocation53_spill]] %s12098_s1 }
   0x3   :  { %12128 = sst [smem:[#allocation54_spill]] %s12099_s2 }
   0x4   :  { %12129 = sst [smem:[#allocation55_spill]] %s12100_s3 }
   0x5 LB: > { %s7127_s25 = sadd.s32 4294967295, %s9262_s24   ;;  %p7131_p0 = scmp.ge.s32.totalorder %s9262_s24, 1  ;;  %s9262_s24 = sphi %s9357_s24, %s28_s24  }
   0x6   : > { %p518_p1 = scmp.lt.s32.totalorder %s9262_s24, 3 }
   0x8   : > { %p519_p2 = pnand %p7131_p0, %p518_p1 }
   0xa   : > { %522 = sbr.rel (%p519_p2) target bundleno = 4724 (0x1274), region = 84 }
  0x11   : > { %v684_v0 = vld [vmem:[%s12102_s5 + $0x50] sm:$0xff]  ;;  %v12120_v2 = vmov 0   ;;  %v685_v3 = vld [vmem:[%s12102_s5 + $0x58] sm:$0xff]  ;;  %v667_v5 = vld [vmem:[%s12101_s4 + $0x68] sm:$0xff]  ;;  %vm1060_vm0 = vcmask 654336   ;;  %p586_p3 = scmp.lt.s32.totalorder %s7127_s25, 1 }
  0x12   : > { %v664_v1 = vld [vmem:[%s12101_s4 + $0x50] sm:$0xff]  ;;  %8707 = vset.pattern.permute.xlu1 %v12120_v2  ;;  %8706 = vset.pattern.permute.xlu0 %v12120_v2  ;;  %v665_v4 = vld [vmem:[%s12101_s4 + $0x58] sm:$0xff]  ;;  %v666_v6 = vld [vmem:[%s12101_s4 + $0x60] sm:$0xff]  ;;  %s12130_s21 = sld [smem:[#allocation52_spill]]  ;;  %s12131_s2 = sld [smem:[#allocation54_spill]]  ;;  %vm1991_vm1 = vcmask 261120  }
  0x13   : > { %892 = vperm.xlu1 %8707, %v684_v0   ;;  %832 = vperm.xlu0 %8706, %v664_v1   ;;  %v687_v7 = vld [vmem:[%s12102_s5 + $0x68] sm:$0xff]  ;;  %v686_v8 = vld [vmem:[%s12102_s5 + $0x60] sm:$0xff]  ;;  %v669_v9 = vld [vmem:[%s12101_s4 + $0x78] sm:$0xff]  ;;  %s12258_s25 = smov (!%p586_p3, %s7127_s25), 1  ;;  %s12132_s0 = sld [smem:[#allocation53_spill]]  ;;  %vm2340_vm2 = vcmask 523264  }
  0x14   : > { %v668_v10 = vld [vmem:[%s12101_s4 + $0x70] sm:$0xff]  ;;  %v689_v11 = vld [vmem:[%s12102_s5 + $0x78] sm:$0xff]  ;;  %v671_v13 = vld [vmem:[%s12101_s4 + $0x88] sm:$0xff]  ;;  %s12115_s19 = smul.u32 160, %s12258_s25  ;;  %s12116_s26 = smov 127   ;;  %vm2217_vm3 = vcmask 7168  }
  0x15   : > { %v688_v12 = vld [vmem:[%s12102_s5 + $0x70] sm:$0xff]  ;;  %v670_v14 = vld [vmem:[%s12101_s4 + $0x80] sm:$0xff]  ;;  %v691_v15 = vld [vmem:[%s12102_s5 + $0x88] sm:$0xff]  ;;  %s8694_s23 = smul.u32 80, %s12258_s25  ;;  %s12143_s3 = sld [smem:[#allocation55_spill]]  ;;  %vm2239_vm5 = vcmask 1039360  }
  0x16   : > { %v690_v16 = vld [vmem:[%s12102_s5 + $0x80] sm:$0xff]  ;;  %v673_v17 = vld [vmem:[%s12101_s4 + $0x98] sm:$0xff]  ;;  %v672_v18 = vld [vmem:[%s12101_s4 + $0x90] sm:$0xff]  ;;  %s12148_s28 = smov 127   ;;  %s12238_s20 = smul.u32 160, %s12258_s25 }
  0x17   : > { %897 = vperm.xlu1 %8707, %v685_v3   ;;  %837 = vperm.xlu0 %8706, %v665_v4   ;;  %v693_v19 = vld [vmem:[%s12102_s5 + $0x98] sm:$0xff]  ;;  %v692_v20 = vld [vmem:[%s12102_s5 + $0x90] sm:$0xff]  ;;  %v655_v21 = vld [vmem:[%s12101_s4 + $0x8] sm:$0xff] }
  0x18   : > { %v654_v22 = vld [vmem:[%s12101_s4] sm:$0xff]  ;;  %v675_v23 = vld [vmem:[%s12102_s5 + $0x8] sm:$0xff]  ;;  %v657_v25 = vld [vmem:[%s12101_s4 + $0x18] sm:$0xff]  ;;  %s9527_s22 = scalar_lea.vmem %s12130_s21, %s12115_s19  ;;  %s9535_s27 = scalar_lea.vmem %s12131_s2, %s12258_s25 }
  0x19   : > { %v674_v24 = vld [vmem:[%s12102_s5] sm:$0xff]  ;;  %v656_v27 = vld [vmem:[%s12101_s4 + $0x10] sm:$0xff]  ;;  %v677_v28 = vld [vmem:[%s12102_s5 + $0x18] sm:$0xff]  ;;  %s9666_s30 = scalar_lea.vmem %s12132_s0, %s8694_s23  ;;  %s12118_s23 = smov 1  }
  0x1a   : > { %v8708_v26 = vld [vmem:[%s12104_s7] sm:$0xff]   ;;  %v676_v29 = vld [vmem:[%s12102_s5 + $0x10] sm:$0xff]  ;;  %v659_v30 = vld [vmem:[%s12101_s4 + $0x28] sm:$0xff]  ;;  %s7950_s21 = sshll.u32 %s12258_s25, 9  ;;  %s11163_s18 = scalar_lea.vmem %s12113_s16, %s12238_s20 }
  0x1b   : > { %847 = vperm.xlu1 %8707, %v667_v5   ;;  %842 = vperm.xlu0 %8706, %v666_v6   ;;  %v658_v31 = vld [vmem:[%s12101_s4 + $0x20] sm:$0xff]  ;;  %v679_v32 = vld [vmem:[%s12102_s5 + $0x28] sm:$0xff]  ;;  %v661_v34 = vld [vmem:[%s12101_s4 + $0x38] sm:$0xff]  ;;  %s9951_s29 = scalar_lea.vmem %s12143_s3, %s7950_s21  ;;  %s611_s2 = scalar_lea.vmem %s12114_s17, %s12258_s25 }
  0x1c   : > { %8115 = vmatprep.mubr.msk.bf16.mxu0 %vm1060_vm0, %v8708_v26  ;;  %v678_v33 = vld [vmem:[%s12102_s5 + $0x20] sm:$0xff]  ;;  %v660_v35 = vld [vmem:[%s12101_s4 + $0x30] sm:$0xff]  ;;  %v681_v36 = vld [vmem:[%s12102_s5 + $0x38] sm:$0xff] }
  0x1d   : > { %v680_v37 = vld [vmem:[%s12102_s5 + $0x30] sm:$0xff]  ;;  %v663_v38 = vld [vmem:[%s12101_s4 + $0x48] sm:$0xff]  ;;  %v662_v39 = vld [vmem:[%s12101_s4 + $0x40] sm:$0xff] }
  0x1e   : > { %v683_v40 = vld [vmem:[%s12102_s5 + $0x48] sm:$0xff]  ;;  %v682_v41 = vld [vmem:[%s12102_s5 + $0x40] sm:$0xff]  ;;  %v1413_v44 = vld [vmem:[%s12106_s9 + $0x18] sm:$0xff] }
  0x1f   : > { %907 = vperm.xlu1 %8707, %v687_v7   ;;  %902 = vperm.xlu0 %8706, %v686_v8   ;;  %v1411_v42 = vld [vmem:[%s12106_s9 + $0x8] sm:$0xff]  ;;  %v1410_v43 = vld [vmem:[%s12106_s9] sm:$0xff]  ;;  %v1412_v45 = vld [vmem:[%s12106_s9 + $0x10] sm:$0xff] }
  0x20   : > { %v1415_v46 = vld [vmem:[%s12106_s9 + $0x28] sm:$0xff]  ;;  %v1414_v47 = vld [vmem:[%s12106_s9 + $0x20] sm:$0xff]  ;;  %v1417_v48 = vld [vmem:[%s12106_s9 + $0x38] sm:$0xff] }
  0x21   : > { %v1416_v49 = vld [vmem:[%s12106_s9 + $0x30] sm:$0xff]  ;;  %v624_v53 = vld [vmem:[%s9527_s22 + $0x58] sm:$0xff]  ;;  %v9538_v57 = vld [vmem:[%s9535_s27] ss:$0 sm:$0xff] }
  0x22   : > { %v623_v50 = vld [vmem:[%s9527_s22 + $0x50] sm:$0xff]  ;;  %v626_v60 = vld [vmem:[%s9527_s22 + $0x68] sm:$0xff]  ;;  %v625_v61 = vld [vmem:[%s9527_s22 + $0x60] sm:$0xff] }
  0x23   : > { %857 = vperm.xlu1 %8707, %v669_v9   ;;  %852 = vperm.xlu0 %8706, %v668_v10   ;;  %vm10033_vm4 = vmneg %vm2217_vm3 }
  0x27   : > { %917 = vperm.xlu1 %8707, %v689_v11   ;;  %912 = vperm.xlu0 %8706, %v688_v12  }
  0x2b   : > { %867 = vperm.xlu1 %8707, %v671_v13   ;;  %862 = vperm.xlu0 %8706, %v670_v14   ;;  %v628_v14 = vld [vmem:[%s9527_s22 + $0x78] sm:$0xff] }
  0x2f   : > { %927 = vperm.xlu1 %8707, %v691_v15   ;;  %922 = vperm.xlu0 %8706, %v690_v16   ;;  %v627_v16 = vld [vmem:[%s9527_s22 + $0x70] sm:$0xff] }
  0x33   : > { %877 = vperm.xlu1 %8707, %v673_v17   ;;  %872 = vperm.xlu0 %8706, %v672_v18  }
  0x37   : > { %937 = vperm.xlu1 %8707, %v693_v19   ;;  %932 = vperm.xlu0 %8706, %v692_v20  }
  0x3b   : > { %701 = vperm.xlu1 %8707, %v655_v21   ;;  %696 = vperm.xlu0 %8706, %v654_v22  }
  0x3f   : > { %761 = vperm.xlu1 %8707, %v675_v23   ;;  %756 = vperm.xlu0 %8706, %v674_v24  }
  0x43   : > { %711 = vperm.xlu1 %8707, %v657_v25   ;;  %706 = vperm.xlu0 %8706, %v656_v27   ;;  %v630_v27 = vld [vmem:[%s9527_s22 + $0x88] sm:$0xff] }
  0x47   : > { %771 = vperm.xlu1 %8707, %v677_v28   ;;  %766 = vperm.xlu0 %8706, %v676_v29   ;;  %v629_v29 = vld [vmem:[%s9527_s22 + $0x80] sm:$0xff] }
  0x4b   : > { %721 = vperm.xlu1 %8707, %v659_v30   ;;  %716 = vperm.xlu0 %8706, %v658_v31  }
  0x4f   : > { %781 = vperm.xlu1 %8707, %v679_v32   ;;  %776 = vperm.xlu0 %8706, %v678_v33  }
  0x53   : > { %731 = vperm.xlu1 %8707, %v661_v34   ;;  %726 = vperm.xlu0 %8706, %v660_v35  }
  0x57   : > { %791 = vperm.xlu1 %8707, %v681_v36   ;;  %786 = vperm.xlu0 %8706, %v680_v37  }
  0x5b   : > { %741 = vperm.xlu1 %8707, %v663_v38   ;;  %736 = vperm.xlu0 %8706, %v662_v39  }
  0x5f   : > { %801 = vperm.xlu1 %8707, %v683_v40   ;;  %796 = vperm.xlu0 %8706, %v682_v41   ;;  %v632_v40 = vld [vmem:[%s9527_s22 + $0x98] sm:$0xff] }
  0x63   : > { %1425 = vperm.xlu1 %8707, %v1411_v42   ;;  %1420 = vperm.xlu0 %8706, %v1410_v43   ;;  %v631_v42 = vld [vmem:[%s9527_s22 + $0x90] sm:$0xff] }
  0x67   : > { %1435 = vperm.xlu1 %8707, %v1413_v44   ;;  %1430 = vperm.xlu0 %8706, %v1412_v45  }
  0x6b   : > { %1445 = vperm.xlu1 %8707, %v1415_v46   ;;  %1440 = vperm.xlu0 %8706, %v1414_v47  }
  0x6f   : > { %1455 = vperm.xlu1 %8707, %v1417_v48   ;;  %1450 = vperm.xlu0 %8706, %v1416_v49  }
  0x92   : > { %v893_v51 = vpop.permute.xlu1 %892  ;;  %v833_v52 = vpop.permute.xlu0 %832 }
  0x93   : > { %v880_v54 = vmul.f32 %v833_v52, %v623_v50 }
  0x95   : > { %v940_v58 = vadd.f32 %v893_v51, %v880_v54 }
  0x96   : > { %v898_v55 = vpop.permute.xlu1 %897  ;;  %v838_v56 = vpop.permute.xlu0 %837 }
  0x97   : > { %v881_v59 = vmul.f32 %v838_v56, %v624_v53  ;;  %v950_v1 = vmul.f32 %v9538_v57, %v940_v58  ;;  %v614_v53 = vld [vmem:[%s9527_s22 + $0x8] sm:$0xff] }
  0x99   : > { %v941_v62 = vadd.f32 %v898_v55, %v881_v59  ;;  %v613_v55 = vld [vmem:[%s9527_s22] sm:$0xff] }
  0x9a   : > { %v848_v63 = vpop.permute.xlu1 %847  ;;  %v843_v0 = vpop.permute.xlu0 %842 }
  0x9b   : > { %v951_v3 = vmul.f32 %v9538_v57, %v941_v62  ;;  %v883_v4 = vmul.f32 %v848_v63, %v626_v60  ;;  %v882_v5 = vmul.f32 %v843_v0, %v625_v61  ;;  %v8709_v60 = vld [vmem:[%s12104_s7 + $0x8] sm:$0xff]   ;;  %v8710_v63 = vld [vmem:[%s12104_s7 + $0x10] sm:$0xff]  }
  0x9d   : > { %v1005_v6 = vpack.c.bf16 %v951_v3, %v950_v1 }
  0x9e   : > { %v908_v7 = vpop.permute.xlu1 %907  ;;  %v903_v8 = vpop.permute.xlu0 %902 }
  0x9f   : > { %v943_v9 = vadd.f32 %v908_v7, %v883_v4  ;;  %v942_v10 = vadd.f32 %v903_v8, %v882_v5  ;;  %8105 = vmatprep.subr.bf16.mxu0 %v1005_v6  ;;  %v615_v8 = vld [vmem:[%s9527_s22 + $0x10] sm:$0xff] }
  0xa0   : > { %8106 = vmatpush3.bf16.msra.mxu0 %v1005_v6  ;;  %v616_v6 = vld [vmem:[%s9527_s22 + $0x18] sm:$0xff] }
  0xa1   : > { %v953_v11 = vmul.f32 %v9538_v57, %v943_v9  ;;  %v952_v12 = vmul.f32 %v9538_v57, %v942_v10 }
  0xa2   : > { %v858_v13 = vpop.permute.xlu1 %857  ;;  %v853_v15 = vpop.permute.xlu0 %852 }
  0xa3   : > { %v1006_v17 = vpack.c.bf16 %v953_v11, %v952_v12  ;;  %v885_v18 = vmul.f32 %v858_v13, %v628_v14  ;;  %v884_v19 = vmul.f32 %v853_v15, %v627_v16  ;;  %v8711_v12 = vld [vmem:[%s12104_s7 + $0x18] sm:$0xff]   ;;  %v8712_v15 = vld [vmem:[%s12104_s7 + $0x20] sm:$0xff]  }
  0xa5   : > { %8107 = vmatprep.subr.bf16.mxu0 %v1006_v17 }
  0xa6   : > { %v918_v20 = vpop.permute.xlu1 %917  ;;  %v913_v21 = vpop.permute.xlu0 %912  ;;  %8108 = vmatpush3.bf16.msra.mxu0 %v1006_v17 }
  0xa7   : > { %v945_v22 = vadd.f32 %v918_v20, %v885_v18  ;;  %v944_v23 = vadd.f32 %v913_v21, %v884_v19  ;;  %v618_v21 = vld [vmem:[%s9527_s22 + $0x28] sm:$0xff] }
  0xa9   : > { %v955_v24 = vmul.f32 %v9538_v57, %v945_v22  ;;  %v954_v25 = vmul.f32 %v9538_v57, %v944_v23  ;;  %v617_v23 = vld [vmem:[%s9527_s22 + $0x20] sm:$0xff] }
  0xaa   : > { %v868_v26 = vpop.permute.xlu1 %867  ;;  %v863_v28 = vpop.permute.xlu0 %862 }
  0xab   : > { %v1007_v30 = vpack.c.bf16 %v955_v24, %v954_v25  ;;  %v887_v31 = vmul.f32 %v868_v26, %v630_v27  ;;  %v886_v32 = vmul.f32 %v863_v28, %v629_v29  ;;  %v8713_v27 = vld [vmem:[%s12104_s7 + $0x28] sm:$0xff]  }
  0xad   : > { %8109 = vmatprep.subr.bf16.mxu0 %v1007_v30 }
  0xae   : > { %v928_v33 = vpop.permute.xlu1 %927  ;;  %v923_v34 = vpop.permute.xlu0 %922  ;;  %8110 = vmatpush3.bf16.msra.mxu0 %v1007_v30  ;;  %v8714_v30 = vld [vmem:[%s12104_s7 + $0x30] sm:$0xff]  }
  0xaf   : > { %v947_v35 = vadd.f32 %v928_v33, %v887_v31  ;;  %v946_v36 = vadd.f32 %v923_v34, %v886_v32 }
  0xb1   : > { %v957_v37 = vmul.f32 %v9538_v57, %v947_v35  ;;  %v956_v38 = vmul.f32 %v9538_v57, %v946_v36  ;;  %v620_v36 = vld [vmem:[%s9527_s22 + $0x38] sm:$0xff] }
  0xb2   : > { %v878_v39 = vpop.permute.xlu1 %877  ;;  %v873_v41 = vpop.permute.xlu0 %872 }
  0xb3   : > { %v1008_v43 = vpack.c.bf16 %v957_v37, %v956_v38  ;;  %v889_v44 = vmul.f32 %v878_v39, %v632_v40  ;;  %v888_v45 = vmul.f32 %v873_v41, %v631_v42  ;;  %v619_v38 = vld [vmem:[%s9527_s22 + $0x30] sm:$0xff]  ;;  %v8715_v42 = vld [vmem:[%s12104_s7 + $0x38] sm:$0xff]  }
  0xb5   : > { %8111 = vmatprep.subr.bf16.mxu0 %v1008_v43 }
  0xb6   : > { %v938_v46 = vpop.permute.xlu1 %937  ;;  %v933_v47 = vpop.permute.xlu0 %932  ;;  %8112 = vmatpush3.bf16.msra.mxu0 %v1008_v43 }
  0xb7   : > { %v949_v48 = vadd.f32 %v938_v46, %v889_v44  ;;  %v948_v49 = vadd.f32 %v933_v47, %v888_v45  ;;  %v8716_v45 = vld [vmem:[%s12104_s7 + $0x40] sm:$0xff]  }
  0xb9   : > { %v959_v50 = vmul.f32 %v9538_v57, %v949_v48  ;;  %v958_v51 = vmul.f32 %v9538_v57, %v948_v49 }
  0xba   : > { %v702_v52 = vpop.permute.xlu1 %701  ;;  %v697_v54 = vpop.permute.xlu0 %696 }
  0xbb   : > { %v1009_v56 = vpack.c.bf16 %v959_v50, %v958_v51  ;;  %v745_v58 = vmul.f32 %v702_v52, %v614_v53  ;;  %v744_v59 = vmul.f32 %v697_v54, %v613_v55  ;;  %v622_v51 = vld [vmem:[%s9527_s22 + $0x48] sm:$0xff]  ;;  %v621_v53 = vld [vmem:[%s9527_s22 + $0x40] sm:$0xff]  ;;  %s12147_s22 = smov 1  }
  0xbd   : > { %8113 = vmatprep.subr.bf16.mxu0 %v1009_v56 }
  0xbe   : > { %v762_v61 = vpop.permute.xlu1 %761  ;;  %v757_v62 = vpop.permute.xlu0 %756  ;;  %8114 = vmatpush3.bf16.msra.mxu0 %v1009_v56 }
  0xbf   : > { %v805_v0 = vadd.f32 %v762_v61, %v745_v58  ;;  %v804_v1 = vadd.f32 %v757_v62, %v744_v59  ;;  %v8717_v58 = vld [vmem:[%s12104_s7 + $0x48] sm:$0xff]   ;;  %v8718_v61 = vld [vmem:[%s12103_s6] sm:$0xff]  }
  0xc1   : > { %v821_v3 = vmul.f32 %v9538_v57, %v805_v0  ;;  %v820_v4 = vmul.f32 %v9538_v57, %v804_v1  ;;  %8116 = vmatmul.mubr.msk.bf16.vlgmr.msra.gmra.mrb[0].mxu0 %vm1060_vm0, %v8709_v60 }
  0xc2   : > { %v712_v5 = vpop.permute.xlu1 %711  ;;  %v707_v7 = vpop.permute.xlu0 %706  ;;  %8119 = vmatprep.mubr.msk.bf16.mxu0 %vm1060_vm0, %v8710_v63 }
  0xc3   : > { %v980_v9 = vpack.c.bf16 %v821_v3, %v820_v4  ;;  %v747_v10 = vmul.f32 %v712_v5, %v616_v6  ;;  %v746_v11 = vmul.f32 %v707_v7, %v615_v8  ;;  %v8719_v4 = vld [vmem:[%s12103_s6 + $0x8] sm:$0xff]   ;;  %v8720_v5 = vld [vmem:[%s12103_s6 + $0x10] sm:$0xff]   ;;  %v8721_v6 = vld [vmem:[%s12103_s6 + $0x18] sm:$0xff]  }
  0xc4   : > { %v8722_v7 = vld [vmem:[%s12103_s6 + $0x20] sm:$0xff]   ;;  %v8723_v8 = vld [vmem:[%s12103_s6 + $0x28] sm:$0xff]  }
  0xc5   : > { %8135 = vmatprep.subr.bf16.mxu0 %v980_v9 }
  0xc6   : > { %v772_v13 = vpop.permute.xlu1 %771  ;;  %v767_v14 = vpop.permute.xlu0 %766  ;;  %8136 = vmatpush3.bf16.msra.mxu0 %v980_v9  ;;  %v8724_v9 = vld [vmem:[%s12103_s6 + $0x30] sm:$0xff]  }
  0xc7   : > { %v807_v16 = vadd.f32 %v772_v13, %v747_v10  ;;  %v806_v17 = vadd.f32 %v767_v14, %v746_v11  ;;  %v8725_v10 = vld [vmem:[%s12103_s6 + $0x38] sm:$0xff]   ;;  %v8726_v11 = vld [vmem:[%s12103_s6 + $0x40] sm:$0xff]  }
  0xc8   : > { %v8728_v13 = vld [vmem:[%s12105_s8] sm:$0xff]  }
  0xc9   : > { %v823_v18 = vmul.f32 %v9538_v57, %v807_v16  ;;  %v822_v19 = vmul.f32 %v9538_v57, %v806_v17  ;;  %8120 = vmatmul.mubr.msk.bf16.gmra.mrb[4].mxu0 %vm1060_vm0, %v8711_v12  ;;  %v8727_v12 = vld [vmem:[%s12103_s6 + $0x48] sm:$0xff]   ;;  %8175 = vmatprep.mubr.msk.bf16.mxu1 %vm1060_vm0, %v8728_v13  ;;  %v9679_v17 = vld [vmem:[%s9666_s30 + $0x10] sm:$0xff]  }
  0xca   : > { %v722_v20 = vpop.permute.xlu1 %721  ;;  %v717_v22 = vpop.permute.xlu0 %716  ;;  %8123 = vmatprep.mubr.msk.bf16.mxu0 %vm1060_vm0, %v8712_v15  ;;  %v8744_v14 = vld [vmem:[%s12107_s10 + $0x4] ss:$8 sps:$4 sm:$0xff]  }
  0xcb   : > { %v981_v24 = vpack.c.bf16 %v823_v18, %v822_v19  ;;  %v749_v25 = vmul.f32 %v722_v20, %v618_v21  ;;  %v748_v26 = vmul.f32 %v717_v22, %v617_v23  ;;  %v9670_v15 = vld [vmem:[%s9666_s30] sm:$0xff]   ;;  %v9674_v16 = vld [vmem:[%s9666_s30 + $0x8] sm:$0xff]   ;;  %v9684_v18 = vld [vmem:[%s9666_s30 + $0x18] sm:$0xff]  }
  0xcc   : > { %v9689_v19 = vld [vmem:[%s9666_s30 + $0x20] sm:$0xff]   ;;  %v9694_v20 = vld [vmem:[%s9666_s30 + $0x28] sm:$0xff]   ;;  %v9699_v21 = vld [vmem:[%s9666_s30 + $0x30] sm:$0xff]  }
  0xcd   : > { %8137 = vmatprep.subr.bf16.mxu0 %v981_v24  ;;  %v9704_v22 = vld [vmem:[%s9666_s30 + $0x38] sm:$0xff]   ;;  %v9709_v23 = vld [vmem:[%s9666_s30 + $0x40] sm:$0xff]  }
  0xce   : > { %v782_v28 = vpop.permute.xlu1 %781  ;;  %v777_v29 = vpop.permute.xlu0 %776  ;;  %8138 = vmatpush3.bf16.msra.mxu0 %v981_v24  ;;  %v9714_v24 = vld [vmem:[%s9666_s30 + $0x48] sm:$0xff]  }
  0xcf   : > { %v809_v31 = vadd.f32 %v782_v28, %v749_v25  ;;  %v808_v32 = vadd.f32 %v777_v29, %v748_v26  ;;  %v8742_v25 = vld [vmem:[%s12107_s10] ss:$8 sps:$4 sm:$0xff]   ;;  %v8745_v26 = vld [vmem:[%s12107_s10 + $0x14] ss:$8 sps:$4 sm:$0xff]   ;;  %v8748_v28 = vld [vmem:[%s12107_s10 + $0x24] ss:$8 sps:$4 sm:$0xff]  }
  0xd0   : > { %v8750_v29 = vld [vmem:[%s12107_s10 + $0x20] ss:$8 sps:$4 sm:$0xff]  }
  0xd1   : > { %v825_v33 = vmul.f32 %v9538_v57, %v809_v31  ;;  %v824_v34 = vmul.f32 %v9538_v57, %v808_v32  ;;  %8124 = vmatmul.mubr.msk.bf16.gmra.mrb[8].mxu0 %vm1060_vm0, %v8713_v27  ;;  %v8747_v27 = vld [vmem:[%s12107_s10 + $0x10] ss:$8 sps:$4 sm:$0xff]   ;;  %v8754_v32 = vld [vmem:[%s12107_s10 + $0x44] ss:$8 sps:$4 sm:$0xff]  }
  0xd2   : > { %v732_v35 = vpop.permute.xlu1 %731  ;;  %v727_v37 = vpop.permute.xlu0 %726  ;;  %8127 = vmatprep.mubr.msk.bf16.mxu0 %vm1060_vm0, %v8714_v30  ;;  %v8751_v30 = vld [vmem:[%s12107_s10 + $0x34] ss:$8 sps:$4 sm:$0xff]   ;;  %v8753_v31 = vld [vmem:[%s12107_s10 + $0x30] ss:$8 sps:$4 sm:$0xff]  }
  0xd3   : > { %v982_v39 = vpack.c.bf16 %v825_v33, %v824_v34  ;;  %v751_v40 = vmul.f32 %v732_v35, %v620_v36  ;;  %v750_v41 = vmul.f32 %v727_v37, %v619_v38  ;;  %v8756_v33 = vld [vmem:[%s12107_s10 + $0x40] ss:$8 sps:$4 sm:$0xff]   ;;  %v8757_v34 = vld [vmem:[%s12107_s10 + $0x54] ss:$8 sps:$4 sm:$0xff]   ;;  %v8759_v35 = vld [vmem:[%s12107_s10 + $0x50] ss:$8 sps:$4 sm:$0xff]  }
  0xd4   : > { %v8760_v36 = vld [vmem:[%s12107_s10 + $0x64] ss:$8 sps:$4 sm:$0xff]   ;;  %v8762_v37 = vld [vmem:[%s12107_s10 + $0x60] ss:$8 sps:$4 sm:$0xff]   ;;  %v8763_v38 = vld [vmem:[%s12107_s10 + $0x74] ss:$8 sps:$4 sm:$0xff]  }
  0xd5   : > { %8139 = vmatprep.subr.bf16.mxu0 %v982_v39 }
  0xd6   : > { %v792_v43 = vpop.permute.xlu1 %791  ;;  %v787_v44 = vpop.permute.xlu0 %786  ;;  %8140 = vmatpush3.bf16.msra.mxu0 %v982_v39 }
  0xd7   : > { %v811_v46 = vadd.f32 %v792_v43, %v751_v40  ;;  %v810_v47 = vadd.f32 %v787_v44, %v750_v41  ;;  %v8765_v44 = vld [vmem:[%s12107_s10 + $0x70] ss:$8 sps:$4 sm:$0xff]  }
  0xd9   : > { %v827_v48 = vmul.f32 %v9538_v57, %v811_v46  ;;  %v826_v49 = vmul.f32 %v9538_v57, %v810_v47  ;;  %8128 = vmatmul.mubr.msk.bf16.gmra.mrb[12].mxu0 %vm1060_vm0, %v8715_v42 }
  0xda   : > { %v742_v50 = vpop.permute.xlu1 %741  ;;  %v737_v52 = vpop.permute.xlu0 %736  ;;  %8131 = vmatprep.mubr.msk.bf16.mxu0 %vm1060_vm0, %v8716_v45 }
  0xdb   : > { %v983_v54 = vpack.c.bf16 %v827_v48, %v826_v49  ;;  %v753_v55 = vmul.f32 %v742_v50, %v622_v51  ;;  %v752_v56 = vmul.f32 %v737_v52, %v621_v53 }
  0xdd   : > { %8141 = vmatprep.subr.bf16.mxu0 %v983_v54 }
  0xde   : > { %v802_v59 = vpop.permute.xlu1 %801  ;;  %v797_v60 = vpop.permute.xlu0 %796  ;;  %8142 = vmatpush3.bf16.msra.mxu0 %v983_v54 }
  0xdf   : > { %v813_v62 = vadd.f32 %v802_v59, %v753_v55  ;;  %v812_v63 = vadd.f32 %v797_v60, %v752_v56  ;;  %v8730_v59 = vld [vmem:[%s12105_s8 + $0x10] sm:$0xff]  }
  0xe1   : > { %v829_v0 = vmul.f32 %v9538_v57, %v813_v62  ;;  %v828_v1 = vmul.f32 %v9538_v57, %v812_v63  ;;  %8132 = vmatmul.mubr.msk.bf16.gmra.mrb[16].mxu0 %vm1060_vm0, %v8717_v58  ;;  %v8729_v58 = vld [vmem:[%s12105_s8 + $0x8] sm:$0xff]  }
  0xe2   : > { %8145 = vmatprep.mubr.msk.bf16.mxu0 %vm1060_vm0, %v8718_v61 }
  0xe3   : > { %v984_v3 = vpack.c.bf16 %v829_v0, %v828_v1  ;;  %v8731_v0 = vld [vmem:[%s12105_s8 + $0x18] sm:$0xff]  }
  0xe5   : > { %8143 = vmatprep.subr.bf16.mxu0 %v984_v3 }
  0xe6   : > { %8144 = vmatpush3.bf16.msra.mxu0 %v984_v3 }
  0xe7   : > { %2040 = vmatprep.subr.bf16.mxu0 %v12120_v2 }
  0xe9   : > { %8146 = vmatmul.mubr.msk.bf16.vlgmr.msra.gmra.mrb[0].mxu0 %vm1060_vm0, %v8719_v4 }
  0xea   : > { %8149 = vmatprep.mubr.msk.bf16.mxu0 %vm1060_vm0, %v8720_v5  ;;  %2041 = vmatpush1.bf16.msra.mxu0 %v9670_v15 }
  0xeb   : > { %2042 = vmatprep.subr.bf16.mxu0 %v12120_v2 }
  0xee   : > { %2043 = vmatpush1.bf16.msra.mxu0 %v9674_v16 }
  0xef   : > { %2044 = vmatprep.subr.bf16.mxu0 %v12120_v2 }
  0xf1   : > { %8150 = vmatmul.mubr.msk.bf16.gmra.mrb[4].mxu0 %vm1060_vm0, %v8721_v6  ;;  %v8766_v6 = vld [vmem:[%s12107_s10 + $0xa0] ss:$8 sps:$4 sm:$0xff]  }
  0xf2   : > { %8153 = vmatprep.mubr.msk.bf16.mxu0 %vm1060_vm0, %v8722_v7  ;;  %2045 = vmatpush1.bf16.msra.mxu0 %v9679_v17  ;;  %v8768_v7 = vld [vmem:[%s12107_s10 + $0xa4] ss:$8 sps:$4 sm:$0xff]  }
  0xf3   : > { %2046 = vmatprep.subr.bf16.mxu0 %v12120_v2 }
  0xf6   : > { %2047 = vmatpush1.bf16.msra.mxu0 %v9684_v18 }
  0xf7   : > { %2048 = vmatprep.subr.bf16.mxu0 %v12120_v2 }
  0xf9   : > { %8154 = vmatmul.mubr.msk.bf16.gmra.mrb[8].mxu0 %vm1060_vm0, %v8723_v8  ;;  %v1426_v8 = vpop.permute.xlu1 %1425 }
  0xfa   : > { %8157 = vmatprep.mubr.msk.bf16.mxu0 %vm1060_vm0, %v8724_v9  ;;  %2049 = vmatpush1.bf16.msra.mxu0 %v9689_v19  ;;  %v1421_v9 = vpop.permute.xlu0 %1420 }
  0xfb   : > { %2050 = vmatprep.subr.bf16.mxu0 %v12120_v2 }
  0xfe   : > { %2051 = vmatpush1.bf16.msra.mxu0 %v9694_v20 }
  0xff   : > { %2052 = vmatprep.subr.bf16.mxu0 %v12120_v2 }
 0x101   : > { %8158 = vmatmul.mubr.msk.bf16.gmra.mrb[12].mxu0 %vm1060_vm0, %v8725_v10  ;;  %v1436_v10 = vpop.permute.xlu1 %1435 }
 0x102   : > { %8161 = vmatprep.mubr.msk.bf16.mxu0 %vm1060_vm0, %v8726_v11  ;;  %2053 = vmatpush1.bf16.msra.mxu0 %v9699_v21  ;;  %v1431_v11 = vpop.permute.xlu0 %1430 }
 0x103   : > { %2054 = vmatprep.subr.bf16.mxu0 %v12120_v2 }
 0x105   : > { %v1446_v13 = vpop.permute.xlu1 %1445 }
 0x106   : > { %2055 = vmatpush1.bf16.msra.mxu0 %v9704_v22 }
 0x107   : > { %2056 = vmatprep.subr.bf16.mxu0 %v12120_v2 }
 0x109   : > { %8162 = vmatmul.mubr.msk.bf16.gmra.mrb[16].mxu0 %vm1060_vm0, %v8727_v12 }
 0x10a   : > { %7228 = vmatprep.mubr.msk.bf16.mxu0 %vm1991_vm1, %v8744_v14  ;;  %2057 = vmatpush1.bf16.msra.mxu0 %v9709_v23 }
 0x10b   : > { %2058 = vmatprep.subr.bf16.mxu0 %v12120_v2 }
 0x10e   : > { %2059 = vmatpush1.bf16.msra.mxu0 %v9714_v24 }
 0x111   : > { %2073 = vmatmul.mubr.bf16.vlgmr.msra.gmra.mrb[20].mxu0 %v8742_v25 }
 0x112   : > { %7229 = vmatprep.mubr.msk.bf16.mxu0 %vm1991_vm1, %v8745_v26 }
 0x119   : > { %2081 = vmatmul.mubr.bf16.gmra.mrb[24].mxu0 %v8747_v27 }
 0x11a   : > { %7230 = vmatprep.mubr.msk.bf16.mxu0 %vm1991_vm1, %v8748_v28  ;;  %v1456_v28 = vpop.permute.xlu1 %1455 }
 0x121   : > { %2089 = vmatmul.mubr.bf16.gmra.mrb[28].mxu0 %v8750_v29 }
 0x122   : > { %7231 = vmatprep.mubr.msk.bf16.mxu0 %vm1991_vm1, %v8751_v30 }
 0x129   : > { %2097 = vmatmul.mubr.bf16.gmra.mrb[32].mxu0 %v8753_v31 }
 0x12a   : > { %7232 = vmatprep.mubr.msk.bf16.mxu0 %vm1991_vm1, %v8754_v32 }
 0x131   : > { %2105 = vmatmul.mubr.bf16.gmra.mrb[36].mxu0 %v8756_v33 }
 0x132   : > { %7233 = vmatprep.mubr.msk.bf16.mxu0 %vm1991_vm1, %v8757_v34 }
 0x139   : > { %2113 = vmatmul.mubr.bf16.gmra.mrb[40].mxu0 %v8759_v35 }
 0x13a   : > { %7234 = vmatprep.mubr.msk.bf16.mxu0 %vm1991_vm1, %v8760_v36  ;;  %v8772_v36 = vld [vmem:[%s12107_s10 + $0xc4] ss:$8 sps:$4 sm:$0xff]  }
 0x141   : > { %2121 = vmatmul.mubr.bf16.gmra.mrb[44].mxu0 %v8762_v37 }
 0x142   : > { %7235 = vmatprep.mubr.msk.bf16.mxu0 %vm1991_vm1, %v8763_v38 }
 0x149   : > { %2129 = vmatmul.mubr.bf16.gmra.mrb[48].mxu0 %v8765_v44  ;;  %v8774_v44 = vld [vmem:[%s12107_s10 + $0xc0] ss:$8 sps:$4 sm:$0xff]  }
 0x1bc   : > { %v9766_v39 = vpop.f32.mrb[0].mxu0 }
 0x1bd   : > { %v9769_v40 = vpop.f32.mrb[1].mxu0 }
 0x1be   : > { %v9771_v41 = vpop.f32.mrb[2].mxu0 }
 0x1bf   : > { %v1406_v42 = vpack.c.bf16 %v9771_v41, %v9766_v39  ;;  %v9775_v43 = vpop.f32.mrb[3].mxu0 }
 0x1c0   : > { %v1405_v45 = vpack.c.bf16 %v9775_v43, %v9769_v40 }
 0x1c2   : > { %8165 = vmatprep.subr.bf16.mxu1 %v1405_v45 }
 0x1c3   : > { %8166 = vmatpush3.bf16.msra.mxu1 %v1405_v45 }
 0x1c4   : > { %v9782_v46 = vpop.f32.mrb[4].mxu0  ;;  %8167 = vmatprep.subr.bf16.mxu1 %v1406_v42 }
 0x1c5   : > { %v9784_v47 = vpop.f32.mrb[5].mxu0 }
 0x1c6   : > { %v9786_v48 = vpop.f32.mrb[6].mxu0 }
 0x1c7   : > { %v1408_v49 = vpack.c.bf16 %v9786_v48, %v9782_v46  ;;  %v9790_v50 = vpop.f32.mrb[7].mxu0  ;;  %8168 = vmatpush3.bf16.msra.mxu1 %v1406_v42 }
 0x1c8   : > { %v1407_v51 = vpack.c.bf16 %v9790_v50, %v9784_v47 }
 0x1ca   : > { %8169 = vmatprep.subr.bf16.mxu1 %v1407_v51 }
 0x1cb   : > { %8170 = vmatpush3.bf16.msra.mxu1 %v1407_v51 }
 0x1cc   : > { %v9794_v52 = vpop.f32.mrb[8].mxu0  ;;  %8171 = vmatprep.subr.bf16.mxu1 %v1408_v49 }
 0x1cd   : > { %12133 = vst [vmem:[#allocation2_spill] sm:$0xff] %v9794_v52  ;;  %v9796_v53 = vpop.f32.mrb[9].mxu0 }
 0x1ce   : > { %v9798_v54 = vpop.f32.mrb[10].mxu0 }
 0x1cf   : > { %12134 = vst [vmem:[#allocation3_spill] sm:$0xff] %v9798_v54  ;;  %v9800_v55 = vpop.f32.mrb[11].mxu0  ;;  %8172 = vmatpush3.bf16.msra.mxu1 %v1408_v49 }
 0x1d0   : > { %v1409_v56 = vpack.c.bf16 %v9800_v55, %v9796_v53 }
 0x1d2   : > { %8173 = vmatprep.subr.bf16.mxu1 %v1409_v56 }
 0x1d3   : > { %8174 = vmatpush3.bf16.msra.mxu1 %v1409_v56 }
 0x1d4   : > { %v9810_v60 = vpop.f32.mrb[12].mxu0  ;;  %8413 = vmatprep.subr.bf16.mxu1 %v12120_v2 }
 0x1d5   : > { %12135 = vst [vmem:[#allocation4_spill] sm:$0xff] %v9810_v60  ;;  %v9813_v61 = vpop.f32.mrb[13].mxu0 }
 0x1d6   : > { %12136 = vst [vmem:[#allocation5_spill] sm:$0xff] %v9813_v61  ;;  %v9815_v62 = vpop.f32.mrb[14].mxu0  ;;  %8176 = vmatmul.mubr.msk.bf16.vlgmr.msra.gmra.mrb[0].mxu1 %vm1060_vm0, %v8729_v58 }
 0x1d7   : > { %12137 = vst [vmem:[#allocation6_spill] sm:$0xff] %v9815_v62  ;;  %v9818_v63 = vpop.f32.mrb[15].mxu0  ;;  %8179 = vmatprep.mubr.msk.bf16.mxu1 %vm1060_vm0, %v8730_v59  ;;  %8423 = vmatpush1.bf16.msra.mxu1 %v9670_v15 }
 0x1d8   : > { %12138 = vst [vmem:[#allocation7_spill] sm:$0xff] %v9818_v63  ;;  %8414 = vmatprep.subr.bf16.mxu1 %v12120_v2 }
 0x1db   : > { %8424 = vmatpush1.bf16.msra.mxu1 %v9674_v16  ;;  %v8769_v16 = vld [vmem:[%s12107_s10 + $0xb4] ss:$8 sps:$4 sm:$0xff]  }
 0x1dc   : > { %v9827_v1 = vpop.f32.mrb[16].mxu0  ;;  %8415 = vmatprep.subr.bf16.mxu1 %v12120_v2 }
 0x1dd   : > { %12139 = vst [vmem:[#allocation8_spill] sm:$0xff] %v9827_v1  ;;  %v9830_v3 = vpop.f32.mrb[17].mxu0 }
 0x1de   : > { %12140 = vst [vmem:[#allocation9_spill] sm:$0xff] %v9830_v3  ;;  %v9832_v4 = vpop.f32.mrb[18].mxu0  ;;  %8180 = vmatmul.mubr.msk.bf16.gmra.mrb[4].mxu1 %vm1060_vm0, %v8731_v0 }
 0x1df   : > { %12141 = vst [vmem:[#allocation10_spill] sm:$0xff] %v9832_v4  ;;  %v9835_v5 = vpop.f32.mrb[19].mxu0  ;;  %8425 = vmatpush1.bf16.msra.mxu1 %v9679_v17  ;;  %7238 = vmatprep.mubr.msk.bf16.mxu1 %vm1991_vm1, %v8768_v7  ;;  %v1441_v17 = vpop.permute.xlu0 %1440 }
 0x1e0   : > { %12142 = vst [vmem:[#allocation11_spill] sm:$0xff] %v9835_v5  ;;  %8416 = vmatprep.subr.bf16.mxu1 %v12120_v2 }
 0x1e3   : > { %8426 = vmatpush1.bf16.msra.mxu1 %v9684_v18  ;;  %v1451_v30 = vpop.permute.xlu0 %1450 }
 0x1e4   : > { %8417 = vmatprep.subr.bf16.mxu1 %v12120_v2  ;;  %v9889_v35 = vpop.f32.mrb[20].mxu0 }
 0x1e5   : > { %v2076_v42 = vpop.f32.mrb[21].mxu0 }
 0x1e6   : > { %v9900_v56 = vpop.f32.mrb[22].mxu0 }
 0x1e7   : > { %8427 = vmatpush1.bf16.msra.mxu1 %v9689_v19  ;;  %v2079_v0 = vpop.f32.mrb[23].mxu0 }
 0x1e8   : > { %8418 = vmatprep.subr.bf16.mxu1 %v12120_v2  ;;  %v8781_v0 = vld [vmem:[%s12107_s10 + $0xf4] ss:$8 sps:$4 sm:$0xff]  }
 0x1eb   : > { %8428 = vmatpush1.bf16.msra.mxu1 %v9694_v20  ;;  %v8771_v20 = vld [vmem:[%s12107_s10 + $0xb0] ss:$8 sps:$4 sm:$0xff]  }
 0x1ec   : > { %8419 = vmatprep.subr.bf16.mxu1 %v12120_v2 }
 0x1ef   : > { %8429 = vmatpush1.bf16.msra.mxu1 %v9699_v21 }
 0x1f0   : > { %8420 = vmatprep.subr.bf16.mxu1 %v12120_v2 }
 0x1f3   : > { %8430 = vmatpush1.bf16.msra.mxu1 %v9704_v22 }
 0x1f4   : > { %8421 = vmatprep.subr.bf16.mxu1 %v12120_v2 }
 0x1f7   : > { %8431 = vmatpush1.bf16.msra.mxu1 %v9709_v23 }
 0x1f8   : > { %8422 = vmatprep.subr.bf16.mxu1 %v12120_v2 }
 0x1fb   : > { %8432 = vmatpush1.bf16.msra.mxu1 %v9714_v24 }
 0x1fc   : > { %2365 = vmatprep.subr.bf16.mxu1 %v12120_v2 }
 0x1fe   : > { %2153 = vmatmul.mubr.bf16.vlgmr.msra.gmra.mrb[8].mxu1 %v8766_v6 }
 0x1ff   : > { %7239 = vmatprep.mubr.msk.bf16.mxu1 %vm1991_vm1, %v8769_v16 }
 0x206   : > { %2161 = vmatmul.mubr.bf16.gmra.mrb[12].mxu1 %v8771_v20 }
 0x207   : > { %7240 = vmatprep.mubr.msk.bf16.mxu1 %vm1991_vm1, %v8772_v36 }
 0x20e   : > { %2169 = vmatmul.mubr.bf16.gmra.mrb[16].mxu1 %v8774_v44  ;;  %v1605_v44 = vld [vmem:[%s9951_s29 + $0x50] sm:$0xff] }
 0x2a9   : > { %v8177_v12 = vpop.f32.mrb[0].mxu1 }
 0x2aa   : > { %v1533_v14 = vadd.f32 %v8177_v12, %v1431_v11  ;;  %v1524_v15 = vpop.f32.mrb[1].mxu1 }
 0x2ab   : > { %v1525_v18 = vadd.f32 %v1524_v15, %v1421_v9  ;;  %v8178_v19 = vpop.f32.mrb[2].mxu1 }
 0x2ac   : > { %v1536_v21 = vadd.f32 %v8178_v19, %v1436_v10  ;;  %v1527_v22 = vpop.f32.mrb[3].mxu1  ;;  %v9868_v24 = vmul.f32 %v9538_v57, %v1533_v14  ;;  %v8777_v14 = vld [vmem:[%s12107_s10 + $0xd0] ss:$8 sps:$4 sm:$0xff]  }
 0x2ad   : > { %v1528_v23 = vadd.f32 %v1527_v22, %v1426_v8  ;;  %v9874_v26 = vmul.f32 %v9538_v57, %v1525_v18  ;;  %v9914_v8 = vpop.f32.mrb[24].mxu0 }
 0x2ae   : > { %v9871_v25 = vmul.f32 %v9538_v57, %v1536_v21  ;;  %v2084_v10 = vpop.f32.mrb[25].mxu0 }
 0x2af   : > { %v9877_v27 = vmul.f32 %v9538_v57, %v1528_v23  ;;  %v9924_v12 = vpop.f32.mrb[26].mxu0  ;;  %v8778_v23 = vld [vmem:[%s12107_s10 + $0xe4] ss:$8 sps:$4 sm:$0xff]  }
 0x2b0   : > { %v9881_v29 = vpack.c.bf16 %v9871_v25, %v9868_v24  ;;  %v1608_v10 = vld [vmem:[%s9951_s29 + $0x68] sm:$0xff] }
 0x2b1   : > { %v8181_v31 = vpop.f32.mrb[4].mxu1  ;;  %v9885_v32 = vpack.c.bf16 %v9877_v27, %v9874_v26 }
 0x2b2   : > { %v1549_v33 = vadd.f32 %v8181_v31, %v1451_v30  ;;  %2211 = vrot.lane.b32.xlu1 %v9881_v29, %s12118_s23  ;;  %v1540_v34 = vpop.f32.mrb[5].mxu1  ;;  %v1604_v30 = vld [vmem:[%s9951_s29 + $0x48] sm:$0xff] }
 0x2b3   : > { %v1541_v37 = vadd.f32 %v1540_v34, %v1441_v17  ;;  %v8182_v38 = vpop.f32.mrb[6].mxu1  ;;  %2209 = vrot.lane.b32.xlu0 %v9885_v32, %s12118_s23 }
 0x2b4   : > { %v1552_v45 = vadd.f32 %v8182_v38, %v1456_v28  ;;  %v1543_v49 = vpop.f32.mrb[7].mxu1  ;;  %v9903_v58 = vmul.f32 %v9538_v57, %v1549_v33  ;;  %v8780_v28 = vld [vmem:[%s12107_s10 + $0xe0] ss:$8 sps:$4 sm:$0xff]   ;;  %v1606_v38 = vld [vmem:[%s9951_s29 + $0x58] sm:$0xff] }
 0x2b5   : > { %v1544_v51 = vadd.f32 %v1543_v49, %v1446_v13  ;;  %v9909_v6 = vmul.f32 %v9538_v57, %v1541_v37  ;;  %v2087_v13 = vpop.f32.mrb[27].mxu0  ;;  %v1603_v33 = vld [vmem:[%s9951_s29 + $0x40] sm:$0xff] }
 0x2b6   : > { %v9906_v59 = vmul.f32 %v9538_v57, %v1552_v45  ;;  %v9936_v15 = vpop.f32.mrb[28].mxu0 }
 0x2b7   : > { %v9912_v7 = vmul.f32 %v9538_v57, %v1544_v51  ;;  %v8775_v57 = vld [vmem:[%s12107_s10 + $0xd4] ss:$8 sps:$4 sm:$0xff]   ;;  %v2092_v16 = vpop.f32.mrb[29].mxu0 }
 0x2b8   : > { %v9918_v9 = vpack.c.bf16 %v9906_v59, %v9903_v58  ;;  %7241 = vmatprep.mubr.msk.bf16.mxu1 %vm1991_vm1, %v8775_v57  ;;  %v9940_v17 = vpop.f32.mrb[30].mxu0  ;;  %v8783_v57 = vld [vmem:[%s12107_s10 + $0xf0] ss:$8 sps:$4 sm:$0xff]  }
 0x2b9   : > { %v9922_v11 = vpack.c.bf16 %v9912_v7, %v9909_v6  ;;  %2177 = vmatmul.mubr.bf16.gmra.mrb[20].mxu1 %v8777_v14  ;;  %v2095_v18 = vpop.f32.mrb[31].mxu0  ;;  %v1607_v14 = vld [vmem:[%s9951_s29 + $0x60] sm:$0xff] }
 0x2ba   : > { %2215 = vrot.lane.b32.xlu1 %v9918_v9, %s12118_s23  ;;  %v9946_v19 = vpop.f32.mrb[32].mxu0  ;;  %7242 = vmatprep.mubr.msk.bf16.mxu1 %vm1991_vm1, %v8778_v23 }
 0x2bb   : > { %2213 = vrot.lane.b32.xlu0 %v9922_v11, %s12118_s23  ;;  %v2100_v20 = vpop.f32.mrb[33].mxu0 }
 0x2bc   : > { %v9953_v21 = vpop.f32.mrb[34].mxu0 }
 0x2bd   : > { %v2103_v22 = vpop.f32.mrb[35].mxu0 }
 0x2be   : > { %2233 = vrot.lane.b32.xlu1 %v9881_v29, %s12116_s26  ;;  %v9966_v31 = vpop.f32.mrb[36].mxu0  ;;  %v1610_v22 = vld [vmem:[%s9951_s29 + $0x78] sm:$0xff] }
 0x2bf   : > { %2231 = vrot.lane.b32.xlu0 %v9885_v32, %s12116_s26  ;;  %v2108_v34 = vpop.f32.mrb[37].mxu0 }
 0x2c0   : > { %v9970_v36 = vpop.f32.mrb[38].mxu0  ;;  %v8786_v34 = vld [vmem:[%s12108_s11 + $0x4] ss:$8 sps:$4 sm:$0xff]  }
 0x2c1   : > { %2185 = vmatmul.mubr.bf16.gmra.mrb[24].mxu1 %v8780_v28  ;;  %v2111_v37 = vpop.f32.mrb[39].mxu0  ;;  %v1609_v28 = vld [vmem:[%s9951_s29 + $0x70] sm:$0xff] }
 0x2c2   : > { %2237 = vrot.lane.b32.xlu1 %v9918_v9, %s12116_s26  ;;  %v9973_v42 = vpop.f32.mrb[40].mxu0  ;;  %7243 = vmatprep.mubr.msk.bf16.mxu1 %vm1991_vm1, %v8781_v0  ;;  %v1600_v0 = vld [vmem:[%s9951_s29 + $0x28] sm:$0xff] }
 0x2c3   : > { %2235 = vrot.lane.b32.xlu0 %v9922_v11, %s12116_s26  ;;  %v2116_v45 = vpop.f32.mrb[41].mxu0 }
 0x2c4   : > { %v9976_v49 = vpop.f32.mrb[42].mxu0  ;;  %v1598_v45 = vld [vmem:[%s9951_s29 + $0x18] sm:$0xff] }
 0x2c5   : > { %v2119_v51 = vpop.f32.mrb[43].mxu0 }
 0x2c6   : > { %1674 = vperm.xlu1 %8707, %v1604_v30   ;;  %v9982_v13 = vpop.f32.mrb[44].mxu0  ;;  %v1597_v51 = vld [vmem:[%s9951_s29 + $0x10] sm:$0xff] }
 0x2c7   : > { %1669 = vperm.xlu0 %8706, %v1603_v33   ;;  %v2124_v16 = vpop.f32.mrb[45].mxu0 }
 0x2c8   : > { %v9989_v18 = vpop.f32.mrb[46].mxu0  ;;  %v2547_v16 = vld [vmem:[%s12110_s13 + $0x8] sm:$0xff] }
 0x2c9   : > { %2193 = vmatmul.mubr.bf16.gmra.mrb[28].mxu1 %v8783_v57  ;;  %v2127_v20 = vpop.f32.mrb[47].mxu0  ;;  %v1602_v57 = vld [vmem:[%s9951_s29 + $0x38] sm:$0xff] }
 0x2ca   : > { %1684 = vperm.xlu1 %8707, %v1606_v38   ;;  %v9992_v23 = vpop.f32.mrb[48].mxu0  ;;  %v1596_v38 = vld [vmem:[%s9951_s29 + $0x8] sm:$0xff]  ;;  %7268 = vmatprep.mubr.msk.bf16.mxu1 %vm2340_vm2, %v8786_v34  ;;  %v2546_v20 = vld [vmem:[%s12110_s13] sm:$0xff] }
 0x2cb   : > { %1679 = vperm.xlu0 %8706, %v1605_v44   ;;  %v2132_v30 = vpop.f32.mrb[49].mxu0  ;;  %v1595_v44 = vld [vmem:[%s9951_s29] sm:$0xff] }
 0x2cc   : > { %v9995_v33 = vpop.f32.mrb[50].mxu0  ;;  %v2551_v30 = vld [vmem:[%s12110_s13 + $0x28] sm:$0xff]  ;;  %v2550_v34 = vld [vmem:[%s12110_s13 + $0x20] sm:$0xff] }
 0x2cd   : > { %v2135_v37 = vpop.f32.mrb[51].mxu0 }
 0x2ce   : > { %1694 = vperm.xlu1 %8707, %v1608_v10   ;;  %v1599_v10 = vld [vmem:[%s9951_s29 + $0x20] sm:$0xff]  ;;  %v2553_v37 = vld [vmem:[%s12110_s13 + $0x38] sm:$0xff] }
 0x2cf   : > { %1689 = vperm.xlu0 %8706, %v1607_v14   ;;  %v1601_v14 = vld [vmem:[%s9951_s29 + $0x30] sm:$0xff] }
 0x2d2   : > { %1704 = vperm.xlu1 %8707, %v1610_v22   ;;  %v2549_v22 = vld [vmem:[%s12110_s13 + $0x18] sm:$0xff] }
 0x2d3   : > { %1699 = vperm.xlu0 %8706, %v1609_v28   ;;  %v2548_v28 = vld [vmem:[%s12110_s13 + $0x10] sm:$0xff] }
 0x2d6   : > { %1634 = vperm.xlu1 %8707, %v1596_v38   ;;  %v2552_v38 = vld [vmem:[%s12110_s13 + $0x30] sm:$0xff] }
 0x2d7   : > { %1629 = vperm.xlu0 %8706, %v1595_v44   ;;  %v12144_v44 = vmov 0 }
 0x2d8   : > { %v12145_v44 = vsel %vm10033_vm4, 4294967295, %v12144_v44 }
 0x2d9   : > { %12146 = vst [vmem:[#allocation12_spill] sm:$0xff] %v12145_v44 }
 0x2da   : > { %1644 = vperm.xlu1 %8707, %v1598_v45  }
 0x2db   : > { %1639 = vperm.xlu0 %8706, %v1597_v51  }
 0x2de   : > { %1654 = vperm.xlu1 %8707, %v1600_v0  }
 0x2df   : > { %1649 = vperm.xlu0 %8706, %v1599_v10  }
 0x2e2   : > { %1664 = vperm.xlu1 %8707, %v1602_v57  }
 0x2e3   : > { %1659 = vperm.xlu0 %8706, %v1601_v14  }
 0x2e6   : > { %2569 = vperm.xlu1 %8707, %v2547_v16  }
 0x2e7   : > { %2564 = vperm.xlu0 %8706, %v2546_v20  }
 0x2ea   : > { %2579 = vperm.xlu1 %8707, %v2549_v22   ;;  %v8784_v22 = vld [vmem:[%s12108_s11] ss:$8 sps:$4 sm:$0xff]  }
 0x2eb   : > { %2574 = vperm.xlu0 %8706, %v2548_v28   ;;  %v8787_v28 = vld [vmem:[%s12108_s11 + $0x14] ss:$8 sps:$4 sm:$0xff]  }
 0x2ee   : > { %2589 = vperm.xlu1 %8707, %v2551_v30   ;;  %v8789_v30 = vld [vmem:[%s12108_s11 + $0x10] ss:$8 sps:$4 sm:$0xff]  }
 0x2ef   : > { %2584 = vperm.xlu0 %8706, %v2550_v34   ;;  %v8790_v34 = vld [vmem:[%s12108_s11 + $0x24] ss:$8 sps:$4 sm:$0xff]  }
 0x2f2   : > { %2599 = vperm.xlu1 %8707, %v2553_v37   ;;  %v8792_v37 = vld [vmem:[%s12108_s11 + $0x20] ss:$8 sps:$4 sm:$0xff]  }
 0x2f3   : > { %2594 = vperm.xlu0 %8706, %v2552_v38   ;;  %v8793_v38 = vld [vmem:[%s12108_s11 + $0x34] ss:$8 sps:$4 sm:$0xff]  }
 0x324   : > { %v2212_v51 = vpop.permute.xlu1 %2211 }
 0x325   : > { %v2210_v45 = vpop.permute.xlu0 %2209 }
 0x326   : > { %7261 = vmatpush1.bf16.msk.msra.mxu1 %vm10033_vm4, %v2210_v45  ;;  %v8795_v45 = vld [vmem:[%s12108_s11 + $0x30] ss:$8 sps:$4 sm:$0xff]  }
 0x327   : > { %2367 = vmatprep.subr.bf16.mxu1 %v12120_v2 }
 0x32a   : > { %7263 = vmatpush1.bf16.msk.msra.mxu1 %vm10033_vm4, %v2212_v51  ;;  %v8796_v51 = vld [vmem:[%s12108_s11 + $0x44] ss:$8 sps:$4 sm:$0xff]  }
 0x32b   : > { %2369 = vmatprep.subr.bf16.mxu1 %v12120_v2 }
 0x32c   : > { %v2216_v10 = vpop.permute.xlu1 %2215 }
 0x32d   : > { %v2214_v0 = vpop.permute.xlu0 %2213 }
 0x32e   : > { %7265 = vmatpush1.bf16.msk.msra.mxu1 %vm10033_vm4, %v2214_v0  ;;  %v8798_v0 = vld [vmem:[%s12108_s11 + $0x40] ss:$8 sps:$4 sm:$0xff]  }
 0x32f   : > { %2371 = vmatprep.subr.bf16.mxu1 %v12120_v2 }
 0x330   : > { %v2234_v16 = vpop.permute.xlu1 %2233 }
 0x331   : > { %v2232_v57 = vpop.permute.xlu0 %2231 }
 0x332   : > { %7267 = vmatpush1.bf16.msk.msra.mxu1 %vm10033_vm4, %v2216_v10  ;;  %v2241_v14 = vsel %vm2239_vm5, %v2232_v57, 0  ;;  %v8799_v10 = vld [vmem:[%s12108_s11 + $0x54] ss:$8 sps:$4 sm:$0xff]   ;;  %v8801_v57 = vld [vmem:[%s12108_s11 + $0x50] ss:$8 sps:$4 sm:$0xff]  }
 0x333   : > { %2373 = vmatprep.subr.bf16.mxu1 %v12120_v2 }
 0x334   : > { %v2238_v20 = vpop.permute.xlu1 %2237 }
 0x336   : > { %2374 = vmatpush1.bf16.msra.mxu1 %v9885_v32  ;;  %v2236_v32 = vpop.permute.xlu0 %2235 }
 0x337   : > { %2375 = vmatprep.subr.bf16.mxu1 %v12120_v2 }
 0x33a   : > { %2376 = vmatpush1.bf16.msra.mxu1 %v9881_v29  ;;  %v2244_v29 = vsel %vm2239_vm5, %v2234_v16, 0  ;;  %v8804_v16 = vld [vmem:[%s12108_s11 + $0x60] ss:$8 sps:$4 sm:$0xff]  }
 0x33b   : > { %2377 = vmatprep.subr.bf16.mxu1 %v12120_v2 }
 0x33e   : > { %2378 = vmatpush1.bf16.msra.mxu1 %v9922_v11  ;;  %v2247_v11 = vsel %vm2239_vm5, %v2236_v32, 0  ;;  %v8807_v32 = vld [vmem:[%s12108_s11 + $0x70] ss:$8 sps:$4 sm:$0xff]  }
 0x33f   : > { %2379 = vmatprep.subr.bf16.mxu1 %v12120_v2 }
 0x342   : > { %2380 = vmatpush1.bf16.msra.mxu1 %v9918_v9  ;;  %v2250_v9 = vsel %vm2239_vm5, %v2238_v20, 0  ;;  %v8810_v20 = vld [vmem:[%s12107_s10 + $0x80] ss:$8 sps:$4 sm:$0xff]  }
 0x343   : > { %2381 = vmatprep.subr.bf16.mxu1 %v12120_v2 }
 0x346   : > { %2382 = vmatpush1.bf16.msra.mxu1 %v2241_v14  ;;  %v8802_v14 = vld [vmem:[%s12108_s11 + $0x64] ss:$8 sps:$4 sm:$0xff]  }
 0x347   : > { %2383 = vmatprep.subr.bf16.mxu1 %v12120_v2 }
 0x34a   : > { %2384 = vmatpush1.bf16.msra.mxu1 %v2244_v29  ;;  %v8805_v29 = vld [vmem:[%s12108_s11 + $0x74] ss:$8 sps:$4 sm:$0xff]  }
 0x34b   : > { %2385 = vmatprep.subr.bf16.mxu1 %v12120_v2 }
 0x34e   : > { %2386 = vmatpush1.bf16.msra.mxu1 %v2247_v11  ;;  %v8808_v11 = vld [vmem:[%s12107_s10 + $0x84] ss:$8 sps:$4 sm:$0xff]  }
 0x34f   : > { %2387 = vmatprep.subr.bf16.mxu1 %v12120_v2  ;;  %7236 = vmatprep.mubr.msk.bf16.mxu0 %vm1991_vm1, %v8808_v11 }
 0x350   : > { %2137 = vmatmul.mubr.bf16.gmra.mrb[52].mxu0 %v8810_v20 }
 0x352   : > { %2388 = vmatpush1.bf16.msra.mxu1 %v2250_v9  ;;  %v8811_v9 = vld [vmem:[%s12107_s10 + $0x94] ss:$8 sps:$4 sm:$0xff]  }
 0x353   : > { %2980 = vmatprep.subr.bf16.mxu1 %v12120_v2  ;;  %7237 = vmatprep.mubr.msk.bf16.mxu0 %vm1991_vm1, %v8811_v9 }
 0x355   : > { %2398 = vmatmul.mubr.bf16.vlgmr.msra.gmra.mrb[32].mxu1 %v8784_v22  ;;  %v8813_v22 = vld [vmem:[%s12107_s10 + $0x90] ss:$8 sps:$4 sm:$0xff]  }
 0x356   : > { %7269 = vmatprep.mubr.msk.bf16.mxu1 %vm2340_vm2, %v8787_v28  ;;  %v8814_v28 = vld [vmem:[%s12109_s12] sm:$0xff]  }
 0x358   : > { %2145 = vmatmul.mubr.bf16.gmra.mrb[56].mxu0 %v8813_v22 }
 0x359   : > { %8191 = vmatprep.mubr.msk.bf16.mxu0 %vm2340_vm2, %v8814_v28 }
 0x35d   : > { %2406 = vmatmul.mubr.bf16.gmra.mrb[36].mxu1 %v8789_v30  ;;  %v1670_v30 = vpop.permute.xlu0 %1669 }
 0x35e   : > { %7270 = vmatprep.mubr.msk.bf16.mxu1 %vm2340_vm2, %v8790_v34  ;;  %v1675_v34 = vpop.permute.xlu1 %1674 }
 0x365   : > { %2414 = vmatmul.mubr.bf16.gmra.mrb[40].mxu1 %v8792_v37  ;;  %v1680_v37 = vpop.permute.xlu0 %1679 }
 0x366   : > { %7271 = vmatprep.mubr.msk.bf16.mxu1 %vm2340_vm2, %v8793_v38  ;;  %v1685_v38 = vpop.permute.xlu1 %1684 }
 0x36d   : > { %2422 = vmatmul.mubr.bf16.gmra.mrb[44].mxu1 %v8795_v45  ;;  %v10135_v45 = vpop.permute.xlu0 %1689 }
 0x36e   : > { %7272 = vmatprep.mubr.msk.bf16.mxu1 %vm2340_vm2, %v8796_v51  ;;  %v10137_v51 = vpop.permute.xlu1 %1694 }
 0x375   : > { %2430 = vmatmul.mubr.bf16.gmra.mrb[48].mxu1 %v8798_v0  ;;  %v10139_v0 = vpop.permute.xlu0 %1699 }
 0x376   : > { %7273 = vmatprep.mubr.msk.bf16.mxu1 %vm2340_vm2, %v8799_v10  ;;  %v10141_v10 = vpop.permute.xlu1 %1704 }
 0x37d   : > { %2438 = vmatmul.mubr.bf16.gmra.mrb[52].mxu1 %v8801_v57  ;;  %v1630_v57 = vpop.permute.xlu0 %1629 }
 0x37e   : > { %7274 = vmatprep.mubr.msk.bf16.mxu1 %vm2340_vm2, %v8802_v14  ;;  %v1635_v14 = vpop.permute.xlu1 %1634 }
 0x381   : > { %v1640_v2 = vpop.permute.xlu0 %1639 }
 0x382   : > { %v1645_v5 = vpop.permute.xlu1 %1644  ;;  %v2083_v4 = vadd.f32 %v9914_v8, %v1640_v2 }
 0x383   : > { %v2086_v1 = vadd.f32 %v9924_v12, %v1645_v5 }
 0x385   : > { %2446 = vmatmul.mubr.bf16.gmra.mrb[56].mxu1 %v8804_v16  ;;  %v2075_v16 = vadd.f32 %v9889_v35, %v1630_v57 }
 0x386   : > { %7275 = vmatprep.mubr.msk.bf16.mxu1 %vm2340_vm2, %v8805_v29 }
 0x38d   : > { %2454 = vmatmul.mubr.bf16.gmra.mrb[60].mxu1 %v8807_v32  ;;  %v2078_v32 = vadd.f32 %v9900_v56, %v1635_v14  ;;  %v1650_v14 = vpop.permute.xlu0 %1649 }
 0x428   : > { %v2399_v29 = vpop.f32.mrb[32].mxu1 }
 0x429   : > { %v10145_v11 = vadd.f32 %v2399_v29, %v2075_v16  ;;  %v2401_v20 = vpop.f32.mrb[33].mxu1  ;;  %v1655_v16 = vpop.permute.xlu1 %1654  ;;  %v2091_v29 = vadd.f32 %v9936_v15, %v1650_v14 }
 0x42a   : > { %v2402_v9 = vpop.f32.mrb[34].mxu1  ;;  %v2094_v20 = vadd.f32 %v9940_v17, %v1655_v16  ;;  %v2107_v16 = vadd.f32 %v9966_v31, %v1670_v30 }
 0x42b   : > { %v10147_v22 = vadd.f32 %v2402_v9, %v2078_v32  ;;  %v2404_v28 = vpop.f32.mrb[35].mxu1 }
 0x42d   : > { %v1665_v5 = vpop.permute.xlu1 %1664 }
 0x430   : > { %v2407_v3 = vpop.f32.mrb[36].mxu1 }
 0x431   : > { %v10151_v63 = vadd.f32 %v2407_v3, %v2083_v4  ;;  %v2409_v35 = vpop.f32.mrb[37].mxu1  ;;  %v1660_v4 = vpop.permute.xlu0 %1659 }
 0x432   : > { %v2410_v57 = vpop.f32.mrb[38].mxu1  ;;  %v2102_v35 = vadd.f32 %v9953_v21, %v1665_v5  ;;  %v2115_v5 = vadd.f32 %v9973_v42, %v1680_v37  ;;  %v2126_v37 = vadd.f32 %v9989_v18, %v10137_v51 }
 0x433   : > { %v10153_v62 = vadd.f32 %v2410_v57, %v2086_v1  ;;  %v2412_v56 = vpop.f32.mrb[39].mxu1  ;;  %v2099_v1 = vadd.f32 %v9946_v19, %v1660_v4 }
 0x438   : > { %v2415_v32 = vpop.f32.mrb[40].mxu1 }
 0x439   : > { %v10157_v9 = vadd.f32 %v2415_v32, %v2091_v29  ;;  %v2417_v2 = vpop.f32.mrb[41].mxu1  ;;  %v2110_v32 = vadd.f32 %v9970_v36, %v1675_v34 }
 0x43a   : > { %v2418_v8 = vpop.f32.mrb[42].mxu1 }
 0x43b   : > { %v10159_v28 = vadd.f32 %v2418_v8, %v2094_v20  ;;  %v2420_v3 = vpop.f32.mrb[43].mxu1 }
 0x440   : > { %v2423_v12 = vpop.f32.mrb[44].mxu1 }
 0x441   : > { %v10163_v57 = vadd.f32 %v2423_v12, %v2099_v1  ;;  %v2425_v15 = vpop.f32.mrb[45].mxu1  ;;  %v2118_v12 = vadd.f32 %v9976_v49, %v1685_v38 }
 0x442   : > { %v2426_v56 = vpop.f32.mrb[46].mxu1 }
 0x443   : > { %v10165_v14 = vadd.f32 %v2426_v56, %v2102_v35  ;;  %v2428_v17 = vpop.f32.mrb[47].mxu1 }
 0x448   : > { %v2431_v29 = vpop.f32.mrb[48].mxu1 }
 0x449   : > { %v2432_v20 = vadd.f32 %v2431_v29, %v2107_v16  ;;  %v2433_v2 = vpop.f32.mrb[49].mxu1  ;;  %v2123_v16 = vadd.f32 %v9982_v13, %v10135_v45 }
 0x44a   : > { %v2434_v8 = vpop.f32.mrb[50].mxu1 }
 0x44b   : > { %v7276_v3 = vmul.f32 -1.442695, %v2432_v20  ;;  %v2435_v19 = vadd.f32 %v2434_v8, %v2110_v32  ;;  %v2436_v4 = vpop.f32.mrb[51].mxu1 }
 0x44c   : > { %v2131_v4 = vadd.f32 %v9992_v23, %v10139_v0 }
 0x44d   : > { %9010 = vpow2.f32 %v7276_v3  ;;  %v7277_v21 = vmul.f32 -1.442695, %v2435_v19 }
 0x44f   : > { %9012 = vpow2.f32 %v7277_v21  ;;  %v2134_v21 = vadd.f32 %v9995_v33, %v10141_v10 }
 0x450   : > { %v2439_v1 = vpop.f32.mrb[52].mxu1 }
 0x451   : > { %v2440_v35 = vadd.f32 %v2439_v1, %v2115_v5  ;;  %v2441_v15 = vpop.f32.mrb[53].mxu1 }
 0x452   : > { %v2442_v31 = vpop.f32.mrb[54].mxu1 }
 0x453   : > { %v7278_v30 = vmul.f32 -1.442695, %v2440_v35  ;;  %v2443_v56 = vadd.f32 %v2442_v31, %v2118_v12  ;;  %v2444_v36 = vpop.f32.mrb[55].mxu1 }
 0x455   : > { %9014 = vpow2.f32 %v7278_v30  ;;  %v7279_v34 = vmul.f32 -1.442695, %v2443_v56 }
 0x457   : > { %v9011_v17 = vpop.eup %9010  ;;  %9016 = vpow2.f32 %v7279_v34 }
 0x458   : > { %v2494_v29 = vadd.f32 1.0, %v9011_v17  ;;  %v2447_v32 = vpop.f32.mrb[56].mxu1  ;;  %9018 = vtanh.f32 %v10145_v11 }
 0x459   : > { %v9013_v42 = vpop.eup %9012  ;;  %v2448_v49 = vadd.f32 %v2447_v32, %v2123_v16  ;;  %v2449_v38 = vpop.f32.mrb[57].mxu1 }
 0x45a   : > { %9020 = vrcp.f32 %v2494_v29  ;;  %v2495_v20 = vadd.f32 1.0, %v9013_v42  ;;  %v2450_v2 = vpop.f32.mrb[58].mxu1 }
 0x45b   : > { %9022 = vtanh.f32 %v10147_v22  ;;  %v7280_v8 = vmul.f32 -1.442695, %v2448_v49  ;;  %v2451_v3 = vadd.f32 %v2450_v2, %v2126_v37  ;;  %v2452_v19 = vpop.f32.mrb[59].mxu1 }
 0x45c   : > { %9024 = vrcp.f32 %v2495_v20 }
 0x45d   : > { %9026 = vpow2.f32 %v7280_v8  ;;  %v7281_v13 = vmul.f32 -1.442695, %v2451_v3 }
 0x45f   : > { %v9015_v45 = vpop.eup %9014  ;;  %9028 = vpow2.f32 %v7281_v13 }
 0x460   : > { %v2496_v18 = vadd.f32 1.0, %v9015_v45  ;;  %v2455_v51 = vpop.f32.mrb[60].mxu1  ;;  %9030 = vtanh.f32 %v10151_v63 }
 0x461   : > { %v9017_v11 = vpop.eup %9016  ;;  %v2456_v22 = vadd.f32 %v2455_v51, %v2131_v4  ;;  %v2457_v5 = vpop.f32.mrb[61].mxu1 }
 0x462   : > { %9032 = vrcp.f32 %v2496_v18  ;;  %v2497_v1 = vadd.f32 1.0, %v9017_v11  ;;  %v2458_v12 = vpop.f32.mrb[62].mxu1  ;;  %v9019_v35 = vpop.eup %9018 }
 0x463   : > { %9034 = vtanh.f32 %v10153_v62  ;;  %v7282_v15 = vmul.f32 -1.442695, %v2456_v22  ;;  %v2459_v31 = vadd.f32 %v2458_v12, %v2134_v21  ;;  %v2460_v23 = vpop.f32.mrb[63].mxu1 }
 0x464   : > { %v9021_v0 = vpop.eup %9020  ;;  %9036 = vrcp.f32 %v2497_v1 }
 0x465   : > { %v9023_v30 = vpop.eup %9022  ;;  %9038 = vpow2.f32 %v7282_v15  ;;  %v7283_v56 = vmul.f32 -1.442695, %v2459_v31  ;;  %v2518_v36 = vmul.f32 %v9021_v0, %v9019_v35  ;;  %v8816_v35 = vld [vmem:[%s12109_s12 + $0x10] sm:$0xff]   ;;  %v8817_v15 = vld [vmem:[%s12109_s12 + $0x18] sm:$0xff]   ;;  %v10199_v31 = vpop.f32.mrb[52].mxu0 }
 0x466   : > { %v9025_v33 = vpop.eup %9024  ;;  %v2140_v23 = vpop.f32.mrb[53].mxu0 }
 0x467   : > { %v9027_v10 = vpop.eup %9026  ;;  %9040 = vpow2.f32 %v7283_v56  ;;  %v2519_v63 = vmul.f32 %v9025_v33, %v9023_v30  ;;  %v10201_v0 = vpop.f32.mrb[54].mxu0 }
 0x468   : > { %v2498_v34 = vadd.f32 1.0, %v9027_v10  ;;  %9042 = vtanh.f32 %v10157_v9  ;;  %v2143_v30 = vpop.f32.mrb[55].mxu0 }
 0x469   : > { %v9029_v17 = vpop.eup %9028  ;;  %v2542_v16 = vpack.c.bf16 %v2519_v63, %v2518_v36  ;;  %v10203_v56 = vpop.f32.mrb[56].mxu0 }
 0x46a   : > { %9044 = vrcp.f32 %v2498_v34  ;;  %v2499_v62 = vadd.f32 1.0, %v9029_v17  ;;  %v9031_v29 = vpop.eup %9030  ;;  %v2148_v36 = vpop.f32.mrb[57].mxu0 }
 0x46b   : > { %9046 = vtanh.f32 %v10159_v28  ;;  %8183 = vmatprep.subr.bf16.mxu0 %v2542_v16  ;;  %v10205_v33 = vpop.f32.mrb[58].mxu0  ;;  %v2565_v63 = vpop.permute.xlu0 %2564 }
 0x46c   : > { %v9033_v32 = vpop.eup %9032  ;;  %9048 = vrcp.f32 %v2499_v62  ;;  %8184 = vmatpush3.bf16.msra.mxu0 %v2542_v16  ;;  %v2151_v10 = vpop.f32.mrb[59].mxu0 }
 0x46d   : > { %v9035_v42 = vpop.eup %9034  ;;  %v2520_v37 = vmul.f32 %v9033_v32, %v9031_v29  ;;  %9050 = vtanh.f32 %v10163_v57  ;;  %v2570_v34 = vpop.permute.xlu1 %2569 }
 0x46e   : > { %v9037_v49 = vpop.eup %9036 }
 0x46f   : > { %v9039_v38 = vpop.eup %9038  ;;  %v2521_v20 = vmul.f32 %v9037_v49, %v9035_v42  ;;  %v2575_v17 = vpop.permute.xlu0 %2574 }
 0x470   : > { %v2500_v2 = vadd.f32 1.0, %v9039_v38 }
 0x471   : > { %v9041_v8 = vpop.eup %9040  ;;  %v2543_v9 = vpack.c.bf16 %v2521_v20, %v2520_v37  ;;  %v2580_v16 = vpop.permute.xlu1 %2579 }
 0x472   : > { %9052 = vrcp.f32 %v2500_v2  ;;  %v2501_v3 = vadd.f32 1.0, %v9041_v8  ;;  %v9043_v19 = vpop.eup %9042 }
 0x473   : > { %9054 = vtanh.f32 %v10165_v14  ;;  %8185 = vmatprep.subr.bf16.mxu0 %v2543_v9  ;;  %v8815_v14 = vld [vmem:[%s12109_s12 + $0x8] sm:$0xff]   ;;  %v2585_v42 = vpop.permute.xlu0 %2584 }
 0x474   : > { %v9045_v28 = vpop.eup %9044  ;;  %9056 = vrcp.f32 %v2501_v3  ;;  %8186 = vmatpush3.bf16.msra.mxu0 %v2543_v9 }
 0x475   : > { %v9047_v13 = vpop.eup %9046  ;;  %v2522_v45 = vmul.f32 %v9045_v28, %v9043_v19  ;;  %v2590_v8 = vpop.permute.xlu1 %2589 }
 0x476   : > { %v9049_v4 = vpop.eup %9048 }
 0x477   : > { %v2523_v18 = vmul.f32 %v9049_v4, %v9047_v13  ;;  %v9051_v11 = vpop.eup %9050  ;;  %v10212_v13 = vld [vmem:[%s9535_s27] ss:$0 sm:$0xff] }
 0x479   : > { %v2544_v51 = vpack.c.bf16 %v2523_v18, %v2522_v45  ;;  %v2595_v18 = vpop.permute.xlu0 %2594 }
 0x47b   : > { %8187 = vmatprep.subr.bf16.mxu0 %v2544_v51 }
 0x47c   : > { %v9053_v21 = vpop.eup %9052  ;;  %8188 = vmatpush3.bf16.msra.mxu0 %v2544_v51 }
 0x47d   : > { %v9055_v57 = vpop.eup %9054  ;;  %v2524_v22 = vmul.f32 %v9053_v21, %v9051_v11 }
 0x47e   : > { %v9057_v5 = vpop.eup %9056 }
 0x47f   : > { %v2525_v1 = vmul.f32 %v9057_v5, %v9055_v57 }
 0x481   : > { %v2545_v12 = vpack.c.bf16 %v2525_v1, %v2524_v22  ;;  %v2600_v22 = vpop.permute.xlu1 %2599 }
 0x483   : > { %8189 = vmatprep.subr.bf16.mxu0 %v2545_v12 }
 0x484   : > { %8190 = vmatpush3.bf16.msra.mxu0 %v2545_v12 }
 0x487   : > { %8192 = vmatmul.mubr.msk.bf16.vlgmr.msra.gmra.mrb[60].mxu0 %vm2340_vm2, %v8815_v14 }
 0x488   : > { %8195 = vmatprep.mubr.msk.bf16.mxu0 %vm2340_vm2, %v8816_v35 }
 0x48f   : > { %8196 = vmatmul.mubr.msk.bf16.gmra.mrb[64].mxu0 %vm2340_vm2, %v8817_v15 }
 0x55a   : > { %v8193_v62 = vpop.f32.mrb[60].mxu0 }
 0x55b   : > { %v2749_v29 = vadd.f32 %v8193_v62, %v2575_v17  ;;  %v2740_v32 = vpop.f32.mrb[61].mxu0  ;;  %v1622_v17 = vld [vmem:[%s9951_s29 + $0xd8] sm:$0xff]  ;;  %v1624_v62 = vld [vmem:[%s9951_s29 + $0xe8] sm:$0xff] }
 0x55c   : > { %v2741_v37 = vadd.f32 %v2740_v32, %v2565_v63  ;;  %v8194_v49 = vpop.f32.mrb[62].mxu0  ;;  %v1626_v32 = vld [vmem:[%s9951_s29 + $0xf8] sm:$0xff] }
 0x55d   : > { %v2805_v38 = vadd.f32 %v2749_v29, %v9868_v24  ;;  %v2752_v20 = vadd.f32 %v8194_v49, %v2580_v16  ;;  %v2743_v2 = vpop.f32.mrb[63].mxu0  ;;  %v1621_v16 = vld [vmem:[%s9951_s29 + $0xd0] sm:$0xff]  ;;  %v1623_v29 = vld [vmem:[%s9951_s29 + $0xe0] sm:$0xff]  ;;  %v1612_v49 = vld [vmem:[%s9951_s29 + $0x88] sm:$0xff] }
 0x55e   : > { %v2803_v9 = vadd.f32 %v2741_v37, %v9874_v26  ;;  %v2744_v3 = vadd.f32 %v2743_v2, %v2570_v34  ;;  %v8820_v37 = vld [vmem:[%s12108_s11 + $0x84] ss:$8 sps:$4 sm:$0xff]   ;;  %v1613_v2 = vld [vmem:[%s9951_s29 + $0x90] sm:$0xff] }
 0x55f   : > { %v2806_v19 = vadd.f32 %v2752_v20, %v9871_v25  ;;  %v2813_v45 = vmul.f32 %v10212_v13, %v2805_v38  ;;  %v1611_v38 = vld [vmem:[%s9951_s29 + $0x80] sm:$0xff]  ;;  %7340 = vmatprep.mubr.msk.bf16.mxu1 %vm2340_vm2, %v8820_v37  ;;  %v1614_v20 = vld [vmem:[%s9951_s29 + $0x98] sm:$0xff]  ;;  %v7434_v37 = vld [vmem:[%s12101_s4 + $0xf0] sm:$0xff] }
 0x560   : > { %v2804_v28 = vadd.f32 %v2744_v3, %v9877_v27  ;;  %v2811_v51 = vmul.f32 %v10212_v13, %v2803_v9  ;;  %v1615_v9 = vld [vmem:[%s9951_s29 + $0xa0] sm:$0xff]  ;;  %v1618_v3 = vld [vmem:[%s9951_s29 + $0xb8] sm:$0xff] }
 0x561   : > { %v2814_v4 = vmul.f32 %v10212_v13, %v2806_v19  ;;  %v1617_v19 = vld [vmem:[%s9951_s29 + $0xb0] sm:$0xff] }
 0x562   : > { %v2812_v24 = vmul.f32 %v10212_v13, %v2804_v28  ;;  %v8197_v11 = vpop.f32.mrb[64].mxu0  ;;  %v2555_v28 = vld [vmem:[%s12110_s13 + $0x48] sm:$0xff] }
 0x563   : > { %v2765_v21 = vadd.f32 %v8197_v11, %v2595_v18  ;;  %v2756_v57 = vpop.f32.mrb[65].mxu0  ;;  %v10218_v26 = vpack.c.bf16 %v2814_v4, %v2813_v45  ;;  %v2554_v45 = vld [vmem:[%s12110_s13 + $0x40] sm:$0xff]  ;;  %v7381_v4 = vld [vmem:[%s12110_s13 + $0xc8] sm:$0xff]  ;;  %v7383_v11 = vld [vmem:[%s12110_s13 + $0xd8] sm:$0xff] }
 0x564   : > { %v2757_v25 = vadd.f32 %v2756_v57, %v2585_v42  ;;  %v8198_v5 = vpop.f32.mrb[66].mxu0  ;;  %v10220_v27 = vpack.c.bf16 %v2812_v24, %v2811_v51  ;;  %v1625_v42 = vld [vmem:[%s9951_s29 + $0xf0] sm:$0xff]  ;;  %v7380_v18 = vld [vmem:[%s12110_s13 + $0xc0] sm:$0xff]  ;;  %v2557_v51 = vld [vmem:[%s12110_s13 + $0x58] sm:$0xff] }
 0x565   : > { %v2809_v1 = vadd.f32 %v2765_v21, %v9903_v58  ;;  %v2768_v12 = vadd.f32 %v8198_v5, %v2600_v22  ;;  %2829 = vrot.lane.b32.xlu1 %v10218_v26, %s12147_s22  ;;  %v2759_v14 = vpop.f32.mrb[67].mxu0  ;;  %v2556_v24 = vld [vmem:[%s12110_s13 + $0x50] sm:$0xff]  ;;  %v2559_v57 = vld [vmem:[%s12110_s13 + $0x68] sm:$0xff]  ;;  %v2558_v22 = vld [vmem:[%s12110_s13 + $0x60] sm:$0xff] }
 0x566   : > { %v2807_v35 = vadd.f32 %v2757_v25, %v9909_v6  ;;  %v2760_v15 = vadd.f32 %v2759_v14, %v2590_v8  ;;  %2827 = vrot.lane.b32.xlu0 %v10220_v27, %s12147_s22  ;;  %v1616_v8 = vld [vmem:[%s9951_s29 + $0xa8] sm:$0xff]  ;;  %v7382_v21 = vld [vmem:[%s12110_s13 + $0xd0] sm:$0xff]  ;;  %v7384_v5 = vld [vmem:[%s12110_s13 + $0xe0] sm:$0xff] }
 0x567   : > { %v2810_v23 = vadd.f32 %v2768_v12, %v9906_v59  ;;  %v2817_v36 = vmul.f32 %v10212_v13, %v2809_v1  ;;  %v1620_v59 = vld [vmem:[%s9951_s29 + $0xc8] sm:$0xff]  ;;  %v2561_v1 = vld [vmem:[%s12110_s13 + $0x78] sm:$0xff]  ;;  %v2560_v12 = vld [vmem:[%s12110_s13 + $0x70] sm:$0xff] }
 0x568   : > { %v2808_v30 = vadd.f32 %v2760_v15, %v9912_v7  ;;  %v2815_v10 = vmul.f32 %v10212_v13, %v2807_v35  ;;  %v1619_v7 = vld [vmem:[%s9951_s29 + $0xc0] sm:$0xff]  ;;  %v7385_v25 = vld [vmem:[%s12110_s13 + $0xe8] sm:$0xff]  ;;  %v7387_v14 = vld [vmem:[%s12110_s13 + $0xf8] sm:$0xff] }
 0x569   : > { %v2818_v58 = vmul.f32 %v10212_v13, %v2810_v23  ;;  %v7386_v35 = vld [vmem:[%s12110_s13 + $0xf0] sm:$0xff]  ;;  %v3455_v15 = vld [vmem:[%s12112_s15 + $0x58] sm:$0xff] }
 0x56a   : > { %v2816_v6 = vmul.f32 %v10212_v13, %v2808_v30  ;;  %v3454_v23 = vld [vmem:[%s12112_s15 + $0x50] sm:$0xff]  ;;  %v3457_v30 = vld [vmem:[%s12112_s15 + $0x68] sm:$0xff] }
 0x56b   : > { %v10234_v63 = vpack.c.bf16 %v2818_v58, %v2817_v36  ;;  %v3456_v36 = vld [vmem:[%s12112_s15 + $0x60] sm:$0xff]  ;;  %v3459_v58 = vld [vmem:[%s12112_s15 + $0x78] sm:$0xff] }
 0x56c   : > { %v10236_v34 = vpack.c.bf16 %v2816_v6, %v2815_v10  ;;  %v3458_v10 = vld [vmem:[%s12112_s15 + $0x70] sm:$0xff]  ;;  %v3461_v6 = vld [vmem:[%s12112_s15 + $0x88] sm:$0xff] }
 0x56d   : > { %2833 = vrot.lane.b32.xlu1 %v10234_v63, %s12147_s22 }
 0x56e   : > { %2831 = vrot.lane.b32.xlu0 %v10236_v34, %s12147_s22 }
 0x571   : > { %2849 = vrot.lane.b32.xlu1 %v10218_v26, %s12148_s28 }
 0x572   : > { %2847 = vrot.lane.b32.xlu0 %v10220_v27, %s12148_s28 }
 0x575   : > { %2853 = vrot.lane.b32.xlu1 %v10234_v63, %s12148_s28 }
 0x576   : > { %2851 = vrot.lane.b32.xlu0 %v10236_v34, %s12148_s28 }
 0x579   : > { %1754 = vperm.xlu1 %8707, %v1620_v59   ;;  %v3460_v59 = vld [vmem:[%s12112_s15 + $0x80] sm:$0xff] }
 0x57a   : > { %1749 = vperm.xlu0 %8706, %v1619_v7   ;;  %v3445_v7 = vld [vmem:[%s12112_s15 + $0x8] sm:$0xff] }
 0x57d   : > { %1764 = vperm.xlu1 %8707, %v1622_v17   ;;  %v3444_v17 = vld [vmem:[%s12112_s15] sm:$0xff] }
 0x57e   : > { %1759 = vperm.xlu0 %8706, %v1621_v16   ;;  %v3463_v16 = vld [vmem:[%s12112_s15 + $0x98] sm:$0xff] }
 0x581   : > { %1774 = vperm.xlu1 %8707, %v1624_v62   ;;  %v3462_v62 = vld [vmem:[%s12112_s15 + $0x90] sm:$0xff] }
 0x582   : > { %1769 = vperm.xlu0 %8706, %v1623_v29   ;;  %v3447_v29 = vld [vmem:[%s12112_s15 + $0x18] sm:$0xff] }
 0x585   : > { %1784 = vperm.xlu1 %8707, %v1626_v32   ;;  %v3446_v32 = vld [vmem:[%s12112_s15 + $0x10] sm:$0xff] }
 0x586   : > { %1779 = vperm.xlu0 %8706, %v1625_v42   ;;  %v7435_v42 = vld [vmem:[%s12101_s4 + $0xf8] sm:$0xff] }
 0x589   : > { %1714 = vperm.xlu1 %8707, %v1612_v49   ;;  %v3449_v49 = vld [vmem:[%s12112_s15 + $0x28] sm:$0xff] }
 0x58a   : > { %1709 = vperm.xlu0 %8706, %v1611_v38   ;;  %v3448_v38 = vld [vmem:[%s12112_s15 + $0x20] sm:$0xff] }
 0x58d   : > { %1724 = vperm.xlu1 %8707, %v1614_v20  }
 0x58e   : > { %1719 = vperm.xlu0 %8706, %v1613_v2   ;;  %v12149_v2 = vmov 0  }
 0x591   : > { %1734 = vperm.xlu1 %8707, %v1616_v8   ;;  %v7455_v8 = vld [vmem:[%s12102_s5 + $0xf8] sm:$0xff] }
 0x592   : > { %1729 = vperm.xlu0 %8706, %v1615_v9   ;;  %v7454_v9 = vld [vmem:[%s12102_s5 + $0xf0] sm:$0xff] }
 0x595   : > { %1744 = vperm.xlu1 %8707, %v1618_v3  }
 0x596   : > { %1739 = vperm.xlu0 %8706, %v1617_v19   ;;  %v7437_v19 = vld [vmem:[%s12101_s4 + $0x108] sm:$0xff] }
 0x599   : > { %2609 = vperm.xlu1 %8707, %v2555_v28   ;;  %v7436_v28 = vld [vmem:[%s12101_s4 + $0x100] sm:$0xff] }
 0x59a   : > { %2604 = vperm.xlu0 %8706, %v2554_v45  }
 0x59d   : > { %3218 = vperm.xlu1 %8707, %v7381_v4   ;;  %v3451_v4 = vld [vmem:[%s12112_s15 + $0x38] sm:$0xff] }
 0x59e   : > { %3213 = vperm.xlu0 %8706, %v7380_v18   ;;  %v3450_v18 = vld [vmem:[%s12112_s15 + $0x30] sm:$0xff] }
 0x5a1   : > { %2619 = vperm.xlu1 %8707, %v2557_v51  }
 0x5a2   : > { %2614 = vperm.xlu0 %8706, %v2556_v24   ;;  %v7457_v24 = vld [vmem:[%s12102_s5 + $0x108] sm:$0xff] }
 0x5a5   : > { %3228 = vperm.xlu1 %8707, %v7383_v11   ;;  %v7456_v11 = vld [vmem:[%s12102_s5 + $0x100] sm:$0xff] }
 0x5a6   : > { %3223 = vperm.xlu0 %8706, %v7382_v21   ;;  %v7439_v21 = vld [vmem:[%s12101_s4 + $0x118] sm:$0xff] }
 0x5a9   : > { %2629 = vperm.xlu1 %8707, %v2559_v57   ;;  %v7438_v57 = vld [vmem:[%s12101_s4 + $0x110] sm:$0xff] }
 0x5aa   : > { %2624 = vperm.xlu0 %8706, %v2558_v22  }
 0x5ad   : > { %3238 = vperm.xlu1 %8707, %v7385_v25  }
 0x5ae   : > { %3233 = vperm.xlu0 %8706, %v7384_v5   ;;  %v3452_v5 = vld [vmem:[%s12112_s15 + $0x40] sm:$0xff] }
 0x5b1   : > { %2639 = vperm.xlu1 %8707, %v2561_v1   ;;  %v7458_v1 = vld [vmem:[%s12102_s5 + $0x110] sm:$0xff] }
 0x5b2   : > { %2634 = vperm.xlu0 %8706, %v2560_v12  }
 0x5b5   : > { %3248 = vperm.xlu1 %8707, %v7387_v14  }
 0x5b6   : > { %3243 = vperm.xlu0 %8706, %v7386_v35   ;;  %v7440_v35 = vld [vmem:[%s12101_s4 + $0x120] sm:$0xff] }
 0x5b9   : > { %3521 = vperm.xlu1 %8707, %v3455_v15  }
 0x5ba   : > { %3516 = vperm.xlu0 %8706, %v3454_v23  }
 0x5bd   : > { %3531 = vperm.xlu1 %8707, %v3457_v30  }
 0x5be   : > { %3526 = vperm.xlu0 %8706, %v3456_v36   ;;  %v7460_v36 = vld [vmem:[%s12102_s5 + $0x120] sm:$0xff] }
 0x5c1   : > { %3541 = vperm.xlu1 %8707, %v3459_v58  }
 0x5c2   : > { %3536 = vperm.xlu0 %8706, %v3458_v10  }
 0x5c5   : > { %3551 = vperm.xlu1 %8707, %v3461_v6  }
 0x5c6   : > { %3546 = vperm.xlu0 %8706, %v3460_v59   ;;  %v7443_v59 = vld [vmem:[%s12101_s4 + $0x138] sm:$0xff] }
 0x5c9   : > { %3471 = vperm.xlu1 %8707, %v3445_v7   ;;  %v7442_v7 = vld [vmem:[%s12101_s4 + $0x130] sm:$0xff] }
 0x5ca   : > { %3466 = vperm.xlu0 %8706, %v3444_v17  }
 0x5cd   : > { %3561 = vperm.xlu1 %8707, %v3463_v16  }
 0x5ce   : > { %3556 = vperm.xlu0 %8706, %v3462_v62  }
 0x5d1   : > { %3481 = vperm.xlu1 %8707, %v3447_v29   ;;  %v7463_v29 = vld [vmem:[%s12102_s5 + $0x138] sm:$0xff] }
 0x5d2   : > { %3476 = vperm.xlu0 %8706, %v3446_v32   ;;  %v7462_v32 = vld [vmem:[%s12102_s5 + $0x130] sm:$0xff] }
 0x5d5   : > { %4032 = vperm.xlu1 %8707, %v7435_v42  }
 0x5d6   : > { %4027 = vperm.xlu0 %8706, %v7434_v37  }
 0x5d7   : > { %v2830_v3 = vpop.permute.xlu1 %2829 }
 0x5d8   : > { %v2828_v20 = vpop.permute.xlu0 %2827 }
 0x5d9   : > { %3491 = vperm.xlu1 %8707, %v3449_v49   ;;  %7333 = vmatpush1.bf16.msk.msra.mxu1 %vm10033_vm4, %v2828_v20  ;;  %v8818_v49 = vld [vmem:[%s12108_s11 + $0x80] ss:$8 sps:$4 sm:$0xff]   ;;  %v8821_v20 = vld [vmem:[%s12108_s11 + $0x94] ss:$8 sps:$4 sm:$0xff]  }
 0x5da   : > { %3486 = vperm.xlu0 %8706, %v3448_v38   ;;  %2982 = vmatprep.subr.bf16.mxu1 %v12149_v2 }
 0x5dd   : > { %4092 = vperm.xlu1 %8707, %v7455_v8   ;;  %7335 = vmatpush1.bf16.msk.msra.mxu1 %vm10033_vm4, %v2830_v3  ;;  %v7425_v8 = vld [vmem:[%s12101_s4 + $0xa8] sm:$0xff] }
 0x5de   : > { %4087 = vperm.xlu0 %8706, %v7454_v9   ;;  %2984 = vmatprep.subr.bf16.mxu1 %v12149_v2  ;;  %v7424_v9 = vld [vmem:[%s12101_s4 + $0xa0] sm:$0xff] }
 0x5df   : > { %v2834_v51 = vpop.permute.xlu1 %2833 }
 0x5e0   : > { %v2832_v45 = vpop.permute.xlu0 %2831 }
 0x5e1   : > { %4042 = vperm.xlu1 %8707, %v7437_v19   ;;  %7337 = vmatpush1.bf16.msk.msra.mxu1 %vm10033_vm4, %v2832_v45  ;;  %v9243_v45 = vld [vmem:[%s9666_s30] sm:$0xff]  }
 0x5e2   : > { %4037 = vperm.xlu0 %8706, %v7436_v28   ;;  %2986 = vmatprep.subr.bf16.mxu1 %v12149_v2  ;;  %v7445_v28 = vld [vmem:[%s12102_s5 + $0xa8] sm:$0xff] }
 0x5e3   : > { %v2850_v22 = vpop.permute.xlu1 %2849 }
 0x5e4   : > { %v2848_v25 = vpop.permute.xlu0 %2847  ;;  %v2859_v58 = vsel %vm2239_vm5, %v2850_v22, 0  ;;  %v7426_v22 = vld [vmem:[%s12101_s4 + $0xb0] sm:$0xff] }
 0x5e5   : > { %3501 = vperm.xlu1 %8707, %v3451_v4   ;;  %7339 = vmatpush1.bf16.msk.msra.mxu1 %vm10033_vm4, %v2834_v51  ;;  %v2856_v15 = vsel %vm2239_vm5, %v2848_v25, 0  ;;  %v7444_v4 = vld [vmem:[%s12102_s5 + $0xa0] sm:$0xff]  ;;  %v8823_v51 = vld [vmem:[%s12108_s11 + $0x90] ss:$8 sps:$4 sm:$0xff]  }
 0x5e6   : > { %3496 = vperm.xlu0 %8706, %v3450_v18   ;;  %2988 = vmatprep.subr.bf16.mxu1 %v12149_v2 }
 0x5e7   : > { %v2854_v12 = vpop.permute.xlu1 %2853 }
 0x5e8   : > { %v2852_v14 = vpop.permute.xlu0 %2851  ;;  %v2865_v42 = vsel %vm2239_vm5, %v2854_v12, 0 }
 0x5e9   : > { %4102 = vperm.xlu1 %8707, %v7457_v24   ;;  %2989 = vmatpush1.bf16.msra.mxu1 %v10220_v27  ;;  %v3453_v27 = vld [vmem:[%s12112_s15 + $0x48] sm:$0xff]  ;;  %v2862_v17 = vsel %vm2239_vm5, %v2852_v14, 0 }
 0x5ea   : > { %4097 = vperm.xlu0 %8706, %v7456_v11   ;;  %2990 = vmatprep.subr.bf16.mxu1 %v12149_v2  ;;  %v8824_v11 = vld [vmem:[%s12108_s11 + $0xa4] ss:$8 sps:$4 sm:$0xff]   ;;  %v8826_v14 = vld [vmem:[%s12108_s11 + $0xa0] ss:$8 sps:$4 sm:$0xff]  }
 0x5ed   : > { %4052 = vperm.xlu1 %8707, %v7439_v21   ;;  %2991 = vmatpush1.bf16.msra.mxu1 %v10218_v26  ;;  %v7459_v26 = vld [vmem:[%s12102_s5 + $0x118] sm:$0xff] }
 0x5ee   : > { %4047 = vperm.xlu0 %8706, %v7438_v57   ;;  %2992 = vmatprep.subr.bf16.mxu1 %v12149_v2  ;;  %v7427_v21 = vld [vmem:[%s12101_s4 + $0xb8] sm:$0xff]  ;;  %v9244_v57 = vld [vmem:[%s9666_s30 + $0x8] sm:$0xff]  }
 0x5f1   : > { %3511 = vperm.xlu1 %8707, %v3453_v27   ;;  %2993 = vmatpush1.bf16.msra.mxu1 %v10236_v34  ;;  %v7441_v34 = vld [vmem:[%s12101_s4 + $0x128] sm:$0xff] }
 0x5f2   : > { %3506 = vperm.xlu0 %8706, %v3452_v5   ;;  %2994 = vmatprep.subr.bf16.mxu1 %v12149_v2  ;;  %v7447_v5 = vld [vmem:[%s12102_s5 + $0xb8] sm:$0xff] }
 0x5f5   : > { %4112 = vperm.xlu1 %8707, %v7459_v26   ;;  %2995 = vmatpush1.bf16.msra.mxu1 %v10234_v63  ;;  %v7461_v63 = vld [vmem:[%s12102_s5 + $0x128] sm:$0xff]  ;;  %v9245_v26 = vld [vmem:[%s9666_s30 + $0x10] sm:$0xff]  }
 0x5f6   : > { %4107 = vperm.xlu0 %8706, %v7458_v1   ;;  %2996 = vmatprep.subr.bf16.mxu1 %v12149_v2  ;;  %v7446_v1 = vld [vmem:[%s12102_s5 + $0xb0] sm:$0xff] }
 0x5f8   : > { %v10441_v23 = vpop.permute.xlu1 %1754 }
 0x5f9   : > { %4062 = vperm.xlu1 %8707, %v7441_v34   ;;  %2997 = vmatpush1.bf16.msra.mxu1 %v2856_v15  ;;  %v10443_v30 = vpop.permute.xlu0 %1749  ;;  %v7429_v15 = vld [vmem:[%s12101_s4 + $0xc8] sm:$0xff] }
 0x5fa   : > { %4057 = vperm.xlu0 %8706, %v7440_v35   ;;  %2998 = vmatprep.subr.bf16.mxu1 %v12149_v2  ;;  %v8827_v35 = vld [vmem:[%s12108_s11 + $0xb4] ss:$8 sps:$4 sm:$0xff]  }
 0x5fc   : > { %v10453_v10 = vpop.permute.xlu1 %1764 }
 0x5fd   : > { %4122 = vperm.xlu1 %8707, %v7461_v63   ;;  %2999 = vmatpush1.bf16.msra.mxu1 %v2859_v58  ;;  %v10455_v6 = vpop.permute.xlu0 %1759  ;;  %v9246_v63 = vld [vmem:[%s9666_s30 + $0x18] sm:$0xff]  }
 0x5fe   : > { %4117 = vperm.xlu0 %8706, %v7460_v36   ;;  %3000 = vmatprep.subr.bf16.mxu1 %v12149_v2  ;;  %v7428_v36 = vld [vmem:[%s12101_s4 + $0xc0] sm:$0xff] }
 0x600   : > { %v10465_v16 = vpop.permute.xlu1 %1774 }
 0x601   : > { %4072 = vperm.xlu1 %8707, %v7443_v59   ;;  %3001 = vmatpush1.bf16.msra.mxu1 %v2862_v17  ;;  %v10467_v62 = vpop.permute.xlu0 %1769  ;;  %v9247_v17 = vld [vmem:[%s9666_s30 + $0x20] sm:$0xff]  }
 0x602   : > { %4067 = vperm.xlu0 %8706, %v7442_v7   ;;  %3002 = vmatprep.subr.bf16.mxu1 %v12149_v2  ;;  %v7449_v7 = vld [vmem:[%s12102_s5 + $0xc8] sm:$0xff] }
 0x604   : > { %v10477_v37 = vpop.permute.xlu1 %1784 }
 0x605   : > { %4132 = vperm.xlu1 %8707, %v7463_v29   ;;  %3003 = vmatpush1.bf16.msra.mxu1 %v2865_v42  ;;  %v10482_v38 = vpop.permute.xlu0 %1779  ;;  %v7448_v29 = vld [vmem:[%s12102_s5 + $0xc0] sm:$0xff]  ;;  %v8829_v42 = vld [vmem:[%s12108_s11 + $0xb0] ss:$8 sps:$4 sm:$0xff]  }
 0x606   : > { %4127 = vperm.xlu0 %8706, %v7462_v32   ;;  %5179 = vmatprep.subr.bf16.mxu1 %v12149_v2 }
 0x608   : > { %v10494_v3 = vpop.permute.xlu1 %1714  ;;  %3013 = vmatmul.mubr.bf16.vlgmr.msra.gmra.mrb[64].mxu1 %v8818_v49 }
 0x609   : > { %3902 = vperm.xlu1 %8707, %v7425_v8   ;;  %v10496_v19 = vpop.permute.xlu0 %1709  ;;  %7341 = vmatprep.mubr.msk.bf16.mxu1 %vm2340_vm2, %v8821_v20  ;;  %v8830_v20 = vld [vmem:[%s12108_s11 + $0xc4] ss:$8 sps:$4 sm:$0xff]   ;;  %v7431_v8 = vld [vmem:[%s12101_s4 + $0xd8] sm:$0xff] }
 0x60a   : > { %3897 = vperm.xlu0 %8706, %v7424_v9   ;;  %5180 = vmatpush1.bf16.msra.mxu1 %v9243_v45  ;;  %v9248_v9 = vld [vmem:[%s9666_s30 + $0x28] sm:$0xff]  }
 0x60b   : > { %5181 = vmatprep.subr.bf16.mxu1 %v12149_v2 }
 0x60c   : > { %v10507_v18 = vpop.permute.xlu1 %1724 }
 0x60d   : > { %3962 = vperm.xlu1 %8707, %v7445_v28   ;;  %v10512_v24 = vpop.permute.xlu0 %1719  ;;  %v7430_v28 = vld [vmem:[%s12101_s4 + $0xd0] sm:$0xff] }
 0x60e   : > { %3957 = vperm.xlu0 %8706, %v7444_v4   ;;  %5182 = vmatpush1.bf16.msra.mxu1 %v9244_v57 }
 0x60f   : > { %5183 = vmatprep.subr.bf16.mxu1 %v12149_v2 }
 0x610   : > { %v10525_v27 = vpop.permute.xlu1 %1734  ;;  %3021 = vmatmul.mubr.bf16.gmra.mrb[68].mxu1 %v8823_v51  ;;  %v7451_v51 = vld [vmem:[%s12102_s5 + $0xd8] sm:$0xff] }
 0x611   : > { %3912 = vperm.xlu1 %8707, %v7427_v21   ;;  %v10527_v25 = vpop.permute.xlu0 %1729  ;;  %7342 = vmatprep.mubr.msk.bf16.mxu1 %vm2340_vm2, %v8824_v11  ;;  %v9249_v11 = vld [vmem:[%s9666_s30 + $0x30] sm:$0xff]  }
 0x612   : > { %3907 = vperm.xlu0 %8706, %v7426_v22   ;;  %5184 = vmatpush1.bf16.msra.mxu1 %v9245_v26  ;;  %v7450_v21 = vld [vmem:[%s12102_s5 + $0xd0] sm:$0xff]  ;;  %v8832_v22 = vld [vmem:[%s12108_s11 + $0xc0] ss:$8 sps:$4 sm:$0xff]  }
 0x613   : > { %5185 = vmatprep.subr.bf16.mxu1 %v12149_v2  ;;  %v8833_v26 = vld [vmem:[%s12108_s11 + $0xd4] ss:$8 sps:$4 sm:$0xff]  }
 0x614   : > { %v10538_v12 = vpop.permute.xlu1 %1744 }
 0x615   : > { %3972 = vperm.xlu1 %8707, %v7447_v5   ;;  %v10543_v34 = vpop.permute.xlu0 %1739 }
 0x616   : > { %3967 = vperm.xlu0 %8706, %v7446_v1   ;;  %5186 = vmatpush1.bf16.msra.mxu1 %v9246_v63  ;;  %v7433_v1 = vld [vmem:[%s12101_s4 + $0xe8] sm:$0xff] }
 0x617   : > { %5187 = vmatprep.subr.bf16.mxu1 %v12149_v2 }
 0x618   : > { %v10556_v58 = vpop.permute.xlu1 %2609  ;;  %3029 = vmatmul.mubr.bf16.gmra.mrb[8].mxu1 %v8826_v14  ;;  %v9250_v14 = vld [vmem:[%s9666_s30 + $0x38] sm:$0xff]  }
 0x619   : > { %3922 = vperm.xlu1 %8707, %v7429_v15   ;;  %v10558_v59 = vpop.permute.xlu0 %2604  ;;  %7343 = vmatprep.mubr.msk.bf16.mxu1 %vm2340_vm2, %v8827_v35  ;;  %v7432_v35 = vld [vmem:[%s12101_s4 + $0xe0] sm:$0xff] }
 0x61a   : > { %3917 = vperm.xlu0 %8706, %v7428_v36   ;;  %5188 = vmatpush1.bf16.msra.mxu1 %v9247_v17  ;;  %v7453_v36 = vld [vmem:[%s12102_s5 + $0xe8] sm:$0xff]  ;;  %v7452_v17 = vld [vmem:[%s12102_s5 + $0xe0] sm:$0xff] }
 0x61b   : > { %5189 = vmatprep.subr.bf16.mxu1 %v12149_v2 }
 0x61c   : > { %v10569_v32 = vpop.permute.xlu1 %3218 }
 0x61d   : > { %3982 = vperm.xlu1 %8707, %v7449_v7   ;;  %v10574_v49 = vpop.permute.xlu0 %3213  ;;  %v9251_v7 = vld [vmem:[%s9666_s30 + $0x40] sm:$0xff]  }
 0x61e   : > { %3977 = vperm.xlu0 %8706, %v7448_v29   ;;  %5190 = vmatpush1.bf16.msra.mxu1 %v9248_v9  ;;  %v7553_v9 = vld [vmem:[%s12106_s9 + $0x48] sm:$0xff] }
 0x61f   : > { %5191 = vmatprep.subr.bf16.mxu1 %v12149_v2 }
 0x620   : > { %v10587_v45 = vpop.permute.xlu1 %2619  ;;  %3037 = vmatmul.mubr.bf16.gmra.mrb[12].mxu1 %v8829_v42  ;;  %v8835_v42 = vld [vmem:[%s12108_s11 + $0xd0] ss:$8 sps:$4 sm:$0xff]  }
 0x621   : > { %3932 = vperm.xlu1 %8707, %v7431_v8   ;;  %v10589_v4 = vpop.permute.xlu0 %2614  ;;  %7344 = vmatprep.mubr.msk.bf16.mxu1 %vm2340_vm2, %v8830_v20  ;;  %v8836_v8 = vld [vmem:[%s12108_s11 + $0xe4] ss:$8 sps:$4 sm:$0xff]  }
 0x622   : > { %3927 = vperm.xlu0 %8706, %v7430_v28   ;;  %5192 = vmatpush1.bf16.msra.mxu1 %v9249_v11  ;;  %v9252_v28 = vld [vmem:[%s9666_s30 + $0x48] sm:$0xff]  }
 0x623   : > { %5193 = vmatprep.subr.bf16.mxu1 %v12149_v2 }
 0x624   : > { %v10600_v57 = vpop.permute.xlu1 %3228 }
 0x625   : > { %3992 = vperm.xlu1 %8707, %v7451_v51   ;;  %v10605_v5 = vpop.permute.xlu0 %3223  ;;  %v7552_v51 = vld [vmem:[%s12106_s9 + $0x40] sm:$0xff] }
 0x626   : > { %3987 = vperm.xlu0 %8706, %v7450_v21   ;;  %5194 = vmatpush1.bf16.msra.mxu1 %v9250_v14  ;;  %v8838_v14 = vld [vmem:[%s12108_s11 + $0xe0] ss:$8 sps:$4 sm:$0xff]  }
 0x627   : > { %5195 = vmatprep.subr.bf16.mxu1 %v12149_v2 }
 0x628   : > { %v10618_v15 = vpop.permute.xlu1 %2629  ;;  %3045 = vmatmul.mubr.bf16.gmra.mrb[16].mxu1 %v8832_v22  ;;  %v7555_v22 = vld [vmem:[%s12106_s9 + $0x58] sm:$0xff] }
 0x629   : > { %3942 = vperm.xlu1 %8707, %v7433_v1   ;;  %v10620_v63 = vpop.permute.xlu0 %2624  ;;  %7345 = vmatprep.mubr.msk.bf16.mxu1 %vm2340_vm2, %v8833_v26  ;;  %v7554_v26 = vld [vmem:[%s12106_s9 + $0x50] sm:$0xff] }
 0x62a   : > { %3937 = vperm.xlu0 %8706, %v7432_v35   ;;  %5196 = vmatpush1.bf16.msra.mxu1 %v9251_v7  ;;  %v7557_v7 = vld [vmem:[%s12106_s9 + $0x68] sm:$0xff] }
 0x62b   : > { %5197 = vmatprep.subr.bf16.mxu1 %v12149_v2 }
 0x62c   : > { %v10631_v29 = vpop.permute.xlu1 %3238 }
 0x62d   : > { %4002 = vperm.xlu1 %8707, %v7453_v36   ;;  %v10636_v20 = vpop.permute.xlu0 %3233  ;;  %v8839_v36 = vld [vmem:[%s12108_s11 + $0xf4] ss:$8 sps:$4 sm:$0xff]  }
 0x62e   : > { %3997 = vperm.xlu0 %8706, %v7452_v17   ;;  %5198 = vmatpush1.bf16.msra.mxu1 %v9252_v28  ;;  %v7556_v17 = vld [vmem:[%s12106_s9 + $0x60] sm:$0xff]  ;;  %v7558_v28 = vld [vmem:[%s12106_s9 + $0x70] sm:$0xff] }
 0x62f   : > { %5501 = vmatprep.subr.bf16.mxu1 %v12149_v2 }
 0x630   : > { %v10649_v11 = vpop.permute.xlu1 %2639  ;;  %3053 = vmatmul.mubr.bf16.gmra.mrb[20].mxu1 %v8835_v42 }
 0x631   : > { %4623 = vperm.xlu1 %8707, %v7553_v9   ;;  %v10651_v21 = vpop.permute.xlu0 %2634  ;;  %7346 = vmatprep.mubr.msk.bf16.mxu1 %vm2340_vm2, %v8836_v8  ;;  %v7559_v9 = vld [vmem:[%s12106_s9 + $0x78] sm:$0xff] }
 0x632   : > { %4618 = vperm.xlu0 %8706, %v7552_v51  }
 0x634   : > { %v10660_v1 = vpop.permute.xlu1 %3248 }
 0x635   : > { %4633 = vperm.xlu1 %8707, %v7555_v22   ;;  %v10665_v35 = vpop.permute.xlu0 %3243  ;;  %v8841_v22 = vld [vmem:[%s12108_s11 + $0xf0] ss:$8 sps:$4 sm:$0xff]  }
 0x636   : > { %4628 = vperm.xlu0 %8706, %v7554_v26  }
 0x638   : > { %v10676_v42 = vpop.permute.xlu1 %3521  ;;  %3061 = vmatmul.mubr.bf16.gmra.mrb[24].mxu1 %v8838_v14 }
 0x639   : > { %12150 = vst [vmem:[#allocation13_spill] sm:$0xff] %v10676_v42  ;;  %4643 = vperm.xlu1 %8707, %v7557_v7   ;;  %v10678_v8 = vpop.permute.xlu0 %3516  ;;  %7347 = vmatprep.mubr.msk.bf16.mxu1 %vm2340_vm2, %v8839_v36 }
 0x63a   : > { %4638 = vperm.xlu0 %8706, %v7556_v17  }
 0x63c   : > { %v10687_v51 = vpop.permute.xlu1 %3531 }
 0x63d   : > { %12151 = vst [vmem:[#allocation14_spill] sm:$0xff] %v10687_v51  ;;  %4653 = vperm.xlu1 %8707, %v7559_v9   ;;  %v10692_v26 = vpop.permute.xlu0 %3526 }
 0x63e   : > { %12152 = vst [vmem:[#allocation15_spill] sm:$0xff] %v10692_v26  ;;  %4648 = vperm.xlu0 %8706, %v7558_v28  }
 0x640   : > { %v10694_v14 = vpop.permute.xlu1 %3541  ;;  %3069 = vmatmul.mubr.bf16.gmra.mrb[28].mxu1 %v8841_v22 }
 0x641   : > { %12153 = vst [vmem:[#allocation16_spill] sm:$0xff] %v10694_v14  ;;  %v10696_v36 = vpop.permute.xlu0 %3536 }
 0x642   : > { %12154 = vst [vmem:[#allocation17_spill] sm:$0xff] %v10696_v36 }
 0x644   : > { %v10698_v7 = vpop.permute.xlu1 %3551 }
 0x645   : > { %12155 = vst [vmem:[#allocation18_spill] sm:$0xff] %v10698_v7  ;;  %v10700_v17 = vpop.permute.xlu0 %3546 }
 0x646   : > { %12156 = vst [vmem:[#allocation19_spill] sm:$0xff] %v10700_v17 }
 0x648   : > { %v10702_v2 = vpop.permute.xlu1 %3471 }
 0x649   : > { %12157 = vst [vmem:[#allocation20_spill] sm:$0xff] %v10702_v2  ;;  %v10704_v44 = vpop.permute.xlu0 %3466 }
 0x64a   : > { %12158 = vst [vmem:[#allocation21_spill] sm:$0xff] %v10704_v44 }
 0x64c   : > { %v10706_v61 = vpop.permute.xlu1 %3561 }
 0x64d   : > { %12159 = vst [vmem:[#allocation22_spill] sm:$0xff] %v10706_v61  ;;  %v10708_v60 = vpop.permute.xlu0 %3556 }
 0x64e   : > { %12160 = vst [vmem:[#allocation23_spill] sm:$0xff] %v10708_v60 }
 0x650   : > { %v10710_v9 = vpop.permute.xlu1 %3481 }
 0x651   : > { %12161 = vst [vmem:[#allocation24_spill] sm:$0xff] %v10710_v9  ;;  %v10712_v28 = vpop.permute.xlu0 %3476 }
 0x652   : > { %12162 = vst [vmem:[#allocation25_spill] sm:$0xff] %v10712_v28 }
 0x654   : > { %v10714_v54 = vpop.permute.xlu1 %4032 }
 0x655   : > { %12163 = vst [vmem:[#allocation26_spill] sm:$0xff] %v10714_v54  ;;  %v10716_v22 = vpop.permute.xlu0 %4027 }
 0x656   : > { %12164 = vst [vmem:[#allocation27_spill] sm:$0xff] %v10716_v22 }
 0x658   : > { %v10718_v52 = vpop.permute.xlu1 %3491 }
 0x659   : > { %12165 = vst [vmem:[#allocation28_spill] sm:$0xff] %v10718_v52  ;;  %v10720_v7 = vpop.permute.xlu0 %3486 }
 0x65a   : > { %12166 = vst [vmem:[#allocation29_spill] sm:$0xff] %v10720_v7 }
 0x65c   : > { %v10722_v17 = vpop.permute.xlu1 %4092 }
 0x65d   : > { %12167 = vst [vmem:[#allocation30_spill] sm:$0xff] %v10722_v17  ;;  %v10724_v2 = vpop.permute.xlu0 %4087 }
 0x65e   : > { %12168 = vst [vmem:[#allocation31_spill] sm:$0xff] %v10724_v2 }
 0x660   : > { %v10726_v44 = vpop.permute.xlu1 %4042 }
 0x661   : > { %12169 = vst [vmem:[#allocation32_spill] sm:$0xff] %v10726_v44  ;;  %v10728_v61 = vpop.permute.xlu0 %4037 }
 0x662   : > { %12170 = vst [vmem:[#allocation33_spill] sm:$0xff] %v10728_v61 }
 0x664   : > { %v10730_v60 = vpop.permute.xlu1 %3501 }
 0x665   : > { %12171 = vst [vmem:[#allocation34_spill] sm:$0xff] %v10730_v60  ;;  %v10732_v9 = vpop.permute.xlu0 %3496 }
 0x666   : > { %12172 = vst [vmem:[#allocation35_spill] sm:$0xff] %v10732_v9 }
 0x668   : > { %v10734_v28 = vpop.permute.xlu1 %4102 }
 0x669   : > { %12173 = vst [vmem:[#allocation36_spill] sm:$0xff] %v10734_v28  ;;  %v10736_v54 = vpop.permute.xlu0 %4097 }
 0x66a   : > { %12174 = vst [vmem:[#allocation37_spill] sm:$0xff] %v10736_v54 }
 0x66c   : > { %v10738_v22 = vpop.permute.xlu1 %4052 }
 0x66d   : > { %12175 = vst [vmem:[#allocation38_spill] sm:$0xff] %v10738_v22  ;;  %v10740_v52 = vpop.permute.xlu0 %4047 }
 0x66e   : > { %12176 = vst [vmem:[#allocation39_spill] sm:$0xff] %v10740_v52 }
 0x670   : > { %v10742_v7 = vpop.permute.xlu1 %3511 }
 0x671   : > { %12177 = vst [vmem:[#allocation40_spill] sm:$0xff] %v10742_v7  ;;  %v10744_v17 = vpop.permute.xlu0 %3506 }
 0x672   : > { %12178 = vst [vmem:[#allocation41_spill] sm:$0xff] %v10744_v17 }
 0x674   : > { %v10746_v2 = vpop.permute.xlu1 %4112 }
 0x675   : > { %12179 = vst [vmem:[#allocation42_spill] sm:$0xff] %v10746_v2  ;;  %v10748_v44 = vpop.permute.xlu0 %4107 }
 0x676   : > { %12180 = vst [vmem:[#allocation43_spill] sm:$0xff] %v10748_v44 }
 0x678   : > { %v10750_v61 = vpop.permute.xlu1 %4062 }
 0x679   : > { %12181 = vst [vmem:[#allocation44_spill] sm:$0xff] %v10750_v61  ;;  %v10752_v60 = vpop.permute.xlu0 %4057 }
 0x67a   : > { %12182 = vst [vmem:[#allocation45_spill] sm:$0xff] %v10752_v60 }
 0x67c   : > { %v10754_v9 = vpop.permute.xlu1 %4122 }
 0x67d   : > { %12183 = vst [vmem:[#allocation46_spill] sm:$0xff] %v10754_v9  ;;  %v10756_v28 = vpop.permute.xlu0 %4117 }
 0x67e   : > { %12184 = vst [vmem:[#allocation47_spill] sm:$0xff] %v10756_v28 }
 0x680   : > { %v10758_v54 = vpop.permute.xlu1 %4072 }
 0x681   : > { %12185 = vst [vmem:[#allocation48_spill] sm:$0xff] %v10758_v54  ;;  %v10760_v22 = vpop.permute.xlu0 %4067 }
 0x682   : > { %12186 = vst [vmem:[#allocation49_spill] sm:$0xff] %v10760_v22 }
 0x684   : > { %v10762_v52 = vpop.permute.xlu1 %4132 }
 0x685   : > { %12187 = vst [vmem:[#allocation50_spill] sm:$0xff] %v10762_v52  ;;  %v10764_v7 = vpop.permute.xlu0 %4127 }
 0x686   : > { %12188 = vst [vmem:[#allocation51_spill] sm:$0xff] %v10764_v7 }
 0x688   : > { %v3903_v17 = vpop.permute.xlu1 %3902 }
 0x689   : > { %v3898_v2 = vpop.permute.xlu0 %3897  ;;  %v3946_v44 = vmul.f32 %v3903_v17, %v9775_v43 }
 0x68a   : > { %v3945_v61 = vmul.f32 %v3898_v2, %v9769_v40 }
 0x68c   : > { %v3963_v51 = vpop.permute.xlu1 %3962 }
 0x68d   : > { %v4006_v60 = vadd.f32 %v3963_v51, %v3946_v44  ;;  %v3958_v14 = vpop.permute.xlu0 %3957 }
 0x68e   : > { %v4005_v9 = vadd.f32 %v3958_v14, %v3945_v61 }
 0x68f   : > { %v4016_v28 = vmul.f32 %v10212_v13, %v4006_v60 }
 0x690   : > { %v4015_v54 = vmul.f32 %v10212_v13, %v4005_v9  ;;  %v3913_v26 = vpop.permute.xlu1 %3912 }
 0x691   : > { %v3908_v22 = vpop.permute.xlu0 %3907  ;;  %v3948_v52 = vmul.f32 %v9771_v41, %v3913_v26 }
 0x692   : > { %v10770_v36 = vpack.c.bf16 %v4016_v28, %v4015_v54  ;;  %v3947_v7 = vmul.f32 %v9766_v39, %v3908_v22 }
 0x694   : > { %v3973_v42 = vpop.permute.xlu1 %3972 }
 0x695   : > { %v4008_v43 = vadd.f32 %v3973_v42, %v3948_v52  ;;  %v3968_v17 = vpop.permute.xlu0 %3967 }
 0x696   : > { %v4007_v40 = vadd.f32 %v3968_v17, %v3947_v7 }
 0x697   : > { %v4018_v44 = vmul.f32 %v10212_v13, %v4008_v43 }
 0x698   : > { %v4017_v61 = vmul.f32 %v10212_v13, %v4007_v40  ;;  %v3923_v2 = vpop.permute.xlu1 %3922 }
 0x699   : > { %v3918_v60 = vpop.permute.xlu0 %3917  ;;  %v3950_v14 = vmul.f32 %v3923_v2, %v9790_v50  ;;  %v8842_v2 = vld [vmem:[%s12109_s12 + $0x20] sm:$0xff]  }
 0x69a   : > { %v10776_v51 = vpack.c.bf16 %v4018_v44, %v4017_v61  ;;  %v3949_v54 = vmul.f32 %v3918_v60, %v9784_v47  ;;  %v8843_v60 = vld [vmem:[%s12109_s12 + $0x28] sm:$0xff]   ;;  %8199 = vmatprep.mubr.msk.bf16.mxu0 %vm2340_vm2, %v8842_v2 }
 0x69b   : > { %8200 = vmatmul.mubr.msk.bf16.gmra.mrb[68].mxu0 %vm2340_vm2, %v8843_v60 }
 0x69c   : > { %v3983_v9 = vpop.permute.xlu1 %3982 }
 0x69d   : > { %v4010_v41 = vadd.f32 %v3983_v9, %v3950_v14  ;;  %v3978_v26 = vpop.permute.xlu0 %3977 }
 0x69e   : > { %v4009_v39 = vadd.f32 %v3978_v26, %v3949_v54 }
 0x69f   : > { %v4020_v52 = vmul.f32 %v10212_v13, %v4010_v41 }
 0x6a0   : > { %v4019_v42 = vmul.f32 %v10212_v13, %v4009_v39  ;;  %v3933_v7 = vpop.permute.xlu1 %3932 }
 0x6a1   : > { %v3928_v28 = vpop.permute.xlu0 %3927  ;;  %v3952_v43 = vmul.f32 %v9786_v48, %v3933_v7 }
 0x6a2   : > { %v10782_v22 = vpack.c.bf16 %v4020_v52, %v4019_v42  ;;  %v3951_v17 = vmul.f32 %v9782_v46, %v3928_v28  ;;  %v8844_v28 = vld [vmem:[%s12109_s12 + $0x30] sm:$0xff]  }
 0x6a3   : > { %8203 = vmatprep.mubr.msk.bf16.mxu0 %vm2340_vm2, %v8844_v28 }
 0x6a4   : > { %v3993_v40 = vpop.permute.xlu1 %3992 }
 0x6a5   : > { %v4012_v50 = vadd.f32 %v3993_v40, %v3952_v43  ;;  %v3988_v44 = vpop.permute.xlu0 %3987  ;;  %v8845_v43 = vld [vmem:[%s12109_s12 + $0x38] sm:$0xff]   ;;  %v2139_v40 = vadd.f32 %v10199_v31, %v10496_v19 }
 0x6a6   : > { %v4011_v47 = vadd.f32 %v3988_v44, %v3951_v17  ;;  %8204 = vmatmul.mubr.msk.bf16.gmra.mrb[72].mxu0 %vm2340_vm2, %v8845_v43  ;;  %v2142_v44 = vadd.f32 %v10201_v0, %v10494_v3 }
 0x6a7   : > { %v4022_v61 = vmul.f32 %v10212_v13, %v4012_v50 }
 0x6a8   : > { %v4021_v14 = vmul.f32 %v10212_v13, %v4011_v47  ;;  %v3943_v54 = vpop.permute.xlu1 %3942 }
 0x6a9   : > { %v3938_v48 = vpop.permute.xlu0 %3937  ;;  %v3954_v9 = vmul.f32 %v3943_v54, %v9800_v55  ;;  %v8846_v55 = vld [vmem:[%s12109_s12 + $0x40] sm:$0xff]  }
 0x6aa   : > { %v10796_v46 = vpack.c.bf16 %v4022_v61, %v4021_v14  ;;  %v3953_v41 = vmul.f32 %v3938_v48, %v9796_v53  ;;  %8215 = vmatprep.mubr.msk.bf16.mxu0 %vm2340_vm2, %v8846_v55  ;;  %v2147_v14 = vadd.f32 %v10203_v56, %v10512_v24  ;;  %v2150_v48 = vadd.f32 %v10205_v33, %v10507_v18 }
 0x6ac   : > { %v4003_v26 = vpop.permute.xlu1 %4002 }
 0x6ad   : > { %v4014_v39 = vadd.f32 %v4003_v26, %v3954_v9  ;;  %v3998_v52 = vpop.permute.xlu0 %3997 }
 0x6ae   : > { %v4013_v42 = vadd.f32 %v3998_v52, %v3953_v41 }
 0x6af   : > { %v4024_v7 = vmul.f32 %v10212_v13, %v4014_v39 }
 0x6b0   : > { %v4023_v17 = vmul.f32 %v10212_v13, %v4013_v42 }
 0x6b2   : > { %v10810_v53 = vpack.c.bf16 %v4024_v7, %v4023_v17 }
 0x6db   : > { %v3014_v50 = vpop.f32.mrb[64].mxu1 }
 0x6dc   : > { %v3015_v13 = vadd.f32 %v3014_v50, %v2139_v40  ;;  %v3016_v47 = vpop.f32.mrb[65].mxu1 }
 0x6dd   : > { %v3017_v61 = vpop.f32.mrb[66].mxu1 }
 0x6de   : > { %v3018_v2 = vadd.f32 %v3017_v61, %v2142_v44  ;;  %v3019_v60 = vpop.f32.mrb[67].mxu1 }
 0x6e3   : > { %v3022_v54 = vpop.f32.mrb[68].mxu1 }
 0x6e4   : > { %v3023_v9 = vadd.f32 %v3022_v54, %v2147_v14  ;;  %v3024_v41 = vpop.f32.mrb[69].mxu1 }
 0x6e5   : > { %v3025_v26 = vpop.f32.mrb[70].mxu1 }
 0x6e6   : > { %v3026_v31 = vadd.f32 %v3025_v26, %v2150_v48  ;;  %v3027_v19 = vpop.f32.mrb[71].mxu1 }
 0x6eb   : > { %v10824_v39 = vpop.f32.mrb[8].mxu1 }
 0x6ec   : > { %v3032_v0 = vpop.f32.mrb[9].mxu1 }
 0x6ed   : > { %v10826_v3 = vpop.f32.mrb[10].mxu1 }
 0x6ee   : > { %v3035_v52 = vpop.f32.mrb[11].mxu1 }
 0x6f3   : > { %v10828_v42 = vpop.f32.mrb[12].mxu1 }
 0x6f4   : > { %v3040_v7 = vpop.f32.mrb[13].mxu1 }
 0x6f5   : > { %v10830_v28 = vpop.f32.mrb[14].mxu1 }
 0x6f6   : > { %v3043_v56 = vpop.f32.mrb[15].mxu1 }
 0x6fb   : > { %v3046_v24 = vpop.f32.mrb[16].mxu1 }
 0x6fc   : > { %v8477_v33 = vadd.f32 %v3046_v24, %v10443_v30  ;;  %v3048_v18 = vpop.f32.mrb[17].mxu1 }
 0x6fd   : > { %v3049_v43 = vpop.f32.mrb[18].mxu1 }
 0x6fe   : > { %v7348_v17 = vmul.f32 -1.442695, %v8477_v33  ;;  %v8478_v55 = vadd.f32 %v3049_v43, %v10441_v23  ;;  %v3051_v40 = vpop.f32.mrb[19].mxu1 }
 0x700   : > { %9058 = vpow2.f32 %v7348_v17  ;;  %v7349_v50 = vmul.f32 -1.442695, %v8478_v55 }
 0x702   : > { %9060 = vpow2.f32 %v7349_v50 }
 0x703   : > { %v3054_v44 = vpop.f32.mrb[20].mxu1 }
 0x704   : > { %v8479_v47 = vadd.f32 %v3054_v44, %v10455_v6  ;;  %v3056_v61 = vpop.f32.mrb[21].mxu1 }
 0x705   : > { %v3057_v60 = vpop.f32.mrb[22].mxu1 }
 0x706   : > { %v7350_v14 = vmul.f32 -1.442695, %v8479_v47  ;;  %v8480_v54 = vadd.f32 %v3057_v60, %v10453_v10  ;;  %v3059_v48 = vpop.f32.mrb[23].mxu1 }
 0x708   : > { %9062 = vpow2.f32 %v7350_v14  ;;  %v7351_v30 = vmul.f32 -1.442695, %v8480_v54  ;;  %v8473_v14 = vadd.f32 %v10824_v39, %v10527_v25 }
 0x70a   : > { %v9059_v41 = vpop.eup %9058  ;;  %9064 = vpow2.f32 %v7351_v30  ;;  %v8474_v30 = vadd.f32 %v10826_v3, %v10525_v27 }
 0x70b   : > { %v3109_v26 = vadd.f32 1.0, %v9059_v41  ;;  %v3062_v19 = vpop.f32.mrb[24].mxu1  ;;  %9066 = vtanh.f32 %v3015_v13 }
 0x70c   : > { %v9061_v23 = vpop.eup %9060  ;;  %v8481_v0 = vadd.f32 %v3062_v19, %v10467_v62  ;;  %v3064_v52 = vpop.f32.mrb[25].mxu1 }
 0x70d   : > { %9068 = vrcp.f32 %v3109_v26  ;;  %v3110_v7 = vadd.f32 1.0, %v9061_v23  ;;  %v3065_v6 = vpop.f32.mrb[26].mxu1 }
 0x70e   : > { %9070 = vtanh.f32 %v3018_v2  ;;  %v7352_v56 = vmul.f32 -1.442695, %v8481_v0  ;;  %v8482_v24 = vadd.f32 %v3065_v6, %v10465_v16  ;;  %v3067_v10 = vpop.f32.mrb[27].mxu1  ;;  %v8475_v0 = vadd.f32 %v10828_v42, %v10543_v34 }
 0x70f   : > { %9072 = vrcp.f32 %v3110_v7  ;;  %v8476_v7 = vadd.f32 %v10830_v28, %v10538_v12 }
 0x710   : > { %9074 = vpow2.f32 %v7352_v56  ;;  %v7353_v33 = vmul.f32 -1.442695, %v8482_v24 }
 0x712   : > { %v9063_v18 = vpop.eup %9062  ;;  %9076 = vpow2.f32 %v7353_v33 }
 0x713   : > { %v3111_v43 = vadd.f32 1.0, %v9063_v18  ;;  %v3070_v17 = vpop.f32.mrb[28].mxu1  ;;  %9078 = vtanh.f32 %v3023_v9 }
 0x714   : > { %v9065_v55 = vpop.eup %9064  ;;  %v8483_v62 = vadd.f32 %v3070_v17, %v10482_v38  ;;  %v3072_v13 = vpop.f32.mrb[29].mxu1 }
 0x715   : > { %9080 = vrcp.f32 %v3111_v43  ;;  %v3112_v40 = vadd.f32 1.0, %v9065_v55  ;;  %v3073_v50 = vpop.f32.mrb[30].mxu1  ;;  %v9067_v2 = vpop.eup %9066 }
 0x716   : > { %9082 = vtanh.f32 %v3026_v31  ;;  %v7354_v44 = vmul.f32 -1.442695, %v8483_v62  ;;  %v8484_v16 = vadd.f32 %v3073_v50, %v10477_v37  ;;  %v3075_v47 = vpop.f32.mrb[31].mxu1 }
 0x717   : > { %v9069_v61 = vpop.eup %9068  ;;  %9084 = vrcp.f32 %v3112_v40  ;;  %v8848_v47 = vld [vmem:[%s12109_s12 + $0x50] sm:$0xff]  }
 0x718   : > { %v9071_v60 = vpop.eup %9070  ;;  %9086 = vpow2.f32 %v7354_v44  ;;  %v7355_v9 = vmul.f32 -1.442695, %v8484_v16  ;;  %v3133_v54 = vmul.f32 %v9069_v61, %v9067_v2  ;;  %v8847_v16 = vld [vmem:[%s12109_s12 + $0x48] sm:$0xff]   ;;  %v8849_v61 = vld [vmem:[%s12109_s12 + $0x58] sm:$0xff]  }
 0x719   : > { %v9073_v38 = vpop.eup %9072 }
 0x71a   : > { %v9075_v48 = vpop.eup %9074  ;;  %9088 = vpow2.f32 %v7355_v9  ;;  %v3134_v31 = vmul.f32 %v9073_v38, %v9071_v60  ;;  %v8850_v60 = vld [vmem:[%s12109_s12 + $0x60] sm:$0xff]   ;;  %v8852_v9 = vld [vmem:[%s12109_s12 + $0x70] sm:$0xff]  }
 0x71b   : > { %v3113_v41 = vadd.f32 1.0, %v9075_v48  ;;  %9090 = vtanh.f32 %v8473_v14  ;;  %v8851_v14 = vld [vmem:[%s12109_s12 + $0x68] sm:$0xff]   ;;  %v8854_v38 = vld [vmem:[%s12111_s14] sm:$0xff]  }
 0x71c   : > { %v9077_v26 = vpop.eup %9076  ;;  %v3158_v37 = vpack.c.bf16 %v3134_v31, %v3133_v54  ;;  %v8853_v54 = vld [vmem:[%s12109_s12 + $0x78] sm:$0xff]  }
 0x71d   : > { %9092 = vrcp.f32 %v3113_v41  ;;  %v3114_v19 = vadd.f32 1.0, %v9077_v26  ;;  %v9079_v23 = vpop.eup %9078 }
 0x71e   : > { %9094 = vtanh.f32 %v8474_v30  ;;  %8207 = vmatprep.subr.bf16.mxu0 %v3158_v37 }
 0x71f   : > { %v9081_v25 = vpop.eup %9080  ;;  %9096 = vrcp.f32 %v3114_v19  ;;  %8208 = vmatpush3.bf16.msra.mxu0 %v3158_v37 }
 0x720   : > { %v9083_v39 = vpop.eup %9082  ;;  %v3135_v52 = vmul.f32 %v9081_v25, %v9079_v23  ;;  %9098 = vtanh.f32 %v8475_v0  ;;  %v8485_v25 = vadd.f32 %v10605_v5, %v10589_v4 }
 0x721   : > { %v9085_v27 = vpop.eup %9084 }
 0x722   : > { %v9087_v3 = vpop.eup %9086  ;;  %v3136_v6 = vmul.f32 %v9085_v27, %v9083_v39  ;;  %v8487_v39 = vadd.f32 %v10574_v49, %v10558_v59 }
 0x723   : > { %v3115_v56 = vadd.f32 1.0, %v9087_v3 }
 0x724   : > { %v9089_v24 = vpop.eup %9088  ;;  %v3159_v10 = vpack.c.bf16 %v3136_v6, %v3135_v52  ;;  %v8489_v52 = vadd.f32 %v10600_v57, %v10587_v45  ;;  %v8493_v57 = vadd.f32 %v10665_v35, %v10651_v21 }
 0x725   : > { %9100 = vrcp.f32 %v3115_v56  ;;  %v3116_v33 = vadd.f32 1.0, %v9089_v24  ;;  %v9091_v18 = vpop.eup %9090 }
 0x726   : > { %9102 = vtanh.f32 %v8476_v7  ;;  %8209 = vmatprep.subr.bf16.mxu0 %v3159_v10  ;;  %v8491_v7 = vadd.f32 %v10569_v32, %v10556_v58  ;;  %v8495_v58 = vadd.f32 %v10636_v20, %v10620_v63 }
 0x727   : > { %v9093_v43 = vpop.eup %9092  ;;  %9104 = vrcp.f32 %v3116_v33  ;;  %8210 = vmatpush3.bf16.msra.mxu0 %v3159_v10 }
 0x728   : > { %v9095_v34 = vpop.eup %9094  ;;  %v3137_v42 = vmul.f32 %v9093_v43, %v9091_v18  ;;  %v10889_v18 = vld [vmem:[%s9535_s27] ss:$0 sm:$0xff] }
 0x729   : > { %v9097_v17 = vpop.eup %9096 }
 0x72a   : > { %v3138_v55 = vmul.f32 %v9097_v17, %v9095_v34  ;;  %v9099_v13 = vpop.eup %9098  ;;  %v8497_v34 = vadd.f32 %v10660_v1, %v10649_v11 }
 0x72c   : > { %v3160_v62 = vpack.c.bf16 %v3138_v55, %v3137_v42  ;;  %v8499_v55 = vadd.f32 %v10631_v29, %v10618_v15  ;;  %v8855_v15 = vld [vmem:[%s12111_s14 + $0x8] sm:$0xff]   ;;  %v8856_v29 = vld [vmem:[%s12111_s14 + $0x10] sm:$0xff]  }
 0x72e   : > { %8211 = vmatprep.subr.bf16.mxu0 %v3160_v62 }
 0x72f   : > { %v9101_v12 = vpop.eup %9100  ;;  %8212 = vmatpush3.bf16.msra.mxu0 %v3160_v62 }
 0x730   : > { %v9103_v28 = vpop.eup %9102  ;;  %v3139_v40 = vmul.f32 %v9101_v12, %v9099_v13 }
 0x731   : > { %v9105_v50 = vpop.eup %9104 }
 0x732   : > { %v3140_v2 = vmul.f32 %v9105_v50, %v9103_v28  ;;  %v8857_v50 = vld [vmem:[%s12111_s14 + $0x18] sm:$0xff]  }
 0x734   : > { %v3161_v44 = vpack.c.bf16 %v3140_v2, %v3139_v40  ;;  %v8858_v2 = vld [vmem:[%s12111_s14 + $0x20] sm:$0xff]  }
 0x736   : > { %8213 = vmatprep.subr.bf16.mxu0 %v3161_v44 }
 0x737   : > { %8214 = vmatpush3.bf16.msra.mxu0 %v3161_v44  ;;  %v8859_v44 = vld [vmem:[%s12111_s14 + $0x28] sm:$0xff]  }
 0x73a   : > { %8216 = vmatmul.mubr.msk.bf16.vlgmr.msra.gmra.mrb[76].mxu0 %vm2340_vm2, %v8847_v16  ;;  %v8860_v16 = vld [vmem:[%s12111_s14 + $0x30] sm:$0xff]  }
 0x73b   : > { %8219 = vmatprep.mubr.msk.bf16.mxu0 %vm2340_vm2, %v8848_v47  ;;  %v8861_v47 = vld [vmem:[%s12111_s14 + $0x38] sm:$0xff]  }
 0x742   : > { %8220 = vmatmul.mubr.msk.bf16.gmra.mrb[80].mxu0 %vm2340_vm2, %v8849_v61  ;;  %v8862_v61 = vld [vmem:[%s12111_s14 + $0x40] sm:$0xff]  }
 0x743   : > { %8223 = vmatprep.mubr.msk.bf16.mxu0 %vm2340_vm2, %v8850_v60  ;;  %v8863_v60 = vld [vmem:[%s12111_s14 + $0x48] sm:$0xff]  }
 0x74a   : > { %8224 = vmatmul.mubr.msk.bf16.gmra.mrb[68].mxu0 %vm2340_vm2, %v8851_v14  ;;  %v8864_v14 = vld [vmem:[%s12104_s7 + $0x50] sm:$0xff]  }
 0x74b   : > { %8227 = vmatprep.mubr.msk.bf16.mxu0 %vm2340_vm2, %v8852_v9 }
 0x752   : > { %8228 = vmatmul.mubr.msk.bf16.gmra.mrb[72].mxu0 %vm2340_vm2, %v8853_v54 }
 0x753   : > { %8239 = vmatprep.mubr.msk.bf16.mxu0 %vm2340_vm2, %v8854_v38 }
 0x80d   : > { %v8217_v48 = vpop.f32.mrb[76].mxu0 }
 0x80e   : > { %v3349_v30 = vpop.f32.mrb[77].mxu0 }
 0x80f   : > { %v8218_v31 = vpop.f32.mrb[78].mxu0 }
 0x810   : > { %v3351_v41 = vpop.f32.mrb[79].mxu0 }
 0x815   : > { %v8221_v26 = vpop.f32.mrb[80].mxu0 }
 0x816   : > { %v3361_v37 = vpop.f32.mrb[81].mxu0 }
 0x817   : > { %v8222_v19 = vpop.f32.mrb[82].mxu0 }
 0x818   : > { %v3363_v23 = vpop.f32.mrb[83].mxu0 }
 0x81d   : > { %v8225_v0 = vpop.f32.mrb[68].mxu0 }
 0x81e   : > { %v8486_v27 = vadd.f32 %v8485_v25, %v8225_v0  ;;  %v3373_v3 = vpop.f32.mrb[69].mxu0  ;;  %v12189_v0 = vld [vmem:[#allocation13_spill] sm:$0xff] }
 0x81f   : > { %v8488_v6 = vadd.f32 %v8487_v39, %v3373_v3  ;;  %v8226_v56 = vpop.f32.mrb[70].mxu0 }
 0x820   : > { %v8490_v24 = vadd.f32 %v8489_v52, %v8226_v56  ;;  %v3376_v10 = vpop.f32.mrb[71].mxu0  ;;  %v3414_v4 = vmul.f32 %v10889_v18, %v8486_v27 }
 0x821   : > { %v8492_v33 = vadd.f32 %v8491_v7, %v3376_v10  ;;  %v3412_v49 = vmul.f32 %v10889_v18, %v8488_v6  ;;  %v12190_v6 = vld [vmem:[#allocation17_spill] sm:$0xff] }
 0x822   : > { %v3415_v59 = vmul.f32 %v10889_v18, %v8490_v24  ;;  %v12191_v24 = vld [vmem:[#allocation15_spill] sm:$0xff] }
 0x823   : > { %v3413_v45 = vmul.f32 %v10889_v18, %v8492_v33 }
 0x824   : > { %v3441_v5 = vpack.c.bf16 %v3415_v59, %v3414_v4  ;;  %v12192_v59 = vld [vmem:[#allocation16_spill] sm:$0xff] }
 0x825   : > { %v8229_v32 = vpop.f32.mrb[72].mxu0  ;;  %v3440_v43 = vpack.c.bf16 %v3413_v45, %v3412_v49 }
 0x826   : > { %v8494_v42 = vadd.f32 %v8493_v57, %v8229_v32  ;;  %v3389_v17 = vpop.f32.mrb[73].mxu0 }
 0x827   : > { %v8496_v62 = vadd.f32 %v8495_v58, %v3389_v17  ;;  %v8230_v13 = vpop.f32.mrb[74].mxu0  ;;  %8231 = vmatprep.subr.bf16.mxu0 %v3440_v43 }
 0x828   : > { %v8498_v12 = vadd.f32 %v8497_v34, %v8230_v13  ;;  %v3392_v28 = vpop.f32.mrb[75].mxu0  ;;  %8232 = vmatpush3.bf16.msra.mxu0 %v3440_v43  ;;  %v3418_v63 = vmul.f32 %v10889_v18, %v8494_v42  ;;  %v12194_v42 = vld [vmem:[#allocation21_spill] sm:$0xff] }
 0x829   : > { %v8500_v21 = vadd.f32 %v8499_v55, %v3392_v28  ;;  %8233 = vmatprep.subr.bf16.mxu0 %v3441_v5  ;;  %v3416_v35 = vmul.f32 %v10889_v18, %v8496_v62  ;;  %v12195_v55 = vld [vmem:[#allocation2_spill] sm:$0xff]  ;;  %v12196_v28 = vld [vmem:[#allocation23_spill] sm:$0xff] }
 0x82a   : > { %v3419_v20 = vmul.f32 %v10889_v18, %v8498_v12 }
 0x82b   : > { %v3417_v11 = vmul.f32 %v10889_v18, %v8500_v21 }
 0x82c   : > { %8234 = vmatpush3.bf16.msra.mxu0 %v3441_v5  ;;  %v3443_v1 = vpack.c.bf16 %v3419_v20, %v3418_v63  ;;  %v12193_v5 = vld [vmem:[#allocation14_spill] sm:$0xff]  ;;  %v12197_v20 = vld [vmem:[#allocation20_spill] sm:$0xff] }
 0x82d   : > { %v3442_v40 = vpack.c.bf16 %v3417_v11, %v3416_v35  ;;  %v12198_v11 = vld [vmem:[#allocation3_spill] sm:$0xff] }
 0x82f   : > { %8235 = vmatprep.subr.bf16.mxu0 %v3442_v40 }
 0x830   : > { %8236 = vmatpush3.bf16.msra.mxu0 %v3442_v40  ;;  %v12199_v40 = vld [vmem:[#allocation19_spill] sm:$0xff] }
 0x831   : > { %8237 = vmatprep.subr.bf16.mxu0 %v3443_v1 }
 0x834   : > { %8238 = vmatpush3.bf16.msra.mxu0 %v3443_v1 }
 0x837   : > { %8240 = vmatmul.mubr.msk.bf16.vlgmr.msra.gmra.mrb[84].mxu0 %vm2340_vm2, %v8855_v15 }
 0x838   : > { %8243 = vmatprep.mubr.msk.bf16.mxu0 %vm2340_vm2, %v8856_v29 }
 0x83f   : > { %8244 = vmatmul.mubr.msk.bf16.gmra.mrb[88].mxu0 %vm2340_vm2, %v8857_v50 }
 0x840   : > { %8247 = vmatprep.mubr.msk.bf16.mxu0 %vm2340_vm2, %v8858_v2 }
 0x847   : > { %8248 = vmatmul.mubr.msk.bf16.gmra.mrb[92].mxu0 %vm2340_vm2, %v8859_v44  ;;  %v12200_v44 = vld [vmem:[#allocation22_spill] sm:$0xff] }
 0x848   : > { %8251 = vmatprep.mubr.msk.bf16.mxu0 %vm2340_vm2, %v8860_v16 }
 0x84f   : > { %8252 = vmatmul.mubr.msk.bf16.gmra.mrb[96].mxu0 %vm2340_vm2, %v8861_v47 }
 0x850   : > { %8255 = vmatprep.mubr.msk.bf16.mxu0 %vm2340_vm2, %v8862_v61 }
 0x857   : > { %8256 = vmatmul.mubr.msk.bf16.gmra.mrb[100].mxu0 %vm2340_vm2, %v8863_v60  ;;  %v12201_v60 = vld [vmem:[#allocation18_spill] sm:$0xff] }
 0x858   : > { %8269 = vmatprep.mubr.msk.bf16.mxu0 %vm1060_vm0, %v8864_v14 }
 0x90a   : > { %v10947_v9 = vpop.f32.mrb[84].mxu0 }
 0x90b   : > { %v3678_v54 = vpop.f32.mrb[85].mxu0 }
 0x90c   : > { %v10949_v38 = vpop.f32.mrb[86].mxu0  ;;  %v3679_v17 = vadd.f32 %v3678_v54, %v12194_v42  ;;  %v12208_v42 = vld [vmem:[#allocation31_spill] sm:$0xff] }
 0x90d   : > { %v3681_v48 = vpop.f32.mrb[87].mxu0 }
 0x90e   : > { %v3682_v35 = vadd.f32 %v3681_v48, %v12197_v20 }
 0x912   : > { %v10951_v30 = vpop.f32.mrb[88].mxu0 }
 0x913   : > { %v3694_v31 = vpop.f32.mrb[89].mxu0 }
 0x914   : > { %v10953_v41 = vpop.f32.mrb[90].mxu0 }
 0x915   : > { %v10955_v26 = vpop.f32.mrb[91].mxu0 }
 0x91a   : > { %v8249_v37 = vpop.f32.mrb[92].mxu0 }
 0x91b   : > { %v10958_v19 = vadd.f32 %v8249_v37, %v10678_v8  ;;  %v10960_v23 = vpop.f32.mrb[93].mxu0 }
 0x91c   : > { %v8250_v25 = vpop.f32.mrb[94].mxu0 }
 0x91d   : > { %v3757_v39 = vmul.f32 1.442695, %v10958_v19  ;;  %v10964_v52 = vadd.f32 %v8250_v25, %v12189_v0  ;;  %v10966_v27 = vpop.f32.mrb[95].mxu0 }
 0x91f   : > { %9106 = vpow2.f32 %v3757_v39  ;;  %v3759_v3 = vmul.f32 1.442695, %v10964_v52 }
 0x921   : > { %9108 = vpow2.f32 %v3759_v3  ;;  %v12202_v3 = vld [vmem:[#allocation27_spill] sm:$0xff] }
 0x922   : > { %v8253_v7 = vpop.f32.mrb[96].mxu0 }
 0x923   : > { %v10970_v56 = vadd.f32 %v8253_v7, %v12190_v6  ;;  %v3726_v8 = vpop.f32.mrb[97].mxu0 }
 0x924   : > { %v10973_v10 = vadd.f32 %v3726_v8, %v12191_v24  ;;  %v8254_v33 = vpop.f32.mrb[98].mxu0  ;;  %v12203_v8 = vld [vmem:[#allocation29_spill] sm:$0xff] }
 0x925   : > { %v3765_v4 = vmul.f32 1.442695, %v10970_v56  ;;  %v10977_v49 = vadd.f32 %v8254_v33, %v12192_v59  ;;  %v3729_v45 = vpop.f32.mrb[99].mxu0  ;;  %v3695_v24 = vadd.f32 %v3694_v31, %v12203_v8  ;;  %v12204_v33 = vld [vmem:[#allocation4_spill] sm:$0xff]  ;;  %v12205_v59 = vld [vmem:[#allocation26_spill] sm:$0xff] }
 0x926   : > { %v3761_v57 = vmul.f32 1.442695, %v10973_v10  ;;  %v10981_v58 = vadd.f32 %v3729_v45, %v12193_v5  ;;  %v12206_v5 = vld [vmem:[#allocation25_spill] sm:$0xff]  ;;  %v12211_v31 = vld [vmem:[#allocation30_spill] sm:$0xff] }
 0x927   : > { %9110 = vpow2.f32 %v3765_v4  ;;  %v3767_v32 = vmul.f32 1.442695, %v10977_v49 }
 0x928   : > { %9112 = vpow2.f32 %v3761_v57  ;;  %v3763_v43 = vmul.f32 1.442695, %v10981_v58 }
 0x929   : > { %v9107_v34 = vpop.eup %9106  ;;  %9114 = vpow2.f32 %v3767_v32  ;;  %v3687_v32 = vadd.f32 %v10947_v9, %v12206_v5 }
 0x92a   : > { %v3777_v62 = vmul.f32 %v9107_v34, %v12195_v55  ;;  %9116 = vpow2.f32 %v3763_v43  ;;  %v8257_v13 = vpop.f32.mrb[100].mxu0  ;;  %v12207_v43 = vld [vmem:[#allocation5_spill] sm:$0xff] }
 0x92b   : > { %v9109_v12 = vpop.eup %9108  ;;  %v10988_v21 = vadd.f32 %v8257_v13, %v12196_v28  ;;  %v3742_v63 = vpop.f32.mrb[101].mxu0 }
 0x92c   : > { %v3778_v1 = vmul.f32 %v9109_v12, %v12198_v11  ;;  %v10993_v15 = vadd.f32 %v3742_v63, %v12199_v40  ;;  %v8258_v29 = vpop.f32.mrb[102].mxu0  ;;  %v3787_v50 = vadd.f32 %v3777_v62, %v3679_v17  ;;  %v12209_v62 = vld [vmem:[#allocation28_spill] sm:$0xff]  ;;  %v12210_v12 = vld [vmem:[#allocation6_spill] sm:$0xff] }
 0x92d   : > { %v3773_v2 = vmul.f32 1.442695, %v10988_v21  ;;  %v10997_v16 = vadd.f32 %v8258_v29, %v12200_v44  ;;  %v3745_v47 = vpop.f32.mrb[103].mxu0  ;;  %v3698_v13 = vadd.f32 %v10955_v26, %v12209_v62 }
 0x92e   : > { %v3769_v61 = vmul.f32 1.442695, %v10993_v15  ;;  %v11001_v14 = vadd.f32 %v3745_v47, %v12201_v60  ;;  %v3788_v54 = vadd.f32 %v3778_v1, %v3682_v35  ;;  %v3797_v37 = vmul.f32 %v10889_v18, %v3787_v50  ;;  %v12212_v35 = vld [vmem:[#allocation24_spill] sm:$0xff]  ;;  %v12213_v1 = vld [vmem:[#allocation7_spill] sm:$0xff] }
 0x92f   : > { %9118 = vpow2.f32 %v3773_v2  ;;  %v3775_v48 = vmul.f32 1.442695, %v10997_v16  ;;  %v3690_v11 = vadd.f32 %v10949_v38, %v12212_v35  ;;  %v12227_v35 = vld [vmem:[#allocation34_spill] sm:$0xff] }
 0x930   : > { %9120 = vpow2.f32 %v3769_v61  ;;  %v3771_v25 = vmul.f32 1.442695, %v11001_v14  ;;  %v3798_v39 = vmul.f32 %v10889_v18, %v3788_v54  ;;  %v4075_v7 = vmul.f32 %v12202_v3, %v3797_v37  ;;  %v12214_v54 = vld [vmem:[#allocation39_spill] sm:$0xff]  ;;  %v12216_v3 = vld [vmem:[#allocation41_spill] sm:$0xff] }
 0x931   : > { %v9111_v0 = vpop.eup %9110  ;;  %9122 = vpow2.f32 %v3775_v48 }
 0x932   : > { %v9113_v6 = vpop.eup %9112  ;;  %v3781_v4 = vmul.f32 %v9111_v0, %v12204_v33  ;;  %9124 = vpow2.f32 %v3771_v25  ;;  %v4076_v45 = vmul.f32 %v12205_v59, %v3798_v39  ;;  %v4135_v17 = vadd.f32 %v12208_v42, %v4075_v7  ;;  %v12215_v25 = vld [vmem:[#allocation33_spill] sm:$0xff] }
 0x933   : > { %v9115_v57 = vpop.eup %9114  ;;  %v3779_v34 = vmul.f32 %v9113_v6, %v12207_v43  ;;  %v3711_v7 = vadd.f32 %v10960_v23, %v12216_v3  ;;  %v12217_v6 = vld [vmem:[#allocation8_spill] sm:$0xff] }
 0x934   : > { %v9117_v55 = vpop.eup %9116  ;;  %v3782_v28 = vmul.f32 %v9115_v57, %v12210_v12  ;;  %v4136_v63 = vadd.f32 %v12211_v31, %v4076_v45  ;;  %v3791_v20 = vadd.f32 %v3781_v4, %v3695_v24  ;;  %v4145_v9 = vmul.f32 %v10889_v18, %v4135_v17  ;;  %v12218_v24 = vld [vmem:[#allocation38_spill] sm:$0xff]  ;;  %v12219_v4 = vld [vmem:[#allocation43_spill] sm:$0xff]  ;;  %v12223_v17 = vld [vmem:[#allocation37_spill] sm:$0xff] }
 0x935   : > { %v3780_v40 = vmul.f32 %v9117_v55, %v12213_v1  ;;  %v3789_v29 = vadd.f32 %v3779_v34, %v3687_v32  ;;  %v12220_v57 = vld [vmem:[#allocation35_spill] sm:$0xff]  ;;  %v12221_v32 = vld [vmem:[#allocation9_spill] sm:$0xff]  ;;  %v12222_v34 = vld [vmem:[#allocation32_spill] sm:$0xff] }
 0x936   : > { %v4146_v50 = vmul.f32 %v10889_v18, %v4136_v63  ;;  %v3792_v2 = vadd.f32 %v3782_v28, %v3698_v13  ;;  %v3801_v44 = vmul.f32 %v10889_v18, %v3791_v20  ;;  %v3703_v5 = vadd.f32 %v10951_v30, %v12220_v57  ;;  %v12224_v23 = vld [vmem:[#allocation40_spill] sm:$0xff]  ;;  %v12225_v12 = vld [vmem:[#allocation10_spill] sm:$0xff]  ;;  %v12228_v30 = vld [vmem:[#allocation11_spill] sm:$0xff] }
 0x937   : > { %v3790_v47 = vadd.f32 %v3780_v40, %v3690_v11  ;;  %v3799_v26 = vmul.f32 %v10889_v18, %v3789_v29  ;;  %v3714_v13 = vadd.f32 %v10966_v27, %v12224_v23  ;;  %v12226_v31 = vld [vmem:[#allocation42_spill] sm:$0xff]  ;;  %v3706_v11 = vadd.f32 %v10953_v41, %v12227_v35  ;;  %v12229_v40 = vld [vmem:[#allocation36_spill] sm:$0xff]  ;;  %v8865_v23 = vld [vmem:[%s12104_s7 + $0x58] sm:$0xff]  }
 0x938   : > { %v4202_v61 = vpack.c.bf16 %v4146_v50, %v4145_v9  ;;  %v3802_v60 = vmul.f32 %v10889_v18, %v3792_v2  ;;  %v4079_v48 = vmul.f32 %v12214_v54, %v3801_v44  ;;  %v12232_v3 = vld [vmem:[#allocation48_spill] sm:$0xff]  ;;  %v8877_v35 = vld [vmem:[%s12103_s6 + $0x68] sm:$0xff]  }
 0x939   : > { %v9119_v37 = vpop.eup %9118  ;;  %v3800_v38 = vmul.f32 %v10889_v18, %v3790_v47  ;;  %v4077_v39 = vmul.f32 %v12215_v25, %v3799_v26 }
 0x93a   : > { %v9121_v0 = vpop.eup %9120  ;;  %v3785_v8 = vmul.f32 %v9119_v37, %v12217_v6  ;;  %8259 = vmatprep.subr.bf16.mxu0 %v4202_v61  ;;  %v4080_v33 = vmul.f32 %v12218_v24, %v3802_v60  ;;  %v4139_v59 = vadd.f32 %v12219_v4, %v4079_v48  ;;  %v12230_v48 = vld [vmem:[#allocation49_spill] sm:$0xff]  ;;  %v12233_v6 = vld [vmem:[#allocation51_spill] sm:$0xff]  ;;  %v12234_v24 = vld [vmem:[#allocation44_spill] sm:$0xff] }
 0x93b   : > { %v9123_v45 = vpop.eup %9122  ;;  %v3783_v43 = vmul.f32 %v9121_v0, %v12221_v32  ;;  %8260 = vmatpush3.bf16.msra.mxu0 %v4202_v61  ;;  %v4078_v42 = vmul.f32 %v12222_v34, %v3800_v38  ;;  %v4137_v55 = vadd.f32 %v12223_v17, %v4077_v39  ;;  %v12231_v39 = vld [vmem:[#allocation45_spill] sm:$0xff]  ;;  %v12235_v4 = vld [vmem:[#allocation47_spill] sm:$0xff] }
 0x93c   : > { %v9125_v62 = vpop.eup %9124  ;;  %v3786_v28 = vmul.f32 %v9123_v45, %v12225_v12  ;;  %v4140_v63 = vadd.f32 %v12226_v31, %v4080_v33  ;;  %v3795_v20 = vadd.f32 %v3785_v8, %v3711_v7  ;;  %v4149_v50 = vmul.f32 %v10889_v18, %v4139_v59  ;;  %v12236_v45 = vld [vmem:[#allocation50_spill] sm:$0xff]  ;;  %v8867_v12 = vld [vmem:[%s12104_s7 + $0x68] sm:$0xff]   ;;  %v8873_v31 = vld [vmem:[%s12104_s7 + $0x98] sm:$0xff]  }
 0x93d   : > { %v3784_v1 = vmul.f32 %v9125_v62, %v12228_v30  ;;  %v4138_v29 = vadd.f32 %v12229_v40, %v4078_v42  ;;  %v3793_v9 = vadd.f32 %v3783_v43, %v3703_v5  ;;  %v4147_v47 = vmul.f32 %v10889_v18, %v4137_v55  ;;  %v12237_v5 = vld [vmem:[#allocation46_spill] sm:$0xff]  ;;  %v8879_v30 = vld [vmem:[%s12103_s6 + $0x78] sm:$0xff]   ;;  %v8881_v40 = vld [vmem:[%s12103_s6 + $0x88] sm:$0xff]  }
 0x93e   : > { %v4150_v2 = vmul.f32 %v10889_v18, %v4140_v63  ;;  %v3796_v44 = vadd.f32 %v3786_v28, %v3714_v13  ;;  %v3805_v27 = vmul.f32 %v10889_v18, %v3795_v20  ;;  %v8866_v13 = vld [vmem:[%s12104_s7 + $0x60] sm:$0xff]   ;;  %v8868_v28 = vld [vmem:[%s12104_s7 + $0x70] sm:$0xff]   ;;  %v8875_v63 = vld [vmem:[%s12103_s6 + $0x58] sm:$0xff]  }
 0x93f   : > { %v4148_v26 = vmul.f32 %v10889_v18, %v4138_v29  ;;  %v3794_v61 = vadd.f32 %v3784_v1, %v3706_v11  ;;  %v3803_v60 = vmul.f32 %v10889_v18, %v3793_v9  ;;  %v8876_v20 = vld [vmem:[%s12103_s6 + $0x60] sm:$0xff]   ;;  %v8878_v11 = vld [vmem:[%s12103_s6 + $0x70] sm:$0xff]   ;;  %v8883_v9 = vld [vmem:[%s12103_s6 + $0x98] sm:$0xff]  }
 0x940   : > { %v4204_v41 = vpack.c.bf16 %v4150_v2, %v4149_v50  ;;  %v3806_v54 = vmul.f32 %v10889_v18, %v3796_v44  ;;  %v4083_v37 = vmul.f32 %v12230_v48, %v3805_v27  ;;  %v8880_v1 = vld [vmem:[%s12103_s6 + $0x80] sm:$0xff]   ;;  %v8882_v29 = vld [vmem:[%s12103_s6 + $0x90] sm:$0xff]  }
 0x941   : > { %v4203_v38 = vpack.c.bf16 %v4148_v26, %v4147_v47  ;;  %v3804_v25 = vmul.f32 %v10889_v18, %v3794_v61  ;;  %v4081_v0 = vmul.f32 %v12231_v39, %v3803_v60  ;;  %v8884_v50 = vld [vmem:[%s12105_s8 + $0x20] sm:$0xff]  }
 0x942   : > { %v4084_v7 = vmul.f32 %v12232_v3, %v3806_v54  ;;  %v4143_v8 = vadd.f32 %v12233_v6, %v4083_v37  ;;  %v8885_v6 = vld [vmem:[%s12105_s8 + $0x28] sm:$0xff]  }
 0x943   : > { %8261 = vmatprep.subr.bf16.mxu0 %v4203_v38  ;;  %v4082_v33 = vmul.f32 %v12234_v24, %v3804_v25  ;;  %v4141_v59 = vadd.f32 %v12235_v4, %v4081_v0 }
 0x944   : > { %8262 = vmatpush3.bf16.msra.mxu0 %v4203_v38  ;;  %v4144_v57 = vadd.f32 %v12236_v45, %v4084_v7  ;;  %v4153_v43 = vmul.f32 %v10889_v18, %v4143_v8  ;;  %v8886_v8 = vld [vmem:[%s12105_s8 + $0x30] sm:$0xff]   ;;  %v8887_v45 = vld [vmem:[%s12105_s8 + $0x38] sm:$0xff]  }
 0x945   : > { %8263 = vmatprep.subr.bf16.mxu0 %v4204_v41  ;;  %v4142_v32 = vadd.f32 %v12237_v5, %v4082_v33  ;;  %v4151_v42 = vmul.f32 %v10889_v18, %v4141_v59 }
 0x946   : > { %v4154_v34 = vmul.f32 %v10889_v18, %v4144_v57 }
 0x947   : > { %v4152_v17 = vmul.f32 %v10889_v18, %v4142_v32 }
 0x948   : > { %8264 = vmatpush3.bf16.msra.mxu0 %v4204_v41  ;;  %v4206_v55 = vpack.c.bf16 %v4154_v34, %v4153_v43  ;;  %v8888_v34 = vld [vmem:[%s12107_s10 + $0x100] ss:$8 sps:$4 sm:$0xff]  }
 0x949   : > { %v4205_v62 = vpack.c.bf16 %v4152_v17, %v4151_v42  ;;  %v8890_v42 = vld [vmem:[%s12107_s10 + $0x104] ss:$8 sps:$4 sm:$0xff]   ;;  %v8891_v17 = vld [vmem:[%s12107_s10 + $0x114] ss:$8 sps:$4 sm:$0xff]  }
 0x94a   : > { %7664 = vmatprep.mubr.msk.bf16.mxu1 %vm1991_vm1, %v8890_v42 }
 0x94b   : > { %8265 = vmatprep.subr.bf16.mxu0 %v4205_v62  ;;  %5212 = vmatmul.mubr.bf16.vlgmr.msra.gmra.mrb[72].mxu1 %v8888_v34 }
 0x94c   : > { %8266 = vmatpush3.bf16.msra.mxu0 %v4205_v62  ;;  %7665 = vmatprep.mubr.msk.bf16.mxu1 %vm1991_vm1, %v8891_v17  ;;  %v8894_v62 = vld [vmem:[%s12107_s10 + $0x124] ss:$8 sps:$4 sm:$0xff]  }
 0x94d   : > { %8267 = vmatprep.subr.bf16.mxu0 %v4206_v55 }
 0x950   : > { %8268 = vmatpush3.bf16.msra.mxu0 %v4206_v55  ;;  %v8893_v55 = vld [vmem:[%s12107_s10 + $0x110] ss:$8 sps:$4 sm:$0xff]  }
 0x951   : > { %8289 = vmatprep.subr.bf16.mxu0 %v10770_v36 }
 0x953   : > { %8270 = vmatmul.mubr.msk.bf16.vlgmr.msra.gmra.mrb[104].mxu0 %vm1060_vm0, %v8865_v23  ;;  %5220 = vmatmul.mubr.bf16.gmra.mrb[76].mxu1 %v8893_v55  ;;  %v8896_v23 = vld [vmem:[%s12107_s10 + $0x120] ss:$8 sps:$4 sm:$0xff]  }
 0x954   : > { %8290 = vmatpush3.bf16.msra.mxu0 %v10770_v36  ;;  %8273 = vmatprep.mubr.msk.bf16.mxu0 %vm1060_vm0, %v8866_v13  ;;  %v8869_v36 = vld [vmem:[%s12104_s7 + $0x78] sm:$0xff]  }
 0x955   : > { %8291 = vmatprep.subr.bf16.mxu0 %v10776_v51  ;;  %7666 = vmatprep.mubr.msk.bf16.mxu1 %vm1991_vm1, %v8894_v62  ;;  %v8897_v13 = vld [vmem:[%s12107_s10 + $0x134] ss:$8 sps:$4 sm:$0xff]  }
 0x958   : > { %8292 = vmatpush3.bf16.msra.mxu0 %v10776_v51  ;;  %v8870_v51 = vld [vmem:[%s12104_s7 + $0x80] sm:$0xff]  }
 0x959   : > { %8293 = vmatprep.subr.bf16.mxu0 %v10782_v22 }
 0x95b   : > { %8274 = vmatmul.mubr.msk.bf16.gmra.mrb[108].mxu0 %vm1060_vm0, %v8867_v12  ;;  %5228 = vmatmul.mubr.bf16.gmra.mrb[80].mxu1 %v8896_v23  ;;  %v8899_v12 = vld [vmem:[%s12107_s10 + $0x130] ss:$8 sps:$4 sm:$0xff]   ;;  %v8924_v23 = vld [vmem:[%s12107_s10 + $0x1c4] ss:$8 sps:$4 sm:$0xff]  }
 0x95c   : > { %8294 = vmatpush3.bf16.msra.mxu0 %v10782_v22  ;;  %8277 = vmatprep.mubr.msk.bf16.mxu0 %vm1060_vm0, %v8868_v28  ;;  %v8871_v22 = vld [vmem:[%s12104_s7 + $0x88] sm:$0xff]  }
 0x95d   : > { %8295 = vmatprep.subr.bf16.mxu0 %v10796_v46  ;;  %7667 = vmatprep.mubr.msk.bf16.mxu1 %vm1991_vm1, %v8897_v13  ;;  %v8900_v28 = vld [vmem:[%s12107_s10 + $0x144] ss:$8 sps:$4 sm:$0xff]  }
 0x960   : > { %8296 = vmatpush3.bf16.msra.mxu0 %v10796_v46  ;;  %v8872_v46 = vld [vmem:[%s12104_s7 + $0x90] sm:$0xff]  }
 0x961   : > { %8297 = vmatprep.subr.bf16.mxu0 %v10810_v53 }
 0x963   : > { %8278 = vmatmul.mubr.msk.bf16.gmra.mrb[112].mxu0 %vm1060_vm0, %v8869_v36  ;;  %5236 = vmatmul.mubr.bf16.gmra.mrb[84].mxu1 %v8899_v12  ;;  %v8902_v36 = vld [vmem:[%s12107_s10 + $0x140] ss:$8 sps:$4 sm:$0xff]  }
 0x964   : > { %8298 = vmatpush3.bf16.msra.mxu0 %v10810_v53  ;;  %8281 = vmatprep.mubr.msk.bf16.mxu0 %vm1060_vm0, %v8870_v51  ;;  %v8874_v53 = vld [vmem:[%s12103_s6 + $0x50] sm:$0xff]  }
 0x965   : > { %v8903_v51 = vld [vmem:[%s12107_s10 + $0x154] ss:$8 sps:$4 sm:$0xff]   ;;  %7668 = vmatprep.mubr.msk.bf16.mxu1 %vm1991_vm1, %v8900_v28 }
 0x96b   : > { %8282 = vmatmul.mubr.msk.bf16.gmra.mrb[116].mxu0 %vm1060_vm0, %v8871_v22  ;;  %5244 = vmatmul.mubr.bf16.gmra.mrb[88].mxu1 %v8902_v36  ;;  %v8905_v22 = vld [vmem:[%s12107_s10 + $0x150] ss:$8 sps:$4 sm:$0xff]  }
 0x96c   : > { %8285 = vmatprep.mubr.msk.bf16.mxu0 %vm1060_vm0, %v8872_v46  ;;  %7669 = vmatprep.mubr.msk.bf16.mxu1 %vm1991_vm1, %v8903_v51  ;;  %v8906_v46 = vld [vmem:[%s12107_s10 + $0x164] ss:$8 sps:$4 sm:$0xff]  }
 0x973   : > { %8286 = vmatmul.mubr.msk.bf16.gmra.mrb[120].mxu0 %vm1060_vm0, %v8873_v31  ;;  %5252 = vmatmul.mubr.bf16.gmra.mrb[92].mxu1 %v8905_v22  ;;  %v8908_v31 = vld [vmem:[%s12107_s10 + $0x160] ss:$8 sps:$4 sm:$0xff]  }
 0x974   : > { %8299 = vmatprep.mubr.msk.bf16.mxu0 %vm1060_vm0, %v8874_v53  ;;  %7670 = vmatprep.mubr.msk.bf16.mxu1 %vm1991_vm1, %v8906_v46  ;;  %v8909_v53 = vld [vmem:[%s12107_s10 + $0x174] ss:$8 sps:$4 sm:$0xff]   ;;  %v8926_v22 = vld [vmem:[%s12107_s10 + $0x1c0] ss:$8 sps:$4 sm:$0xff]  }
 0x97b   : > { %8300 = vmatmul.mubr.msk.bf16.vlgmr.msra.gmra.mrb[104].mxu0 %vm1060_vm0, %v8875_v63  ;;  %5260 = vmatmul.mubr.bf16.gmra.mrb[96].mxu1 %v8908_v31  ;;  %v8911_v63 = vld [vmem:[%s12107_s10 + $0x170] ss:$8 sps:$4 sm:$0xff]  }
 0x97c   : > { %8303 = vmatprep.mubr.msk.bf16.mxu0 %vm1060_vm0, %v8876_v20  ;;  %7671 = vmatprep.mubr.msk.bf16.mxu1 %vm1991_vm1, %v8909_v53  ;;  %v8912_v20 = vld [vmem:[%s12107_s10 + $0x184] ss:$8 sps:$4 sm:$0xff]  }
 0x983   : > { %8304 = vmatmul.mubr.msk.bf16.gmra.mrb[108].mxu0 %vm1060_vm0, %v8877_v35  ;;  %5268 = vmatmul.mubr.bf16.gmra.mrb[100].mxu1 %v8911_v63  ;;  %v8914_v35 = vld [vmem:[%s12107_s10 + $0x180] ss:$8 sps:$4 sm:$0xff]  }
 0x984   : > { %8307 = vmatprep.mubr.msk.bf16.mxu0 %vm1060_vm0, %v8878_v11  ;;  %7672 = vmatprep.mubr.msk.bf16.mxu1 %vm1991_vm1, %v8912_v20  ;;  %v8915_v11 = vld [vmem:[%s12107_s10 + $0x194] ss:$8 sps:$4 sm:$0xff]  }
 0x98b   : > { %8308 = vmatmul.mubr.msk.bf16.gmra.mrb[112].mxu0 %vm1060_vm0, %v8879_v30  ;;  %5276 = vmatmul.mubr.bf16.gmra.mrb[104].mxu1 %v8914_v35  ;;  %v8917_v30 = vld [vmem:[%s12107_s10 + $0x190] ss:$8 sps:$4 sm:$0xff]  }
 0x98c   : > { %8311 = vmatprep.mubr.msk.bf16.mxu0 %vm1060_vm0, %v8880_v1  ;;  %7673 = vmatprep.mubr.msk.bf16.mxu1 %vm1991_vm1, %v8915_v11  ;;  %v8918_v1 = vld [vmem:[%s12107_s10 + $0x1a4] ss:$8 sps:$4 sm:$0xff]  }
 0x993   : > { %8312 = vmatmul.mubr.msk.bf16.gmra.mrb[116].mxu0 %vm1060_vm0, %v8881_v40  ;;  %5284 = vmatmul.mubr.bf16.gmra.mrb[108].mxu1 %v8917_v30  ;;  %v4619_v40 = vpop.permute.xlu0 %4618  ;;  %v8927_v30 = vld [vmem:[%s12107_s10 + $0x1d4] ss:$8 sps:$4 sm:$0xff]  }
 0x994   : > { %8315 = vmatprep.mubr.msk.bf16.mxu0 %vm1060_vm0, %v8882_v29  ;;  %7674 = vmatprep.mubr.msk.bf16.mxu1 %vm1991_vm1, %v8918_v1  ;;  %v4624_v29 = vpop.permute.xlu1 %4623  ;;  %v8930_v1 = vld [vmem:[%s12107_s10 + $0x1e4] ss:$8 sps:$4 sm:$0xff]  }
 0x99b   : > { %8316 = vmatmul.mubr.msk.bf16.gmra.mrb[120].mxu0 %vm1060_vm0, %v8883_v9  ;;  %v8920_v9 = vld [vmem:[%s12107_s10 + $0x1a0] ss:$8 sps:$4 sm:$0xff]  }
 0x99c   : > { %8329 = vmatprep.mubr.msk.bf16.mxu0 %vm1060_vm0, %v8884_v50  ;;  %v4629_v50 = vpop.permute.xlu0 %4628  ;;  %5292 = vmatmul.mubr.bf16.gmra.mrb[112].mxu1 %v8920_v9  ;;  %v7608_v9 = vld [vmem:[%s9951_s29 + $0x140] sm:$0xff] }
 0xa4e   : > { %v8301_v2 = vpop.f32.mrb[104].mxu0 }
 0xa4f   : > { %6995 = vst [vmem:[%s11163_s18 + $0x10] sm:$0xff] %v8301_v2  ;;  %v4514_v44 = vpop.f32.mrb[105].mxu0 }
 0xa50   : > { %6993 = vst [vmem:[%s11163_s18] sm:$0xff] %v4514_v44  ;;  %v8302_v27 = vpop.f32.mrb[106].mxu0 }
 0xa51   : > { %v4603_v47 = vpack.c.bf16 %v8302_v27, %v8301_v2  ;;  %6996 = vst [vmem:[%s11163_s18 + $0x18] sm:$0xff] %v8302_v27  ;;  %v4517_v26 = vpop.f32.mrb[107].mxu0  ;;  %v4634_v2 = vpop.permute.xlu1 %4633 }
 0xa52   : > { %v4602_v61 = vpack.c.bf16 %v4517_v26, %v4514_v44  ;;  %6994 = vst [vmem:[%s11163_s18 + $0x8] sm:$0xff] %v4517_v26  ;;  %v8921_v26 = vld [vmem:[%s12107_s10 + $0x1b4] ss:$8 sps:$4 sm:$0xff]  }
 0xa53   : > { %7675 = vmatprep.mubr.msk.bf16.mxu1 %vm1991_vm1, %v8921_v26  ;;  %v7612_v26 = vld [vmem:[%s9951_s29 + $0x160] sm:$0xff] }
 0xa54   : > { %8319 = vmatprep.subr.bf16.mxu0 %v4602_v61 }
 0xa55   : > { %8320 = vmatpush3.bf16.msra.mxu0 %v4602_v61  ;;  %v4639_v61 = vpop.permute.xlu0 %4638 }
 0xa56   : > { %v8305_v60 = vpop.f32.mrb[108].mxu0  ;;  %8321 = vmatprep.subr.bf16.mxu0 %v4603_v47 }
 0xa57   : > { %6999 = vst [vmem:[%s11163_s18 + $0x30] sm:$0xff] %v8305_v60  ;;  %v4530_v41 = vpop.f32.mrb[109].mxu0 }
 0xa58   : > { %6997 = vst [vmem:[%s11163_s18 + $0x20] sm:$0xff] %v4530_v41  ;;  %v8306_v54 = vpop.f32.mrb[110].mxu0 }
 0xa59   : > { %v4605_v48 = vpack.c.bf16 %v8306_v54, %v8305_v60  ;;  %7000 = vst [vmem:[%s11163_s18 + $0x38] sm:$0xff] %v8306_v54  ;;  %v4533_v37 = vpop.f32.mrb[111].mxu0  ;;  %8322 = vmatpush3.bf16.msra.mxu0 %v4603_v47  ;;  %v4649_v34 = vpop.permute.xlu0 %4648 }
 0xa5a   : > { %v4604_v38 = vpack.c.bf16 %v4533_v37, %v4530_v41  ;;  %6998 = vst [vmem:[%s11163_s18 + $0x28] sm:$0xff] %v4533_v37  ;;  %v8923_v37 = vld [vmem:[%s12107_s10 + $0x1b0] ss:$8 sps:$4 sm:$0xff]  }
 0xa5b   : > { %5300 = vmatmul.mubr.bf16.gmra.mrb[116].mxu1 %v8923_v37  ;;  %v7603_v37 = vld [vmem:[%s9951_s29 + $0x118] sm:$0xff] }
 0xa5c   : > { %8323 = vmatprep.subr.bf16.mxu0 %v4604_v38  ;;  %7676 = vmatprep.mubr.msk.bf16.mxu1 %vm1991_vm1, %v8924_v23  ;;  %v7752_v23 = vld [vmem:[%s12110_s13 + $0x100] sm:$0xff] }
 0xa5d   : > { %8324 = vmatpush3.bf16.msra.mxu0 %v4604_v38  ;;  %v4644_v38 = vpop.permute.xlu1 %4643 }
 0xa5e   : > { %v11173_v25 = vpop.f32.mrb[112].mxu0  ;;  %8325 = vmatprep.subr.bf16.mxu0 %v4605_v48 }
 0xa5f   : > { %v4546_v39 = vpop.f32.mrb[113].mxu0 }
 0xa60   : > { %7001 = vst [vmem:[%s11163_s18 + $0x40] sm:$0xff] %v4546_v39  ;;  %v11176_v0 = vpop.f32.mrb[114].mxu0 }
 0xa61   : > { %v4549_v3 = vpop.f32.mrb[115].mxu0  ;;  %8326 = vmatpush3.bf16.msra.mxu0 %v4605_v48  ;;  %v4654_v13 = vpop.permute.xlu1 %4653 }
 0xa62   : > { %v4606_v7 = vpack.c.bf16 %v4549_v3, %v4546_v39  ;;  %7002 = vst [vmem:[%s11163_s18 + $0x48] sm:$0xff] %v4549_v3 }
 0xa63   : > { %5308 = vmatmul.mubr.bf16.gmra.mrb[120].mxu1 %v8926_v22  ;;  %v7758_v22 = vld [vmem:[%s12110_s13 + $0x130] sm:$0xff] }
 0xa64   : > { %8327 = vmatprep.subr.bf16.mxu0 %v4606_v7  ;;  %7677 = vmatprep.mubr.msk.bf16.mxu1 %vm1991_vm1, %v8927_v30  ;;  %v7918_v30 = vld [vmem:[%s12112_s15 + $0xf0] sm:$0xff] }
 0xa65   : > { %8328 = vmatpush3.bf16.msra.mxu0 %v4606_v7 }
 0xa66   : > { %v11185_v24 = vpop.f32.mrb[116].mxu0 }
 0xa67   : > { %v11187_v33 = vpop.f32.mrb[117].mxu0 }
 0xa68   : > { %12239 = vst [vmem:[#allocation13_spill] sm:$0xff] %v11187_v33  ;;  %v11189_v4 = vpop.f32.mrb[118].mxu0  ;;  %8330 = vmatmul.mubr.msk.bf16.vlgmr.msra.gmra.mrb[124].mxu0 %vm1060_vm0, %v8885_v6 }
 0xa69   : > { %12240 = vst [vmem:[#allocation17_spill] sm:$0xff] %v11189_v4  ;;  %v11192_v59 = vpop.f32.mrb[119].mxu0  ;;  %8333 = vmatprep.mubr.msk.bf16.mxu0 %vm1060_vm0, %v8886_v8 }
 0xa6a   : > { %12241 = vst [vmem:[#allocation15_spill] sm:$0xff] %v11192_v59 }
 0xa6e   : > { %v11198_v57 = vpop.f32.mrb[120].mxu0 }
 0xa6f   : > { %12242 = vst [vmem:[#allocation16_spill] sm:$0xff] %v11198_v57  ;;  %v11200_v5 = vpop.f32.mrb[121].mxu0 }
 0xa70   : > { %12243 = vst [vmem:[#allocation14_spill] sm:$0xff] %v11200_v5  ;;  %v11202_v32 = vpop.f32.mrb[122].mxu0  ;;  %8334 = vmatmul.mubr.msk.bf16.gmra.mrb[128].mxu0 %vm1060_vm0, %v8887_v45 }
 0xa71   : > { %12244 = vst [vmem:[#allocation21_spill] sm:$0xff] %v11202_v32  ;;  %v11205_v43 = vpop.f32.mrb[123].mxu0 }
 0xa72   : > { %12245 = vst [vmem:[#allocation2_spill] sm:$0xff] %v11205_v43 }
 0xb3b   : > { %v8331_v44 = vpop.f32.mrb[124].mxu0 }
 0xb3c   : > { %v4731_v27 = vadd.f32 %v8331_v44, %v4629_v50  ;;  %v4722_v47 = vpop.f32.mrb[125].mxu0  ;;  %v7611_v50 = vld [vmem:[%s9951_s29 + $0x158] sm:$0xff] }
 0xb3d   : > { %v4723_v60 = vadd.f32 %v4722_v47, %v4619_v40  ;;  %v8332_v41 = vpop.f32.mrb[126].mxu0  ;;  %v8932_v40 = vld [vmem:[%s12107_s10 + $0x1e0] ss:$8 sps:$4 sm:$0xff]   ;;  %v8933_v44 = vld [vmem:[%s12107_s10 + $0x1f4] ss:$8 sps:$4 sm:$0xff]  }
 0xb3e   : > { %v4734_v54 = vadd.f32 %v8332_v41, %v4634_v2  ;;  %v4725_v48 = vpop.f32.mrb[127].mxu0  ;;  %v11292_v3 = vmul.f32 %v10889_v18, %v4731_v27  ;;  %v7610_v2 = vld [vmem:[%s9951_s29 + $0x150] sm:$0xff]  ;;  %v7613_v47 = vld [vmem:[%s9951_s29 + $0x168] sm:$0xff] }
 0xb3f   : > { %v4726_v39 = vadd.f32 %v4725_v48, %v4624_v29  ;;  %v11298_v6 = vmul.f32 %v10889_v18, %v4723_v60  ;;  %v7609_v29 = vld [vmem:[%s9951_s29 + $0x148] sm:$0xff]  ;;  %v8935_v27 = vld [vmem:[%s12107_s10 + $0x1f0] ss:$8 sps:$4 sm:$0xff]   ;;  %v7600_v48 = vld [vmem:[%s9951_s29 + $0x100] sm:$0xff] }
 0xb40   : > { %v11295_v7 = vmul.f32 %v10889_v18, %v4734_v54  ;;  %v7614_v60 = vld [vmem:[%s9951_s29 + $0x170] sm:$0xff]  ;;  %v8938_v41 = vld [vmem:[%s12108_s11 + $0x104] ss:$8 sps:$4 sm:$0xff]  }
 0xb41   : > { %v11301_v8 = vmul.f32 %v10889_v18, %v4726_v39  ;;  %v7601_v54 = vld [vmem:[%s9951_s29 + $0x108] sm:$0xff] }
 0xb42   : > { %v11305_v45 = vpack.c.bf16 %v11295_v7, %v11292_v3  ;;  %v7605_v39 = vld [vmem:[%s9951_s29 + $0x128] sm:$0xff] }
 0xb43   : > { %v11309_v42 = vpack.c.bf16 %v11301_v8, %v11298_v6  ;;  %v8335_v17 = vpop.f32.mrb[128].mxu0 }
 0xb44   : > { %v4747_v55 = vadd.f32 %v8335_v17, %v4649_v34  ;;  %v4738_v62 = vpop.f32.mrb[129].mxu0  ;;  %5350 = vrot.lane.b32.xlu1 %v11305_v45, %s12147_s22  ;;  %v7604_v34 = vld [vmem:[%s9951_s29 + $0x120] sm:$0xff]  ;;  %v7607_v17 = vld [vmem:[%s9951_s29 + $0x138] sm:$0xff] }
 0xb45   : > { %v4739_v12 = vadd.f32 %v4738_v62, %v4639_v61  ;;  %v8336_v28 = vpop.f32.mrb[130].mxu0  ;;  %5348 = vrot.lane.b32.xlu0 %v11309_v42, %s12147_s22  ;;  %v7615_v61 = vld [vmem:[%s9951_s29 + $0x178] sm:$0xff]  ;;  %v7753_v62 = vld [vmem:[%s12110_s13 + $0x108] sm:$0xff] }
 0xb46   : > { %v4750_v36 = vadd.f32 %v8336_v28, %v4654_v13  ;;  %v4741_v51 = vpop.f32.mrb[131].mxu0  ;;  %v11323_v31 = vmul.f32 %v10889_v18, %v4747_v55  ;;  %v7606_v55 = vld [vmem:[%s9951_s29 + $0x130] sm:$0xff]  ;;  %v7755_v13 = vld [vmem:[%s12110_s13 + $0x118] sm:$0xff]  ;;  %v7757_v28 = vld [vmem:[%s12110_s13 + $0x128] sm:$0xff] }
 0xb47   : > { %v4742_v46 = vadd.f32 %v4741_v51, %v4644_v38  ;;  %v11329_v63 = vmul.f32 %v10889_v18, %v4739_v12  ;;  %v7602_v38 = vld [vmem:[%s9951_s29 + $0x110] sm:$0xff]  ;;  %v7759_v51 = vld [vmem:[%s12110_s13 + $0x138] sm:$0xff] }
 0xb48   : > { %v11326_v53 = vmul.f32 %v10889_v18, %v4750_v36  ;;  %v7754_v12 = vld [vmem:[%s12110_s13 + $0x110] sm:$0xff]  ;;  %v7756_v36 = vld [vmem:[%s12110_s13 + $0x120] sm:$0xff] }
 0xb49   : > { %v11332_v20 = vmul.f32 %v10889_v18, %v4742_v46  ;;  %v8929_v18 = vld [vmem:[%s12107_s10 + $0x1d0] ss:$8 sps:$4 sm:$0xff]  }
 0xb4a   : > { %v11336_v35 = vpack.c.bf16 %v11326_v53, %v11323_v31  ;;  %5316 = vmatmul.mubr.bf16.gmra.mrb[124].mxu1 %v8929_v18  ;;  %v12247_v18 = vmov 0  }
 0xb4b   : > { %v11340_v11 = vpack.c.bf16 %v11332_v20, %v11329_v63  ;;  %7678 = vmatprep.mubr.msk.bf16.mxu1 %vm1991_vm1, %v8930_v1 }
 0xb4c   : > { %5354 = vrot.lane.b32.xlu1 %v11336_v35, %s12147_s22 }
 0xb4d   : > { %5352 = vrot.lane.b32.xlu0 %v11340_v11, %s12147_s22 }
 0xb50   : > { %5370 = vrot.lane.b32.xlu1 %v11305_v45, %s12148_s28 }
 0xb51   : > { %5368 = vrot.lane.b32.xlu0 %v11309_v42, %s12148_s28 }
 0xb52   : > { %5324 = vmatmul.mubr.bf16.gmra.mrb[128].mxu1 %v8932_v40 }
 0xb53   : > { %7679 = vmatprep.mubr.msk.bf16.mxu1 %vm1991_vm1, %v8933_v44 }
 0xb54   : > { %5374 = vrot.lane.b32.xlu1 %v11336_v35, %s12148_s28 }
 0xb55   : > { %5372 = vrot.lane.b32.xlu0 %v11340_v11, %s12148_s28 }
 0xb58   : > { %4874 = vperm.xlu1 %8707, %v7609_v29  }
 0xb59   : > { %4869 = vperm.xlu0 %8706, %v7608_v9  }
 0xb5a   : > { %5332 = vmatmul.mubr.bf16.gmra.mrb[132].mxu1 %v8935_v27  ;;  %v8936_v27 = vld [vmem:[%s12108_s11 + $0x100] ss:$8 sps:$4 sm:$0xff]  }
 0xb5b   : > { %7720 = vmatprep.mubr.msk.bf16.mxu1 %vm2340_vm2, %v8938_v41  ;;  %v8945_v41 = vld [vmem:[%s12108_s11 + $0x134] ss:$8 sps:$4 sm:$0xff]  }
 0xb5c   : > { %4884 = vperm.xlu1 %8707, %v7611_v50  }
 0xb5d   : > { %4879 = vperm.xlu0 %8706, %v7610_v2  }
 0xb60   : > { %4894 = vperm.xlu1 %8707, %v7613_v47   ;;  %v8939_v47 = vld [vmem:[%s12108_s11 + $0x114] ss:$8 sps:$4 sm:$0xff]  }
 0xb61   : > { %4889 = vperm.xlu0 %8706, %v7612_v26   ;;  %v8941_v26 = vld [vmem:[%s12108_s11 + $0x110] ss:$8 sps:$4 sm:$0xff]  }
 0xb64   : > { %4904 = vperm.xlu1 %8707, %v7615_v61   ;;  %v8942_v61 = vld [vmem:[%s12108_s11 + $0x124] ss:$8 sps:$4 sm:$0xff]  }
 0xb65   : > { %4899 = vperm.xlu0 %8706, %v7614_v60   ;;  %v8944_v60 = vld [vmem:[%s12108_s11 + $0x120] ss:$8 sps:$4 sm:$0xff]  }
 0xb68   : > { %4834 = vperm.xlu1 %8707, %v7601_v54   ;;  %v8947_v54 = vld [vmem:[%s12108_s11 + $0x130] ss:$8 sps:$4 sm:$0xff]  }
 0xb69   : > { %4829 = vperm.xlu0 %8706, %v7600_v48   ;;  %v8948_v48 = vld [vmem:[%s12108_s11 + $0x144] ss:$8 sps:$4 sm:$0xff]  }
 0xb6c   : > { %4844 = vperm.xlu1 %8707, %v7603_v37   ;;  %v8950_v37 = vld [vmem:[%s12108_s11 + $0x140] ss:$8 sps:$4 sm:$0xff]  }
 0xb6d   : > { %4839 = vperm.xlu0 %8706, %v7602_v38   ;;  %v8951_v38 = vld [vmem:[%s12108_s11 + $0x154] ss:$8 sps:$4 sm:$0xff]  }
 0xb70   : > { %4854 = vperm.xlu1 %8707, %v7605_v39   ;;  %v8953_v39 = vld [vmem:[%s12108_s11 + $0x150] ss:$8 sps:$4 sm:$0xff]  }
 0xb71   : > { %4849 = vperm.xlu0 %8706, %v7604_v34   ;;  %v8954_v34 = vld [vmem:[%s12108_s11 + $0x164] ss:$8 sps:$4 sm:$0xff]  }
 0xb74   : > { %4864 = vperm.xlu1 %8707, %v7607_v17   ;;  %v8956_v17 = vld [vmem:[%s12108_s11 + $0x160] ss:$8 sps:$4 sm:$0xff]  }
 0xb75   : > { %4859 = vperm.xlu0 %8706, %v7606_v55   ;;  %v8957_v55 = vld [vmem:[%s12108_s11 + $0x174] ss:$8 sps:$4 sm:$0xff]  }
 0xb78   : > { %5707 = vperm.xlu1 %8707, %v7753_v62   ;;  %v8959_v62 = vld [vmem:[%s12108_s11 + $0x170] ss:$8 sps:$4 sm:$0xff]  }
 0xb79   : > { %5702 = vperm.xlu0 %8706, %v7752_v23   ;;  %v8960_v23 = vld [vmem:[%s12109_s12 + $0x80] sm:$0xff]  }
 0xb7a   : > { %8345 = vmatprep.mubr.msk.bf16.mxu0 %vm2340_vm2, %v8960_v23 }
 0xb7c   : > { %5717 = vperm.xlu1 %8707, %v7755_v13  }
 0xb7d   : > { %5712 = vperm.xlu0 %8706, %v7754_v12  }
 0xb80   : > { %5727 = vperm.xlu1 %8707, %v7757_v28  }
 0xb81   : > { %5722 = vperm.xlu0 %8706, %v7756_v36  }
 0xb84   : > { %5737 = vperm.xlu1 %8707, %v7759_v51  }
 0xb85   : > { %5732 = vperm.xlu0 %8706, %v7758_v22  }
 0xbb6   : > { %v5351_v1 = vpop.permute.xlu1 %5350 }
 0xbb7   : > { %v5349_v46 = vpop.permute.xlu0 %5348 }
 0xbb8   : > { %7713 = vmatpush1.bf16.msk.msra.mxu1 %vm10033_vm4, %v5349_v46 }
 0xbb9   : > { %5503 = vmatprep.subr.bf16.mxu1 %v12247_v18 }
 0xbbc   : > { %7715 = vmatpush1.bf16.msk.msra.mxu1 %vm10033_vm4, %v5351_v1 }
 0xbbd   : > { %5505 = vmatprep.subr.bf16.mxu1 %v12247_v18 }
 0xbbe   : > { %v5355_v29 = vpop.permute.xlu1 %5354 }
 0xbbf   : > { %v5353_v40 = vpop.permute.xlu0 %5352 }
 0xbc0   : > { %7717 = vmatpush1.bf16.msk.msra.mxu1 %vm10033_vm4, %v5353_v40 }
 0xbc1   : > { %5507 = vmatprep.subr.bf16.mxu1 %v12247_v18 }
 0xbc2   : > { %v5371_v2 = vpop.permute.xlu1 %5370 }
 0xbc3   : > { %v5369_v9 = vpop.permute.xlu0 %5368 }
 0xbc4   : > { %7719 = vmatpush1.bf16.msk.msra.mxu1 %vm10033_vm4, %v5355_v29  ;;  %v5377_v50 = vsel %vm2239_vm5, %v5369_v9, 0 }
 0xbc5   : > { %5509 = vmatprep.subr.bf16.mxu1 %v12247_v18 }
 0xbc6   : > { %v5375_v44 = vpop.permute.xlu1 %5374 }
 0xbc8   : > { %5510 = vmatpush1.bf16.msra.mxu1 %v11309_v42  ;;  %v5380_v42 = vsel %vm2239_vm5, %v5371_v2, 0 }
 0xbc9   : > { %5511 = vmatprep.subr.bf16.mxu1 %v12247_v18 }
 0xbcc   : > { %5512 = vmatpush1.bf16.msra.mxu1 %v11305_v45  ;;  %v5373_v45 = vpop.permute.xlu0 %5372 }
 0xbcd   : > { %5513 = vmatprep.subr.bf16.mxu1 %v12247_v18 }
 0xbd0   : > { %5514 = vmatpush1.bf16.msra.mxu1 %v11340_v11  ;;  %v5383_v11 = vsel %vm2239_vm5, %v5373_v45, 0 }
 0xbd1   : > { %5515 = vmatprep.subr.bf16.mxu1 %v12247_v18 }
 0xbd4   : > { %5516 = vmatpush1.bf16.msra.mxu1 %v11336_v35  ;;  %v5386_v35 = vsel %vm2239_vm5, %v5375_v44, 0 }
 0xbd5   : > { %5517 = vmatprep.subr.bf16.mxu1 %v12247_v18 }
 0xbd8   : > { %5518 = vmatpush1.bf16.msra.mxu1 %v5377_v50  ;;  %v4870_v2 = vpop.permute.xlu0 %4869 }
 0xbd9   : > { %5519 = vmatprep.subr.bf16.mxu1 %v12247_v18 }
 0xbdc   : > { %5520 = vmatpush1.bf16.msra.mxu1 %v5380_v42  ;;  %v4875_v42 = vpop.permute.xlu1 %4874  ;;  %v4880_v44 = vpop.permute.xlu0 %4879 }
 0xbdd   : > { %5521 = vmatprep.subr.bf16.mxu1 %v12247_v18 }
 0xbe0   : > { %5522 = vmatpush1.bf16.msra.mxu1 %v5383_v11 }
 0xbe1   : > { %5523 = vmatprep.subr.bf16.mxu1 %v12247_v18 }
 0xbe4   : > { %5524 = vmatpush1.bf16.msra.mxu1 %v5386_v35 }
 0xbe5   : > { %6118 = vmatprep.subr.bf16.mxu1 %v12247_v18 }
 0xbe7   : > { %5534 = vmatmul.mubr.bf16.vlgmr.msra.gmra.mrb[72].mxu1 %v8936_v27 }
 0xbe8   : > { %7721 = vmatprep.mubr.msk.bf16.mxu1 %vm2340_vm2, %v8939_v47  ;;  %v4885_v47 = vpop.permute.xlu1 %4884 }
 0xbef   : > { %5542 = vmatmul.mubr.bf16.gmra.mrb[76].mxu1 %v8941_v26  ;;  %v4890_v26 = vpop.permute.xlu0 %4889 }
 0xbf0   : > { %7722 = vmatprep.mubr.msk.bf16.mxu1 %vm2340_vm2, %v8942_v61 }
 0xbf7   : > { %5550 = vmatmul.mubr.bf16.gmra.mrb[80].mxu1 %v8944_v60 }
 0xbf8   : > { %7723 = vmatprep.mubr.msk.bf16.mxu1 %vm2340_vm2, %v8945_v41 }
 0xbff   : > { %5558 = vmatmul.mubr.bf16.gmra.mrb[84].mxu1 %v8947_v54  ;;  %v4895_v54 = vpop.permute.xlu1 %4894 }
 0xc00   : > { %7724 = vmatprep.mubr.msk.bf16.mxu1 %vm2340_vm2, %v8948_v48 }
 0xc07   : > { %5566 = vmatmul.mubr.bf16.gmra.mrb[88].mxu1 %v8950_v37 }
 0xc08   : > { %7725 = vmatprep.mubr.msk.bf16.mxu1 %vm2340_vm2, %v8951_v38 }
 0xc0f   : > { %5574 = vmatmul.mubr.bf16.gmra.mrb[92].mxu1 %v8953_v39 }
 0xc10   : > { %7726 = vmatprep.mubr.msk.bf16.mxu1 %vm2340_vm2, %v8954_v34 }
 0xc17   : > { %5582 = vmatmul.mubr.bf16.gmra.mrb[96].mxu1 %v8956_v17  ;;  %v4900_v17 = vpop.permute.xlu0 %4899 }
 0xc18   : > { %7727 = vmatprep.mubr.msk.bf16.mxu1 %vm2340_vm2, %v8957_v55  ;;  %v4905_v55 = vpop.permute.xlu1 %4904 }
 0xc1f   : > { %5590 = vmatmul.mubr.bf16.gmra.mrb[100].mxu1 %v8959_v62 }
 0xcba   : > { %v5535_v13 = vpop.f32.mrb[72].mxu1 }
 0xcbb   : > { %v5537_v12 = vpop.f32.mrb[73].mxu1 }
 0xcbc   : > { %v5538_v28 = vpop.f32.mrb[74].mxu1 }
 0xcbd   : > { %v5540_v36 = vpop.f32.mrb[75].mxu1 }
 0xcc2   : > { %v5543_v51 = vpop.f32.mrb[76].mxu1 }
 0xcc3   : > { %v5545_v22 = vpop.f32.mrb[77].mxu1 }
 0xcc4   : > { %v11503_v46 = vpop.f32.mrb[78].mxu1 }
 0xcc5   : > { %v5548_v1 = vpop.f32.mrb[79].mxu1 }
 0xcca   : > { %v11505_v40 = vpop.f32.mrb[80].mxu1 }
 0xccb   : > { %v5553_v29 = vpop.f32.mrb[81].mxu1 }
 0xccc   : > { %v11507_v9 = vpop.f32.mrb[82].mxu1 }
 0xccd   : > { %v5556_v50 = vpop.f32.mrb[83].mxu1 }
 0xcce   : > { %v4830_v50 = vpop.permute.xlu0 %4829 }
 0xcd2   : > { %v11509_v45 = vpop.f32.mrb[84].mxu1 }
 0xcd3   : > { %v5561_v11 = vpop.f32.mrb[85].mxu1 }
 0xcd4   : > { %v11511_v35 = vpop.f32.mrb[86].mxu1 }
 0xcd5   : > { %v5564_v27 = vpop.f32.mrb[87].mxu1 }
 0xcd6   : > { %v4835_v27 = vpop.permute.xlu1 %4834 }
 0xcda   : > { %v5567_v61 = vpop.f32.mrb[88].mxu1 }
 0xcdb   : > { %v8509_v60 = vadd.f32 %v5567_v61, %v4870_v2  ;;  %v5569_v41 = vpop.f32.mrb[89].mxu1  ;;  %v8501_v2 = vadd.f32 %v5535_v13, %v4830_v50  ;;  %v4840_v13 = vpop.permute.xlu0 %4839 }
 0xcdc   : > { %v5570_v48 = vpop.f32.mrb[90].mxu1 }
 0xcdd   : > { %v7728_v37 = vmul.f32 -1.442695, %v8509_v60  ;;  %v8510_v38 = vadd.f32 %v5570_v48, %v4875_v42  ;;  %v5572_v39 = vpop.f32.mrb[91].mxu1  ;;  %v8502_v42 = vadd.f32 %v5538_v28, %v4835_v27  ;;  %v4845_v28 = vpop.permute.xlu1 %4844 }
 0xcdf   : > { %9126 = vpow2.f32 %v7728_v37  ;;  %v7729_v34 = vmul.f32 -1.442695, %v8510_v38 }
 0xce1   : > { %9128 = vpow2.f32 %v7729_v34 }
 0xce2   : > { %v5575_v62 = vpop.f32.mrb[92].mxu1 }
 0xce3   : > { %v8511_v23 = vadd.f32 %v5575_v62, %v4880_v44  ;;  %v5577_v12 = vpop.f32.mrb[93].mxu1 }
 0xce4   : > { %v5578_v36 = vpop.f32.mrb[94].mxu1 }
 0xce5   : > { %v7730_v22 = vmul.f32 -1.442695, %v8511_v23  ;;  %v8512_v1 = vadd.f32 %v5578_v36, %v4885_v47  ;;  %v5580_v29 = vpop.f32.mrb[95].mxu1  ;;  %v8503_v23 = vadd.f32 %v5543_v51, %v4840_v13 }
 0xce7   : > { %9130 = vpow2.f32 %v7730_v22  ;;  %v7731_v11 = vmul.f32 -1.442695, %v8512_v1  ;;  %v8504_v22 = vadd.f32 %v11503_v46, %v4845_v28 }
 0xce9   : > { %v9127_v61 = vpop.eup %9126  ;;  %9132 = vpow2.f32 %v7731_v11 }
 0xcea   : > { %v5630_v60 = vadd.f32 1.0, %v9127_v61  ;;  %v5583_v41 = vpop.f32.mrb[96].mxu1  ;;  %9134 = vtanh.f32 %v8501_v2 }
 0xceb   : > { %v9129_v48 = vpop.eup %9128  ;;  %v8513_v37 = vadd.f32 %v5583_v41, %v4890_v26  ;;  %v5585_v38 = vpop.f32.mrb[97].mxu1 }
 0xcec   : > { %9136 = vrcp.f32 %v5630_v60  ;;  %v5631_v44 = vadd.f32 1.0, %v9129_v48  ;;  %v5586_v39 = vpop.f32.mrb[98].mxu1  ;;  %v4850_v41 = vpop.permute.xlu0 %4849 }
 0xced   : > { %9138 = vtanh.f32 %v8502_v42  ;;  %v7732_v47 = vmul.f32 -1.442695, %v8513_v37  ;;  %v8514_v34 = vadd.f32 %v5586_v39, %v4895_v54  ;;  %v5588_v62 = vpop.f32.mrb[99].mxu1  ;;  %v8505_v46 = vadd.f32 %v11505_v40, %v4850_v41 }
 0xcee   : > { %9140 = vrcp.f32 %v5631_v44 }
 0xcef   : > { %9142 = vpow2.f32 %v7732_v47  ;;  %v7733_v12 = vmul.f32 -1.442695, %v8514_v34 }
 0xcf0   : > { %v4860_v28 = vpop.permute.xlu0 %4859 }
 0xcf1   : > { %v9131_v36 = vpop.eup %9130  ;;  %9144 = vpow2.f32 %v7733_v12 }
 0xcf2   : > { %v5632_v1 = vadd.f32 1.0, %v9131_v36  ;;  %v5591_v26 = vpop.f32.mrb[100].mxu1  ;;  %9146 = vtanh.f32 %v8503_v23 }
 0xcf3   : > { %v9133_v29 = vpop.eup %9132  ;;  %v8515_v50 = vadd.f32 %v5591_v26, %v4900_v17  ;;  %v5593_v2 = vpop.f32.mrb[101].mxu1 }
 0xcf4   : > { %9148 = vrcp.f32 %v5632_v1  ;;  %v5633_v11 = vadd.f32 1.0, %v9133_v29  ;;  %v5594_v54 = vpop.f32.mrb[102].mxu1  ;;  %v9135_v27 = vpop.eup %9134 }
 0xcf5   : > { %9150 = vtanh.f32 %v8504_v22  ;;  %v7734_v61 = vmul.f32 -1.442695, %v8515_v50  ;;  %v8516_v51 = vadd.f32 %v5594_v54, %v4905_v55  ;;  %v5596_v42 = vpop.f32.mrb[103].mxu1  ;;  %v4855_v17 = vpop.permute.xlu1 %4854  ;;  %v8507_v22 = vadd.f32 %v11509_v45, %v4860_v28 }
 0xcf6   : > { %v9137_v60 = vpop.eup %9136  ;;  %9152 = vrcp.f32 %v5633_v11  ;;  %v8506_v47 = vadd.f32 %v11507_v9, %v4855_v17 }
 0xcf7   : > { %v9139_v48 = vpop.eup %9138  ;;  %9154 = vpow2.f32 %v7734_v61  ;;  %v7735_v37 = vmul.f32 -1.442695, %v8516_v51  ;;  %v5654_v38 = vmul.f32 %v9137_v60, %v9135_v27 }
 0xcf8   : > { %v9141_v44 = vpop.eup %9140 }
 0xcf9   : > { %v9143_v39 = vpop.eup %9142  ;;  %9156 = vpow2.f32 %v7735_v37  ;;  %v5655_v34 = vmul.f32 %v9141_v44, %v9139_v48  ;;  %v4865_v26 = vpop.permute.xlu1 %4864 }
 0xcfa   : > { %v5634_v62 = vadd.f32 1.0, %v9143_v39  ;;  %9158 = vtanh.f32 %v8505_v46  ;;  %v8508_v50 = vadd.f32 %v11511_v35, %v4865_v26 }
 0xcfb   : > { %v9145_v13 = vpop.eup %9144  ;;  %v5679_v55 = vpack.c.bf16 %v5655_v34, %v5654_v38  ;;  %v8961_v34 = vld [vmem:[%s12109_s12 + $0x88] sm:$0xff]  }
 0xcfc   : > { %9160 = vrcp.f32 %v5634_v62  ;;  %v5635_v23 = vadd.f32 1.0, %v9145_v13  ;;  %v9147_v12 = vpop.eup %9146  ;;  %v8962_v62 = vld [vmem:[%s12109_s12 + $0x90] sm:$0xff]   ;;  %v8963_v13 = vld [vmem:[%s12109_s12 + $0x98] sm:$0xff]  }
 0xcfd   : > { %9162 = vtanh.f32 %v8506_v47  ;;  %8337 = vmatprep.subr.bf16.mxu0 %v5679_v55 }
 0xcfe   : > { %v9149_v40 = vpop.eup %9148  ;;  %9164 = vrcp.f32 %v5635_v23  ;;  %8338 = vmatpush3.bf16.msra.mxu0 %v5679_v55  ;;  %v5703_v55 = vpop.permute.xlu0 %5702 }
 0xcff   : > { %v9151_v36 = vpop.eup %9150  ;;  %v5656_v1 = vmul.f32 %v9149_v40, %v9147_v12  ;;  %9166 = vtanh.f32 %v8507_v22  ;;  %v5708_v23 = vpop.permute.xlu1 %5707 }
 0xd00   : > { %v9153_v9 = vpop.eup %9152 }
 0xd01   : > { %v9155_v29 = vpop.eup %9154  ;;  %v5657_v2 = vmul.f32 %v9153_v9, %v9151_v36 }
 0xd02   : > { %v5636_v11 = vadd.f32 1.0, %v9155_v29  ;;  %v5713_v12 = vpop.permute.xlu0 %5712 }
 0xd03   : > { %v9157_v54 = vpop.eup %9156  ;;  %v5680_v27 = vpack.c.bf16 %v5657_v2, %v5656_v1  ;;  %v5718_v40 = vpop.permute.xlu1 %5717 }
 0xd04   : > { %9168 = vrcp.f32 %v5636_v11  ;;  %v5637_v61 = vadd.f32 1.0, %v9157_v54  ;;  %v9159_v51 = vpop.eup %9158 }
 0xd05   : > { %9170 = vtanh.f32 %v8508_v50  ;;  %8339 = vmatprep.subr.bf16.mxu0 %v5680_v27 }
 0xd06   : > { %v9161_v42 = vpop.eup %9160  ;;  %9172 = vrcp.f32 %v5637_v61  ;;  %8340 = vmatpush3.bf16.msra.mxu0 %v5680_v27  ;;  %v5723_v1 = vpop.permute.xlu0 %5722 }
 0xd07   : > { %v9163_v45 = vpop.eup %9162  ;;  %v5658_v60 = vmul.f32 %v9161_v42, %v9159_v51  ;;  %v5728_v11 = vpop.permute.xlu1 %5727  ;;  %v11535_v42 = vld [vmem:[%s9535_s27] ss:$0 sm:$0xff] }
 0xd08   : > { %v9165_v41 = vpop.eup %9164 }
 0xd09   : > { %v5659_v48 = vmul.f32 %v9165_v41, %v9163_v45  ;;  %v9167_v37 = vpop.eup %9166 }
 0xd0a   : > { %v5733_v41 = vpop.permute.xlu0 %5732 }
 0xd0b   : > { %v5681_v46 = vpack.c.bf16 %v5659_v48, %v5658_v60 }
 0xd0d   : > { %8341 = vmatprep.subr.bf16.mxu0 %v5681_v46 }
 0xd0e   : > { %v9169_v35 = vpop.eup %9168  ;;  %8342 = vmatpush3.bf16.msra.mxu0 %v5681_v46 }
 0xd0f   : > { %v9171_v38 = vpop.eup %9170  ;;  %v5660_v44 = vmul.f32 %v9169_v35, %v9167_v37 }
 0xd10   : > { %v9173_v17 = vpop.eup %9172 }
 0xd11   : > { %v5661_v39 = vmul.f32 %v9173_v17, %v9171_v38  ;;  %v5738_v38 = vpop.permute.xlu1 %5737 }
 0xd13   : > { %v5682_v47 = vpack.c.bf16 %v5661_v39, %v5660_v44 }
 0xd15   : > { %8343 = vmatprep.subr.bf16.mxu0 %v5682_v47 }
 0xd16   : > { %8344 = vmatpush3.bf16.msra.mxu0 %v5682_v47 }
 0xd19   : > { %8346 = vmatmul.mubr.msk.bf16.vlgmr.msra.gmra.mrb[132].mxu0 %vm2340_vm2, %v8961_v34 }
 0xd1a   : > { %8349 = vmatprep.mubr.msk.bf16.mxu0 %vm2340_vm2, %v8962_v62 }
 0xd21   : > { %8350 = vmatmul.mubr.msk.bf16.gmra.mrb[136].mxu0 %vm2340_vm2, %v8963_v13 }
 0xdec   : > { %v8347_v28 = vpop.f32.mrb[132].mxu0 }
 0xded   : > { %v5887_v36 = vadd.f32 %v8347_v28, %v5713_v12  ;;  %v5878_v22 = vpop.f32.mrb[133].mxu0 }
 0xdee   : > { %v5879_v9 = vadd.f32 %v5878_v22, %v5703_v55  ;;  %v8348_v26 = vpop.f32.mrb[134].mxu0  ;;  %v7626_v22 = vld [vmem:[%s9951_s29 + $0x1d0] sm:$0xff] }
 0xdef   : > { %v5943_v29 = vadd.f32 %v5887_v36, %v11292_v3  ;;  %v5890_v50 = vadd.f32 %v8348_v26, %v5718_v40  ;;  %v5881_v2 = vpop.f32.mrb[135].mxu0  ;;  %v7627_v36 = vld [vmem:[%s9951_s29 + $0x1d8] sm:$0xff] }
 0xdf0   : > { %v5941_v54 = vadd.f32 %v5879_v9, %v11298_v6  ;;  %v5882_v27 = vadd.f32 %v5881_v2, %v5708_v23  ;;  %v7628_v9 = vld [vmem:[%s9951_s29 + $0x1e0] sm:$0xff]  ;;  %v7631_v26 = vld [vmem:[%s9951_s29 + $0x1f8] sm:$0xff]  ;;  %v7617_v2 = vld [vmem:[%s9951_s29 + $0x188] sm:$0xff] }
 0xdf1   : > { %v5944_v61 = vadd.f32 %v5890_v50, %v11295_v7  ;;  %v5951_v45 = vmul.f32 %v11535_v42, %v5943_v29  ;;  %v7630_v29 = vld [vmem:[%s9951_s29 + $0x1f0] sm:$0xff]  ;;  %v8966_v50 = vld [vmem:[%s12108_s11 + $0x184] ss:$8 sps:$4 sm:$0xff]  }
 0xdf2   : > { %v5942_v51 = vadd.f32 %v5882_v27, %v11301_v8  ;;  %v5949_v48 = vmul.f32 %v11535_v42, %v5941_v54  ;;  %7824 = vmatprep.mubr.msk.bf16.mxu1 %vm2340_vm2, %v8966_v50  ;;  %v7619_v54 = vld [vmem:[%s9951_s29 + $0x198] sm:$0xff]  ;;  %v7618_v27 = vld [vmem:[%s9951_s29 + $0x190] sm:$0xff] }
 0xdf3   : > { %v5952_v60 = vmul.f32 %v11535_v42, %v5944_v61  ;;  %v7621_v61 = vld [vmem:[%s9951_s29 + $0x1a8] sm:$0xff] }
 0xdf4   : > { %v5950_v3 = vmul.f32 %v11535_v42, %v5942_v51  ;;  %v8351_v46 = vpop.f32.mrb[136].mxu0  ;;  %v7620_v51 = vld [vmem:[%s9951_s29 + $0x1a0] sm:$0xff] }
 0xdf5   : > { %v11541_v37 = vpack.c.bf16 %v5952_v60, %v5951_v45  ;;  %v5903_v6 = vadd.f32 %v8351_v46, %v5733_v41  ;;  %v5894_v35 = vpop.f32.mrb[137].mxu0  ;;  %v7623_v45 = vld [vmem:[%s9951_s29 + $0x1b8] sm:$0xff]  ;;  %v7622_v60 = vld [vmem:[%s9951_s29 + $0x1b0] sm:$0xff]  ;;  %v7761_v41 = vld [vmem:[%s12110_s13 + $0x148] sm:$0xff] }
 0xdf6   : > { %v11543_v7 = vpack.c.bf16 %v5950_v3, %v5949_v48  ;;  %v5895_v8 = vadd.f32 %v5894_v35, %v5723_v1  ;;  %v8352_v44 = vpop.f32.mrb[138].mxu0  ;;  %v7629_v1 = vld [vmem:[%s9951_s29 + $0x1e8] sm:$0xff]  ;;  %v7760_v48 = vld [vmem:[%s12110_s13 + $0x140] sm:$0xff]  ;;  %v7762_v35 = vld [vmem:[%s12110_s13 + $0x150] sm:$0xff] }
 0xdf7   : > { %v5947_v17 = vadd.f32 %v5903_v6, %v11323_v31  ;;  %v5906_v39 = vadd.f32 %v8352_v44, %v5738_v38  ;;  %v5897_v47 = vpop.f32.mrb[139].mxu0  ;;  %5967 = vrot.lane.b32.xlu1 %v11541_v37, %s12147_s22  ;;  %v7865_v3 = vld [vmem:[%s12110_s13 + $0x1c8] sm:$0xff]  ;;  %v7864_v46 = vld [vmem:[%s12110_s13 + $0x1c0] sm:$0xff]  ;;  %v7763_v6 = vld [vmem:[%s12110_s13 + $0x158] sm:$0xff] }
 0xdf8   : > { %v5945_v34 = vadd.f32 %v5895_v8, %v11329_v63  ;;  %v5898_v62 = vadd.f32 %v5897_v47, %v5728_v11  ;;  %5965 = vrot.lane.b32.xlu0 %v11543_v7, %s12147_s22  ;;  %v7616_v11 = vld [vmem:[%s9951_s29 + $0x180] sm:$0xff]  ;;  %v7867_v38 = vld [vmem:[%s12110_s13 + $0x1d8] sm:$0xff]  ;;  %v7866_v8 = vld [vmem:[%s12110_s13 + $0x1d0] sm:$0xff] }
 0xdf9   : > { %v5948_v13 = vadd.f32 %v5906_v39, %v11326_v53  ;;  %v5955_v23 = vmul.f32 %v11535_v42, %v5947_v17  ;;  %v7625_v53 = vld [vmem:[%s9951_s29 + $0x1c8] sm:$0xff]  ;;  %v7764_v17 = vld [vmem:[%s12110_s13 + $0x160] sm:$0xff] }
 0xdfa   : > { %v5946_v55 = vadd.f32 %v5898_v62, %v11332_v20  ;;  %v5953_v12 = vmul.f32 %v11535_v42, %v5945_v34  ;;  %v7624_v20 = vld [vmem:[%s9951_s29 + $0x1c0] sm:$0xff]  ;;  %v7765_v44 = vld [vmem:[%s12110_s13 + $0x168] sm:$0xff]  ;;  %v7767_v34 = vld [vmem:[%s12110_s13 + $0x178] sm:$0xff] }
 0xdfb   : > { %v5956_v31 = vmul.f32 %v11535_v42, %v5948_v13  ;;  %v7869_v39 = vld [vmem:[%s12110_s13 + $0x1e8] sm:$0xff]  ;;  %v7868_v47 = vld [vmem:[%s12110_s13 + $0x1e0] sm:$0xff]  ;;  %v7766_v62 = vld [vmem:[%s12110_s13 + $0x170] sm:$0xff] }
 0xdfc   : > { %v5954_v63 = vmul.f32 %v11535_v42, %v5946_v55  ;;  %v7871_v13 = vld [vmem:[%s12110_s13 + $0x1f8] sm:$0xff]  ;;  %v7870_v55 = vld [vmem:[%s12110_s13 + $0x1f0] sm:$0xff] }
 0xdfd   : > { %v11557_v40 = vpack.c.bf16 %v5956_v31, %v5955_v23  ;;  %v7919_v23 = vld [vmem:[%s12112_s15 + $0xf8] sm:$0xff]  ;;  %v7921_v31 = vld [vmem:[%s12112_s15 + $0x108] sm:$0xff] }
 0xdfe   : > { %v11559_v28 = vpack.c.bf16 %v5954_v63, %v5953_v12  ;;  %v7923_v12 = vld [vmem:[%s12112_s15 + $0x118] sm:$0xff]  ;;  %v7925_v63 = vld [vmem:[%s12112_s15 + $0x128] sm:$0xff] }
 0xdff   : > { %5971 = vrot.lane.b32.xlu1 %v11557_v40, %s12147_s22 }
 0xe00   : > { %5969 = vrot.lane.b32.xlu0 %v11559_v28, %s12147_s22 }
 0xe03   : > { %5987 = vrot.lane.b32.xlu1 %v11541_v37, %s12148_s28 }
 0xe04   : > { %5985 = vrot.lane.b32.xlu0 %v11543_v7, %s12148_s28 }
 0xe07   : > { %5991 = vrot.lane.b32.xlu1 %v11557_v40, %s12148_s28 }
 0xe08   : > { %5989 = vrot.lane.b32.xlu0 %v11559_v28, %s12148_s28 }
 0xe0b   : > { %4954 = vperm.xlu1 %8707, %v7625_v53   ;;  %v7927_v53 = vld [vmem:[%s12112_s15 + $0x138] sm:$0xff] }
 0xe0c   : > { %4949 = vperm.xlu0 %8706, %v7624_v20   ;;  %v3807_v20 = vmul.f32 %v11535_v42, %v10958_v19 }
 0xe0f   : > { %4964 = vperm.xlu1 %8707, %v7627_v36   ;;  %v3809_v36 = vmul.f32 %v11535_v42, %v10973_v10 }
 0xe10   : > { %4959 = vperm.xlu0 %8706, %v7626_v22  }
 0xe13   : > { %4974 = vperm.xlu1 %8707, %v7629_v1   ;;  %v3810_v1 = vmul.f32 %v11535_v42, %v10981_v58  ;;  %v3808_v58 = vmul.f32 %v11535_v42, %v10964_v52  ;;  %v3812_v52 = vmul.f32 %v11535_v42, %v10977_v49  ;;  %v7922_v49 = vld [vmem:[%s12112_s15 + $0x110] sm:$0xff] }
 0xe14   : > { %4969 = vperm.xlu0 %8706, %v7628_v9  }
 0xe17   : > { %4984 = vperm.xlu1 %8707, %v7631_v26   ;;  %v3811_v26 = vmul.f32 %v11535_v42, %v10970_v56  ;;  %v3813_v56 = vmul.f32 %v11535_v42, %v10993_v15  ;;  %v7924_v15 = vld [vmem:[%s12112_s15 + $0x120] sm:$0xff] }
 0xe18   : > { %4979 = vperm.xlu0 %8706, %v7630_v29  }
 0xe1b   : > { %4914 = vperm.xlu1 %8707, %v7617_v2  }
 0xe1c   : > { %4909 = vperm.xlu0 %8706, %v7616_v11  }
 0xe1f   : > { %4924 = vperm.xlu1 %8707, %v7619_v54  }
 0xe20   : > { %4919 = vperm.xlu0 %8706, %v7618_v27   ;;  %v3815_v27 = vmul.f32 %v11535_v42, %v10988_v21  ;;  %v8964_v21 = vld [vmem:[%s12108_s11 + $0x180] ss:$8 sps:$4 sm:$0xff]  }
 0xe23   : > { %4934 = vperm.xlu1 %8707, %v7621_v61   ;;  %v7926_v61 = vld [vmem:[%s12112_s15 + $0x130] sm:$0xff] }
 0xe24   : > { %4929 = vperm.xlu0 %8706, %v7620_v51   ;;  %v3816_v51 = vmul.f32 %v11535_v42, %v10997_v16  ;;  %v7912_v16 = vld [vmem:[%s12112_s15 + $0xc0] sm:$0xff] }
 0xe27   : > { %4944 = vperm.xlu1 %8707, %v7623_v45  }
 0xe28   : > { %4939 = vperm.xlu0 %8706, %v7622_v60  }
 0xe2b   : > { %5747 = vperm.xlu1 %8707, %v7761_v41   ;;  %v7909_v41 = vld [vmem:[%s12112_s15 + $0xa8] sm:$0xff] }
 0xe2c   : > { %5742 = vperm.xlu0 %8706, %v7760_v48  }
 0xe2f   : > { %6356 = vperm.xlu1 %8707, %v7865_v3   ;;  %v7914_v3 = vld [vmem:[%s12112_s15 + $0xd0] sm:$0xff] }
 0xe30   : > { %6351 = vperm.xlu0 %8706, %v7864_v46   ;;  %v8969_v46 = vld [vmem:[%s12108_s11 + $0x190] ss:$8 sps:$4 sm:$0xff]  }
 0xe33   : > { %5757 = vperm.xlu1 %8707, %v7763_v6   ;;  %v8970_v6 = vld [vmem:[%s12108_s11 + $0x1a4] ss:$8 sps:$4 sm:$0xff]  }
 0xe34   : > { %5752 = vperm.xlu0 %8706, %v7762_v35  }
 0xe37   : > { %6366 = vperm.xlu1 %8707, %v7867_v38   ;;  %v7908_v38 = vld [vmem:[%s12112_s15 + $0xa0] sm:$0xff] }
 0xe38   : > { %6361 = vperm.xlu0 %8706, %v7866_v8  }
 0xe3b   : > { %5767 = vperm.xlu1 %8707, %v7765_v44   ;;  %v8972_v44 = vld [vmem:[%s12108_s11 + $0x1a0] ss:$8 sps:$4 sm:$0xff]  }
 0xe3c   : > { %5762 = vperm.xlu0 %8706, %v7764_v17   ;;  %v8973_v17 = vld [vmem:[%s12108_s11 + $0x1b4] ss:$8 sps:$4 sm:$0xff]  }
 0xe3f   : > { %6376 = vperm.xlu1 %8707, %v7869_v39  }
 0xe40   : > { %6371 = vperm.xlu0 %8706, %v7868_v47   ;;  %v7910_v47 = vld [vmem:[%s12112_s15 + $0xb0] sm:$0xff] }
 0xe43   : > { %5777 = vperm.xlu1 %8707, %v7767_v34  }
 0xe44   : > { %5772 = vperm.xlu0 %8706, %v7766_v62   ;;  %v7911_v62 = vld [vmem:[%s12112_s15 + $0xb8] sm:$0xff] }
 0xe47   : > { %6386 = vperm.xlu1 %8707, %v7871_v13  }
 0xe48   : > { %6381 = vperm.xlu0 %8706, %v7870_v55   ;;  %v8975_v55 = vld [vmem:[%s12108_s11 + $0x1b0] ss:$8 sps:$4 sm:$0xff]  }
 0xe4b   : > { %6661 = vperm.xlu1 %8707, %v7919_v23   ;;  %v8976_v23 = vld [vmem:[%s12108_s11 + $0x1c4] ss:$8 sps:$4 sm:$0xff]  }
 0xe4f   : > { %6671 = vperm.xlu1 %8707, %v7921_v31   ;;  %v7913_v31 = vld [vmem:[%s12112_s15 + $0xc8] sm:$0xff] }
 0xe53   : > { %6681 = vperm.xlu1 %8707, %v7923_v12  }
 0xe57   : > { %6691 = vperm.xlu1 %8707, %v7925_v63  }
 0xe5b   : > { %6701 = vperm.xlu1 %8707, %v7927_v53   ;;  %v7915_v53 = vld [vmem:[%s12112_s15 + $0xd8] sm:$0xff] }
 0xe67   : > { %3817 = vadd.xlane.f32.xlu0 %v3807_v20  ;;  %v8978_v20 = vld [vmem:[%s12108_s11 + $0x1c0] ss:$8 sps:$4 sm:$0xff]  }
 0xe69   : > { %v5968_v9 = vpop.permute.xlu1 %5967 }
 0xe6a   : > { %v5966_v22 = vpop.permute.xlu0 %5965 }
 0xe6b   : > { %3821 = vadd.xlane.f32.xlu0 %v3809_v36  ;;  %7817 = vmatpush1.bf16.msk.msra.mxu1 %vm10033_vm4, %v5966_v22  ;;  %v8979_v36 = vld [vmem:[%s12108_s11 + $0x1d4] ss:$8 sps:$4 sm:$0xff]  }
 0xe6c   : > { %6120 = vmatprep.subr.bf16.mxu1 %v12247_v18 }
 0xe6f   : > { %3823 = vadd.xlane.f32.xlu0 %v3810_v1  ;;  %7819 = vmatpush1.bf16.msk.msra.mxu1 %vm10033_vm4, %v5968_v9 }
 0xe70   : > { %6122 = vmatprep.subr.bf16.mxu1 %v12247_v18 }
 0xe71   : > { %v5972_v10 = vpop.permute.xlu1 %5971 }
 0xe72   : > { %v5970_v19 = vpop.permute.xlu0 %5969 }
 0xe73   : > { %7821 = vmatpush1.bf16.msk.msra.mxu1 %vm10033_vm4, %v5970_v19  ;;  %v8981_v19 = vld [vmem:[%s12108_s11 + $0x1d0] ss:$8 sps:$4 sm:$0xff]  }
 0xe74   : > { %6124 = vmatprep.subr.bf16.mxu1 %v12247_v18 }
 0xe76   : > { %v5986_v29 = vpop.permute.xlu0 %5985 }
 0xe77   : > { %7823 = vmatpush1.bf16.msk.msra.mxu1 %vm10033_vm4, %v5972_v10  ;;  %v8982_v10 = vld [vmem:[%s12108_s11 + $0x1e4] ss:$8 sps:$4 sm:$0xff]  }
 0xe78   : > { %6126 = vmatprep.subr.bf16.mxu1 %v12247_v18 }
 0xe7a   : > { %v5990_v11 = vpop.permute.xlu0 %5989 }
 0xe7b   : > { %6127 = vmatpush1.bf16.msra.mxu1 %v11543_v7  ;;  %v5988_v7 = vpop.permute.xlu1 %5987 }
 0xe7c   : > { %6128 = vmatprep.subr.bf16.mxu1 %v12247_v18  ;;  %v5997_v2 = vsel %vm2239_vm5, %v5988_v7, 0  ;;  %v8985_v7 = vld [vmem:[%s12108_s11 + $0x1f4] ss:$8 sps:$4 sm:$0xff]  }
 0xe7f   : > { %3819 = vadd.xlane.f32.xlu1 %v3808_v58  ;;  %6129 = vmatpush1.bf16.msra.mxu1 %v11541_v37  ;;  %v7920_v37 = vld [vmem:[%s12112_s15 + $0x100] sm:$0xff]  ;;  %v5992_v50 = vpop.permute.xlu1 %5991 }
 0xe80   : > { %6130 = vmatprep.subr.bf16.mxu1 %v12247_v18  ;;  %v6003_v45 = vsel %vm2239_vm5, %v5992_v50, 0 }
 0xe83   : > { %3825 = vadd.xlane.f32.xlu1 %v3811_v26  ;;  %6131 = vmatpush1.bf16.msra.mxu1 %v11559_v28  ;;  %v5994_v28 = vsel %vm2239_vm5, %v5986_v29, 0 }
 0xe84   : > { %6132 = vmatprep.subr.bf16.mxu1 %v12247_v18 }
 0xe85   : > { %6656 = vperm.xlu0 %8706, %v7918_v30  }
 0xe87   : > { %3827 = vadd.xlane.f32.xlu1 %v3812_v52  ;;  %6133 = vmatpush1.bf16.msra.mxu1 %v11557_v40  ;;  %v3814_v40 = vmul.f32 %v11535_v42, %v11001_v14  ;;  %v6000_v14 = vsel %vm2239_vm5, %v5990_v11, 0  ;;  %v8984_v52 = vld [vmem:[%s12108_s11 + $0x1e0] ss:$8 sps:$4 sm:$0xff]  }
 0xe88   : > { %6134 = vmatprep.subr.bf16.mxu1 %v12247_v18 }
 0xe89   : > { %6666 = vperm.xlu0 %8706, %v7920_v37  }
 0xe8a   : > { %v11707_v54 = vpop.permute.xlu1 %4954 }
 0xe8b   : > { %3829 = vadd.xlane.f32.xlu1 %v3813_v56  ;;  %6135 = vmatpush1.bf16.msra.mxu1 %v5994_v28  ;;  %v11752_v8 = vpop.permute.xlu0 %4949  ;;  %v8987_v56 = vld [vmem:[%s12108_s11 + $0x1f0] ss:$8 sps:$4 sm:$0xff]  }
 0xe8c   : > { %6136 = vmatprep.subr.bf16.mxu1 %v12247_v18 }
 0xe8d   : > { %6676 = vperm.xlu0 %8706, %v7922_v49  }
 0xe8e   : > { %v11720_v60 = vpop.permute.xlu1 %4964 }
 0xe8f   : > { %3831 = vadd.xlane.f32.xlu1 %v3814_v40  ;;  %6137 = vmatpush1.bf16.msra.mxu1 %v5997_v2  ;;  %v11766_v34 = vpop.permute.xlu0 %4959 }
 0xe90   : > { %6138 = vmatprep.subr.bf16.mxu1 %v12247_v18 }
 0xe91   : > { %6686 = vperm.xlu0 %8706, %v7924_v15  }
 0xe92   : > { %v11735_v48 = vpop.permute.xlu1 %4974 }
 0xe93   : > { %3833 = vadd.xlane.f32.xlu1 %v3815_v27  ;;  %6139 = vmatpush1.bf16.msra.mxu1 %v6000_v14  ;;  %v11782_v12 = vpop.permute.xlu0 %4969 }
 0xe94   : > { %6140 = vmatprep.subr.bf16.mxu1 %v12247_v18  ;;  %v8967_v18 = vld [vmem:[%s12108_s11 + $0x194] ss:$8 sps:$4 sm:$0xff]  }
 0xe95   : > { %6696 = vperm.xlu0 %8706, %v7926_v61  }
 0xe96   : > { %v11746_v35 = vpop.permute.xlu1 %4984 }
 0xe97   : > { %3835 = vadd.xlane.f32.xlu1 %v3816_v51  ;;  %6141 = vmatpush1.bf16.msra.mxu1 %v6003_v45  ;;  %v11796_v22 = vpop.permute.xlu0 %4979 }
 0xe99   : > { %6611 = vperm.xlu0 %8706, %v7909_v41  }
 0xe9a   : > { %6151 = vmatmul.mubr.bf16.vlgmr.msra.gmra.mrb[104].mxu1 %v8964_v21  ;;  %v11760_v39 = vpop.permute.xlu1 %4914 }
 0xe9b   : > { %7825 = vmatprep.mubr.msk.bf16.mxu1 %vm2340_vm2, %v8967_v18  ;;  %v11801_v9 = vpop.permute.xlu0 %4909 }
 0xe9d   : > { %6626 = vperm.xlu0 %8706, %v7912_v16  }
 0xe9e   : > { %v11771_v13 = vpop.permute.xlu1 %4924 }
 0xe9f   : > { %v11812_v26 = vpop.permute.xlu0 %4919 }
 0xea1   : > { %6636 = vperm.xlu0 %8706, %v7914_v3  }
 0xea2   : > { %6159 = vmatmul.mubr.bf16.gmra.mrb[108].mxu1 %v8969_v46  ;;  %v11785_v63 = vpop.permute.xlu1 %4934 }
 0xea3   : > { %7826 = vmatprep.mubr.msk.bf16.mxu1 %vm2340_vm2, %v8970_v6  ;;  %v11822_v37 = vpop.permute.xlu0 %4929 }
 0xea6   : > { %v11798_v1 = vpop.permute.xlu1 %4944 }
 0xea7   : > { %v11830_v28 = vpop.permute.xlu0 %4939 }
 0xea8   : > { %6606 = vperm.xlu1 %8707, %v7908_v38  }
 0xeaa   : > { %6167 = vmatmul.mubr.bf16.gmra.mrb[112].mxu1 %v8972_v44  ;;  %v11809_v58 = vpop.permute.xlu1 %5747 }
 0xeab   : > { %7827 = vmatprep.mubr.msk.bf16.mxu1 %vm2340_vm2, %v8973_v17  ;;  %v11834_v50 = vpop.permute.xlu0 %5742 }
 0xeac   : > { %6616 = vperm.xlu1 %8707, %v7910_v47  }
 0xeae   : > { %v11814_v30 = vpop.permute.xlu1 %6356 }
 0xeaf   : > { %v11838_v2 = vpop.permute.xlu0 %6351 }
 0xeb0   : > { %6621 = vperm.xlu1 %8707, %v7911_v62  }
 0xeb2   : > { %6175 = vmatmul.mubr.bf16.gmra.mrb[116].mxu1 %v8975_v55  ;;  %v11825_v29 = vpop.permute.xlu1 %5757 }
 0xeb3   : > { %7828 = vmatprep.mubr.msk.bf16.mxu1 %vm2340_vm2, %v8976_v23  ;;  %v11842_v11 = vpop.permute.xlu0 %5752 }
 0xeb4   : > { %6631 = vperm.xlu1 %8707, %v7913_v31  }
 0xeb6   : > { %v11832_v49 = vpop.permute.xlu1 %6366 }
 0xeb7   : > { %v11846_v14 = vpop.permute.xlu0 %6361 }
 0xeb8   : > { %6641 = vperm.xlu1 %8707, %v7915_v53  }
 0xeba   : > { %6183 = vmatmul.mubr.bf16.gmra.mrb[120].mxu1 %v8978_v20  ;;  %v11836_v40 = vpop.permute.xlu1 %5767 }
 0xebb   : > { %7829 = vmatprep.mubr.msk.bf16.mxu1 %vm2340_vm2, %v8979_v36  ;;  %v11850_v51 = vpop.permute.xlu0 %5762 }
 0xebe   : > { %v11840_v15 = vpop.permute.xlu1 %6376 }
 0xebf   : > { %v11854_v21 = vpop.permute.xlu0 %6371 }
 0xec2   : > { %6191 = vmatmul.mubr.bf16.gmra.mrb[124].mxu1 %v8981_v19  ;;  %v11844_v27 = vpop.permute.xlu1 %5777 }
 0xec3   : > { %7830 = vmatprep.mubr.msk.bf16.mxu1 %vm2340_vm2, %v8982_v10  ;;  %v11858_v18 = vpop.permute.xlu0 %5772 }
 0xec6   : > { %v11848_v61 = vpop.permute.xlu1 %6386 }
 0xec7   : > { %v11862_v3 = vpop.permute.xlu0 %6381 }
 0xeca   : > { %6199 = vmatmul.mubr.bf16.gmra.mrb[128].mxu1 %v8984_v52  ;;  %v11852_v45 = vpop.permute.xlu1 %6661 }
 0xecb   : > { %7831 = vmatprep.mubr.msk.bf16.mxu1 %vm2340_vm2, %v8985_v7 }
 0xece   : > { %v11856_v41 = vpop.permute.xlu1 %6671 }
 0xed2   : > { %6207 = vmatmul.mubr.bf16.gmra.mrb[132].mxu1 %v8987_v56  ;;  %v11860_v16 = vpop.permute.xlu1 %6681 }
 0xed6   : > { %v11864_v46 = vpop.permute.xlu1 %6691 }
 0xeda   : > { %v11866_v38 = vpop.permute.xlu1 %6701 }
 0xef4   : > { %v3818_v6 = vpop.xlane.xlu0 %3817 }
 0xef8   : > { %v3822_v44 = vpop.xlane.xlu0 %3821 }
 0xefc   : > { %v3824_v55 = vpop.xlane.xlu0 %3823 }
 0xf0c   : > { %v3820_v17 = vpop.xlane.xlu1 %3819 }
 0xf0d   : > { %v3837_v47 = vadd.f32 %v3820_v17, %v3818_v6  ;;  %v8988_v6 = vld [vmem:[%s12109_s12 + $0xa0] sm:$0xff]   ;;  %v8990_v17 = vld [vmem:[%s12109_s12 + $0xb0] sm:$0xff]  }
 0xf0e   : > { %8353 = vmatprep.mubr.msk.bf16.mxu0 %vm2340_vm2, %v8988_v6 }
 0xf0f   : > { %v3838_v62 = vadd.f32 %v3837_v47, %v3822_v44  ;;  %v8989_v44 = vld [vmem:[%s12109_s12 + $0xa8] sm:$0xff]  }
 0xf10   : > { %v3826_v23 = vpop.xlane.xlu1 %3825  ;;  %8354 = vmatmul.mubr.msk.bf16.gmra.mrb[140].mxu0 %vm2340_vm2, %v8989_v44 }
 0xf11   : > { %v3839_v31 = vadd.f32 %v3838_v62, %v3824_v55  ;;  %8357 = vmatprep.mubr.msk.bf16.mxu0 %vm2340_vm2, %v8990_v17 }
 0xf13   : > { %v3840_v53 = vadd.f32 %v3839_v31, %v3826_v23 }
 0xf14   : > { %v3828_v20 = vpop.xlane.xlu1 %3827 }
 0xf15   : > { %v3841_v36 = vadd.f32 %v3840_v53, %v3828_v20 }
 0xf18   : > { %v3830_v19 = vpop.xlane.xlu1 %3829 }
 0xf19   : > { %v3842_v10 = vadd.f32 %v3841_v36, %v3830_v19 }
 0xf1c   : > { %v3832_v52 = vpop.xlane.xlu1 %3831 }
 0xf1d   : > { %v3843_v7 = vadd.f32 %v3842_v10, %v3832_v52 }
 0xf20   : > { %v3834_v56 = vpop.xlane.xlu1 %3833 }
 0xf21   : > { %v3844_v43 = vadd.f32 %v3843_v7, %v3834_v56 }
 0xf24   : > { %v3836_v32 = vpop.xlane.xlu1 %3835 }
 0xf25   : > { %v11868_v5 = vadd.f32 %v3844_v43, %v3836_v32  ;;  %v8991_v32 = vld [vmem:[%s12109_s12 + $0xb8] sm:$0xff]   ;;  %v8992_v43 = vld [vmem:[%s12109_s12 + $0xc0] sm:$0xff]  }
 0xf26   : > { %8358 = vmatmul.mubr.msk.bf16.gmra.mrb[144].mxu0 %vm2340_vm2, %v8991_v32 }
 0xf27   : > { %12248 = vst [vmem:[#allocation23_spill] sm:$0xff] %v11868_v5  ;;  %8369 = vmatprep.mubr.msk.bf16.mxu0 %vm2340_vm2, %v8992_v43 }
 0xf6d   : > { %v6152_v47 = vpop.f32.mrb[104].mxu1 }
 0xf6e   : > { %v6154_v62 = vpop.f32.mrb[105].mxu1 }
 0xf6f   : > { %v6155_v55 = vpop.f32.mrb[106].mxu1 }
 0xf70   : > { %v6157_v23 = vpop.f32.mrb[107].mxu1 }
 0xf75   : > { %v6160_v31 = vpop.f32.mrb[108].mxu1 }
 0xf76   : > { %v6162_v53 = vpop.f32.mrb[109].mxu1 }
 0xf77   : > { %v6163_v20 = vpop.f32.mrb[110].mxu1 }
 0xf78   : > { %v6165_v36 = vpop.f32.mrb[111].mxu1 }
 0xf7d   : > { %v11890_v19 = vpop.f32.mrb[112].mxu1 }
 0xf7e   : > { %v6170_v10 = vpop.f32.mrb[113].mxu1 }
 0xf7f   : > { %v11892_v52 = vpop.f32.mrb[114].mxu1 }
 0xf80   : > { %v6173_v7 = vpop.f32.mrb[115].mxu1 }
 0xf85   : > { %v11894_v56 = vpop.f32.mrb[116].mxu1 }
 0xf86   : > { %v6178_v6 = vpop.f32.mrb[117].mxu1 }
 0xf87   : > { %v11896_v44 = vpop.f32.mrb[118].mxu1 }
 0xf88   : > { %v6181_v17 = vpop.f32.mrb[119].mxu1 }
 0xf8d   : > { %v6184_v32 = vpop.f32.mrb[120].mxu1 }
 0xf8e   : > { %v8525_v43 = vadd.f32 %v6184_v32, %v11752_v8  ;;  %v6186_v62 = vpop.f32.mrb[121].mxu1  ;;  %v8517_v8 = vadd.f32 %v6152_v47, %v11801_v9  ;;  %v8519_v9 = vadd.f32 %v6160_v31, %v11812_v26 }
 0xf8f   : > { %v6187_v23 = vpop.f32.mrb[122].mxu1 }
 0xf90   : > { %v7832_v53 = vmul.f32 -1.442695, %v8525_v43  ;;  %v8526_v36 = vadd.f32 %v6187_v23, %v11707_v54  ;;  %v6189_v5 = vpop.f32.mrb[123].mxu1  ;;  %v8518_v54 = vadd.f32 %v6155_v55, %v11760_v39  ;;  %v8520_v55 = vadd.f32 %v6163_v20, %v11771_v13 }
 0xf91   : > { %v8521_v20 = vadd.f32 %v11890_v19, %v11822_v37 }
 0xf92   : > { %9174 = vpow2.f32 %v7832_v53  ;;  %v7833_v10 = vmul.f32 -1.442695, %v8526_v36 }
 0xf94   : > { %9176 = vpow2.f32 %v7833_v10 }
 0xf95   : > { %v6192_v57 = vpop.f32.mrb[124].mxu1 }
 0xf96   : > { %v8527_v7 = vadd.f32 %v6192_v57, %v11766_v34  ;;  %v6194_v59 = vpop.f32.mrb[125].mxu1 }
 0xf97   : > { %v6195_v6 = vpop.f32.mrb[126].mxu1 }
 0xf98   : > { %v7834_v4 = vmul.f32 -1.442695, %v8527_v7  ;;  %v8528_v17 = vadd.f32 %v6195_v6, %v11720_v60  ;;  %v6197_v33 = vpop.f32.mrb[127].mxu1 }
 0xf9a   : > { %9178 = vpow2.f32 %v7834_v4  ;;  %v7835_v32 = vmul.f32 -1.442695, %v8528_v17 }
 0xf9c   : > { %v9175_v43 = vpop.eup %9174  ;;  %9180 = vpow2.f32 %v7835_v32 }
 0xf9d   : > { %v6247_v5 = vadd.f32 1.0, %v9175_v43  ;;  %v6200_v62 = vpop.f32.mrb[128].mxu1  ;;  %9182 = vtanh.f32 %v8517_v8 }
 0xf9e   : > { %v9177_v23 = vpop.eup %9176  ;;  %v8529_v57 = vadd.f32 %v6200_v62, %v11782_v12  ;;  %v6202_v59 = vpop.f32.mrb[129].mxu1 }
 0xf9f   : > { %9184 = vrcp.f32 %v6247_v5  ;;  %v6248_v34 = vadd.f32 1.0, %v9177_v23  ;;  %v6203_v53 = vpop.f32.mrb[130].mxu1  ;;  %v8522_v23 = vadd.f32 %v11892_v52, %v11785_v63 }
 0xfa0   : > { %9186 = vtanh.f32 %v8518_v54  ;;  %v7836_v33 = vmul.f32 -1.442695, %v8529_v57  ;;  %v8530_v60 = vadd.f32 %v6203_v53, %v11735_v48  ;;  %v6205_v4 = vpop.f32.mrb[131].mxu1 }
 0xfa1   : > { %9188 = vrcp.f32 %v6248_v34 }
 0xfa2   : > { %9190 = vpow2.f32 %v7836_v33  ;;  %v7837_v39 = vmul.f32 -1.442695, %v8530_v60  ;;  %v8523_v60 = vadd.f32 %v11894_v56, %v11830_v28 }
 0xfa4   : > { %v9179_v47 = vpop.eup %9178  ;;  %9192 = vpow2.f32 %v7837_v39 }
 0xfa5   : > { %v6249_v36 = vadd.f32 1.0, %v9179_v47  ;;  %v6208_v12 = vpop.f32.mrb[132].mxu1  ;;  %9194 = vtanh.f32 %v8519_v9  ;;  %v8524_v9 = vadd.f32 %v11896_v44, %v11798_v1 }
 0xfa6   : > { %v9181_v10 = vpop.eup %9180  ;;  %v8531_v7 = vadd.f32 %v6208_v12, %v11796_v22  ;;  %v6210_v6 = vpop.f32.mrb[133].mxu1 }
 0xfa7   : > { %9196 = vrcp.f32 %v6249_v36  ;;  %v6250_v17 = vadd.f32 1.0, %v9181_v10  ;;  %v6211_v48 = vpop.f32.mrb[134].mxu1  ;;  %v9183_v8 = vpop.eup %9182 }
 0xfa8   : > { %9198 = vtanh.f32 %v8520_v55  ;;  %v7838_v32 = vmul.f32 -1.442695, %v8531_v7  ;;  %v8532_v26 = vadd.f32 %v6211_v48, %v11746_v35  ;;  %v6213_v31 = vpop.f32.mrb[135].mxu1 }
 0xfa9   : > { %v9185_v43 = vpop.eup %9184  ;;  %9200 = vrcp.f32 %v6250_v17 }
 0xfaa   : > { %v9187_v13 = vpop.eup %9186  ;;  %9202 = vpow2.f32 %v7838_v32  ;;  %v7839_v54 = vmul.f32 -1.442695, %v8532_v26  ;;  %v6271_v5 = vmul.f32 %v9185_v43, %v9183_v8 }
 0xfab   : > { %v9189_v22 = vpop.eup %9188 }
 0xfac   : > { %v9191_v62 = vpop.eup %9190  ;;  %9204 = vpow2.f32 %v7839_v54  ;;  %v6272_v57 = vmul.f32 %v9189_v22, %v9187_v13  ;;  %v8993_v13 = vld [vmem:[%s12109_s12 + $0xc8] sm:$0xff]   ;;  %v8995_v54 = vld [vmem:[%s12109_s12 + $0xd8] sm:$0xff]  }
 0xfad   : > { %v6251_v59 = vadd.f32 1.0, %v9191_v62  ;;  %9206 = vtanh.f32 %v8521_v20  ;;  %v8994_v20 = vld [vmem:[%s12109_s12 + $0xd0] sm:$0xff]   ;;  %v8997_v22 = vld [vmem:[%s12109_s12 + $0xe8] sm:$0xff]  }
 0xfae   : > { %v9193_v34 = vpop.eup %9192  ;;  %v6296_v35 = vpack.c.bf16 %v6272_v57, %v6271_v5  ;;  %v8996_v5 = vld [vmem:[%s12109_s12 + $0xe0] sm:$0xff]   ;;  %v8998_v62 = vld [vmem:[%s12109_s12 + $0xf0] sm:$0xff]  }
 0xfaf   : > { %9208 = vrcp.f32 %v6251_v59  ;;  %v6252_v53 = vadd.f32 1.0, %v9193_v34  ;;  %v9195_v33 = vpop.eup %9194  ;;  %v9000_v57 = vld [vmem:[%s12111_s14 + $0x50] sm:$0xff]  }
 0xfb0   : > { %9210 = vtanh.f32 %v8522_v23  ;;  %8361 = vmatprep.subr.bf16.mxu0 %v6296_v35  ;;  %v8999_v23 = vld [vmem:[%s12109_s12 + $0xf8] sm:$0xff]  }
 0xfb1   : > { %v9197_v37 = vpop.eup %9196  ;;  %9212 = vrcp.f32 %v6252_v53  ;;  %8362 = vmatpush3.bf16.msra.mxu0 %v6296_v35 }
 0xfb2   : > { %v9199_v19 = vpop.eup %9198  ;;  %v6273_v4 = vmul.f32 %v9197_v37, %v9195_v33  ;;  %9214 = vtanh.f32 %v8523_v60 }
 0xfb3   : > { %v9201_v63 = vpop.eup %9200 }
 0xfb4   : > { %v9203_v52 = vpop.eup %9202  ;;  %v6274_v39 = vmul.f32 %v9201_v63, %v9199_v19  ;;  %v8535_v63 = vadd.f32 %v11838_v2, %v11834_v50 }
 0xfb5   : > { %v6253_v47 = vadd.f32 1.0, %v9203_v52 }
 0xfb6   : > { %v9205_v55 = vpop.eup %9204  ;;  %v6297_v36 = vpack.c.bf16 %v6274_v39, %v6273_v4  ;;  %v8533_v4 = vadd.f32 %v11846_v14, %v11842_v11 }
 0xfb7   : > { %9216 = vrcp.f32 %v6253_v47  ;;  %v6254_v12 = vadd.f32 1.0, %v9205_v55  ;;  %v9207_v10 = vpop.eup %9206  ;;  %v8539_v55 = vadd.f32 %v11814_v30, %v11809_v58  ;;  %v8543_v58 = vadd.f32 %v11854_v21, %v11850_v51 }
 0xfb8   : > { %9218 = vtanh.f32 %v8524_v9  ;;  %8363 = vmatprep.subr.bf16.mxu0 %v6297_v36  ;;  %v8537_v9 = vadd.f32 %v11832_v49, %v11825_v29  ;;  %v8541_v29 = vadd.f32 %v11862_v3, %v11858_v18 }
 0xfb9   : > { %v9209_v7 = vpop.eup %9208  ;;  %9220 = vrcp.f32 %v6254_v12  ;;  %8364 = vmatpush3.bf16.msra.mxu0 %v6297_v36 }
 0xfba   : > { %v9211_v28 = vpop.eup %9210  ;;  %v6275_v56 = vmul.f32 %v9209_v7, %v9207_v10 }
 0xfbb   : > { %v9213_v6 = vpop.eup %9212 }
 0xfbc   : > { %v6276_v17 = vmul.f32 %v9213_v6, %v9211_v28  ;;  %v9215_v8 = vpop.eup %9214  ;;  %v8545_v6 = vadd.f32 %v11848_v61, %v11844_v27 }
 0xfbe   : > { %v6298_v48 = vpack.c.bf16 %v6276_v17, %v6275_v56 }
 0xfc0   : > { %8365 = vmatprep.subr.bf16.mxu0 %v6298_v48 }
 0xfc1   : > { %v9217_v1 = vpop.eup %9216  ;;  %8366 = vmatpush3.bf16.msra.mxu0 %v6298_v48 }
 0xfc2   : > { %v9219_v44 = vpop.eup %9218  ;;  %v6277_v32 = vmul.f32 %v9217_v1, %v9215_v8  ;;  %v8547_v8 = vadd.f32 %v11840_v15, %v11836_v40  ;;  %v9001_v40 = vld [vmem:[%s12111_s14 + $0x58] sm:$0xff]   ;;  %v9002_v15 = vld [vmem:[%s12111_s14 + $0x60] sm:$0xff]  }
 0xfc3   : > { %v9221_v26 = vpop.eup %9220 }
 0xfc4   : > { %v6278_v31 = vmul.f32 %v9221_v26, %v9219_v44 }
 0xfc6   : > { %v6299_v43 = vpack.c.bf16 %v6278_v31, %v6277_v32 }
 0xfc8   : > { %8367 = vmatprep.subr.bf16.mxu0 %v6299_v43 }
 0xfc9   : > { %8368 = vmatpush3.bf16.msra.mxu0 %v6299_v43  ;;  %v9004_v43 = vld [vmem:[%s12111_s14 + $0x70] sm:$0xff]  }
 0xfcc   : > { %8370 = vmatmul.mubr.msk.bf16.vlgmr.msra.gmra.mrb[148].mxu0 %vm2340_vm2, %v8993_v13  ;;  %v9005_v13 = vld [vmem:[%s12111_s14 + $0x78] sm:$0xff]  }
 0xfcd   : > { %8373 = vmatprep.mubr.msk.bf16.mxu0 %vm2340_vm2, %v8994_v20  ;;  %v9006_v20 = vld [vmem:[%s12111_s14 + $0x80] sm:$0xff]  }
 0xfd4   : > { %8374 = vmatmul.mubr.msk.bf16.gmra.mrb[152].mxu0 %vm2340_vm2, %v8995_v54  ;;  %v9007_v54 = vld [vmem:[%s12111_s14 + $0x88] sm:$0xff]  }
 0xfd5   : > { %8377 = vmatprep.mubr.msk.bf16.mxu0 %vm2340_vm2, %v8996_v5  ;;  %v9008_v5 = vld [vmem:[%s12111_s14 + $0x90] sm:$0xff]  }
 0xfdc   : > { %8378 = vmatmul.mubr.msk.bf16.gmra.mrb[140].mxu0 %vm2340_vm2, %v8997_v22  ;;  %v9009_v22 = vld [vmem:[%s12111_s14 + $0x98] sm:$0xff]  }
 0xfdd   : > { %8381 = vmatprep.mubr.msk.bf16.mxu0 %vm2340_vm2, %v8998_v62 }
 0xfe4   : > { %8382 = vmatmul.mubr.msk.bf16.gmra.mrb[144].mxu0 %vm2340_vm2, %v8999_v23 }
 0xfe5   : > { %8393 = vmatprep.mubr.msk.bf16.mxu0 %vm2340_vm2, %v9000_v57 }
0x109f   : > { %v8371_v59 = vpop.f32.mrb[148].mxu0 }
0x10a0   : > { %v6487_v34 = vpop.f32.mrb[149].mxu0  ;;  %v6657_v59 = vpop.permute.xlu0 %6656 }
0x10a1   : > { %v8372_v35 = vpop.f32.mrb[150].mxu0 }
0x10a2   : > { %v6489_v53 = vpop.f32.mrb[151].mxu0 }
0x10a4   : > { %v6667_v53 = vpop.permute.xlu0 %6666 }
0x10a7   : > { %v8375_v33 = vpop.f32.mrb[152].mxu0 }
0x10a8   : > { %v6499_v37 = vpop.f32.mrb[153].mxu0 }
0x10a9   : > { %v8376_v19 = vpop.f32.mrb[154].mxu0 }
0x10aa   : > { %v6501_v60 = vpop.f32.mrb[155].mxu0 }
0x10ab   : > { %v6677_v60 = vpop.permute.xlu0 %6676 }
0x10af   : > { %v8379_v52 = vpop.f32.mrb[140].mxu0 }
0x10b0   : > { %v8534_v39 = vadd.f32 %v8533_v4, %v8379_v52  ;;  %v6511_v47 = vpop.f32.mrb[141].mxu0 }
0x10b1   : > { %v8536_v36 = vadd.f32 %v8535_v63, %v6511_v47  ;;  %v8380_v12 = vpop.f32.mrb[142].mxu0  ;;  %v12025_v47 = vld [vmem:[%s9535_s27] ss:$0 sm:$0xff] }
0x10b2   : > { %v8538_v10 = vadd.f32 %v8537_v9, %v8380_v12  ;;  %v6514_v7 = vpop.f32.mrb[143].mxu0  ;;  %v6552_v56 = vmul.f32 %v11535_v42, %v8534_v39 }
0x10b3   : > { %v8540_v28 = vadd.f32 %v8539_v55, %v6514_v7  ;;  %v6550_v50 = vmul.f32 %v11535_v42, %v8536_v36 }
0x10b4   : > { %v6553_v11 = vmul.f32 %v11535_v42, %v8538_v10  ;;  %v6687_v10 = vpop.permute.xlu0 %6686 }
0x10b5   : > { %v6551_v2 = vmul.f32 %v11535_v42, %v8540_v28 }
0x10b6   : > { %v6580_v49 = vpack.c.bf16 %v6553_v11, %v6552_v56  ;;  %v6607_v56 = vpop.permute.xlu1 %6606 }
0x10b7   : > { %v8383_v30 = vpop.f32.mrb[144].mxu0  ;;  %v6579_v14 = vpack.c.bf16 %v6551_v2, %v6550_v50 }
0x10b8   : > { %v8542_v17 = vadd.f32 %v8541_v29, %v8383_v30  ;;  %v6527_v48 = vpop.f32.mrb[145].mxu0 }
0x10b9   : > { %v8544_v1 = vadd.f32 %v8543_v58, %v6527_v48  ;;  %v8384_v44 = vpop.f32.mrb[146].mxu0  ;;  %8385 = vmatprep.subr.bf16.mxu0 %v6579_v14  ;;  %v6697_v58 = vpop.permute.xlu0 %6696 }
0x10ba   : > { %v8546_v32 = vadd.f32 %v8545_v6, %v8384_v44  ;;  %v6530_v26 = vpop.f32.mrb[147].mxu0  ;;  %8386 = vmatpush3.bf16.msra.mxu0 %v6579_v14  ;;  %v6556_v51 = vmul.f32 %v11535_v42, %v8542_v17 }
0x10bb   : > { %v8548_v18 = vadd.f32 %v8547_v8, %v6530_v26  ;;  %8387 = vmatprep.subr.bf16.mxu0 %v6580_v49  ;;  %v6554_v3 = vmul.f32 %v11535_v42, %v8544_v1  ;;  %v6617_v1 = vpop.permute.xlu1 %6616 }
0x10bc   : > { %v6557_v21 = vmul.f32 %v11535_v42, %v8546_v32 }
0x10bd   : > { %v6555_v27 = vmul.f32 %v11535_v42, %v8548_v18  ;;  %v9003_v42 = vld [vmem:[%s12111_s14 + $0x68] sm:$0xff]  }
0x10be   : > { %8388 = vmatpush3.bf16.msra.mxu0 %v6580_v49  ;;  %v6582_v61 = vpack.c.bf16 %v6557_v21, %v6556_v51 }
0x10bf   : > { %v6581_v31 = vpack.c.bf16 %v6555_v27, %v6554_v3  ;;  %v6612_v27 = vpop.permute.xlu0 %6611 }
0x10c1   : > { %8389 = vmatprep.subr.bf16.mxu0 %v6581_v31 }
0x10c2   : > { %8390 = vmatpush3.bf16.msra.mxu0 %v6581_v31 }
0x10c3   : > { %8391 = vmatprep.subr.bf16.mxu0 %v6582_v61 }
0x10c6   : > { %8392 = vmatpush3.bf16.msra.mxu0 %v6582_v61 }
0x10c9   : > { %8394 = vmatmul.mubr.msk.bf16.vlgmr.msra.gmra.mrb[156].mxu0 %vm2340_vm2, %v9001_v40 }
0x10ca   : > { %8397 = vmatprep.mubr.msk.bf16.mxu0 %vm2340_vm2, %v9002_v15 }
0x10d1   : > { %8398 = vmatmul.mubr.msk.bf16.gmra.mrb[160].mxu0 %vm2340_vm2, %v9003_v42 }
0x10d2   : > { %8401 = vmatprep.mubr.msk.bf16.mxu0 %vm2340_vm2, %v9004_v43 }
0x10d9   : > { %8402 = vmatmul.mubr.msk.bf16.gmra.mrb[164].mxu0 %vm2340_vm2, %v9005_v13  ;;  %v6622_v13 = vpop.permute.xlu1 %6621 }
0x10da   : > { %8405 = vmatprep.mubr.msk.bf16.mxu0 %vm2340_vm2, %v9006_v20 }
0x10e1   : > { %8406 = vmatmul.mubr.msk.bf16.gmra.mrb[168].mxu0 %vm2340_vm2, %v9007_v54 }
0x10e2   : > { %8409 = vmatprep.mubr.msk.bf16.mxu0 %vm2340_vm2, %v9008_v5 }
0x10e9   : > { %8410 = vmatmul.mubr.msk.bf16.gmra.mrb[172].mxu0 %vm2340_vm2, %v9009_v22 }
0x119c   : > { %v12010_v62 = vpop.f32.mrb[156].mxu0 }
0x119d   : > { %v6818_v23 = vpop.f32.mrb[157].mxu0 }
0x119e   : > { %v12012_v57 = vpop.f32.mrb[158].mxu0  ;;  %v6819_v51 = vadd.f32 %v6818_v23, %v6607_v56 }
0x119f   : > { %v6821_v34 = vpop.f32.mrb[159].mxu0 }
0x11a0   : > { %v6822_v31 = vadd.f32 %v6821_v34, %v6612_v27 }
0x11a4   : > { %v12014_v35 = vpop.f32.mrb[160].mxu0 }
0x11a5   : > { %v12016_v33 = vpop.f32.mrb[161].mxu0 }
0x11a6   : > { %v12018_v37 = vpop.f32.mrb[162].mxu0 }
0x11a7   : > { %v12020_v19 = vpop.f32.mrb[163].mxu0 }
0x11ac   : > { %v8403_v4 = vpop.f32.mrb[164].mxu0 }
0x11ad   : > { %v6859_v63 = vadd.f32 %v8403_v4, %v6657_v59  ;;  %v12022_v52 = vpop.f32.mrb[165].mxu0  ;;  %v6627_v4 = vpop.permute.xlu0 %6626 }
0x11ae   : > { %v8404_v9 = vpop.f32.mrb[166].mxu0 }
0x11af   : > { %v6897_v39 = vmul.f32 1.442695, %v6859_v63  ;;  %v6947_v55 = vmul.f32 %v12025_v47, %v6859_v63  ;;  %v6862_v36 = vadd.f32 %v8404_v9, %v11852_v45  ;;  %v12029_v12 = vpop.f32.mrb[167].mxu0 }
0x11b1   : > { %9222 = vpow2.f32 %v6897_v39  ;;  %v6899_v7 = vmul.f32 1.442695, %v6862_v36  ;;  %v6948_v28 = vmul.f32 %v12025_v47, %v6862_v36  ;;  %6957 = vadd.xlane.f32.xlu1 %v6947_v55  ;;  %v6835_v39 = vadd.f32 %v12016_v33, %v6627_v4 }
0x11b2   : > { %v6830_v33 = vadd.f32 %v12012_v57, %v6622_v13 }
0x11b3   : > { %9224 = vpow2.f32 %v6899_v7  ;;  %6959 = vadd.xlane.f32.xlu0 %v6948_v28  ;;  %v12249_v7 = vld [vmem:[#allocation13_spill] sm:$0xff] }
0x11b4   : > { %v8407_v11 = vpop.f32.mrb[168].mxu0 }
0x11b5   : > { %v6875_v50 = vadd.f32 %v8407_v11, %v6677_v60  ;;  %v6866_v2 = vpop.f32.mrb[169].mxu0 }
0x11b6   : > { %v6867_v29 = vadd.f32 %v6866_v2, %v6667_v53  ;;  %v8408_v49 = vpop.f32.mrb[170].mxu0  ;;  %v12250_v2 = vld [vmem:[#allocation17_spill] sm:$0xff] }
0x11b7   : > { %v6905_v30 = vmul.f32 1.442695, %v6875_v50  ;;  %v6951_v45 = vmul.f32 %v12025_v47, %v6875_v50  ;;  %v6878_v14 = vadd.f32 %v8408_v49, %v11860_v16  ;;  %v6869_v6 = vpop.f32.mrb[171].mxu0 }
0x11b8   : > { %v6901_v17 = vmul.f32 1.442695, %v6867_v29  ;;  %v6949_v48 = vmul.f32 %v12025_v47, %v6867_v29  ;;  %v6870_v8 = vadd.f32 %v6869_v6, %v11856_v41 }
0x11b9   : > { %9226 = vpow2.f32 %v6905_v30  ;;  %v6907_v44 = vmul.f32 1.442695, %v6878_v14  ;;  %6965 = vadd.xlane.f32.xlu0 %v6951_v45  ;;  %v6952_v18 = vmul.f32 %v12025_v47, %v6878_v14  ;;  %v7917_v14 = vld [vmem:[%s12112_s15 + $0xe8] sm:$0xff] }
0x11ba   : > { %9228 = vpow2.f32 %v6901_v17  ;;  %v6903_v32 = vmul.f32 1.442695, %v6870_v8  ;;  %6961 = vadd.xlane.f32.xlu1 %v6949_v48  ;;  %v6950_v20 = vmul.f32 %v12025_v47, %v6870_v8 }
0x11bb   : > { %v9223_v26 = vpop.eup %9222  ;;  %9230 = vpow2.f32 %v6907_v44  ;;  %v6637_v44 = vpop.permute.xlu0 %6636 }
0x11bc   : > { %v6917_v16 = vmul.f32 %v9223_v26, %v11173_v25  ;;  %9232 = vpow2.f32 %v6903_v32  ;;  %v8411_v21 = vpop.f32.mrb[172].mxu0  ;;  %v12252_v32 = vld [vmem:[#allocation16_spill] sm:$0xff] }
0x11bd   : > { %v9225_v3 = vpop.eup %9224  ;;  %v6891_v61 = vadd.f32 %v8411_v21, %v6697_v58  ;;  %v6882_v41 = vpop.f32.mrb[173].mxu0  ;;  %6967 = vadd.xlane.f32.xlu0 %v6952_v18 }
0x11be   : > { %v6927_v40 = vadd.f32 %v6917_v16, %v6819_v51  ;;  %v6918_v15 = vmul.f32 %v9225_v3, %v11176_v0  ;;  %v6883_v42 = vadd.f32 %v6882_v41, %v6687_v10  ;;  %v8412_v43 = vpop.f32.mrb[174].mxu0  ;;  %v6632_v10 = vpop.permute.xlu1 %6631  ;;  %v6843_v51 = vadd.f32 %v12014_v35, %v6637_v44  ;;  %v12253_v16 = vld [vmem:[#allocation14_spill] sm:$0xff]  ;;  %v12254_v3 = vld [vmem:[#allocation21_spill] sm:$0xff] }
0x11bf   : > { %v6913_v54 = vmul.f32 1.442695, %v6891_v61  ;;  %v6894_v25 = vadd.f32 %v8412_v43, %v11866_v38  ;;  %v6885_v5 = vpop.f32.mrb[175].mxu0  ;;  %v6955_v63 = vmul.f32 %v12025_v47, %v6891_v61  ;;  %v6838_v11 = vadd.f32 %v12020_v19, %v6632_v10  ;;  %v12256_v10 = vld [vmem:[#allocation23_spill] sm:$0xff] }
0x11c0   : > { %v6937_v22 = vmul.f32 %v12025_v47, %v6927_v40  ;;  %v6928_v23 = vadd.f32 %v6918_v15, %v6822_v31  ;;  %v6909_v59 = vmul.f32 1.442695, %v6883_v42  ;;  %v6886_v53 = vadd.f32 %v6885_v5, %v11864_v46 }
0x11c1   : > { %9234 = vpow2.f32 %v6913_v54  ;;  %v6915_v34 = vmul.f32 1.442695, %v6894_v25  ;;  %6963 = vadd.xlane.f32.xlu0 %v6950_v20  ;;  %v6827_v46 = vadd.f32 %v12010_v62, %v6617_v1  ;;  %v6953_v30 = vmul.f32 %v12025_v47, %v6883_v42  ;;  %v12255_v42 = vld [vmem:[#allocation2_spill] sm:$0xff] }
0x11c2   : > { %7003 = vst [vmem:[%s11163_s18 + $0x50] sm:$0xff] %v6937_v22  ;;  %v6938_v0 = vmul.f32 %v12025_v47, %v6928_v23  ;;  %9236 = vpow2.f32 %v6909_v59  ;;  %v6911_v38 = vmul.f32 1.442695, %v6886_v53  ;;  %v6956_v8 = vmul.f32 %v12025_v47, %v6894_v25  ;;  %v6642_v41 = vpop.permute.xlu1 %6641  ;;  %v7916_v54 = vld [vmem:[%s12112_s15 + $0xe0] sm:$0xff] }
0x11c3   : > { %v9227_v60 = vpop.eup %9226  ;;  %9238 = vpow2.f32 %v6915_v34  ;;  %v6954_v40 = vmul.f32 %v12025_v47, %v6886_v53  ;;  %v6846_v15 = vadd.f32 %v12018_v37, %v6642_v41 }
0x11c4   : > { %v9229_v9 = vpop.eup %9228  ;;  %7004 = vst [vmem:[%s11163_s18 + $0x58] sm:$0xff] %v6938_v0  ;;  %v6921_v55 = vmul.f32 %v9227_v60, %v11185_v24  ;;  %9240 = vpow2.f32 %v6911_v38  ;;  %v12251_v24 = vld [vmem:[#allocation15_spill] sm:$0xff] }
0x11c5   : > { %v9231_v36 = vpop.eup %9230  ;;  %v6919_v28 = vmul.f32 %v9229_v9, %v12249_v7  ;;  %6973 = vadd.xlane.f32.xlu0 %v6955_v63 }
0x11c6   : > { %v9233_v56 = vpop.eup %9232  ;;  %v6931_v50 = vadd.f32 %v6921_v55, %v6835_v39  ;;  %v6922_v29 = vmul.f32 %v9231_v36, %v12250_v2 }
0x11c7   : > { %v6929_v49 = vadd.f32 %v6919_v28, %v6827_v46  ;;  %v6920_v58 = vmul.f32 %v9233_v56, %v12251_v24  ;;  %v3846_v46 = vrot.slane %v12256_v10, 4 }
0x11c8   : > { %v6941_v62 = vmul.f32 %v12025_v47, %v6931_v50  ;;  %v6932_v45 = vadd.f32 %v6922_v29, %v6838_v11 }
0x11c9   : > { %v6939_v19 = vmul.f32 %v12025_v47, %v6929_v49  ;;  %v6930_v6 = vadd.f32 %v6920_v58, %v6830_v33  ;;  %6969 = vadd.xlane.f32.xlu0 %v6953_v30  ;;  %v3847_v11 = vadd.f32 %v3846_v46, %v12256_v10 }
0x11ca   : > { %7007 = vst [vmem:[%s11163_s18 + $0x70] sm:$0xff] %v6941_v62  ;;  %v6942_v57 = vmul.f32 %v12025_v47, %v6932_v45 }
0x11cb   : > { %v9235_v17 = vpop.eup %9234  ;;  %7005 = vst [vmem:[%s11163_s18 + $0x60] sm:$0xff] %v6939_v19  ;;  %v6940_v48 = vmul.f32 %v12025_v47, %v6930_v6  ;;  %6651 = vperm.xlu1 %8707, %v7917_v14   ;;  %v3848_v2 = vrot.slane %v3847_v11, 2 }
0x11cc   : > { %v9237_v1 = vpop.eup %9236  ;;  %7008 = vst [vmem:[%s11163_s18 + $0x78] sm:$0xff] %v6942_v57  ;;  %v6925_v26 = vmul.f32 %v9235_v17, %v12252_v32 }
0x11cd   : > { %v9239_v18 = vpop.eup %9238  ;;  %7006 = vst [vmem:[%s11163_s18 + $0x68] sm:$0xff] %v6940_v48  ;;  %v6923_v21 = vmul.f32 %v9237_v1, %v12253_v16  ;;  %6975 = vadd.xlane.f32.xlu0 %v6956_v8  ;;  %v3849_v24 = vadd.f32 %v3848_v2, %v3847_v11 }
0x11ce   : > { %v6926_v27 = vmul.f32 %v9239_v18, %v12254_v3  ;;  %v9241_v61 = vpop.eup %9240 }
0x11cf   : > { %v6933_v31 = vadd.f32 %v6923_v21, %v6843_v51  ;;  %v6924_v43 = vmul.f32 %v9241_v61, %v12255_v42  ;;  %v3850_v14 = vrot.slane %v3849_v24, 1 }
0x11d1   : > { %v6943_v13 = vmul.f32 %v12025_v47, %v6933_v31  ;;  %6971 = vadd.xlane.f32.xlu0 %v6954_v40  ;;  %v6934_v35 = vadd.f32 %v6924_v43, %v6846_v15  ;;  %v3851_v17 = vadd.f32 %v3850_v14, %v3849_v24 }
0x11d3   : > { %7009 = vst [vmem:[%s11163_s18 + $0x80] sm:$0xff] %v6943_v13  ;;  %v6944_v20 = vmul.f32 %v12025_v47, %v6934_v35 }
0x11d5   : > { %7010 = vst [vmem:[%s11163_s18 + $0x88] sm:$0xff] %v6944_v20 }
0x11e7   : > { %6646 = vperm.xlu0 %8706, %v7916_v54  }
0x123e   : > { %v6958_v5 = vpop.xlane.xlu1 %6957 }
0x1240   : > { %v6960_v25 = vpop.xlane.xlu0 %6959 }
0x1241   : > { %v6977_v60 = vadd.f32 %v6960_v25, %v6958_v5 }
0x1246   : > { %v6966_v22 = vpop.xlane.xlu0 %6965 }
0x1247   : > { %v6962_v37 = vpop.xlane.xlu1 %6961 }
0x1248   : > { %v6978_v63 = vadd.f32 %v6977_v60, %v6962_v37 }
0x124a   : > { %v6968_v23 = vpop.xlane.xlu0 %6967 }
0x124b   : > { %v6652_v59 = vpop.permute.xlu1 %6651 }
0x124c   : > { %v6854_v34 = vadd.f32 %v12029_v12, %v6652_v59 }
0x124e   : > { %v6936_v53 = vadd.f32 %v6926_v27, %v6854_v34  ;;  %v6964_v0 = vpop.xlane.xlu0 %6963 }
0x124f   : > { %v6979_v9 = vadd.f32 %v6978_v63, %v6964_v0 }
0x1250   : > { %v6946_v4 = vmul.f32 %v12025_v47, %v6936_v53 }
0x1251   : > { %v6980_v55 = vadd.f32 %v6979_v9, %v6966_v22 }
0x1252   : > { %7012 = vst [vmem:[%s11163_s18 + $0x98] sm:$0xff] %v6946_v4  ;;  %v6974_v38 = vpop.xlane.xlu0 %6973 }
0x1253   : > { %v6981_v7 = vadd.f32 %v6980_v55, %v6968_v23 }
0x1256   : > { %v6970_v39 = vpop.xlane.xlu0 %6969 }
0x1257   : > { %v6982_v28 = vadd.f32 %v6981_v7, %v6970_v39 }
0x125a   : > { %v6976_v36 = vpop.xlane.xlu0 %6975 }
0x125e   : > { %v6972_v56 = vpop.xlane.xlu0 %6971 }
0x125f   : > { %v6983_v12 = vadd.f32 %v6982_v28, %v6972_v56 }
0x1261   : > { %v6984_v50 = vadd.f32 %v6983_v12, %v6974_v38 }
0x1263   : > { %v6985_v29 = vadd.f32 %v6984_v50, %v6976_v36 }
0x1265   : > { %v6986_v33 = vrot.slane %v6985_v29, 4 }
0x1266   : > { %v6647_v49 = vpop.permute.xlu0 %6646 }
0x1267   : > { %v6987_v58 = vadd.f32 %v6986_v33, %v6985_v29  ;;  %v6851_v30 = vadd.f32 %v12022_v52, %v6647_v49 }
0x1269   : > { %v6988_v62 = vrot.slane %v6987_v58, 2  ;;  %v6935_v45 = vadd.f32 %v6925_v26, %v6851_v30 }
0x126b   : > { %v6989_v19 = vadd.f32 %v6988_v62, %v6987_v58  ;;  %v6945_v6 = vmul.f32 %v12025_v47, %v6935_v45 }
0x126d   : > { %v6990_v57 = vrot.slane %v6989_v19, 1  ;;  %7011 = vst [vmem:[%s11163_s18 + $0x90] sm:$0xff] %v6945_v6 }
0x126f   : > { %v6991_v48 = vadd.f32 %v6990_v57, %v6989_v19 }
0x1271   : > { %v6992_v8 = vadd.f32 %v6991_v48, %v3851_v17 }
0x1273   : > { %7013 = vst [vmem:[%s611_s2] sm:$0x1] %v6992_v8 }
0x1274 PF: > { %s28_s24 = sadd.s32 1, %s9262_s24  }
0x1275   : > { %p25_p4 = scmp.ge.s32.totalorder %s28_s24, 4  }
0x1277   :  { %27 = sbr.rel (!%p25_p4) target bundleno = 5 (0x5), region = 154 }

</bundles_post_ra>
